<compile_context>
chip_gen: v6e
topology: v6e:2x2x1
jax: 0.10.0
libtpu: 0.0.40
codegen_flags: <defaults>
</compile_context>

<pallas_src>
import math

import numpy as np
import jax
import jax.numpy as jnp
from jax.experimental import pallas as pl
from jax.experimental.pallas import tpu as pltpu

LN_EPS = 1e-5    # torch.nn.LayerNorm default
MASK_NEG = 1e30  # finite "minus infinity" for masked scores


# ----------------------------------------------------------------------------
# Fused decoder-layer kernel factory
# ----------------------------------------------------------------------------
def _make_decoder_kernel(n_heads, k_size, v_size, has_out_mask):
    f32, bf16 = jnp.float32, jnp.bfloat16

    def layer_norm(x, g, b):
        mu = jnp.mean(x, axis=-1, keepdims=True)
        var = jnp.mean((x - mu) ** 2, axis=-1, keepdims=True)
        return (x - mu) * jax.lax.rsqrt(var + LN_EPS) * g + b

    def kernel(*refs):
        inp_ref, cond_ref, sbias_ref = refs[0], refs[1], refs[2]
        i = 3
        if has_out_mask:
            obias_ref = refs[i]
            i += 1
        else:
            obias_ref = None
        params = refs[i:i + 26]
        sa, ca, pw = params[0:10], params[10:20], params[20:26]
        o_ref = refs[-1]

        Bt, Ld, H = inp_ref.shape
        Le = cond_ref.shape[1]

        # Flatten the batch block into the matmul M dimension (review item: small Ld).
        x = inp_ref[...].reshape(Bt * Ld, H)          # f32
        cond = cond_ref[...].reshape(Bt * Le, H)      # f32

        def mha(xq, xkv, Lq, Lk, bias, p):
            wq, bq, wk, bk, wv, bv, wo, bo, g, beta = p
            # Dense fused projections: one MXU matmul each, N = nh*ks / nh*vs.
            q = (jnp.dot(xq.astype(bf16), wq[...],
                         preferred_element_type=f32) + bq[...]).astype(bf16)
            k = (jnp.dot(xkv.astype(bf16), wk[...],
                         preferred_element_type=f32) + bk[...]).astype(bf16)
            v = (jnp.dot(xkv.astype(bf16), wv[...],
                         preferred_element_type=f32) + bv[...]).astype(bf16)

            ctx_rows = []
            for b in range(Bt):                       # static, unrolled
                qb = q[b * Lq:(b + 1) * Lq]           # [Lq, nh*ks]
                kb = k[b * Lk:(b + 1) * Lk]
                vb = v[b * Lk:(b + 1) * Lk]
                bias_b = None if bias is None else bias[b]   # [Lq, Lk] bf16 additive bias
                head_ctx = []
                for h in range(n_heads):              # static, unrolled
                    qh = qb[:, h * k_size:(h + 1) * k_size]
                    kh = kb[:, h * k_size:(h + 1) * k_size]
                    vh = vb[:, h * v_size:(h + 1) * v_size]
                    s = jnp.einsum("qd,kd->qk", qh, kh,
                                   preferred_element_type=f32)      # [Lq, Lk] f32
                    if bias_b is not None:
                        s = s + bias_b                # additive bias, no multiply
                    s = s - jnp.max(s, axis=-1, keepdims=True)
                    prob = jnp.exp(s)
                    prob = prob * pl.reciprocal(
                        jnp.sum(prob, axis=-1, keepdims=True), approx=True)
                    head_ctx.append(jnp.einsum("qk,kd->qd", prob.astype(bf16), vh,
                                               preferred_element_type=f32))
                row = head_ctx[0] if n_heads == 1 else jnp.concatenate(head_ctx, axis=-1)
                ctx_rows.append(row)                  # [Lq, nh*vs]
            ctx = ctx_rows[0] if Bt == 1 else jnp.concatenate(ctx_rows, axis=0)

            # Output projection: one dense matmul contracting the full nh*vs dimension
            # (head reduction folded into the MXU contraction).
            out = jnp.dot(ctx.astype(bf16), wo[...],
                          preferred_element_type=f32) + bo[...]
            return layer_norm(out + xq, g[...], beta[...])

        def ffn(xin, p):
            w1, b1, w2, b2, g, beta = p
            hdn = jnp.maximum(
                jnp.dot(xin.astype(bf16), w1[...], preferred_element_type=f32) + b1[...],
                0.0)
            y = jnp.dot(hdn.astype(bf16), w2[...], preferred_element_type=f32) + b2[...]
            return layer_norm(y + xin, g[...], beta[...])

        sbias = sbias_ref[...]                                    # [Bt, Ld, Ld] bf16
        obias = None if obias_ref is None else obias_ref[...]     # [Bt, Ld, Le] bf16

        r = mha(x, x, Ld, Ld, sbias, sa)          # masked self-attention + add&norm
        r = mha(r, cond, Ld, Le, obias, ca)       # cross-attention + add&norm
        r = ffn(r, pw)                            # position-wise FFN + add&norm

        o_ref[...] = r.reshape(Bt, Ld, H)         # unpadded, lane width = H

    return kernel


# ----------------------------------------------------------------------------
# Host-side parameter preparation (one time): fused [in, out] layouts, bf16
# weights, (1, D) f32 biases, 1/sqrt(k_size) folded into the query projection.
# ----------------------------------------------------------------------------
def prepare_mha_params(raw, n_heads, k_size, v_size):
    wq, bq, wk, bk, wv, bv, wo, bo, g, beta = raw
    scale = 1.0 / math.sqrt(k_size)
    f32, bf16 = jnp.float32, jnp.bfloat16
    return (
        (wq * scale).astype(bf16), (bq * scale).reshape(1, -1).astype(f32),
        wk.astype(bf16), bk.reshape(1, -1).astype(f32),
        wv.astype(bf16), bv.reshape(1, -1).astype(f32),
        wo.astype(bf16),                      # [nh*vs, H]
        bo.reshape(1, -1).astype(f32),
        g.reshape(1, -1).astype(f32), beta.reshape(1, -1).astype(f32),
    )


def prepare_pw_params(raw):
    w1, b1, w2, b2, g, beta = raw
    f32, bf16 = jnp.float32, jnp.bfloat16
    return (
        w1.astype(bf16), b1.reshape(1, -1).astype(f32),
        w2.astype(bf16), b2.reshape(1, -1).astype(f32),
        g.reshape(1, -1).astype(f32), beta.reshape(1, -1).astype(f32),
    )


def _mask_to_bias(mask):
    """Byte/float mask (1 => disallowed) -> additive bf16 bias (0 or -1e30)."""
    m = mask.astype(jnp.float32) > 0.5
    return jnp.where(m, jnp.float32(-MASK_NEG), jnp.float32(0.0)).astype(jnp.bfloat16)


def _pick_batch_block(batch, dec_len, target_rows=256):
    """Largest divisor Bt of batch with Bt*dec_len <= target_rows (M-dim flattening)."""
    if dec_len >= target_rows:
        return 1
    best = 1
    for cand in range(1, batch + 1):
        if batch % cand == 0 and cand * dec_len <= target_rows:
            best = cand
    return best


# ----------------------------------------------------------------------------
# DecoderLayer forward (single fused pallas_call)
# ----------------------------------------------------------------------------
def decoder_layer(inp, condition, self_mask, out_mask, prepared_params,
                  n_heads, k_size, v_size):
    B, Ld, H = inp.shape
    Le = condition.shape[1]
    has_out_mask = out_mask is not None

    Bt = _pick_batch_block(B, Ld)
    grid = (B // Bt,)

    inputs = [inp, condition, _mask_to_bias(self_mask)]
    data_specs = [
        pl.BlockSpec((Bt, Ld, H), lambda g: (g, 0, 0)),
        pl.BlockSpec((Bt, Le, H), lambda g: (g, 0, 0)),
        pl.BlockSpec((Bt, Ld, Ld), lambda g: (g, 0, 0)),
    ]
    if has_out_mask:
        inputs.append(_mask_to_bias(out_mask))
        data_specs.append(pl.BlockSpec((Bt, Ld, Le), lambda g: (g, 0, 0)))

    flat_params = (prepared_params["self_attn"]
                   + prepared_params["out_attn"]
                   + prepared_params["pw"])

    kernel = _make_decoder_kernel(n_heads, k_size, v_size, has_out_mask)

    # VMEM limit sized from the actual footprint, clamped to [32 MiB, 64 MiB].
    param_bytes = sum(int(np.prod(p.shape)) * p.dtype.itemsize for p in flat_params)
    act_bytes = 4 * Bt * (2 * Ld * H + Le * H + 4 * Ld * H
                          + n_heads * Ld * max(Ld, Le) + Ld * max(Ld, Le))
    vmem_limit = int(min(max(4 * (param_bytes + act_bytes), 32 * 2 ** 20), 64 * 2 ** 20))

    def _param_spec(a, single_buffer):
        nd = a.ndim
        if single_buffer:
            return pl.BlockSpec(a.shape, lambda g, _nd=nd: (0,) * _nd,
                                pipeline_mode=pl.Buffered(1))
        return pl.BlockSpec(a.shape, lambda g, _nd=nd: (0,) * _nd)

    def _run(single_buffer):
        out = pl.pallas_call(
            kernel,
            out_shape=jax.ShapeDtypeStruct((B, Ld, H), jnp.float32),
            grid=grid,
            in_specs=data_specs + [_param_spec(p, single_buffer) for p in flat_params],
            out_specs=pl.BlockSpec((Bt, Ld, H), lambda g: (g, 0, 0)),
            compiler_params=pltpu.CompilerParams(
                dimension_semantics=("parallel",),
                vmem_limit_bytes=vmem_limit),
        )(*inputs, *flat_params)
        return jax.block_until_ready(out)

    try:
        # Single-buffer the 26 constant-index parameter inputs (review item 5).
        return _run(single_buffer=True)
    except Exception:
        # Fallback if this Pallas build rejects Buffered(1) specs.
        return _run(single_buffer=False)


# ----------------------------------------------------------------------------
# Parameter init + pure-JAX f32 reference for validation
# ----------------------------------------------------------------------------
def _init_mha(key, n_heads, h, ks, vs):
    k = jax.random.split(key, 4)
    return (
        jax.random.normal(k[0], (h, n_heads * ks), jnp.float32) * 0.1,
        jnp.zeros((n_heads * ks,), jnp.float32),
        jax.random.normal(k[1], (h, n_heads * ks), jnp.float32) * 0.1,
        jnp.zeros((n_heads * ks,), jnp.float32),
        jax.random.normal(k[2], (h, n_heads * vs), jnp.float32) * 0.1,
        jnp.zeros((n_heads * vs,), jnp.float32),
        jax.random.normal(k[3], (n_heads * vs, h), jnp.float32) * 0.1,
        jnp.zeros((h,), jnp.float32),
        jnp.ones((h,), jnp.float32),
        jnp.zeros((h,), jnp.float32),
    )


def _init_pw(key, h):
    k = jax.random.split(key, 2)
    return (
        jax.random.normal(k[0], (h, 4 * h), jnp.float32) * 0.1,
        jnp.zeros((4 * h,), jnp.float32),
        jax.random.normal(k[1], (4 * h, h), jnp.float32) * 0.1,
        jnp.zeros((h,), jnp.float32),
        jnp.ones((h,), jnp.float32),
        jnp.zeros((h,), jnp.float32),
    )


def _ref_mha(xq, xkv, mask, p, n_heads, ks, vs):
    wq, bq, wk, bk, wv, bv, wo, bo, g, beta = p
    hi = jax.lax.Precision.HIGHEST
    q = jnp.einsum("blh,hd->bld", xq, wq, precision=hi) + bq
    k = jnp.einsum("blh,hd->bld", xkv, wk, precision=hi) + bk
    v = jnp.einsum("blh,hd->bld", xkv, wv, precision=hi) + bv
    B, Lq, _ = q.shape
    Lk = k.shape[1]
    q = q.reshape(B, Lq, n_heads, ks)
    k = k.reshape(B, Lk, n_heads, ks)
    v = v.reshape(B, Lk, n_heads, vs)
    s = jnp.einsum("bqhd,bkhd->bhqk", q, k, precision=hi) / math.sqrt(ks)
    s = jnp.where(mask[:, None, :, :] > 0.5, -jnp.inf, s)
    p_att = jax.nn.softmax(s, axis=-1)
    o = jnp.einsum("bhqk,bkhd->bqhd", p_att, v, precision=hi).reshape(B, Lq, n_heads * vs)
    o = jnp.einsum("bld,dh->blh", o, wo, precision=hi) + bo
    x = o + xq
    mu = jnp.mean(x, -1, keepdims=True)
    var = jnp.mean((x - mu) ** 2, -1, keepdims=True)
    return (x - mu) / jnp.sqrt(var + LN_EPS) * g + beta


def _ref_pw(x, p):
    w1, b1, w2, b2, g, beta = p
    hi = jax.lax.Precision.HIGHEST
    h = jax.nn.relu(jnp.einsum("blh,hd->bld", x, w1, precision=hi) + b1)
    y = jnp.einsum("bld,dh->blh", h, w2, precision=hi) + b2
    r = y + x
    mu = jnp.mean(r, -1, keepdims=True)
    var = jnp.mean((r - mu) ** 2, -1, keepdims=True)
    return (r - mu) / jnp.sqrt(var + LN_EPS) * g + beta


def _ref_decoder(inp, cond, self_mask, out_mask, params, n_heads, ks, vs):
    r = _ref_mha(inp, inp, self_mask, params["self_attn"], n_heads, ks, vs)
    r = _ref_mha(r, cond, out_mask, params["out_attn"], n_heads, ks, vs)
    return _ref_pw(r, params["pw"])


if __name__ == "__main__":
    # Small shapes consistent with the module's forward signature.
    B, Ld, Le = 2, 8, 16
    n_heads, h_size, k_size, v_size = 4, 32, 8, 8

    root = jax.random.PRNGKey(0)
    k_in, k_cond, k_sa, k_oa, k_pw = jax.random.split(root, 5)

    inp = jax.random.normal(k_in, (B, Ld, h_size), jnp.float32)
    condition = jax.random.normal(k_cond, (B, Le, h_size), jnp.float32)

    # Causal self-mask: 1.0 where attention is disallowed (upper triangle).
    causal = (jnp.arange(Ld)[:, None] < jnp.arange(Ld)[None, :]).astype(jnp.float32)
    self_mask = jnp.broadcast_to(causal, (B, Ld, Ld))

    # Cross-attention padding mask: batch 0 sees all encoder positions, batch 1 only
    # the first Le//2 (no fully-masked rows).
    enc_lens = jnp.array([Le, Le // 2])
    out_mask = jnp.broadcast_to(
        (jnp.arange(Le)[None, None, :] >= enc_lens[:, None, None]).astype(jnp.float32),
        (B, Ld, Le))

    raw_params = {
        "self_attn": _init_mha(k_sa, n_heads, h_size, k_size, v_size),
        "out_attn": _init_mha(k_oa, n_heads, h_size, k_size, v_size),
        "pw": _init_pw(k_pw, h_size),
    }
    prepared = {
        "self_attn": prepare_mha_params(raw_params["self_attn"], n_heads, k_size, v_size),
        "out_attn": prepare_mha_params(raw_params["out_attn"], n_heads, k_size, v_size),
        "pw": prepare_pw_params(raw_params["pw"]),
    }

    # Path 1: out_mask=None (specialized kernel, no cross-attention mask input).
    out_a = decoder_layer(inp, condition, self_mask, None, prepared,
                          n_heads, k_size, v_size)
    out_a = jax.block_until_ready(out_a)
    ref_a = _ref_decoder(inp, condition, self_mask,
                         jnp.zeros((B, Ld, Le), jnp.float32),
                         raw_params, n_heads, k_size, v_size)
    assert out_a.shape == (B, Ld, h_size)
    np.testing.assert_allclose(np.asarray(out_a), np.asarray(ref_a),
                               atol=5e-2, rtol=5e-2)

    # Path 2: explicit out_mask.
    out_b = decoder_layer(inp, condition, self_mask, out_mask, prepared,
                          n_heads, k_size, v_size)
    out_b = jax.block_until_ready(out_b)
    ref_b = _ref_decoder(inp, condition, self_mask, out_mask, raw_params,
                         n_heads, k_size, v_size)
    np.testing.assert_allclose(np.asarray(out_b), np.asarray(ref_b),
                               atol=5e-2, rtol=5e-2)

    print("KERNEL_OK")
</pallas_src>

<mosaic_0001>
module attributes {stable_mosaic.version = 11 : i64} {
  func.func @kernel(%arg0: i32, %arg1: memref<2x8x32xf32, #tpu.memory_space<vmem>>, %arg2: memref<2x16x32xf32, #tpu.memory_space<vmem>>, %arg3: memref<2x8x8xbf16, #tpu.memory_space<vmem>>, %arg4: memref<32x32xbf16, #tpu.memory_space<vmem>>, %arg5: memref<1x32xf32, #tpu.memory_space<vmem>>, %arg6: memref<32x32xbf16, #tpu.memory_space<vmem>>, %arg7: memref<1x32xf32, #tpu.memory_space<vmem>>, %arg8: memref<32x32xbf16, #tpu.memory_space<vmem>>, %arg9: memref<1x32xf32, #tpu.memory_space<vmem>>, %arg10: memref<32x32xbf16, #tpu.memory_space<vmem>>, %arg11: memref<1x32xf32, #tpu.memory_space<vmem>>, %arg12: memref<1x32xf32, #tpu.memory_space<vmem>>, %arg13: memref<1x32xf32, #tpu.memory_space<vmem>>, %arg14: memref<32x32xbf16, #tpu.memory_space<vmem>>, %arg15: memref<1x32xf32, #tpu.memory_space<vmem>>, %arg16: memref<32x32xbf16, #tpu.memory_space<vmem>>, %arg17: memref<1x32xf32, #tpu.memory_space<vmem>>, %arg18: memref<32x32xbf16, #tpu.memory_space<vmem>>, %arg19: memref<1x32xf32, #tpu.memory_space<vmem>>, %arg20: memref<32x32xbf16, #tpu.memory_space<vmem>>, %arg21: memref<1x32xf32, #tpu.memory_space<vmem>>, %arg22: memref<1x32xf32, #tpu.memory_space<vmem>>, %arg23: memref<1x32xf32, #tpu.memory_space<vmem>>, %arg24: memref<32x128xbf16, #tpu.memory_space<vmem>>, %arg25: memref<1x128xf32, #tpu.memory_space<vmem>>, %arg26: memref<128x32xbf16, #tpu.memory_space<vmem>>, %arg27: memref<1x32xf32, #tpu.memory_space<vmem>>, %arg28: memref<1x32xf32, #tpu.memory_space<vmem>>, %arg29: memref<1x32xf32, #tpu.memory_space<vmem>>, %arg30: memref<2x8x32xf32, #tpu.memory_space<vmem>>) attributes {dimension_semantics = [#tpu.dimension_semantics<parallel>], iteration_bounds = array<i64: 1>, scalar_prefetch = 0 : i64, scratch_operands = 0 : i64, tpu.core_type = #tpu.core_type<tc>, window_params = [{transform_indices = @transform_0, window_bounds = array<i64: 2, 8, 32>}, {transform_indices = @transform_1, window_bounds = array<i64: 2, 16, 32>}, {transform_indices = @transform_2, window_bounds = array<i64: 2, 8, 8>}, {pipeline_mode = #tpu.pipeline_mode<synchronous>, transform_indices = @transform_3, window_bounds = array<i64: 32, 32>}, {pipeline_mode = #tpu.pipeline_mode<synchronous>, transform_indices = @transform_4, window_bounds = array<i64: 1, 32>}, {pipeline_mode = #tpu.pipeline_mode<synchronous>, transform_indices = @transform_5, window_bounds = array<i64: 32, 32>}, {pipeline_mode = #tpu.pipeline_mode<synchronous>, transform_indices = @transform_6, window_bounds = array<i64: 1, 32>}, {pipeline_mode = #tpu.pipeline_mode<synchronous>, transform_indices = @transform_7, window_bounds = array<i64: 32, 32>}, {pipeline_mode = #tpu.pipeline_mode<synchronous>, transform_indices = @transform_8, window_bounds = array<i64: 1, 32>}, {pipeline_mode = #tpu.pipeline_mode<synchronous>, transform_indices = @transform_9, window_bounds = array<i64: 32, 32>}, {pipeline_mode = #tpu.pipeline_mode<synchronous>, transform_indices = @transform_10, window_bounds = array<i64: 1, 32>}, {pipeline_mode = #tpu.pipeline_mode<synchronous>, transform_indices = @transform_11, window_bounds = array<i64: 1, 32>}, {pipeline_mode = #tpu.pipeline_mode<synchronous>, transform_indices = @transform_12, window_bounds = array<i64: 1, 32>}, {pipeline_mode = #tpu.pipeline_mode<synchronous>, transform_indices = @transform_13, window_bounds = array<i64: 32, 32>}, {pipeline_mode = #tpu.pipeline_mode<synchronous>, transform_indices = @transform_14, window_bounds = array<i64: 1, 32>}, {pipeline_mode = #tpu.pipeline_mode<synchronous>, transform_indices = @transform_15, window_bounds = array<i64: 32, 32>}, {pipeline_mode = #tpu.pipeline_mode<synchronous>, transform_indices = @transform_16, window_bounds = array<i64: 1, 32>}, {pipeline_mode = #tpu.pipeline_mode<synchronous>, transform_indices = @transform_17, window_bounds = array<i64: 32, 32>}, {pipeline_mode = #tpu.pipeline_mode<synchronous>, transform_indices = @transform_18, window_bounds = array<i64: 1, 32>}, {pipeline_mode = #tpu.pipeline_mode<synchronous>, transform_indices = @transform_19, window_bounds = array<i64: 32, 32>}, {pipeline_mode = #tpu.pipeline_mode<synchronous>, transform_indices = @transform_20, window_bounds = array<i64: 1, 32>}, {pipeline_mode = #tpu.pipeline_mode<synchronous>, transform_indices = @transform_21, window_bounds = array<i64: 1, 32>}, {pipeline_mode = #tpu.pipeline_mode<synchronous>, transform_indices = @transform_22, window_bounds = array<i64: 1, 32>}, {pipeline_mode = #tpu.pipeline_mode<synchronous>, transform_indices = @transform_23, window_bounds = array<i64: 32, 128>}, {pipeline_mode = #tpu.pipeline_mode<synchronous>, transform_indices = @transform_24, window_bounds = array<i64: 1, 128>}, {pipeline_mode = #tpu.pipeline_mode<synchronous>, transform_indices = @transform_25, window_bounds = array<i64: 128, 32>}, {pipeline_mode = #tpu.pipeline_mode<synchronous>, transform_indices = @transform_26, window_bounds = array<i64: 1, 32>}, {pipeline_mode = #tpu.pipeline_mode<synchronous>, transform_indices = @transform_27, window_bounds = array<i64: 1, 32>}, {pipeline_mode = #tpu.pipeline_mode<synchronous>, transform_indices = @transform_28, window_bounds = array<i64: 1, 32>}, {transform_indices = @transform_29, window_bounds = array<i64: 2, 8, 32>}]} {
    %c0 = arith.constant 0 : index
    %c0_0 = arith.constant 0 : index
    %c0_1 = arith.constant 0 : index
    %0 = vector.load %arg1[%c0, %c0_0, %c0_1] : memref<2x8x32xf32, #tpu.memory_space<vmem>>, vector<2x8x32xf32>
    %1 = vector.shape_cast %0 : vector<2x8x32xf32> to vector<16x32xf32>
    %c0_2 = arith.constant 0 : index
    %c0_3 = arith.constant 0 : index
    %c0_4 = arith.constant 0 : index
    %2 = vector.load %arg2[%c0_2, %c0_3, %c0_4] : memref<2x16x32xf32, #tpu.memory_space<vmem>>, vector<2x16x32xf32>
    %3 = vector.shape_cast %2 : vector<2x16x32xf32> to vector<32x32xf32>
    %c0_5 = arith.constant 0 : index
    %c0_6 = arith.constant 0 : index
    %c0_7 = arith.constant 0 : index
    %4 = vector.load %arg3[%c0_5, %c0_6, %c0_7] : memref<2x8x8xbf16, #tpu.memory_space<vmem>>, vector<2x8x8xbf16>
    %5 = arith.truncf %1 : vector<16x32xf32> to vector<16x32xbf16>
    %c0_8 = arith.constant 0 : index
    %c0_9 = arith.constant 0 : index
    %6 = vector.load %arg4[%c0_8, %c0_9] : memref<32x32xbf16, #tpu.memory_space<vmem>>, vector<32x32xbf16>
    %cst = arith.constant dense<0.000000e+00> : vector<16x32xf32>
    %7 = tpu.matmul %5, %6, %cst {dimension_numbers = #tpu.dot_dimension_numbers<[1], [0], [0], [1], [0, 0, 1, 1], [], []>} : vector<16x32xbf16>, vector<32x32xbf16>, vector<16x32xf32> -> vector<16x32xf32>
    %c0_10 = arith.constant 0 : index
    %c0_11 = arith.constant 0 : index
    %8 = vector.load %arg5[%c0_10, %c0_11] : memref<1x32xf32, #tpu.memory_space<vmem>>, vector<1x32xf32>
    %9 = vector.broadcast %8 : vector<1x32xf32> to vector<16x32xf32>
    %10 = arith.addf %7, %9 : vector<16x32xf32>
    %11 = arith.truncf %10 : vector<16x32xf32> to vector<16x32xbf16>
    %12 = arith.truncf %1 : vector<16x32xf32> to vector<16x32xbf16>
    %c0_12 = arith.constant 0 : index
    %c0_13 = arith.constant 0 : index
    %13 = vector.load %arg6[%c0_12, %c0_13] : memref<32x32xbf16, #tpu.memory_space<vmem>>, vector<32x32xbf16>
    %cst_14 = arith.constant dense<0.000000e+00> : vector<16x32xf32>
    %14 = tpu.matmul %12, %13, %cst_14 {dimension_numbers = #tpu.dot_dimension_numbers<[1], [0], [0], [1], [0, 0, 1, 1], [], []>} : vector<16x32xbf16>, vector<32x32xbf16>, vector<16x32xf32> -> vector<16x32xf32>
    %c0_15 = arith.constant 0 : index
    %c0_16 = arith.constant 0 : index
    %15 = vector.load %arg7[%c0_15, %c0_16] : memref<1x32xf32, #tpu.memory_space<vmem>>, vector<1x32xf32>
    %16 = vector.broadcast %15 : vector<1x32xf32> to vector<16x32xf32>
    %17 = arith.addf %14, %16 : vector<16x32xf32>
    %18 = arith.truncf %17 : vector<16x32xf32> to vector<16x32xbf16>
    %19 = arith.truncf %1 : vector<16x32xf32> to vector<16x32xbf16>
    %c0_17 = arith.constant 0 : index
    %c0_18 = arith.constant 0 : index
    %20 = vector.load %arg8[%c0_17, %c0_18] : memref<32x32xbf16, #tpu.memory_space<vmem>>, vector<32x32xbf16>
    %cst_19 = arith.constant dense<0.000000e+00> : vector<16x32xf32>
    %21 = tpu.matmul %19, %20, %cst_19 {dimension_numbers = #tpu.dot_dimension_numbers<[1], [0], [0], [1], [0, 0, 1, 1], [], []>} : vector<16x32xbf16>, vector<32x32xbf16>, vector<16x32xf32> -> vector<16x32xf32>
    %c0_20 = arith.constant 0 : index
    %c0_21 = arith.constant 0 : index
    %22 = vector.load %arg9[%c0_20, %c0_21] : memref<1x32xf32, #tpu.memory_space<vmem>>, vector<1x32xf32>
    %23 = vector.broadcast %22 : vector<1x32xf32> to vector<16x32xf32>
    %24 = arith.addf %21, %23 : vector<16x32xf32>
    %25 = arith.truncf %24 : vector<16x32xf32> to vector<16x32xbf16>
    %26 = vector.extract_strided_slice %11 {offsets = [0, 0], sizes = [8, 32], strides = [1, 1]} : vector<16x32xbf16> to vector<8x32xbf16>
    %27 = vector.extract_strided_slice %18 {offsets = [0, 0], sizes = [8, 32], strides = [1, 1]} : vector<16x32xbf16> to vector<8x32xbf16>
    %28 = vector.extract_strided_slice %25 {offsets = [0, 0], sizes = [8, 32], strides = [1, 1]} : vector<16x32xbf16> to vector<8x32xbf16>
    %29 = vector.extract_strided_slice %4 {offsets = [0, 0, 0], sizes = [1, 8, 8], strides = [1, 1, 1]} : vector<2x8x8xbf16> to vector<1x8x8xbf16>
    %30 = vector.shape_cast %29 : vector<1x8x8xbf16> to vector<8x8xbf16>
    %31 = vector.extract_strided_slice %26 {offsets = [0, 0], sizes = [8, 8], strides = [1, 1]} : vector<8x32xbf16> to vector<8x8xbf16>
    %32 = vector.extract_strided_slice %27 {offsets = [0, 0], sizes = [8, 8], strides = [1, 1]} : vector<8x32xbf16> to vector<8x8xbf16>
    %33 = vector.extract_strided_slice %28 {offsets = [0, 0], sizes = [8, 8], strides = [1, 1]} : vector<8x32xbf16> to vector<8x8xbf16>
    "tpu.trace_start"() <{level = 10 : i32, message = "qd,kd->qk"}> : () -> ()
    %cst_22 = arith.constant dense<0.000000e+00> : vector<8x8xf32>
    %34 = tpu.matmul %31, %32, %cst_22 {dimension_numbers = #tpu.dot_dimension_numbers<[1], [1], [0], [0], [0, 0, 1, 0], [], []>} : vector<8x8xbf16>, vector<8x8xbf16>, vector<8x8xf32> -> vector<8x8xf32>
    "tpu.trace_stop"() : () -> ()
    %35 = arith.extf %30 : vector<8x8xbf16> to vector<8x8xf32>
    %36 = arith.addf %34, %35 : vector<8x8xf32>
    %cst_23 = arith.constant dense<0xFF800000> : vector<8xf32>
    %37 = vector.multi_reduction <maximumf>, %36, %cst_23 [1] : vector<8x8xf32> to vector<8xf32>
    %38 = vector.shape_cast %37 : vector<8xf32> to vector<8x1xf32>
    %39 = vector.broadcast %38 : vector<8x1xf32> to vector<8x8xf32>
    %40 = arith.subf %36, %39 : vector<8x8xf32>
    %41 = math.exp %40 : vector<8x8xf32>
    %cst_24 = arith.constant dense<0.000000e+00> : vector<8xf32>
    %42 = vector.multi_reduction <add>, %41, %cst_24 [1] : vector<8x8xf32> to vector<8xf32>
    %43 = vector.shape_cast %42 : vector<8xf32> to vector<8x1xf32>
    %44 = tpu.reciprocal %43 {approx = true} : vector<8x1xf32> -> vector<8x1xf32>
    %45 = vector.broadcast %44 : vector<8x1xf32> to vector<8x8xf32>
    %46 = arith.mulf %41, %45 : vector<8x8xf32>
    %47 = arith.truncf %46 : vector<8x8xf32> to vector<8x8xbf16>
    "tpu.trace_start"() <{level = 10 : i32, message = "qk,kd->qd"}> : () -> ()
    %cst_25 = arith.constant dense<0.000000e+00> : vector<8x8xf32>
    %48 = tpu.matmul %47, %33, %cst_25 {dimension_numbers = #tpu.dot_dimension_numbers<[1], [0], [0], [1], [0, 0, 1, 1], [], []>} : vector<8x8xbf16>, vector<8x8xbf16>, vector<8x8xf32> -> vector<8x8xf32>
    "tpu.trace_stop"() : () -> ()
    %49 = vector.extract_strided_slice %26 {offsets = [0, 8], sizes = [8, 8], strides = [1, 1]} : vector<8x32xbf16> to vector<8x8xbf16>
    %50 = vector.extract_strided_slice %27 {offsets = [0, 8], sizes = [8, 8], strides = [1, 1]} : vector<8x32xbf16> to vector<8x8xbf16>
    %51 = vector.extract_strided_slice %28 {offsets = [0, 8], sizes = [8, 8], strides = [1, 1]} : vector<8x32xbf16> to vector<8x8xbf16>
    "tpu.trace_start"() <{level = 10 : i32, message = "qd,kd->qk"}> : () -> ()
    %cst_26 = arith.constant dense<0.000000e+00> : vector<8x8xf32>
    %52 = tpu.matmul %49, %50, %cst_26 {dimension_numbers = #tpu.dot_dimension_numbers<[1], [1], [0], [0], [0, 0, 1, 0], [], []>} : vector<8x8xbf16>, vector<8x8xbf16>, vector<8x8xf32> -> vector<8x8xf32>
    "tpu.trace_stop"() : () -> ()
    %53 = arith.extf %30 : vector<8x8xbf16> to vector<8x8xf32>
    %54 = arith.addf %52, %53 : vector<8x8xf32>
    %cst_27 = arith.constant dense<0xFF800000> : vector<8xf32>
    %55 = vector.multi_reduction <maximumf>, %54, %cst_27 [1] : vector<8x8xf32> to vector<8xf32>
    %56 = vector.shape_cast %55 : vector<8xf32> to vector<8x1xf32>
    %57 = vector.broadcast %56 : vector<8x1xf32> to vector<8x8xf32>
    %58 = arith.subf %54, %57 : vector<8x8xf32>
    %59 = math.exp %58 : vector<8x8xf32>
    %cst_28 = arith.constant dense<0.000000e+00> : vector<8xf32>
    %60 = vector.multi_reduction <add>, %59, %cst_28 [1] : vector<8x8xf32> to vector<8xf32>
    %61 = vector.shape_cast %60 : vector<8xf32> to vector<8x1xf32>
    %62 = tpu.reciprocal %61 {approx = true} : vector<8x1xf32> -> vector<8x1xf32>
    %63 = vector.broadcast %62 : vector<8x1xf32> to vector<8x8xf32>
    %64 = arith.mulf %59, %63 : vector<8x8xf32>
    %65 = arith.truncf %64 : vector<8x8xf32> to vector<8x8xbf16>
    "tpu.trace_start"() <{level = 10 : i32, message = "qk,kd->qd"}> : () -> ()
    %cst_29 = arith.constant dense<0.000000e+00> : vector<8x8xf32>
    %66 = tpu.matmul %65, %51, %cst_29 {dimension_numbers = #tpu.dot_dimension_numbers<[1], [0], [0], [1], [0, 0, 1, 1], [], []>} : vector<8x8xbf16>, vector<8x8xbf16>, vector<8x8xf32> -> vector<8x8xf32>
    "tpu.trace_stop"() : () -> ()
    %67 = vector.extract_strided_slice %26 {offsets = [0, 16], sizes = [8, 8], strides = [1, 1]} : vector<8x32xbf16> to vector<8x8xbf16>
    %68 = vector.extract_strided_slice %27 {offsets = [0, 16], sizes = [8, 8], strides = [1, 1]} : vector<8x32xbf16> to vector<8x8xbf16>
    %69 = vector.extract_strided_slice %28 {offsets = [0, 16], sizes = [8, 8], strides = [1, 1]} : vector<8x32xbf16> to vector<8x8xbf16>
    "tpu.trace_start"() <{level = 10 : i32, message = "qd,kd->qk"}> : () -> ()
    %cst_30 = arith.constant dense<0.000000e+00> : vector<8x8xf32>
    %70 = tpu.matmul %67, %68, %cst_30 {dimension_numbers = #tpu.dot_dimension_numbers<[1], [1], [0], [0], [0, 0, 1, 0], [], []>} : vector<8x8xbf16>, vector<8x8xbf16>, vector<8x8xf32> -> vector<8x8xf32>
    "tpu.trace_stop"() : () -> ()
    %71 = arith.extf %30 : vector<8x8xbf16> to vector<8x8xf32>
    %72 = arith.addf %70, %71 : vector<8x8xf32>
    %cst_31 = arith.constant dense<0xFF800000> : vector<8xf32>
    %73 = vector.multi_reduction <maximumf>, %72, %cst_31 [1] : vector<8x8xf32> to vector<8xf32>
    %74 = vector.shape_cast %73 : vector<8xf32> to vector<8x1xf32>
    %75 = vector.broadcast %74 : vector<8x1xf32> to vector<8x8xf32>
    %76 = arith.subf %72, %75 : vector<8x8xf32>
    %77 = math.exp %76 : vector<8x8xf32>
    %cst_32 = arith.constant dense<0.000000e+00> : vector<8xf32>
    %78 = vector.multi_reduction <add>, %77, %cst_32 [1] : vector<8x8xf32> to vector<8xf32>
    %79 = vector.shape_cast %78 : vector<8xf32> to vector<8x1xf32>
    %80 = tpu.reciprocal %79 {approx = true} : vector<8x1xf32> -> vector<8x1xf32>
    %81 = vector.broadcast %80 : vector<8x1xf32> to vector<8x8xf32>
    %82 = arith.mulf %77, %81 : vector<8x8xf32>
    %83 = arith.truncf %82 : vector<8x8xf32> to vector<8x8xbf16>
    "tpu.trace_start"() <{level = 10 : i32, message = "qk,kd->qd"}> : () -> ()
    %cst_33 = arith.constant dense<0.000000e+00> : vector<8x8xf32>
    %84 = tpu.matmul %83, %69, %cst_33 {dimension_numbers = #tpu.dot_dimension_numbers<[1], [0], [0], [1], [0, 0, 1, 1], [], []>} : vector<8x8xbf16>, vector<8x8xbf16>, vector<8x8xf32> -> vector<8x8xf32>
    "tpu.trace_stop"() : () -> ()
    %85 = vector.extract_strided_slice %26 {offsets = [0, 24], sizes = [8, 8], strides = [1, 1]} : vector<8x32xbf16> to vector<8x8xbf16>
    %86 = vector.extract_strided_slice %27 {offsets = [0, 24], sizes = [8, 8], strides = [1, 1]} : vector<8x32xbf16> to vector<8x8xbf16>
    %87 = vector.extract_strided_slice %28 {offsets = [0, 24], sizes = [8, 8], strides = [1, 1]} : vector<8x32xbf16> to vector<8x8xbf16>
    "tpu.trace_start"() <{level = 10 : i32, message = "qd,kd->qk"}> : () -> ()
    %cst_34 = arith.constant dense<0.000000e+00> : vector<8x8xf32>
    %88 = tpu.matmul %85, %86, %cst_34 {dimension_numbers = #tpu.dot_dimension_numbers<[1], [1], [0], [0], [0, 0, 1, 0], [], []>} : vector<8x8xbf16>, vector<8x8xbf16>, vector<8x8xf32> -> vector<8x8xf32>
    "tpu.trace_stop"() : () -> ()
    %89 = arith.extf %30 : vector<8x8xbf16> to vector<8x8xf32>
    %90 = arith.addf %88, %89 : vector<8x8xf32>
    %cst_35 = arith.constant dense<0xFF800000> : vector<8xf32>
    %91 = vector.multi_reduction <maximumf>, %90, %cst_35 [1] : vector<8x8xf32> to vector<8xf32>
    %92 = vector.shape_cast %91 : vector<8xf32> to vector<8x1xf32>
    %93 = vector.broadcast %92 : vector<8x1xf32> to vector<8x8xf32>
    %94 = arith.subf %90, %93 : vector<8x8xf32>
    %95 = math.exp %94 : vector<8x8xf32>
    %cst_36 = arith.constant dense<0.000000e+00> : vector<8xf32>
    %96 = vector.multi_reduction <add>, %95, %cst_36 [1] : vector<8x8xf32> to vector<8xf32>
    %97 = vector.shape_cast %96 : vector<8xf32> to vector<8x1xf32>
    %98 = tpu.reciprocal %97 {approx = true} : vector<8x1xf32> -> vector<8x1xf32>
    %99 = vector.broadcast %98 : vector<8x1xf32> to vector<8x8xf32>
    %100 = arith.mulf %95, %99 : vector<8x8xf32>
    %101 = arith.truncf %100 : vector<8x8xf32> to vector<8x8xbf16>
    "tpu.trace_start"() <{level = 10 : i32, message = "qk,kd->qd"}> : () -> ()
    %cst_37 = arith.constant dense<0.000000e+00> : vector<8x8xf32>
    %102 = tpu.matmul %101, %87, %cst_37 {dimension_numbers = #tpu.dot_dimension_numbers<[1], [0], [0], [1], [0, 0, 1, 1], [], []>} : vector<8x8xbf16>, vector<8x8xbf16>, vector<8x8xf32> -> vector<8x8xf32>
    "tpu.trace_stop"() : () -> ()
    %103 = tpu.concatenate %48, %66, %84, %102 in 1 : vector<8x8xf32>, vector<8x8xf32>, vector<8x8xf32>, vector<8x8xf32> -> vector<8x32xf32>
    %104 = vector.extract_strided_slice %11 {offsets = [8, 0], sizes = [8, 32], strides = [1, 1]} : vector<16x32xbf16> to vector<8x32xbf16>
    %105 = vector.extract_strided_slice %18 {offsets = [8, 0], sizes = [8, 32], strides = [1, 1]} : vector<16x32xbf16> to vector<8x32xbf16>
    %106 = vector.extract_strided_slice %25 {offsets = [8, 0], sizes = [8, 32], strides = [1, 1]} : vector<16x32xbf16> to vector<8x32xbf16>
    %107 = vector.extract_strided_slice %4 {offsets = [1, 0, 0], sizes = [1, 8, 8], strides = [1, 1, 1]} : vector<2x8x8xbf16> to vector<1x8x8xbf16>
    %108 = vector.shape_cast %107 : vector<1x8x8xbf16> to vector<8x8xbf16>
    %109 = vector.extract_strided_slice %104 {offsets = [0, 0], sizes = [8, 8], strides = [1, 1]} : vector<8x32xbf16> to vector<8x8xbf16>
    %110 = vector.extract_strided_slice %105 {offsets = [0, 0], sizes = [8, 8], strides = [1, 1]} : vector<8x32xbf16> to vector<8x8xbf16>
    %111 = vector.extract_strided_slice %106 {offsets = [0, 0], sizes = [8, 8], strides = [1, 1]} : vector<8x32xbf16> to vector<8x8xbf16>
    "tpu.trace_start"() <{level = 10 : i32, message = "qd,kd->qk"}> : () -> ()
    %cst_38 = arith.constant dense<0.000000e+00> : vector<8x8xf32>
    %112 = tpu.matmul %109, %110, %cst_38 {dimension_numbers = #tpu.dot_dimension_numbers<[1], [1], [0], [0], [0, 0, 1, 0], [], []>} : vector<8x8xbf16>, vector<8x8xbf16>, vector<8x8xf32> -> vector<8x8xf32>
    "tpu.trace_stop"() : () -> ()
    %113 = arith.extf %108 : vector<8x8xbf16> to vector<8x8xf32>
    %114 = arith.addf %112, %113 : vector<8x8xf32>
    %cst_39 = arith.constant dense<0xFF800000> : vector<8xf32>
    %115 = vector.multi_reduction <maximumf>, %114, %cst_39 [1] : vector<8x8xf32> to vector<8xf32>
    %116 = vector.shape_cast %115 : vector<8xf32> to vector<8x1xf32>
    %117 = vector.broadcast %116 : vector<8x1xf32> to vector<8x8xf32>
    %118 = arith.subf %114, %117 : vector<8x8xf32>
    %119 = math.exp %118 : vector<8x8xf32>
    %cst_40 = arith.constant dense<0.000000e+00> : vector<8xf32>
    %120 = vector.multi_reduction <add>, %119, %cst_40 [1] : vector<8x8xf32> to vector<8xf32>
    %121 = vector.shape_cast %120 : vector<8xf32> to vector<8x1xf32>
    %122 = tpu.reciprocal %121 {approx = true} : vector<8x1xf32> -> vector<8x1xf32>
    %123 = vector.broadcast %122 : vector<8x1xf32> to vector<8x8xf32>
    %124 = arith.mulf %119, %123 : vector<8x8xf32>
    %125 = arith.truncf %124 : vector<8x8xf32> to vector<8x8xbf16>
    "tpu.trace_start"() <{level = 10 : i32, message = "qk,kd->qd"}> : () -> ()
    %cst_41 = arith.constant dense<0.000000e+00> : vector<8x8xf32>
    %126 = tpu.matmul %125, %111, %cst_41 {dimension_numbers = #tpu.dot_dimension_numbers<[1], [0], [0], [1], [0, 0, 1, 1], [], []>} : vector<8x8xbf16>, vector<8x8xbf16>, vector<8x8xf32> -> vector<8x8xf32>
    "tpu.trace_stop"() : () -> ()
    %127 = vector.extract_strided_slice %104 {offsets = [0, 8], sizes = [8, 8], strides = [1, 1]} : vector<8x32xbf16> to vector<8x8xbf16>
    %128 = vector.extract_strided_slice %105 {offsets = [0, 8], sizes = [8, 8], strides = [1, 1]} : vector<8x32xbf16> to vector<8x8xbf16>
    %129 = vector.extract_strided_slice %106 {offsets = [0, 8], sizes = [8, 8], strides = [1, 1]} : vector<8x32xbf16> to vector<8x8xbf16>
    "tpu.trace_start"() <{level = 10 : i32, message = "qd,kd->qk"}> : () -> ()
    %cst_42 = arith.constant dense<0.000000e+00> : vector<8x8xf32>
    %130 = tpu.matmul %127, %128, %cst_42 {dimension_numbers = #tpu.dot_dimension_numbers<[1], [1], [0], [0], [0, 0, 1, 0], [], []>} : vector<8x8xbf16>, vector<8x8xbf16>, vector<8x8xf32> -> vector<8x8xf32>
    "tpu.trace_stop"() : () -> ()
    %131 = arith.extf %108 : vector<8x8xbf16> to vector<8x8xf32>
    %132 = arith.addf %130, %131 : vector<8x8xf32>
    %cst_43 = arith.constant dense<0xFF800000> : vector<8xf32>
    %133 = vector.multi_reduction <maximumf>, %132, %cst_43 [1] : vector<8x8xf32> to vector<8xf32>
    %134 = vector.shape_cast %133 : vector<8xf32> to vector<8x1xf32>
    %135 = vector.broadcast %134 : vector<8x1xf32> to vector<8x8xf32>
    %136 = arith.subf %132, %135 : vector<8x8xf32>
    %137 = math.exp %136 : vector<8x8xf32>
    %cst_44 = arith.constant dense<0.000000e+00> : vector<8xf32>
    %138 = vector.multi_reduction <add>, %137, %cst_44 [1] : vector<8x8xf32> to vector<8xf32>
    %139 = vector.shape_cast %138 : vector<8xf32> to vector<8x1xf32>
    %140 = tpu.reciprocal %139 {approx = true} : vector<8x1xf32> -> vector<8x1xf32>
    %141 = vector.broadcast %140 : vector<8x1xf32> to vector<8x8xf32>
    %142 = arith.mulf %137, %141 : vector<8x8xf32>
    %143 = arith.truncf %142 : vector<8x8xf32> to vector<8x8xbf16>
    "tpu.trace_start"() <{level = 10 : i32, message = "qk,kd->qd"}> : () -> ()
    %cst_45 = arith.constant dense<0.000000e+00> : vector<8x8xf32>
    %144 = tpu.matmul %143, %129, %cst_45 {dimension_numbers = #tpu.dot_dimension_numbers<[1], [0], [0], [1], [0, 0, 1, 1], [], []>} : vector<8x8xbf16>, vector<8x8xbf16>, vector<8x8xf32> -> vector<8x8xf32>
    "tpu.trace_stop"() : () -> ()
    %145 = vector.extract_strided_slice %104 {offsets = [0, 16], sizes = [8, 8], strides = [1, 1]} : vector<8x32xbf16> to vector<8x8xbf16>
    %146 = vector.extract_strided_slice %105 {offsets = [0, 16], sizes = [8, 8], strides = [1, 1]} : vector<8x32xbf16> to vector<8x8xbf16>
    %147 = vector.extract_strided_slice %106 {offsets = [0, 16], sizes = [8, 8], strides = [1, 1]} : vector<8x32xbf16> to vector<8x8xbf16>
    "tpu.trace_start"() <{level = 10 : i32, message = "qd,kd->qk"}> : () -> ()
    %cst_46 = arith.constant dense<0.000000e+00> : vector<8x8xf32>
    %148 = tpu.matmul %145, %146, %cst_46 {dimension_numbers = #tpu.dot_dimension_numbers<[1], [1], [0], [0], [0, 0, 1, 0], [], []>} : vector<8x8xbf16>, vector<8x8xbf16>, vector<8x8xf32> -> vector<8x8xf32>
    "tpu.trace_stop"() : () -> ()
    %149 = arith.extf %108 : vector<8x8xbf16> to vector<8x8xf32>
    %150 = arith.addf %148, %149 : vector<8x8xf32>
    %cst_47 = arith.constant dense<0xFF800000> : vector<8xf32>
    %151 = vector.multi_reduction <maximumf>, %150, %cst_47 [1] : vector<8x8xf32> to vector<8xf32>
    %152 = vector.shape_cast %151 : vector<8xf32> to vector<8x1xf32>
    %153 = vector.broadcast %152 : vector<8x1xf32> to vector<8x8xf32>
    %154 = arith.subf %150, %153 : vector<8x8xf32>
    %155 = math.exp %154 : vector<8x8xf32>
    %cst_48 = arith.constant dense<0.000000e+00> : vector<8xf32>
    %156 = vector.multi_reduction <add>, %155, %cst_48 [1] : vector<8x8xf32> to vector<8xf32>
    %157 = vector.shape_cast %156 : vector<8xf32> to vector<8x1xf32>
    %158 = tpu.reciprocal %157 {approx = true} : vector<8x1xf32> -> vector<8x1xf32>
    %159 = vector.broadcast %158 : vector<8x1xf32> to vector<8x8xf32>
    %160 = arith.mulf %155, %159 : vector<8x8xf32>
    %161 = arith.truncf %160 : vector<8x8xf32> to vector<8x8xbf16>
    "tpu.trace_start"() <{level = 10 : i32, message = "qk,kd->qd"}> : () -> ()
    %cst_49 = arith.constant dense<0.000000e+00> : vector<8x8xf32>
    %162 = tpu.matmul %161, %147, %cst_49 {dimension_numbers = #tpu.dot_dimension_numbers<[1], [0], [0], [1], [0, 0, 1, 1], [], []>} : vector<8x8xbf16>, vector<8x8xbf16>, vector<8x8xf32> -> vector<8x8xf32>
    "tpu.trace_stop"() : () -> ()
    %163 = vector.extract_strided_slice %104 {offsets = [0, 24], sizes = [8, 8], strides = [1, 1]} : vector<8x32xbf16> to vector<8x8xbf16>
    %164 = vector.extract_strided_slice %105 {offsets = [0, 24], sizes = [8, 8], strides = [1, 1]} : vector<8x32xbf16> to vector<8x8xbf16>
    %165 = vector.extract_strided_slice %106 {offsets = [0, 24], sizes = [8, 8], strides = [1, 1]} : vector<8x32xbf16> to vector<8x8xbf16>
    "tpu.trace_start"() <{level = 10 : i32, message = "qd,kd->qk"}> : () -> ()
    %cst_50 = arith.constant dense<0.000000e+00> : vector<8x8xf32>
    %166 = tpu.matmul %163, %164, %cst_50 {dimension_numbers = #tpu.dot_dimension_numbers<[1], [1], [0], [0], [0, 0, 1, 0], [], []>} : vector<8x8xbf16>, vector<8x8xbf16>, vector<8x8xf32> -> vector<8x8xf32>
    "tpu.trace_stop"() : () -> ()
    %167 = arith.extf %108 : vector<8x8xbf16> to vector<8x8xf32>
    %168 = arith.addf %166, %167 : vector<8x8xf32>
    %cst_51 = arith.constant dense<0xFF800000> : vector<8xf32>
    %169 = vector.multi_reduction <maximumf>, %168, %cst_51 [1] : vector<8x8xf32> to vector<8xf32>
    %170 = vector.shape_cast %169 : vector<8xf32> to vector<8x1xf32>
    %171 = vector.broadcast %170 : vector<8x1xf32> to vector<8x8xf32>
    %172 = arith.subf %168, %171 : vector<8x8xf32>
    %173 = math.exp %172 : vector<8x8xf32>
    %cst_52 = arith.constant dense<0.000000e+00> : vector<8xf32>
    %174 = vector.multi_reduction <add>, %173, %cst_52 [1] : vector<8x8xf32> to vector<8xf32>
    %175 = vector.shape_cast %174 : vector<8xf32> to vector<8x1xf32>
    %176 = tpu.reciprocal %175 {approx = true} : vector<8x1xf32> -> vector<8x1xf32>
    %177 = vector.broadcast %176 : vector<8x1xf32> to vector<8x8xf32>
    %178 = arith.mulf %173, %177 : vector<8x8xf32>
    %179 = arith.truncf %178 : vector<8x8xf32> to vector<8x8xbf16>
    "tpu.trace_start"() <{level = 10 : i32, message = "qk,kd->qd"}> : () -> ()
    %cst_53 = arith.constant dense<0.000000e+00> : vector<8x8xf32>
    %180 = tpu.matmul %179, %165, %cst_53 {dimension_numbers = #tpu.dot_dimension_numbers<[1], [0], [0], [1], [0, 0, 1, 1], [], []>} : vector<8x8xbf16>, vector<8x8xbf16>, vector<8x8xf32> -> vector<8x8xf32>
    "tpu.trace_stop"() : () -> ()
    %181 = tpu.concatenate %126, %144, %162, %180 in 1 : vector<8x8xf32>, vector<8x8xf32>, vector<8x8xf32>, vector<8x8xf32> -> vector<8x32xf32>
    %182 = tpu.concatenate %103, %181 in 0 : vector<8x32xf32>, vector<8x32xf32> -> vector<16x32xf32>
    %183 = arith.truncf %182 : vector<16x32xf32> to vector<16x32xbf16>
    %c0_54 = arith.constant 0 : index
    %c0_55 = arith.constant 0 : index
    %184 = vector.load %arg10[%c0_54, %c0_55] : memref<32x32xbf16, #tpu.memory_space<vmem>>, vector<32x32xbf16>
    %cst_56 = arith.constant dense<0.000000e+00> : vector<16x32xf32>
    %185 = tpu.matmul %183, %184, %cst_56 {dimension_numbers = #tpu.dot_dimension_numbers<[1], [0], [0], [1], [0, 0, 1, 1], [], []>} : vector<16x32xbf16>, vector<32x32xbf16>, vector<16x32xf32> -> vector<16x32xf32>
    %c0_57 = arith.constant 0 : index
    %c0_58 = arith.constant 0 : index
    %186 = vector.load %arg11[%c0_57, %c0_58] : memref<1x32xf32, #tpu.memory_space<vmem>>, vector<1x32xf32>
    %187 = vector.broadcast %186 : vector<1x32xf32> to vector<16x32xf32>
    %188 = arith.addf %185, %187 : vector<16x32xf32>
    %189 = arith.addf %188, %1 : vector<16x32xf32>
    %c0_59 = arith.constant 0 : index
    %c0_60 = arith.constant 0 : index
    %190 = vector.load %arg12[%c0_59, %c0_60] : memref<1x32xf32, #tpu.memory_space<vmem>>, vector<1x32xf32>
    %c0_61 = arith.constant 0 : index
    %c0_62 = arith.constant 0 : index
    %191 = vector.load %arg13[%c0_61, %c0_62] : memref<1x32xf32, #tpu.memory_space<vmem>>, vector<1x32xf32>
    %cst_63 = arith.constant dense<0.000000e+00> : vector<16xf32>
    %192 = vector.multi_reduction <add>, %189, %cst_63 [1] : vector<16x32xf32> to vector<16xf32>
    %193 = vector.shape_cast %192 : vector<16xf32> to vector<16x1xf32>
    %cst_64 = arith.constant 3.200000e+01 : f32
    %194 = vector.broadcast %cst_64 : f32 to vector<16x1xf32>
    %195 = arith.divf %193, %194 : vector<16x1xf32>
    %196 = vector.broadcast %195 : vector<16x1xf32> to vector<16x32xf32>
    %197 = arith.subf %189, %196 : vector<16x32xf32>
    %198 = arith.mulf %197, %197 : vector<16x32xf32>
    %cst_65 = arith.constant dense<0.000000e+00> : vector<16xf32>
    %199 = vector.multi_reduction <add>, %198, %cst_65 [1] : vector<16x32xf32> to vector<16xf32>
    %200 = vector.shape_cast %199 : vector<16xf32> to vector<16x1xf32>
    %cst_66 = arith.constant 3.200000e+01 : f32
    %201 = vector.broadcast %cst_66 : f32 to vector<16x1xf32>
    %202 = arith.divf %200, %201 : vector<16x1xf32>
    %203 = vector.broadcast %195 : vector<16x1xf32> to vector<16x32xf32>
    %204 = arith.subf %189, %203 : vector<16x32xf32>
    %cst_67 = arith.constant 9.99999974E-6 : f32
    %205 = vector.broadcast %cst_67 : f32 to vector<16x1xf32>
    %206 = arith.addf %202, %205 : vector<16x1xf32>
    %207 = math.rsqrt %206 : vector<16x1xf32>
    %208 = vector.broadcast %207 : vector<16x1xf32> to vector<16x32xf32>
    %209 = arith.mulf %204, %208 : vector<16x32xf32>
    %210 = vector.broadcast %190 : vector<1x32xf32> to vector<16x32xf32>
    %211 = arith.mulf %209, %210 : vector<16x32xf32>
    %212 = vector.broadcast %191 : vector<1x32xf32> to vector<16x32xf32>
    %213 = arith.addf %211, %212 : vector<16x32xf32>
    %214 = arith.truncf %213 : vector<16x32xf32> to vector<16x32xbf16>
    %c0_68 = arith.constant 0 : index
    %c0_69 = arith.constant 0 : index
    %215 = vector.load %arg14[%c0_68, %c0_69] : memref<32x32xbf16, #tpu.memory_space<vmem>>, vector<32x32xbf16>
    %cst_70 = arith.constant dense<0.000000e+00> : vector<16x32xf32>
    %216 = tpu.matmul %214, %215, %cst_70 {dimension_numbers = #tpu.dot_dimension_numbers<[1], [0], [0], [1], [0, 0, 1, 1], [], []>} : vector<16x32xbf16>, vector<32x32xbf16>, vector<16x32xf32> -> vector<16x32xf32>
    %c0_71 = arith.constant 0 : index
    %c0_72 = arith.constant 0 : index
    %217 = vector.load %arg15[%c0_71, %c0_72] : memref<1x32xf32, #tpu.memory_space<vmem>>, vector<1x32xf32>
    %218 = vector.broadcast %217 : vector<1x32xf32> to vector<16x32xf32>
    %219 = arith.addf %216, %218 : vector<16x32xf32>
    %220 = arith.truncf %219 : vector<16x32xf32> to vector<16x32xbf16>
    %221 = arith.truncf %3 : vector<32x32xf32> to vector<32x32xbf16>
    %c0_73 = arith.constant 0 : index
    %c0_74 = arith.constant 0 : index
    %222 = vector.load %arg16[%c0_73, %c0_74] : memref<32x32xbf16, #tpu.memory_space<vmem>>, vector<32x32xbf16>
    %cst_75 = arith.constant dense<0.000000e+00> : vector<32x32xf32>
    %223 = tpu.matmul %221, %222, %cst_75 {dimension_numbers = #tpu.dot_dimension_numbers<[1], [0], [0], [1], [0, 0, 1, 1], [], []>} : vector<32x32xbf16>, vector<32x32xbf16>, vector<32x32xf32> -> vector<32x32xf32>
    %c0_76 = arith.constant 0 : index
    %c0_77 = arith.constant 0 : index
    %224 = vector.load %arg17[%c0_76, %c0_77] : memref<1x32xf32, #tpu.memory_space<vmem>>, vector<1x32xf32>
    %225 = vector.broadcast %224 : vector<1x32xf32> to vector<32x32xf32>
    %226 = arith.addf %223, %225 : vector<32x32xf32>
    %227 = arith.truncf %226 : vector<32x32xf32> to vector<32x32xbf16>
    %228 = arith.truncf %3 : vector<32x32xf32> to vector<32x32xbf16>
    %c0_78 = arith.constant 0 : index
    %c0_79 = arith.constant 0 : index
    %229 = vector.load %arg18[%c0_78, %c0_79] : memref<32x32xbf16, #tpu.memory_space<vmem>>, vector<32x32xbf16>
    %cst_80 = arith.constant dense<0.000000e+00> : vector<32x32xf32>
    %230 = tpu.matmul %228, %229, %cst_80 {dimension_numbers = #tpu.dot_dimension_numbers<[1], [0], [0], [1], [0, 0, 1, 1], [], []>} : vector<32x32xbf16>, vector<32x32xbf16>, vector<32x32xf32> -> vector<32x32xf32>
    %c0_81 = arith.constant 0 : index
    %c0_82 = arith.constant 0 : index
    %231 = vector.load %arg19[%c0_81, %c0_82] : memref<1x32xf32, #tpu.memory_space<vmem>>, vector<1x32xf32>
    %232 = vector.broadcast %231 : vector<1x32xf32> to vector<32x32xf32>
    %233 = arith.addf %230, %232 : vector<32x32xf32>
    %234 = arith.truncf %233 : vector<32x32xf32> to vector<32x32xbf16>
    %235 = vector.extract_strided_slice %220 {offsets = [0, 0], sizes = [8, 32], strides = [1, 1]} : vector<16x32xbf16> to vector<8x32xbf16>
    %236 = vector.extract_strided_slice %227 {offsets = [0, 0], sizes = [16, 32], strides = [1, 1]} : vector<32x32xbf16> to vector<16x32xbf16>
    %237 = vector.extract_strided_slice %234 {offsets = [0, 0], sizes = [16, 32], strides = [1, 1]} : vector<32x32xbf16> to vector<16x32xbf16>
    %238 = vector.extract_strided_slice %235 {offsets = [0, 0], sizes = [8, 8], strides = [1, 1]} : vector<8x32xbf16> to vector<8x8xbf16>
    %239 = vector.extract_strided_slice %236 {offsets = [0, 0], sizes = [16, 8], strides = [1, 1]} : vector<16x32xbf16> to vector<16x8xbf16>
    %240 = vector.extract_strided_slice %237 {offsets = [0, 0], sizes = [16, 8], strides = [1, 1]} : vector<16x32xbf16> to vector<16x8xbf16>
    "tpu.trace_start"() <{level = 10 : i32, message = "qd,kd->qk"}> : () -> ()
    %cst_83 = arith.constant dense<0.000000e+00> : vector<8x16xf32>
    %241 = tpu.matmul %238, %239, %cst_83 {dimension_numbers = #tpu.dot_dimension_numbers<[1], [1], [0], [0], [0, 0, 1, 0], [], []>} : vector<8x8xbf16>, vector<16x8xbf16>, vector<8x16xf32> -> vector<8x16xf32>
    "tpu.trace_stop"() : () -> ()
    %cst_84 = arith.constant dense<0xFF800000> : vector<8xf32>
    %242 = vector.multi_reduction <maximumf>, %241, %cst_84 [1] : vector<8x16xf32> to vector<8xf32>
    %243 = vector.shape_cast %242 : vector<8xf32> to vector<8x1xf32>
    %244 = vector.broadcast %243 : vector<8x1xf32> to vector<8x16xf32>
    %245 = arith.subf %241, %244 : vector<8x16xf32>
    %246 = math.exp %245 : vector<8x16xf32>
    %cst_85 = arith.constant dense<0.000000e+00> : vector<8xf32>
    %247 = vector.multi_reduction <add>, %246, %cst_85 [1] : vector<8x16xf32> to vector<8xf32>
    %248 = vector.shape_cast %247 : vector<8xf32> to vector<8x1xf32>
    %249 = tpu.reciprocal %248 {approx = true} : vector<8x1xf32> -> vector<8x1xf32>
    %250 = vector.broadcast %249 : vector<8x1xf32> to vector<8x16xf32>
    %251 = arith.mulf %246, %250 : vector<8x16xf32>
    %252 = arith.truncf %251 : vector<8x16xf32> to vector<8x16xbf16>
    "tpu.trace_start"() <{level = 10 : i32, message = "qk,kd->qd"}> : () -> ()
    %cst_86 = arith.constant dense<0.000000e+00> : vector<8x8xf32>
    %253 = tpu.matmul %252, %240, %cst_86 {dimension_numbers = #tpu.dot_dimension_numbers<[1], [0], [0], [1], [0, 0, 1, 1], [], []>} : vector<8x16xbf16>, vector<16x8xbf16>, vector<8x8xf32> -> vector<8x8xf32>
    "tpu.trace_stop"() : () -> ()
    %254 = vector.extract_strided_slice %235 {offsets = [0, 8], sizes = [8, 8], strides = [1, 1]} : vector<8x32xbf16> to vector<8x8xbf16>
    %255 = vector.extract_strided_slice %236 {offsets = [0, 8], sizes = [16, 8], strides = [1, 1]} : vector<16x32xbf16> to vector<16x8xbf16>
    %256 = vector.extract_strided_slice %237 {offsets = [0, 8], sizes = [16, 8], strides = [1, 1]} : vector<16x32xbf16> to vector<16x8xbf16>
    "tpu.trace_start"() <{level = 10 : i32, message = "qd,kd->qk"}> : () -> ()
    %cst_87 = arith.constant dense<0.000000e+00> : vector<8x16xf32>
    %257 = tpu.matmul %254, %255, %cst_87 {dimension_numbers = #tpu.dot_dimension_numbers<[1], [1], [0], [0], [0, 0, 1, 0], [], []>} : vector<8x8xbf16>, vector<16x8xbf16>, vector<8x16xf32> -> vector<8x16xf32>
    "tpu.trace_stop"() : () -> ()
    %cst_88 = arith.constant dense<0xFF800000> : vector<8xf32>
    %258 = vector.multi_reduction <maximumf>, %257, %cst_88 [1] : vector<8x16xf32> to vector<8xf32>
    %259 = vector.shape_cast %258 : vector<8xf32> to vector<8x1xf32>
    %260 = vector.broadcast %259 : vector<8x1xf32> to vector<8x16xf32>
    %261 = arith.subf %257, %260 : vector<8x16xf32>
    %262 = math.exp %261 : vector<8x16xf32>
    %cst_89 = arith.constant dense<0.000000e+00> : vector<8xf32>
    %263 = vector.multi_reduction <add>, %262, %cst_89 [1] : vector<8x16xf32> to vector<8xf32>
    %264 = vector.shape_cast %263 : vector<8xf32> to vector<8x1xf32>
    %265 = tpu.reciprocal %264 {approx = true} : vector<8x1xf32> -> vector<8x1xf32>
    %266 = vector.broadcast %265 : vector<8x1xf32> to vector<8x16xf32>
    %267 = arith.mulf %262, %266 : vector<8x16xf32>
    %268 = arith.truncf %267 : vector<8x16xf32> to vector<8x16xbf16>
    "tpu.trace_start"() <{level = 10 : i32, message = "qk,kd->qd"}> : () -> ()
    %cst_90 = arith.constant dense<0.000000e+00> : vector<8x8xf32>
    %269 = tpu.matmul %268, %256, %cst_90 {dimension_numbers = #tpu.dot_dimension_numbers<[1], [0], [0], [1], [0, 0, 1, 1], [], []>} : vector<8x16xbf16>, vector<16x8xbf16>, vector<8x8xf32> -> vector<8x8xf32>
    "tpu.trace_stop"() : () -> ()
    %270 = vector.extract_strided_slice %235 {offsets = [0, 16], sizes = [8, 8], strides = [1, 1]} : vector<8x32xbf16> to vector<8x8xbf16>
    %271 = vector.extract_strided_slice %236 {offsets = [0, 16], sizes = [16, 8], strides = [1, 1]} : vector<16x32xbf16> to vector<16x8xbf16>
    %272 = vector.extract_strided_slice %237 {offsets = [0, 16], sizes = [16, 8], strides = [1, 1]} : vector<16x32xbf16> to vector<16x8xbf16>
    "tpu.trace_start"() <{level = 10 : i32, message = "qd,kd->qk"}> : () -> ()
    %cst_91 = arith.constant dense<0.000000e+00> : vector<8x16xf32>
    %273 = tpu.matmul %270, %271, %cst_91 {dimension_numbers = #tpu.dot_dimension_numbers<[1], [1], [0], [0], [0, 0, 1, 0], [], []>} : vector<8x8xbf16>, vector<16x8xbf16>, vector<8x16xf32> -> vector<8x16xf32>
    "tpu.trace_stop"() : () -> ()
    %cst_92 = arith.constant dense<0xFF800000> : vector<8xf32>
    %274 = vector.multi_reduction <maximumf>, %273, %cst_92 [1] : vector<8x16xf32> to vector<8xf32>
    %275 = vector.shape_cast %274 : vector<8xf32> to vector<8x1xf32>
    %276 = vector.broadcast %275 : vector<8x1xf32> to vector<8x16xf32>
    %277 = arith.subf %273, %276 : vector<8x16xf32>
    %278 = math.exp %277 : vector<8x16xf32>
    %cst_93 = arith.constant dense<0.000000e+00> : vector<8xf32>
    %279 = vector.multi_reduction <add>, %278, %cst_93 [1] : vector<8x16xf32> to vector<8xf32>
    %280 = vector.shape_cast %279 : vector<8xf32> to vector<8x1xf32>
    %281 = tpu.reciprocal %280 {approx = true} : vector<8x1xf32> -> vector<8x1xf32>
    %282 = vector.broadcast %281 : vector<8x1xf32> to vector<8x16xf32>
    %283 = arith.mulf %278, %282 : vector<8x16xf32>
    %284 = arith.truncf %283 : vector<8x16xf32> to vector<8x16xbf16>
    "tpu.trace_start"() <{level = 10 : i32, message = "qk,kd->qd"}> : () -> ()
    %cst_94 = arith.constant dense<0.000000e+00> : vector<8x8xf32>
    %285 = tpu.matmul %284, %272, %cst_94 {dimension_numbers = #tpu.dot_dimension_numbers<[1], [0], [0], [1], [0, 0, 1, 1], [], []>} : vector<8x16xbf16>, vector<16x8xbf16>, vector<8x8xf32> -> vector<8x8xf32>
    "tpu.trace_stop"() : () -> ()
    %286 = vector.extract_strided_slice %235 {offsets = [0, 24], sizes = [8, 8], strides = [1, 1]} : vector<8x32xbf16> to vector<8x8xbf16>
    %287 = vector.extract_strided_slice %236 {offsets = [0, 24], sizes = [16, 8], strides = [1, 1]} : vector<16x32xbf16> to vector<16x8xbf16>
    %288 = vector.extract_strided_slice %237 {offsets = [0, 24], sizes = [16, 8], strides = [1, 1]} : vector<16x32xbf16> to vector<16x8xbf16>
    "tpu.trace_start"() <{level = 10 : i32, message = "qd,kd->qk"}> : () -> ()
    %cst_95 = arith.constant dense<0.000000e+00> : vector<8x16xf32>
    %289 = tpu.matmul %286, %287, %cst_95 {dimension_numbers = #tpu.dot_dimension_numbers<[1], [1], [0], [0], [0, 0, 1, 0], [], []>} : vector<8x8xbf16>, vector<16x8xbf16>, vector<8x16xf32> -> vector<8x16xf32>
    "tpu.trace_stop"() : () -> ()
    %cst_96 = arith.constant dense<0xFF800000> : vector<8xf32>
    %290 = vector.multi_reduction <maximumf>, %289, %cst_96 [1] : vector<8x16xf32> to vector<8xf32>
    %291 = vector.shape_cast %290 : vector<8xf32> to vector<8x1xf32>
    %292 = vector.broadcast %291 : vector<8x1xf32> to vector<8x16xf32>
    %293 = arith.subf %289, %292 : vector<8x16xf32>
    %294 = math.exp %293 : vector<8x16xf32>
    %cst_97 = arith.constant dense<0.000000e+00> : vector<8xf32>
    %295 = vector.multi_reduction <add>, %294, %cst_97 [1] : vector<8x16xf32> to vector<8xf32>
    %296 = vector.shape_cast %295 : vector<8xf32> to vector<8x1xf32>
    %297 = tpu.reciprocal %296 {approx = true} : vector<8x1xf32> -> vector<8x1xf32>
    %298 = vector.broadcast %297 : vector<8x1xf32> to vector<8x16xf32>
    %299 = arith.mulf %294, %298 : vector<8x16xf32>
    %300 = arith.truncf %299 : vector<8x16xf32> to vector<8x16xbf16>
    "tpu.trace_start"() <{level = 10 : i32, message = "qk,kd->qd"}> : () -> ()
    %cst_98 = arith.constant dense<0.000000e+00> : vector<8x8xf32>
    %301 = tpu.matmul %300, %288, %cst_98 {dimension_numbers = #tpu.dot_dimension_numbers<[1], [0], [0], [1], [0, 0, 1, 1], [], []>} : vector<8x16xbf16>, vector<16x8xbf16>, vector<8x8xf32> -> vector<8x8xf32>
    "tpu.trace_stop"() : () -> ()
    %302 = tpu.concatenate %253, %269, %285, %301 in 1 : vector<8x8xf32>, vector<8x8xf32>, vector<8x8xf32>, vector<8x8xf32> -> vector<8x32xf32>
    %303 = vector.extract_strided_slice %220 {offsets = [8, 0], sizes = [8, 32], strides = [1, 1]} : vector<16x32xbf16> to vector<8x32xbf16>
    %304 = vector.extract_strided_slice %227 {offsets = [16, 0], sizes = [16, 32], strides = [1, 1]} : vector<32x32xbf16> to vector<16x32xbf16>
    %305 = vector.extract_strided_slice %234 {offsets = [16, 0], sizes = [16, 32], strides = [1, 1]} : vector<32x32xbf16> to vector<16x32xbf16>
    %306 = vector.extract_strided_slice %303 {offsets = [0, 0], sizes = [8, 8], strides = [1, 1]} : vector<8x32xbf16> to vector<8x8xbf16>
    %307 = vector.extract_strided_slice %304 {offsets = [0, 0], sizes = [16, 8], strides = [1, 1]} : vector<16x32xbf16> to vector<16x8xbf16>
    %308 = vector.extract_strided_slice %305 {offsets = [0, 0], sizes = [16, 8], strides = [1, 1]} : vector<16x32xbf16> to vector<16x8xbf16>
    "tpu.trace_start"() <{level = 10 : i32, message = "qd,kd->qk"}> : () -> ()
    %cst_99 = arith.constant dense<0.000000e+00> : vector<8x16xf32>
    %309 = tpu.matmul %306, %307, %cst_99 {dimension_numbers = #tpu.dot_dimension_numbers<[1], [1], [0], [0], [0, 0, 1, 0], [], []>} : vector<8x8xbf16>, vector<16x8xbf16>, vector<8x16xf32> -> vector<8x16xf32>
    "tpu.trace_stop"() : () -> ()
    %cst_100 = arith.constant dense<0xFF800000> : vector<8xf32>
    %310 = vector.multi_reduction <maximumf>, %309, %cst_100 [1] : vector<8x16xf32> to vector<8xf32>
    %311 = vector.shape_cast %310 : vector<8xf32> to vector<8x1xf32>
    %312 = vector.broadcast %311 : vector<8x1xf32> to vector<8x16xf32>
    %313 = arith.subf %309, %312 : vector<8x16xf32>
    %314 = math.exp %313 : vector<8x16xf32>
    %cst_101 = arith.constant dense<0.000000e+00> : vector<8xf32>
    %315 = vector.multi_reduction <add>, %314, %cst_101 [1] : vector<8x16xf32> to vector<8xf32>
    %316 = vector.shape_cast %315 : vector<8xf32> to vector<8x1xf32>
    %317 = tpu.reciprocal %316 {approx = true} : vector<8x1xf32> -> vector<8x1xf32>
    %318 = vector.broadcast %317 : vector<8x1xf32> to vector<8x16xf32>
    %319 = arith.mulf %314, %318 : vector<8x16xf32>
    %320 = arith.truncf %319 : vector<8x16xf32> to vector<8x16xbf16>
    "tpu.trace_start"() <{level = 10 : i32, message = "qk,kd->qd"}> : () -> ()
    %cst_102 = arith.constant dense<0.000000e+00> : vector<8x8xf32>
    %321 = tpu.matmul %320, %308, %cst_102 {dimension_numbers = #tpu.dot_dimension_numbers<[1], [0], [0], [1], [0, 0, 1, 1], [], []>} : vector<8x16xbf16>, vector<16x8xbf16>, vector<8x8xf32> -> vector<8x8xf32>
    "tpu.trace_stop"() : () -> ()
    %322 = vector.extract_strided_slice %303 {offsets = [0, 8], sizes = [8, 8], strides = [1, 1]} : vector<8x32xbf16> to vector<8x8xbf16>
    %323 = vector.extract_strided_slice %304 {offsets = [0, 8], sizes = [16, 8], strides = [1, 1]} : vector<16x32xbf16> to vector<16x8xbf16>
    %324 = vector.extract_strided_slice %305 {offsets = [0, 8], sizes = [16, 8], strides = [1, 1]} : vector<16x32xbf16> to vector<16x8xbf16>
    "tpu.trace_start"() <{level = 10 : i32, message = "qd,kd->qk"}> : () -> ()
    %cst_103 = arith.constant dense<0.000000e+00> : vector<8x16xf32>
    %325 = tpu.matmul %322, %323, %cst_103 {dimension_numbers = #tpu.dot_dimension_numbers<[1], [1], [0], [0], [0, 0, 1, 0], [], []>} : vector<8x8xbf16>, vector<16x8xbf16>, vector<8x16xf32> -> vector<8x16xf32>
    "tpu.trace_stop"() : () -> ()
    %cst_104 = arith.constant dense<0xFF800000> : vector<8xf32>
    %326 = vector.multi_reduction <maximumf>, %325, %cst_104 [1] : vector<8x16xf32> to vector<8xf32>
    %327 = vector.shape_cast %326 : vector<8xf32> to vector<8x1xf32>
    %328 = vector.broadcast %327 : vector<8x1xf32> to vector<8x16xf32>
    %329 = arith.subf %325, %328 : vector<8x16xf32>
    %330 = math.exp %329 : vector<8x16xf32>
    %cst_105 = arith.constant dense<0.000000e+00> : vector<8xf32>
    %331 = vector.multi_reduction <add>, %330, %cst_105 [1] : vector<8x16xf32> to vector<8xf32>
    %332 = vector.shape_cast %331 : vector<8xf32> to vector<8x1xf32>
    %333 = tpu.reciprocal %332 {approx = true} : vector<8x1xf32> -> vector<8x1xf32>
    %334 = vector.broadcast %333 : vector<8x1xf32> to vector<8x16xf32>
    %335 = arith.mulf %330, %334 : vector<8x16xf32>
    %336 = arith.truncf %335 : vector<8x16xf32> to vector<8x16xbf16>
    "tpu.trace_start"() <{level = 10 : i32, message = "qk,kd->qd"}> : () -> ()
    %cst_106 = arith.constant dense<0.000000e+00> : vector<8x8xf32>
    %337 = tpu.matmul %336, %324, %cst_106 {dimension_numbers = #tpu.dot_dimension_numbers<[1], [0], [0], [1], [0, 0, 1, 1], [], []>} : vector<8x16xbf16>, vector<16x8xbf16>, vector<8x8xf32> -> vector<8x8xf32>
    "tpu.trace_stop"() : () -> ()
    %338 = vector.extract_strided_slice %303 {offsets = [0, 16], sizes = [8, 8], strides = [1, 1]} : vector<8x32xbf16> to vector<8x8xbf16>
    %339 = vector.extract_strided_slice %304 {offsets = [0, 16], sizes = [16, 8], strides = [1, 1]} : vector<16x32xbf16> to vector<16x8xbf16>
    %340 = vector.extract_strided_slice %305 {offsets = [0, 16], sizes = [16, 8], strides = [1, 1]} : vector<16x32xbf16> to vector<16x8xbf16>
    "tpu.trace_start"() <{level = 10 : i32, message = "qd,kd->qk"}> : () -> ()
    %cst_107 = arith.constant dense<0.000000e+00> : vector<8x16xf32>
    %341 = tpu.matmul %338, %339, %cst_107 {dimension_numbers = #tpu.dot_dimension_numbers<[1], [1], [0], [0], [0, 0, 1, 0], [], []>} : vector<8x8xbf16>, vector<16x8xbf16>, vector<8x16xf32> -> vector<8x16xf32>
    "tpu.trace_stop"() : () -> ()
    %cst_108 = arith.constant dense<0xFF800000> : vector<8xf32>
    %342 = vector.multi_reduction <maximumf>, %341, %cst_108 [1] : vector<8x16xf32> to vector<8xf32>
    %343 = vector.shape_cast %342 : vector<8xf32> to vector<8x1xf32>
    %344 = vector.broadcast %343 : vector<8x1xf32> to vector<8x16xf32>
    %345 = arith.subf %341, %344 : vector<8x16xf32>
    %346 = math.exp %345 : vector<8x16xf32>
    %cst_109 = arith.constant dense<0.000000e+00> : vector<8xf32>
    %347 = vector.multi_reduction <add>, %346, %cst_109 [1] : vector<8x16xf32> to vector<8xf32>
    %348 = vector.shape_cast %347 : vector<8xf32> to vector<8x1xf32>
    %349 = tpu.reciprocal %348 {approx = true} : vector<8x1xf32> -> vector<8x1xf32>
    %350 = vector.broadcast %349 : vector<8x1xf32> to vector<8x16xf32>
    %351 = arith.mulf %346, %350 : vector<8x16xf32>
    %352 = arith.truncf %351 : vector<8x16xf32> to vector<8x16xbf16>
    "tpu.trace_start"() <{level = 10 : i32, message = "qk,kd->qd"}> : () -> ()
    %cst_110 = arith.constant dense<0.000000e+00> : vector<8x8xf32>
    %353 = tpu.matmul %352, %340, %cst_110 {dimension_numbers = #tpu.dot_dimension_numbers<[1], [0], [0], [1], [0, 0, 1, 1], [], []>} : vector<8x16xbf16>, vector<16x8xbf16>, vector<8x8xf32> -> vector<8x8xf32>
    "tpu.trace_stop"() : () -> ()
    %354 = vector.extract_strided_slice %303 {offsets = [0, 24], sizes = [8, 8], strides = [1, 1]} : vector<8x32xbf16> to vector<8x8xbf16>
    %355 = vector.extract_strided_slice %304 {offsets = [0, 24], sizes = [16, 8], strides = [1, 1]} : vector<16x32xbf16> to vector<16x8xbf16>
    %356 = vector.extract_strided_slice %305 {offsets = [0, 24], sizes = [16, 8], strides = [1, 1]} : vector<16x32xbf16> to vector<16x8xbf16>
    "tpu.trace_start"() <{level = 10 : i32, message = "qd,kd->qk"}> : () -> ()
    %cst_111 = arith.constant dense<0.000000e+00> : vector<8x16xf32>
    %357 = tpu.matmul %354, %355, %cst_111 {dimension_numbers = #tpu.dot_dimension_numbers<[1], [1], [0], [0], [0, 0, 1, 0], [], []>} : vector<8x8xbf16>, vector<16x8xbf16>, vector<8x16xf32> -> vector<8x16xf32>
    "tpu.trace_stop"() : () -> ()
    %cst_112 = arith.constant dense<0xFF800000> : vector<8xf32>
    %358 = vector.multi_reduction <maximumf>, %357, %cst_112 [1] : vector<8x16xf32> to vector<8xf32>
    %359 = vector.shape_cast %358 : vector<8xf32> to vector<8x1xf32>
    %360 = vector.broadcast %359 : vector<8x1xf32> to vector<8x16xf32>
    %361 = arith.subf %357, %360 : vector<8x16xf32>
    %362 = math.exp %361 : vector<8x16xf32>
    %cst_113 = arith.constant dense<0.000000e+00> : vector<8xf32>
    %363 = vector.multi_reduction <add>, %362, %cst_113 [1] : vector<8x16xf32> to vector<8xf32>
    %364 = vector.shape_cast %363 : vector<8xf32> to vector<8x1xf32>
    %365 = tpu.reciprocal %364 {approx = true} : vector<8x1xf32> -> vector<8x1xf32>
    %366 = vector.broadcast %365 : vector<8x1xf32> to vector<8x16xf32>
    %367 = arith.mulf %362, %366 : vector<8x16xf32>
    %368 = arith.truncf %367 : vector<8x16xf32> to vector<8x16xbf16>
    "tpu.trace_start"() <{level = 10 : i32, message = "qk,kd->qd"}> : () -> ()
    %cst_114 = arith.constant dense<0.000000e+00> : vector<8x8xf32>
    %369 = tpu.matmul %368, %356, %cst_114 {dimension_numbers = #tpu.dot_dimension_numbers<[1], [0], [0], [1], [0, 0, 1, 1], [], []>} : vector<8x16xbf16>, vector<16x8xbf16>, vector<8x8xf32> -> vector<8x8xf32>
    "tpu.trace_stop"() : () -> ()
    %370 = tpu.concatenate %321, %337, %353, %369 in 1 : vector<8x8xf32>, vector<8x8xf32>, vector<8x8xf32>, vector<8x8xf32> -> vector<8x32xf32>
    %371 = tpu.concatenate %302, %370 in 0 : vector<8x32xf32>, vector<8x32xf32> -> vector<16x32xf32>
    %372 = arith.truncf %371 : vector<16x32xf32> to vector<16x32xbf16>
    %c0_115 = arith.constant 0 : index
    %c0_116 = arith.constant 0 : index
    %373 = vector.load %arg20[%c0_115, %c0_116] : memref<32x32xbf16, #tpu.memory_space<vmem>>, vector<32x32xbf16>
    %cst_117 = arith.constant dense<0.000000e+00> : vector<16x32xf32>
    %374 = tpu.matmul %372, %373, %cst_117 {dimension_numbers = #tpu.dot_dimension_numbers<[1], [0], [0], [1], [0, 0, 1, 1], [], []>} : vector<16x32xbf16>, vector<32x32xbf16>, vector<16x32xf32> -> vector<16x32xf32>
    %c0_118 = arith.constant 0 : index
    %c0_119 = arith.constant 0 : index
    %375 = vector.load %arg21[%c0_118, %c0_119] : memref<1x32xf32, #tpu.memory_space<vmem>>, vector<1x32xf32>
    %376 = vector.broadcast %375 : vector<1x32xf32> to vector<16x32xf32>
    %377 = arith.addf %374, %376 : vector<16x32xf32>
    %378 = arith.addf %377, %213 : vector<16x32xf32>
    %c0_120 = arith.constant 0 : index
    %c0_121 = arith.constant 0 : index
    %379 = vector.load %arg22[%c0_120, %c0_121] : memref<1x32xf32, #tpu.memory_space<vmem>>, vector<1x32xf32>
    %c0_122 = arith.constant 0 : index
    %c0_123 = arith.constant 0 : index
    %380 = vector.load %arg23[%c0_122, %c0_123] : memref<1x32xf32, #tpu.memory_space<vmem>>, vector<1x32xf32>
    %cst_124 = arith.constant dense<0.000000e+00> : vector<16xf32>
    %381 = vector.multi_reduction <add>, %378, %cst_124 [1] : vector<16x32xf32> to vector<16xf32>
    %382 = vector.shape_cast %381 : vector<16xf32> to vector<16x1xf32>
    %cst_125 = arith.constant 3.200000e+01 : f32
    %383 = vector.broadcast %cst_125 : f32 to vector<16x1xf32>
    %384 = arith.divf %382, %383 : vector<16x1xf32>
    %385 = vector.broadcast %384 : vector<16x1xf32> to vector<16x32xf32>
    %386 = arith.subf %378, %385 : vector<16x32xf32>
    %387 = arith.mulf %386, %386 : vector<16x32xf32>
    %cst_126 = arith.constant dense<0.000000e+00> : vector<16xf32>
    %388 = vector.multi_reduction <add>, %387, %cst_126 [1] : vector<16x32xf32> to vector<16xf32>
    %389 = vector.shape_cast %388 : vector<16xf32> to vector<16x1xf32>
    %cst_127 = arith.constant 3.200000e+01 : f32
    %390 = vector.broadcast %cst_127 : f32 to vector<16x1xf32>
    %391 = arith.divf %389, %390 : vector<16x1xf32>
    %392 = vector.broadcast %384 : vector<16x1xf32> to vector<16x32xf32>
    %393 = arith.subf %378, %392 : vector<16x32xf32>
    %cst_128 = arith.constant 9.99999974E-6 : f32
    %394 = vector.broadcast %cst_128 : f32 to vector<16x1xf32>
    %395 = arith.addf %391, %394 : vector<16x1xf32>
    %396 = math.rsqrt %395 : vector<16x1xf32>
    %397 = vector.broadcast %396 : vector<16x1xf32> to vector<16x32xf32>
    %398 = arith.mulf %393, %397 : vector<16x32xf32>
    %399 = vector.broadcast %379 : vector<1x32xf32> to vector<16x32xf32>
    %400 = arith.mulf %398, %399 : vector<16x32xf32>
    %401 = vector.broadcast %380 : vector<1x32xf32> to vector<16x32xf32>
    %402 = arith.addf %400, %401 : vector<16x32xf32>
    %403 = arith.truncf %402 : vector<16x32xf32> to vector<16x32xbf16>
    %c0_129 = arith.constant 0 : index
    %c0_130 = arith.constant 0 : index
    %404 = vector.load %arg24[%c0_129, %c0_130] : memref<32x128xbf16, #tpu.memory_space<vmem>>, vector<32x128xbf16>
    %cst_131 = arith.constant dense<0.000000e+00> : vector<16x128xf32>
    %405 = tpu.matmul %403, %404, %cst_131 {dimension_numbers = #tpu.dot_dimension_numbers<[1], [0], [0], [1], [0, 0, 1, 1], [], []>} : vector<16x32xbf16>, vector<32x128xbf16>, vector<16x128xf32> -> vector<16x128xf32>
    %c0_132 = arith.constant 0 : index
    %c0_133 = arith.constant 0 : index
    %406 = vector.load %arg25[%c0_132, %c0_133] : memref<1x128xf32, #tpu.memory_space<vmem>>, vector<1x128xf32>
    %407 = vector.broadcast %406 : vector<1x128xf32> to vector<16x128xf32>
    %408 = arith.addf %405, %407 : vector<16x128xf32>
    %cst_134 = arith.constant 0.000000e+00 : f32
    %409 = vector.broadcast %cst_134 : f32 to vector<16x128xf32>
    %410 = arith.maximumf %408, %409 : vector<16x128xf32>
    %411 = arith.truncf %410 : vector<16x128xf32> to vector<16x128xbf16>
    %c0_135 = arith.constant 0 : index
    %c0_136 = arith.constant 0 : index
    %412 = vector.load %arg26[%c0_135, %c0_136] : memref<128x32xbf16, #tpu.memory_space<vmem>>, vector<128x32xbf16>
    %cst_137 = arith.constant dense<0.000000e+00> : vector<16x32xf32>
    %413 = tpu.matmul %411, %412, %cst_137 {dimension_numbers = #tpu.dot_dimension_numbers<[1], [0], [0], [1], [0, 0, 1, 1], [], []>} : vector<16x128xbf16>, vector<128x32xbf16>, vector<16x32xf32> -> vector<16x32xf32>
    %c0_138 = arith.constant 0 : index
    %c0_139 = arith.constant 0 : index
    %414 = vector.load %arg27[%c0_138, %c0_139] : memref<1x32xf32, #tpu.memory_space<vmem>>, vector<1x32xf32>
    %415 = vector.broadcast %414 : vector<1x32xf32> to vector<16x32xf32>
    %416 = arith.addf %413, %415 : vector<16x32xf32>
    %417 = arith.addf %416, %402 : vector<16x32xf32>
    %c0_140 = arith.constant 0 : index
    %c0_141 = arith.constant 0 : index
    %418 = vector.load %arg28[%c0_140, %c0_141] : memref<1x32xf32, #tpu.memory_space<vmem>>, vector<1x32xf32>
    %c0_142 = arith.constant 0 : index
    %c0_143 = arith.constant 0 : index
    %419 = vector.load %arg29[%c0_142, %c0_143] : memref<1x32xf32, #tpu.memory_space<vmem>>, vector<1x32xf32>
    %cst_144 = arith.constant dense<0.000000e+00> : vector<16xf32>
    %420 = vector.multi_reduction <add>, %417, %cst_144 [1] : vector<16x32xf32> to vector<16xf32>
    %421 = vector.shape_cast %420 : vector<16xf32> to vector<16x1xf32>
    %cst_145 = arith.constant 3.200000e+01 : f32
    %422 = vector.broadcast %cst_145 : f32 to vector<16x1xf32>
    %423 = arith.divf %421, %422 : vector<16x1xf32>
    %424 = vector.broadcast %423 : vector<16x1xf32> to vector<16x32xf32>
    %425 = arith.subf %417, %424 : vector<16x32xf32>
    %426 = arith.mulf %425, %425 : vector<16x32xf32>
    %cst_146 = arith.constant dense<0.000000e+00> : vector<16xf32>
    %427 = vector.multi_reduction <add>, %426, %cst_146 [1] : vector<16x32xf32> to vector<16xf32>
    %428 = vector.shape_cast %427 : vector<16xf32> to vector<16x1xf32>
    %cst_147 = arith.constant 3.200000e+01 : f32
    %429 = vector.broadcast %cst_147 : f32 to vector<16x1xf32>
    %430 = arith.divf %428, %429 : vector<16x1xf32>
    %431 = vector.broadcast %423 : vector<16x1xf32> to vector<16x32xf32>
    %432 = arith.subf %417, %431 : vector<16x32xf32>
    %cst_148 = arith.constant 9.99999974E-6 : f32
    %433 = vector.broadcast %cst_148 : f32 to vector<16x1xf32>
    %434 = arith.addf %430, %433 : vector<16x1xf32>
    %435 = math.rsqrt %434 : vector<16x1xf32>
    %436 = vector.broadcast %435 : vector<16x1xf32> to vector<16x32xf32>
    %437 = arith.mulf %432, %436 : vector<16x32xf32>
    %438 = vector.broadcast %418 : vector<1x32xf32> to vector<16x32xf32>
    %439 = arith.mulf %437, %438 : vector<16x32xf32>
    %440 = vector.broadcast %419 : vector<1x32xf32> to vector<16x32xf32>
    %441 = arith.addf %439, %440 : vector<16x32xf32>
    %442 = vector.shape_cast %441 : vector<16x32xf32> to vector<2x8x32xf32>
    %c0_149 = arith.constant 0 : index
    %c0_150 = arith.constant 0 : index
    %c0_151 = arith.constant 0 : index
    %443 = vector.load %arg30[%c0_149, %c0_150, %c0_151] : memref<2x8x32xf32, #tpu.memory_space<vmem>>, vector<2x8x32xf32>
    tpu.vector_store %arg30[%c0_149, %c0_150, %c0_151], %442 {strides = array<i32>} : memref<2x8x32xf32, #tpu.memory_space<vmem>>, vector<2x8x32xf32>,
    return
  }
  func.func @transform_0(%arg0: i32) -> (i32, i32, i32) {
    %c0_i32 = arith.constant 0 : i32
    %c0_i32_0 = arith.constant 0 : i32
    %c0_i32_1 = arith.constant 0 : i32
    return %arg0, %c0_i32, %c0_i32_0 : i32, i32, i32
  }
  func.func @transform_1(%arg0: i32) -> (i32, i32, i32) {
    %c0_i32 = arith.constant 0 : i32
    %c0_i32_0 = arith.constant 0 : i32
    %c0_i32_1 = arith.constant 0 : i32
    return %arg0, %c0_i32, %c0_i32_0 : i32, i32, i32
  }
  func.func @transform_2(%arg0: i32) -> (i32, i32, i32) {
    %c0_i32 = arith.constant 0 : i32
    %c0_i32_0 = arith.constant 0 : i32
    %c0_i32_1 = arith.constant 0 : i32
    return %arg0, %c0_i32, %c0_i32_0 : i32, i32, i32
  }
  func.func @transform_3(%arg0: i32) -> (i32, i32) {
    %c0_i32 = arith.constant 0 : i32
    %c0_i32_0 = arith.constant 0 : i32
    %c0_i32_1 = arith.constant 0 : i32
    return %c0_i32, %c0_i32_0 : i32, i32
  }
  func.func @transform_4(%arg0: i32) -> (i32, i32) {
    %c0_i32 = arith.constant 0 : i32
    %c0_i32_0 = arith.constant 0 : i32
    %c0_i32_1 = arith.constant 0 : i32
    return %c0_i32, %c0_i32_0 : i32, i32
  }
  func.func @transform_5(%arg0: i32) -> (i32, i32) {
    %c0_i32 = arith.constant 0 : i32
    %c0_i32_0 = arith.constant 0 : i32
    %c0_i32_1 = arith.constant 0 : i32
    return %c0_i32, %c0_i32_0 : i32, i32
  }
  func.func @transform_6(%arg0: i32) -> (i32, i32) {
    %c0_i32 = arith.constant 0 : i32
    %c0_i32_0 = arith.constant 0 : i32
    %c0_i32_1 = arith.constant 0 : i32
    return %c0_i32, %c0_i32_0 : i32, i32
  }
  func.func @transform_7(%arg0: i32) -> (i32, i32) {
    %c0_i32 = arith.constant 0 : i32
    %c0_i32_0 = arith.constant 0 : i32
    %c0_i32_1 = arith.constant 0 : i32
    return %c0_i32, %c0_i32_0 : i32, i32
  }
  func.func @transform_8(%arg0: i32) -> (i32, i32) {
    %c0_i32 = arith.constant 0 : i32
    %c0_i32_0 = arith.constant 0 : i32
    %c0_i32_1 = arith.constant 0 : i32
    return %c0_i32, %c0_i32_0 : i32, i32
  }
  func.func @transform_9(%arg0: i32) -> (i32, i32) {
    %c0_i32 = arith.constant 0 : i32
    %c0_i32_0 = arith.constant 0 : i32
    %c0_i32_1 = arith.constant 0 : i32
    return %c0_i32, %c0_i32_0 : i32, i32
  }
  func.func @transform_10(%arg0: i32) -> (i32, i32) {
    %c0_i32 = arith.constant 0 : i32
    %c0_i32_0 = arith.constant 0 : i32
    %c0_i32_1 = arith.constant 0 : i32
    return %c0_i32, %c0_i32_0 : i32, i32
  }
  func.func @transform_11(%arg0: i32) -> (i32, i32) {
    %c0_i32 = arith.constant 0 : i32
    %c0_i32_0 = arith.constant 0 : i32
    %c0_i32_1 = arith.constant 0 : i32
    return %c0_i32, %c0_i32_0 : i32, i32
  }
  func.func @transform_12(%arg0: i32) -> (i32, i32) {
    %c0_i32 = arith.constant 0 : i32
    %c0_i32_0 = arith.constant 0 : i32
    %c0_i32_1 = arith.constant 0 : i32
    return %c0_i32, %c0_i32_0 : i32, i32
  }
  func.func @transform_13(%arg0: i32) -> (i32, i32) {
    %c0_i32 = arith.constant 0 : i32
    %c0_i32_0 = arith.constant 0 : i32
    %c0_i32_1 = arith.constant 0 : i32
    return %c0_i32, %c0_i32_0 : i32, i32
  }
  func.func @transform_14(%arg0: i32) -> (i32, i32) {
    %c0_i32 = arith.constant 0 : i32
    %c0_i32_0 = arith.constant 0 : i32
    %c0_i32_1 = arith.constant 0 : i32
    return %c0_i32, %c0_i32_0 : i32, i32
  }
  func.func @transform_15(%arg0: i32) -> (i32, i32) {
    %c0_i32 = arith.constant 0 : i32
    %c0_i32_0 = arith.constant 0 : i32
    %c0_i32_1 = arith.constant 0 : i32
    return %c0_i32, %c0_i32_0 : i32, i32
  }
  func.func @transform_16(%arg0: i32) -> (i32, i32) {
    %c0_i32 = arith.constant 0 : i32
    %c0_i32_0 = arith.constant 0 : i32
    %c0_i32_1 = arith.constant 0 : i32
    return %c0_i32, %c0_i32_0 : i32, i32
  }
  func.func @transform_17(%arg0: i32) -> (i32, i32) {
    %c0_i32 = arith.constant 0 : i32
    %c0_i32_0 = arith.constant 0 : i32
    %c0_i32_1 = arith.constant 0 : i32
    return %c0_i32, %c0_i32_0 : i32, i32
  }
  func.func @transform_18(%arg0: i32) -> (i32, i32) {
    %c0_i32 = arith.constant 0 : i32
    %c0_i32_0 = arith.constant 0 : i32
    %c0_i32_1 = arith.constant 0 : i32
    return %c0_i32, %c0_i32_0 : i32, i32
  }
  func.func @transform_19(%arg0: i32) -> (i32, i32) {
    %c0_i32 = arith.constant 0 : i32
    %c0_i32_0 = arith.constant 0 : i32
    %c0_i32_1 = arith.constant 0 : i32
    return %c0_i32, %c0_i32_0 : i32, i32
  }
  func.func @transform_20(%arg0: i32) -> (i32, i32) {
    %c0_i32 = arith.constant 0 : i32
    %c0_i32_0 = arith.constant 0 : i32
    %c0_i32_1 = arith.constant 0 : i32
    return %c0_i32, %c0_i32_0 : i32, i32
  }
  func.func @transform_21(%arg0: i32) -> (i32, i32) {
    %c0_i32 = arith.constant 0 : i32
    %c0_i32_0 = arith.constant 0 : i32
    %c0_i32_1 = arith.constant 0 : i32
    return %c0_i32, %c0_i32_0 : i32, i32
  }
  func.func @transform_22(%arg0: i32) -> (i32, i32) {
    %c0_i32 = arith.constant 0 : i32
    %c0_i32_0 = arith.constant 0 : i32
    %c0_i32_1 = arith.constant 0 : i32
    return %c0_i32, %c0_i32_0 : i32, i32
  }
  func.func @transform_23(%arg0: i32) -> (i32, i32) {
    %c0_i32 = arith.constant 0 : i32
    %c0_i32_0 = arith.constant 0 : i32
    %c0_i32_1 = arith.constant 0 : i32
    return %c0_i32, %c0_i32_0 : i32, i32
  }
  func.func @transform_24(%arg0: i32) -> (i32, i32) {
    %c0_i32 = arith.constant 0 : i32
    %c0_i32_0 = arith.constant 0 : i32
    %c0_i32_1 = arith.constant 0 : i32
    return %c0_i32, %c0_i32_0 : i32, i32
  }
  func.func @transform_25(%arg0: i32) -> (i32, i32) {
    %c0_i32 = arith.constant 0 : i32
    %c0_i32_0 = arith.constant 0 : i32
    %c0_i32_1 = arith.constant 0 : i32
    return %c0_i32, %c0_i32_0 : i32, i32
  }
  func.func @transform_26(%arg0: i32) -> (i32, i32) {
    %c0_i32 = arith.constant 0 : i32
    %c0_i32_0 = arith.constant 0 : i32
    %c0_i32_1 = arith.constant 0 : i32
    return %c0_i32, %c0_i32_0 : i32, i32
  }
  func.func @transform_27(%arg0: i32) -> (i32, i32) {
    %c0_i32 = arith.constant 0 : i32
    %c0_i32_0 = arith.constant 0 : i32
    %c0_i32_1 = arith.constant 0 : i32
    return %c0_i32, %c0_i32_0 : i32, i32
  }
  func.func @transform_28(%arg0: i32) -> (i32, i32) {
    %c0_i32 = arith.constant 0 : i32
    %c0_i32_0 = arith.constant 0 : i32
    %c0_i32_1 = arith.constant 0 : i32
    return %c0_i32, %c0_i32_0 : i32, i32
  }
  func.func @transform_29(%arg0: i32) -> (i32, i32, i32) {
    %c0_i32 = arith.constant 0 : i32
    %c0_i32_0 = arith.constant 0 : i32
    %c0_i32_1 = arith.constant 0 : i32
    return %arg0, %c0_i32, %c0_i32_0 : i32, i32, i32
  }
}

module attributes {stable_mosaic.version = 11 : i64} {
  func.func @kernel(%arg0: i32, %arg1: memref<2x8x32xf32, #tpu.memory_space<vmem>>, %arg2: memref<2x16x32xf32, #tpu.memory_space<vmem>>, %arg3: memref<2x8x8xbf16, #tpu.memory_space<vmem>>, %arg4: memref<32x32xbf16, #tpu.memory_space<vmem>>, %arg5: memref<1x32xf32, #tpu.memory_space<vmem>>, %arg6: memref<32x32xbf16, #tpu.memory_space<vmem>>, %arg7: memref<1x32xf32, #tpu.memory_space<vmem>>, %arg8: memref<32x32xbf16, #tpu.memory_space<vmem>>, %arg9: memref<1x32xf32, #tpu.memory_space<vmem>>, %arg10: memref<32x32xbf16, #tpu.memory_space<vmem>>, %arg11: memref<1x32xf32, #tpu.memory_space<vmem>>, %arg12: memref<1x32xf32, #tpu.memory_space<vmem>>, %arg13: memref<1x32xf32, #tpu.memory_space<vmem>>, %arg14: memref<32x32xbf16, #tpu.memory_space<vmem>>, %arg15: memref<1x32xf32, #tpu.memory_space<vmem>>, %arg16: memref<32x32xbf16, #tpu.memory_space<vmem>>, %arg17: memref<1x32xf32, #tpu.memory_space<vmem>>, %arg18: memref<32x32xbf16, #tpu.memory_space<vmem>>, %arg19: memref<1x32xf32, #tpu.memory_space<vmem>>, %arg20: memref<32x32xbf16, #tpu.memory_space<vmem>>, %arg21: memref<1x32xf32, #tpu.memory_space<vmem>>, %arg22: memref<1x32xf32, #tpu.memory_space<vmem>>, %arg23: memref<1x32xf32, #tpu.memory_space<vmem>>, %arg24: memref<32x128xbf16, #tpu.memory_space<vmem>>, %arg25: memref<1x128xf32, #tpu.memory_space<vmem>>, %arg26: memref<128x32xbf16, #tpu.memory_space<vmem>>, %arg27: memref<1x32xf32, #tpu.memory_space<vmem>>, %arg28: memref<1x32xf32, #tpu.memory_space<vmem>>, %arg29: memref<1x32xf32, #tpu.memory_space<vmem>>, %arg30: memref<2x8x32xf32, #tpu.memory_space<vmem>>) attributes {dimension_semantics = [#tpu.dimension_semantics<parallel>], iteration_bounds = array<i64: 1>, scalar_prefetch = 0 : i64, scratch_operands = 0 : i64, tpu.core_type = #tpu.core_type<tc>, window_params = [{transform_indices = @transform_0, window_bounds = array<i64: 2, 8, 32>}, {transform_indices = @transform_1, window_bounds = array<i64: 2, 16, 32>}, {transform_indices = @transform_2, window_bounds = array<i64: 2, 8, 8>}, {pipeline_mode = #tpu.pipeline_mode<synchronous>, transform_indices = @transform_3, window_bounds = array<i64: 32, 32>}, {pipeline_mode = #tpu.pipeline_mode<synchronous>, transform_indices = @transform_4, window_bounds = array<i64: 1, 32>}, {pipeline_mode = #tpu.pipeline_mode<synchronous>, transform_indices = @transform_5, window_bounds = array<i64: 32, 32>}, {pipeline_mode = #tpu.pipeline_mode<synchronous>, transform_indices = @transform_6, window_bounds = array<i64: 1, 32>}, {pipeline_mode = #tpu.pipeline_mode<synchronous>, transform_indices = @transform_7, window_bounds = array<i64: 32, 32>}, {pipeline_mode = #tpu.pipeline_mode<synchronous>, transform_indices = @transform_8, window_bounds = array<i64: 1, 32>}, {pipeline_mode = #tpu.pipeline_mode<synchronous>, transform_indices = @transform_9, window_bounds = array<i64: 32, 32>}, {pipeline_mode = #tpu.pipeline_mode<synchronous>, transform_indices = @transform_10, window_bounds = array<i64: 1, 32>}, {pipeline_mode = #tpu.pipeline_mode<synchronous>, transform_indices = @transform_11, window_bounds = array<i64: 1, 32>}, {pipeline_mode = #tpu.pipeline_mode<synchronous>, transform_indices = @transform_12, window_bounds = array<i64: 1, 32>}, {pipeline_mode = #tpu.pipeline_mode<synchronous>, transform_indices = @transform_13, window_bounds = array<i64: 32, 32>}, {pipeline_mode = #tpu.pipeline_mode<synchronous>, transform_indices = @transform_14, window_bounds = array<i64: 1, 32>}, {pipeline_mode = #tpu.pipeline_mode<synchronous>, transform_indices = @transform_15, window_bounds = array<i64: 32, 32>}, {pipeline_mode = #tpu.pipeline_mode<synchronous>, transform_indices = @transform_16, window_bounds = array<i64: 1, 32>}, {pipeline_mode = #tpu.pipeline_mode<synchronous>, transform_indices = @transform_17, window_bounds = array<i64: 32, 32>}, {pipeline_mode = #tpu.pipeline_mode<synchronous>, transform_indices = @transform_18, window_bounds = array<i64: 1, 32>}, {pipeline_mode = #tpu.pipeline_mode<synchronous>, transform_indices = @transform_19, window_bounds = array<i64: 32, 32>}, {pipeline_mode = #tpu.pipeline_mode<synchronous>, transform_indices = @transform_20, window_bounds = array<i64: 1, 32>}, {pipeline_mode = #tpu.pipeline_mode<synchronous>, transform_indices = @transform_21, window_bounds = array<i64: 1, 32>}, {pipeline_mode = #tpu.pipeline_mode<synchronous>, transform_indices = @transform_22, window_bounds = array<i64: 1, 32>}, {pipeline_mode = #tpu.pipeline_mode<synchronous>, transform_indices = @transform_23, window_bounds = array<i64: 32, 128>}, {pipeline_mode = #tpu.pipeline_mode<synchronous>, transform_indices = @transform_24, window_bounds = array<i64: 1, 128>}, {pipeline_mode = #tpu.pipeline_mode<synchronous>, transform_indices = @transform_25, window_bounds = array<i64: 128, 32>}, {pipeline_mode = #tpu.pipeline_mode<synchronous>, transform_indices = @transform_26, window_bounds = array<i64: 1, 32>}, {pipeline_mode = #tpu.pipeline_mode<synchronous>, transform_indices = @transform_27, window_bounds = array<i64: 1, 32>}, {pipeline_mode = #tpu.pipeline_mode<synchronous>, transform_indices = @transform_28, window_bounds = array<i64: 1, 32>}, {transform_indices = @transform_29, window_bounds = array<i64: 2, 8, 32>}]} {
    %c0 = arith.constant 0 : index
    %c0_0 = arith.constant 0 : index
    %c0_1 = arith.constant 0 : index
    %0 = vector.load %arg1[%c0, %c0_0, %c0_1] : memref<2x8x32xf32, #tpu.memory_space<vmem>>, vector<2x8x32xf32>
    %1 = vector.shape_cast %0 : vector<2x8x32xf32> to vector<16x32xf32>
    %c0_2 = arith.constant 0 : index
    %c0_3 = arith.constant 0 : index
    %c0_4 = arith.constant 0 : index
    %2 = vector.load %arg2[%c0_2, %c0_3, %c0_4] : memref<2x16x32xf32, #tpu.memory_space<vmem>>, vector<2x16x32xf32>
    %3 = vector.shape_cast %2 : vector<2x16x32xf32> to vector<32x32xf32>
    %c0_5 = arith.constant 0 : index
    %c0_6 = arith.constant 0 : index
    %c0_7 = arith.constant 0 : index
    %4 = vector.load %arg3[%c0_5, %c0_6, %c0_7] : memref<2x8x8xbf16, #tpu.memory_space<vmem>>, vector<2x8x8xbf16>
    %5 = arith.truncf %1 : vector<16x32xf32> to vector<16x32xbf16>
    %c0_8 = arith.constant 0 : index
    %c0_9 = arith.constant 0 : index
    %6 = vector.load %arg4[%c0_8, %c0_9] : memref<32x32xbf16, #tpu.memory_space<vmem>>, vector<32x32xbf16>
    %cst = arith.constant dense<0.000000e+00> : vector<16x32xf32>
    %7 = tpu.matmul %5, %6, %cst {dimension_numbers = #tpu.dot_dimension_numbers<[1], [0], [0], [1], [0, 0, 1, 1], [], []>} : vector<16x32xbf16>, vector<32x32xbf16>, vector<16x32xf32> -> vector<16x32xf32>
    %c0_10 = arith.constant 0 : index
    %c0_11 = arith.constant 0 : index
    %8 = vector.load %arg5[%c0_10, %c0_11] : memref<1x32xf32, #tpu.memory_space<vmem>>, vector<1x32xf32>
    %9 = vector.broadcast %8 : vector<1x32xf32> to vector<16x32xf32>
    %10 = arith.addf %7, %9 : vector<16x32xf32>
    %11 = arith.truncf %10 : vector<16x32xf32> to vector<16x32xbf16>
    %12 = arith.truncf %1 : vector<16x32xf32> to vector<16x32xbf16>
    %c0_12 = arith.constant 0 : index
    %c0_13 = arith.constant 0 : index
    %13 = vector.load %arg6[%c0_12, %c0_13] : memref<32x32xbf16, #tpu.memory_space<vmem>>, vector<32x32xbf16>
    %cst_14 = arith.constant dense<0.000000e+00> : vector<16x32xf32>
    %14 = tpu.matmul %12, %13, %cst_14 {dimension_numbers = #tpu.dot_dimension_numbers<[1], [0], [0], [1], [0, 0, 1, 1], [], []>} : vector<16x32xbf16>, vector<32x32xbf16>, vector<16x32xf32> -> vector<16x32xf32>
    %c0_15 = arith.constant 0 : index
    %c0_16 = arith.constant 0 : index
    %15 = vector.load %arg7[%c0_15, %c0_16] : memref<1x32xf32, #tpu.memory_space<vmem>>, vector<1x32xf32>
    %16 = vector.broadcast %15 : vector<1x32xf32> to vector<16x32xf32>
    %17 = arith.addf %14, %16 : vector<16x32xf32>
    %18 = arith.truncf %17 : vector<16x32xf32> to vector<16x32xbf16>
    %19 = arith.truncf %1 : vector<16x32xf32> to vector<16x32xbf16>
    %c0_17 = arith.constant 0 : index
    %c0_18 = arith.constant 0 : index
    %20 = vector.load %arg8[%c0_17, %c0_18] : memref<32x32xbf16, #tpu.memory_space<vmem>>, vector<32x32xbf16>
    %cst_19 = arith.constant dense<0.000000e+00> : vector<16x32xf32>
    %21 = tpu.matmul %19, %20, %cst_19 {dimension_numbers = #tpu.dot_dimension_numbers<[1], [0], [0], [1], [0, 0, 1, 1], [], []>} : vector<16x32xbf16>, vector<32x32xbf16>, vector<16x32xf32> -> vector<16x32xf32>
    %c0_20 = arith.constant 0 : index
    %c0_21 = arith.constant 0 : index
    %22 = vector.load %arg9[%c0_20, %c0_21] : memref<1x32xf32, #tpu.memory_space<vmem>>, vector<1x32xf32>
    %23 = vector.broadcast %22 : vector<1x32xf32> to vector<16x32xf32>
    %24 = arith.addf %21, %23 : vector<16x32xf32>
    %25 = arith.truncf %24 : vector<16x32xf32> to vector<16x32xbf16>
    %26 = vector.extract_strided_slice %11 {offsets = [0, 0], sizes = [8, 32], strides = [1, 1]} : vector<16x32xbf16> to vector<8x32xbf16>
    %27 = vector.extract_strided_slice %18 {offsets = [0, 0], sizes = [8, 32], strides = [1, 1]} : vector<16x32xbf16> to vector<8x32xbf16>
    %28 = vector.extract_strided_slice %25 {offsets = [0, 0], sizes = [8, 32], strides = [1, 1]} : vector<16x32xbf16> to vector<8x32xbf16>
    %29 = vector.extract_strided_slice %4 {offsets = [0, 0, 0], sizes = [1, 8, 8], strides = [1, 1, 1]} : vector<2x8x8xbf16> to vector<1x8x8xbf16>
    %30 = vector.shape_cast %29 : vector<1x8x8xbf16> to vector<8x8xbf16>
    %31 = vector.extract_strided_slice %26 {offsets = [0, 0], sizes = [8, 8], strides = [1, 1]} : vector<8x32xbf16> to vector<8x8xbf16>
    %32 = vector.extract_strided_slice %27 {offsets = [0, 0], sizes = [8, 8], strides = [1, 1]} : vector<8x32xbf16> to vector<8x8xbf16>
    %33 = vector.extract_strided_slice %28 {offsets = [0, 0], sizes = [8, 8], strides = [1, 1]} : vector<8x32xbf16> to vector<8x8xbf16>
    "tpu.trace_start"() <{level = 10 : i32, message = "qd,kd->qk"}> : () -> ()
    %cst_22 = arith.constant dense<0.000000e+00> : vector<8x8xf32>
    %34 = tpu.matmul %31, %32, %cst_22 {dimension_numbers = #tpu.dot_dimension_numbers<[1], [1], [0], [0], [0, 0, 1, 0], [], []>} : vector<8x8xbf16>, vector<8x8xbf16>, vector<8x8xf32> -> vector<8x8xf32>
    "tpu.trace_stop"() : () -> ()
    %35 = arith.extf %30 : vector<8x8xbf16> to vector<8x8xf32>
    %36 = arith.addf %34, %35 : vector<8x8xf32>
    %cst_23 = arith.constant dense<0xFF800000> : vector<8xf32>
    %37 = vector.multi_reduction <maximumf>, %36, %cst_23 [1] : vector<8x8xf32> to vector<8xf32>
    %38 = vector.shape_cast %37 : vector<8xf32> to vector<8x1xf32>
    %39 = vector.broadcast %38 : vector<8x1xf32> to vector<8x8xf32>
    %40 = arith.subf %36, %39 : vector<8x8xf32>
    %41 = math.exp %40 : vector<8x8xf32>
    %cst_24 = arith.constant dense<0.000000e+00> : vector<8xf32>
    %42 = vector.multi_reduction <add>, %41, %cst_24 [1] : vector<8x8xf32> to vector<8xf32>
    %43 = vector.shape_cast %42 : vector<8xf32> to vector<8x1xf32>
    %44 = tpu.reciprocal %43 {approx = true} : vector<8x1xf32> -> vector<8x1xf32>
    %45 = vector.broadcast %44 : vector<8x1xf32> to vector<8x8xf32>
    %46 = arith.mulf %41, %45 : vector<8x8xf32>
    %47 = arith.truncf %46 : vector<8x8xf32> to vector<8x8xbf16>
    "tpu.trace_start"() <{level = 10 : i32, message = "qk,kd->qd"}> : () -> ()
    %cst_25 = arith.constant dense<0.000000e+00> : vector<8x8xf32>
    %48 = tpu.matmul %47, %33, %cst_25 {dimension_numbers = #tpu.dot_dimension_numbers<[1], [0], [0], [1], [0, 0, 1, 1], [], []>} : vector<8x8xbf16>, vector<8x8xbf16>, vector<8x8xf32> -> vector<8x8xf32>
    "tpu.trace_stop"() : () -> ()
    %49 = vector.extract_strided_slice %26 {offsets = [0, 8], sizes = [8, 8], strides = [1, 1]} : vector<8x32xbf16> to vector<8x8xbf16>
    %50 = vector.extract_strided_slice %27 {offsets = [0, 8], sizes = [8, 8], strides = [1, 1]} : vector<8x32xbf16> to vector<8x8xbf16>
    %51 = vector.extract_strided_slice %28 {offsets = [0, 8], sizes = [8, 8], strides = [1, 1]} : vector<8x32xbf16> to vector<8x8xbf16>
    "tpu.trace_start"() <{level = 10 : i32, message = "qd,kd->qk"}> : () -> ()
    %cst_26 = arith.constant dense<0.000000e+00> : vector<8x8xf32>
    %52 = tpu.matmul %49, %50, %cst_26 {dimension_numbers = #tpu.dot_dimension_numbers<[1], [1], [0], [0], [0, 0, 1, 0], [], []>} : vector<8x8xbf16>, vector<8x8xbf16>, vector<8x8xf32> -> vector<8x8xf32>
    "tpu.trace_stop"() : () -> ()
    %53 = arith.extf %30 : vector<8x8xbf16> to vector<8x8xf32>
    %54 = arith.addf %52, %53 : vector<8x8xf32>
    %cst_27 = arith.constant dense<0xFF800000> : vector<8xf32>
    %55 = vector.multi_reduction <maximumf>, %54, %cst_27 [1] : vector<8x8xf32> to vector<8xf32>
    %56 = vector.shape_cast %55 : vector<8xf32> to vector<8x1xf32>
    %57 = vector.broadcast %56 : vector<8x1xf32> to vector<8x8xf32>
    %58 = arith.subf %54, %57 : vector<8x8xf32>
    %59 = math.exp %58 : vector<8x8xf32>
    %cst_28 = arith.constant dense<0.000000e+00> : vector<8xf32>
    %60 = vector.multi_reduction <add>, %59, %cst_28 [1] : vector<8x8xf32> to vector<8xf32>
    %61 = vector.shape_cast %60 : vector<8xf32> to vector<8x1xf32>
    %62 = tpu.reciprocal %61 {approx = true} : vector<8x1xf32> -> vector<8x1xf32>
    %63 = vector.broadcast %62 : vector<8x1xf32> to vector<8x8xf32>
    %64 = arith.mulf %59, %63 : vector<8x8xf32>
    %65 = arith.truncf %64 : vector<8x8xf32> to vector<8x8xbf16>
    "tpu.trace_start"() <{level = 10 : i32, message = "qk,kd->qd"}> : () -> ()
    %cst_29 = arith.constant dense<0.000000e+00> : vector<8x8xf32>
    %66 = tpu.matmul %65, %51, %cst_29 {dimension_numbers = #tpu.dot_dimension_numbers<[1], [0], [0], [1], [0, 0, 1, 1], [], []>} : vector<8x8xbf16>, vector<8x8xbf16>, vector<8x8xf32> -> vector<8x8xf32>
    "tpu.trace_stop"() : () -> ()
    %67 = vector.extract_strided_slice %26 {offsets = [0, 16], sizes = [8, 8], strides = [1, 1]} : vector<8x32xbf16> to vector<8x8xbf16>
    %68 = vector.extract_strided_slice %27 {offsets = [0, 16], sizes = [8, 8], strides = [1, 1]} : vector<8x32xbf16> to vector<8x8xbf16>
    %69 = vector.extract_strided_slice %28 {offsets = [0, 16], sizes = [8, 8], strides = [1, 1]} : vector<8x32xbf16> to vector<8x8xbf16>
    "tpu.trace_start"() <{level = 10 : i32, message = "qd,kd->qk"}> : () -> ()
    %cst_30 = arith.constant dense<0.000000e+00> : vector<8x8xf32>
    %70 = tpu.matmul %67, %68, %cst_30 {dimension_numbers = #tpu.dot_dimension_numbers<[1], [1], [0], [0], [0, 0, 1, 0], [], []>} : vector<8x8xbf16>, vector<8x8xbf16>, vector<8x8xf32> -> vector<8x8xf32>
    "tpu.trace_stop"() : () -> ()
    %71 = arith.extf %30 : vector<8x8xbf16> to vector<8x8xf32>
    %72 = arith.addf %70, %71 : vector<8x8xf32>
    %cst_31 = arith.constant dense<0xFF800000> : vector<8xf32>
    %73 = vector.multi_reduction <maximumf>, %72, %cst_31 [1] : vector<8x8xf32> to vector<8xf32>
    %74 = vector.shape_cast %73 : vector<8xf32> to vector<8x1xf32>
    %75 = vector.broadcast %74 : vector<8x1xf32> to vector<8x8xf32>
    %76 = arith.subf %72, %75 : vector<8x8xf32>
    %77 = math.exp %76 : vector<8x8xf32>
    %cst_32 = arith.constant dense<0.000000e+00> : vector<8xf32>
    %78 = vector.multi_reduction <add>, %77, %cst_32 [1] : vector<8x8xf32> to vector<8xf32>
    %79 = vector.shape_cast %78 : vector<8xf32> to vector<8x1xf32>
    %80 = tpu.reciprocal %79 {approx = true} : vector<8x1xf32> -> vector<8x1xf32>
    %81 = vector.broadcast %80 : vector<8x1xf32> to vector<8x8xf32>
    %82 = arith.mulf %77, %81 : vector<8x8xf32>
    %83 = arith.truncf %82 : vector<8x8xf32> to vector<8x8xbf16>
    "tpu.trace_start"() <{level = 10 : i32, message = "qk,kd->qd"}> : () -> ()
    %cst_33 = arith.constant dense<0.000000e+00> : vector<8x8xf32>
    %84 = tpu.matmul %83, %69, %cst_33 {dimension_numbers = #tpu.dot_dimension_numbers<[1], [0], [0], [1], [0, 0, 1, 1], [], []>} : vector<8x8xbf16>, vector<8x8xbf16>, vector<8x8xf32> -> vector<8x8xf32>
    "tpu.trace_stop"() : () -> ()
    %85 = vector.extract_strided_slice %26 {offsets = [0, 24], sizes = [8, 8], strides = [1, 1]} : vector<8x32xbf16> to vector<8x8xbf16>
    %86 = vector.extract_strided_slice %27 {offsets = [0, 24], sizes = [8, 8], strides = [1, 1]} : vector<8x32xbf16> to vector<8x8xbf16>
    %87 = vector.extract_strided_slice %28 {offsets = [0, 24], sizes = [8, 8], strides = [1, 1]} : vector<8x32xbf16> to vector<8x8xbf16>
    "tpu.trace_start"() <{level = 10 : i32, message = "qd,kd->qk"}> : () -> ()
    %cst_34 = arith.constant dense<0.000000e+00> : vector<8x8xf32>
    %88 = tpu.matmul %85, %86, %cst_34 {dimension_numbers = #tpu.dot_dimension_numbers<[1], [1], [0], [0], [0, 0, 1, 0], [], []>} : vector<8x8xbf16>, vector<8x8xbf16>, vector<8x8xf32> -> vector<8x8xf32>
    "tpu.trace_stop"() : () -> ()
    %89 = arith.extf %30 : vector<8x8xbf16> to vector<8x8xf32>
    %90 = arith.addf %88, %89 : vector<8x8xf32>
    %cst_35 = arith.constant dense<0xFF800000> : vector<8xf32>
    %91 = vector.multi_reduction <maximumf>, %90, %cst_35 [1] : vector<8x8xf32> to vector<8xf32>
    %92 = vector.shape_cast %91 : vector<8xf32> to vector<8x1xf32>
    %93 = vector.broadcast %92 : vector<8x1xf32> to vector<8x8xf32>
    %94 = arith.subf %90, %93 : vector<8x8xf32>
    %95 = math.exp %94 : vector<8x8xf32>
    %cst_36 = arith.constant dense<0.000000e+00> : vector<8xf32>
    %96 = vector.multi_reduction <add>, %95, %cst_36 [1] : vector<8x8xf32> to vector<8xf32>
    %97 = vector.shape_cast %96 : vector<8xf32> to vector<8x1xf32>
    %98 = tpu.reciprocal %97 {approx = true} : vector<8x1xf32> -> vector<8x1xf32>
    %99 = vector.broadcast %98 : vector<8x1xf32> to vector<8x8xf32>
    %100 = arith.mulf %95, %99 : vector<8x8xf32>
    %101 = arith.truncf %100 : vector<8x8xf32> to vector<8x8xbf16>
    "tpu.trace_start"() <{level = 10 : i32, message = "qk,kd->qd"}> : () -> ()
    %cst_37 = arith.constant dense<0.000000e+00> : vector<8x8xf32>
    %102 = tpu.matmul %101, %87, %cst_37 {dimension_numbers = #tpu.dot_dimension_numbers<[1], [0], [0], [1], [0, 0, 1, 1], [], []>} : vector<8x8xbf16>, vector<8x8xbf16>, vector<8x8xf32> -> vector<8x8xf32>
    "tpu.trace_stop"() : () -> ()
    %103 = tpu.concatenate %48, %66, %84, %102 in 1 : vector<8x8xf32>, vector<8x8xf32>, vector<8x8xf32>, vector<8x8xf32> -> vector<8x32xf32>
    %104 = vector.extract_strided_slice %11 {offsets = [8, 0], sizes = [8, 32], strides = [1, 1]} : vector<16x32xbf16> to vector<8x32xbf16>
    %105 = vector.extract_strided_slice %18 {offsets = [8, 0], sizes = [8, 32], strides = [1, 1]} : vector<16x32xbf16> to vector<8x32xbf16>
    %106 = vector.extract_strided_slice %25 {offsets = [8, 0], sizes = [8, 32], strides = [1, 1]} : vector<16x32xbf16> to vector<8x32xbf16>
    %107 = vector.extract_strided_slice %4 {offsets = [1, 0, 0], sizes = [1, 8, 8], strides = [1, 1, 1]} : vector<2x8x8xbf16> to vector<1x8x8xbf16>
    %108 = vector.shape_cast %107 : vector<1x8x8xbf16> to vector<8x8xbf16>
    %109 = vector.extract_strided_slice %104 {offsets = [0, 0], sizes = [8, 8], strides = [1, 1]} : vector<8x32xbf16> to vector<8x8xbf16>
    %110 = vector.extract_strided_slice %105 {offsets = [0, 0], sizes = [8, 8], strides = [1, 1]} : vector<8x32xbf16> to vector<8x8xbf16>
    %111 = vector.extract_strided_slice %106 {offsets = [0, 0], sizes = [8, 8], strides = [1, 1]} : vector<8x32xbf16> to vector<8x8xbf16>
    "tpu.trace_start"() <{level = 10 : i32, message = "qd,kd->qk"}> : () -> ()
    %cst_38 = arith.constant dense<0.000000e+00> : vector<8x8xf32>
    %112 = tpu.matmul %109, %110, %cst_38 {dimension_numbers = #tpu.dot_dimension_numbers<[1], [1], [0], [0], [0, 0, 1, 0], [], []>} : vector<8x8xbf16>, vector<8x8xbf16>, vector<8x8xf32> -> vector<8x8xf32>
    "tpu.trace_stop"() : () -> ()
    %113 = arith.extf %108 : vector<8x8xbf16> to vector<8x8xf32>
    %114 = arith.addf %112, %113 : vector<8x8xf32>
    %cst_39 = arith.constant dense<0xFF800000> : vector<8xf32>
    %115 = vector.multi_reduction <maximumf>, %114, %cst_39 [1] : vector<8x8xf32> to vector<8xf32>
    %116 = vector.shape_cast %115 : vector<8xf32> to vector<8x1xf32>
    %117 = vector.broadcast %116 : vector<8x1xf32> to vector<8x8xf32>
    %118 = arith.subf %114, %117 : vector<8x8xf32>
    %119 = math.exp %118 : vector<8x8xf32>
    %cst_40 = arith.constant dense<0.000000e+00> : vector<8xf32>
    %120 = vector.multi_reduction <add>, %119, %cst_40 [1] : vector<8x8xf32> to vector<8xf32>
    %121 = vector.shape_cast %120 : vector<8xf32> to vector<8x1xf32>
    %122 = tpu.reciprocal %121 {approx = true} : vector<8x1xf32> -> vector<8x1xf32>
    %123 = vector.broadcast %122 : vector<8x1xf32> to vector<8x8xf32>
    %124 = arith.mulf %119, %123 : vector<8x8xf32>
    %125 = arith.truncf %124 : vector<8x8xf32> to vector<8x8xbf16>
    "tpu.trace_start"() <{level = 10 : i32, message = "qk,kd->qd"}> : () -> ()
    %cst_41 = arith.constant dense<0.000000e+00> : vector<8x8xf32>
    %126 = tpu.matmul %125, %111, %cst_41 {dimension_numbers = #tpu.dot_dimension_numbers<[1], [0], [0], [1], [0, 0, 1, 1], [], []>} : vector<8x8xbf16>, vector<8x8xbf16>, vector<8x8xf32> -> vector<8x8xf32>
    "tpu.trace_stop"() : () -> ()
    %127 = vector.extract_strided_slice %104 {offsets = [0, 8], sizes = [8, 8], strides = [1, 1]} : vector<8x32xbf16> to vector<8x8xbf16>
    %128 = vector.extract_strided_slice %105 {offsets = [0, 8], sizes = [8, 8], strides = [1, 1]} : vector<8x32xbf16> to vector<8x8xbf16>
    %129 = vector.extract_strided_slice %106 {offsets = [0, 8], sizes = [8, 8], strides = [1, 1]} : vector<8x32xbf16> to vector<8x8xbf16>
    "tpu.trace_start"() <{level = 10 : i32, message = "qd,kd->qk"}> : () -> ()
    %cst_42 = arith.constant dense<0.000000e+00> : vector<8x8xf32>
    %130 = tpu.matmul %127, %128, %cst_42 {dimension_numbers = #tpu.dot_dimension_numbers<[1], [1], [0], [0], [0, 0, 1, 0], [], []>} : vector<8x8xbf16>, vector<8x8xbf16>, vector<8x8xf32> -> vector<8x8xf32>
    "tpu.trace_stop"() : () -> ()
    %131 = arith.extf %108 : vector<8x8xbf16> to vector<8x8xf32>
    %132 = arith.addf %130, %131 : vector<8x8xf32>
    %cst_43 = arith.constant dense<0xFF800000> : vector<8xf32>
    %133 = vector.multi_reduction <maximumf>, %132, %cst_43 [1] : vector<8x8xf32> to vector<8xf32>
    %134 = vector.shape_cast %133 : vector<8xf32> to vector<8x1xf32>
    %135 = vector.broadcast %134 : vector<8x1xf32> to vector<8x8xf32>
    %136 = arith.subf %132, %135 : vector<8x8xf32>
    %137 = math.exp %136 : vector<8x8xf32>
    %cst_44 = arith.constant dense<0.000000e+00> : vector<8xf32>
    %138 = vector.multi_reduction <add>, %137, %cst_44 [1] : vector<8x8xf32> to vector<8xf32>
    %139 = vector.shape_cast %138 : vector<8xf32> to vector<8x1xf32>
    %140 = tpu.reciprocal %139 {approx = true} : vector<8x1xf32> -> vector<8x1xf32>
    %141 = vector.broadcast %140 : vector<8x1xf32> to vector<8x8xf32>
    %142 = arith.mulf %137, %141 : vector<8x8xf32>
    %143 = arith.truncf %142 : vector<8x8xf32> to vector<8x8xbf16>
    "tpu.trace_start"() <{level = 10 : i32, message = "qk,kd->qd"}> : () -> ()
    %cst_45 = arith.constant dense<0.000000e+00> : vector<8x8xf32>
    %144 = tpu.matmul %143, %129, %cst_45 {dimension_numbers = #tpu.dot_dimension_numbers<[1], [0], [0], [1], [0, 0, 1, 1], [], []>} : vector<8x8xbf16>, vector<8x8xbf16>, vector<8x8xf32> -> vector<8x8xf32>
    "tpu.trace_stop"() : () -> ()
    %145 = vector.extract_strided_slice %104 {offsets = [0, 16], sizes = [8, 8], strides = [1, 1]} : vector<8x32xbf16> to vector<8x8xbf16>
    %146 = vector.extract_strided_slice %105 {offsets = [0, 16], sizes = [8, 8], strides = [1, 1]} : vector<8x32xbf16> to vector<8x8xbf16>
    %147 = vector.extract_strided_slice %106 {offsets = [0, 16], sizes = [8, 8], strides = [1, 1]} : vector<8x32xbf16> to vector<8x8xbf16>
    "tpu.trace_start"() <{level = 10 : i32, message = "qd,kd->qk"}> : () -> ()
    %cst_46 = arith.constant dense<0.000000e+00> : vector<8x8xf32>
    %148 = tpu.matmul %145, %146, %cst_46 {dimension_numbers = #tpu.dot_dimension_numbers<[1], [1], [0], [0], [0, 0, 1, 0], [], []>} : vector<8x8xbf16>, vector<8x8xbf16>, vector<8x8xf32> -> vector<8x8xf32>
    "tpu.trace_stop"() : () -> ()
    %149 = arith.extf %108 : vector<8x8xbf16> to vector<8x8xf32>
    %150 = arith.addf %148, %149 : vector<8x8xf32>
    %cst_47 = arith.constant dense<0xFF800000> : vector<8xf32>
    %151 = vector.multi_reduction <maximumf>, %150, %cst_47 [1] : vector<8x8xf32> to vector<8xf32>
    %152 = vector.shape_cast %151 : vector<8xf32> to vector<8x1xf32>
    %153 = vector.broadcast %152 : vector<8x1xf32> to vector<8x8xf32>
    %154 = arith.subf %150, %153 : vector<8x8xf32>
    %155 = math.exp %154 : vector<8x8xf32>
    %cst_48 = arith.constant dense<0.000000e+00> : vector<8xf32>
    %156 = vector.multi_reduction <add>, %155, %cst_48 [1] : vector<8x8xf32> to vector<8xf32>
    %157 = vector.shape_cast %156 : vector<8xf32> to vector<8x1xf32>
    %158 = tpu.reciprocal %157 {approx = true} : vector<8x1xf32> -> vector<8x1xf32>
    %159 = vector.broadcast %158 : vector<8x1xf32> to vector<8x8xf32>
    %160 = arith.mulf %155, %159 : vector<8x8xf32>
    %161 = arith.truncf %160 : vector<8x8xf32> to vector<8x8xbf16>
    "tpu.trace_start"() <{level = 10 : i32, message = "qk,kd->qd"}> : () -> ()
    %cst_49 = arith.constant dense<0.000000e+00> : vector<8x8xf32>
    %162 = tpu.matmul %161, %147, %cst_49 {dimension_numbers = #tpu.dot_dimension_numbers<[1], [0], [0], [1], [0, 0, 1, 1], [], []>} : vector<8x8xbf16>, vector<8x8xbf16>, vector<8x8xf32> -> vector<8x8xf32>
    "tpu.trace_stop"() : () -> ()
    %163 = vector.extract_strided_slice %104 {offsets = [0, 24], sizes = [8, 8], strides = [1, 1]} : vector<8x32xbf16> to vector<8x8xbf16>
    %164 = vector.extract_strided_slice %105 {offsets = [0, 24], sizes = [8, 8], strides = [1, 1]} : vector<8x32xbf16> to vector<8x8xbf16>
    %165 = vector.extract_strided_slice %106 {offsets = [0, 24], sizes = [8, 8], strides = [1, 1]} : vector<8x32xbf16> to vector<8x8xbf16>
    "tpu.trace_start"() <{level = 10 : i32, message = "qd,kd->qk"}> : () -> ()
    %cst_50 = arith.constant dense<0.000000e+00> : vector<8x8xf32>
    %166 = tpu.matmul %163, %164, %cst_50 {dimension_numbers = #tpu.dot_dimension_numbers<[1], [1], [0], [0], [0, 0, 1, 0], [], []>} : vector<8x8xbf16>, vector<8x8xbf16>, vector<8x8xf32> -> vector<8x8xf32>
    "tpu.trace_stop"() : () -> ()
    %167 = arith.extf %108 : vector<8x8xbf16> to vector<8x8xf32>
    %168 = arith.addf %166, %167 : vector<8x8xf32>
    %cst_51 = arith.constant dense<0xFF800000> : vector<8xf32>
    %169 = vector.multi_reduction <maximumf>, %168, %cst_51 [1] : vector<8x8xf32> to vector<8xf32>
    %170 = vector.shape_cast %169 : vector<8xf32> to vector<8x1xf32>
    %171 = vector.broadcast %170 : vector<8x1xf32> to vector<8x8xf32>
    %172 = arith.subf %168, %171 : vector<8x8xf32>
    %173 = math.exp %172 : vector<8x8xf32>
    %cst_52 = arith.constant dense<0.000000e+00> : vector<8xf32>
    %174 = vector.multi_reduction <add>, %173, %cst_52 [1] : vector<8x8xf32> to vector<8xf32>
    %175 = vector.shape_cast %174 : vector<8xf32> to vector<8x1xf32>
    %176 = tpu.reciprocal %175 {approx = true} : vector<8x1xf32> -> vector<8x1xf32>
    %177 = vector.broadcast %176 : vector<8x1xf32> to vector<8x8xf32>
    %178 = arith.mulf %173, %177 : vector<8x8xf32>
    %179 = arith.truncf %178 : vector<8x8xf32> to vector<8x8xbf16>
    "tpu.trace_start"() <{level = 10 : i32, message = "qk,kd->qd"}> : () -> ()
    %cst_53 = arith.constant dense<0.000000e+00> : vector<8x8xf32>
    %180 = tpu.matmul %179, %165, %cst_53 {dimension_numbers = #tpu.dot_dimension_numbers<[1], [0], [0], [1], [0, 0, 1, 1], [], []>} : vector<8x8xbf16>, vector<8x8xbf16>, vector<8x8xf32> -> vector<8x8xf32>
    "tpu.trace_stop"() : () -> ()
    %181 = tpu.concatenate %126, %144, %162, %180 in 1 : vector<8x8xf32>, vector<8x8xf32>, vector<8x8xf32>, vector<8x8xf32> -> vector<8x32xf32>
    %182 = tpu.concatenate %103, %181 in 0 : vector<8x32xf32>, vector<8x32xf32> -> vector<16x32xf32>
    %183 = arith.truncf %182 : vector<16x32xf32> to vector<16x32xbf16>
    %c0_54 = arith.constant 0 : index
    %c0_55 = arith.constant 0 : index
    %184 = vector.load %arg10[%c0_54, %c0_55] : memref<32x32xbf16, #tpu.memory_space<vmem>>, vector<32x32xbf16>
    %cst_56 = arith.constant dense<0.000000e+00> : vector<16x32xf32>
    %185 = tpu.matmul %183, %184, %cst_56 {dimension_numbers = #tpu.dot_dimension_numbers<[1], [0], [0], [1], [0, 0, 1, 1], [], []>} : vector<16x32xbf16>, vector<32x32xbf16>, vector<16x32xf32> -> vector<16x32xf32>
    %c0_57 = arith.constant 0 : index
    %c0_58 = arith.constant 0 : index
    %186 = vector.load %arg11[%c0_57, %c0_58] : memref<1x32xf32, #tpu.memory_space<vmem>>, vector<1x32xf32>
    %187 = vector.broadcast %186 : vector<1x32xf32> to vector<16x32xf32>
    %188 = arith.addf %185, %187 : vector<16x32xf32>
    %189 = arith.addf %188, %1 : vector<16x32xf32>
    %c0_59 = arith.constant 0 : index
    %c0_60 = arith.constant 0 : index
    %190 = vector.load %arg12[%c0_59, %c0_60] : memref<1x32xf32, #tpu.memory_space<vmem>>, vector<1x32xf32>
    %c0_61 = arith.constant 0 : index
    %c0_62 = arith.constant 0 : index
    %191 = vector.load %arg13[%c0_61, %c0_62] : memref<1x32xf32, #tpu.memory_space<vmem>>, vector<1x32xf32>
    %cst_63 = arith.constant dense<0.000000e+00> : vector<16xf32>
    %192 = vector.multi_reduction <add>, %189, %cst_63 [1] : vector<16x32xf32> to vector<16xf32>
    %193 = vector.shape_cast %192 : vector<16xf32> to vector<16x1xf32>
    %cst_64 = arith.constant 3.200000e+01 : f32
    %194 = vector.broadcast %cst_64 : f32 to vector<16x1xf32>
    %195 = arith.divf %193, %194 : vector<16x1xf32>
    %196 = vector.broadcast %195 : vector<16x1xf32> to vector<16x32xf32>
    %197 = arith.subf %189, %196 : vector<16x32xf32>
    %198 = arith.mulf %197, %197 : vector<16x32xf32>
    %cst_65 = arith.constant dense<0.000000e+00> : vector<16xf32>
    %199 = vector.multi_reduction <add>, %198, %cst_65 [1] : vector<16x32xf32> to vector<16xf32>
    %200 = vector.shape_cast %199 : vector<16xf32> to vector<16x1xf32>
    %cst_66 = arith.constant 3.200000e+01 : f32
    %201 = vector.broadcast %cst_66 : f32 to vector<16x1xf32>
    %202 = arith.divf %200, %201 : vector<16x1xf32>
    %203 = vector.broadcast %195 : vector<16x1xf32> to vector<16x32xf32>
    %204 = arith.subf %189, %203 : vector<16x32xf32>
    %cst_67 = arith.constant 9.99999974E-6 : f32
    %205 = vector.broadcast %cst_67 : f32 to vector<16x1xf32>
    %206 = arith.addf %202, %205 : vector<16x1xf32>
    %207 = math.rsqrt %206 : vector<16x1xf32>
    %208 = vector.broadcast %207 : vector<16x1xf32> to vector<16x32xf32>
    %209 = arith.mulf %204, %208 : vector<16x32xf32>
    %210 = vector.broadcast %190 : vector<1x32xf32> to vector<16x32xf32>
    %211 = arith.mulf %209, %210 : vector<16x32xf32>
    %212 = vector.broadcast %191 : vector<1x32xf32> to vector<16x32xf32>
    %213 = arith.addf %211, %212 : vector<16x32xf32>
    %214 = arith.truncf %213 : vector<16x32xf32> to vector<16x32xbf16>
    %c0_68 = arith.constant 0 : index
    %c0_69 = arith.constant 0 : index
    %215 = vector.load %arg14[%c0_68, %c0_69] : memref<32x32xbf16, #tpu.memory_space<vmem>>, vector<32x32xbf16>
    %cst_70 = arith.constant dense<0.000000e+00> : vector<16x32xf32>
    %216 = tpu.matmul %214, %215, %cst_70 {dimension_numbers = #tpu.dot_dimension_numbers<[1], [0], [0], [1], [0, 0, 1, 1], [], []>} : vector<16x32xbf16>, vector<32x32xbf16>, vector<16x32xf32> -> vector<16x32xf32>
    %c0_71 = arith.constant 0 : index
    %c0_72 = arith.constant 0 : index
    %217 = vector.load %arg15[%c0_71, %c0_72] : memref<1x32xf32, #tpu.memory_space<vmem>>, vector<1x32xf32>
    %218 = vector.broadcast %217 : vector<1x32xf32> to vector<16x32xf32>
    %219 = arith.addf %216, %218 : vector<16x32xf32>
    %220 = arith.truncf %219 : vector<16x32xf32> to vector<16x32xbf16>
    %221 = arith.truncf %3 : vector<32x32xf32> to vector<32x32xbf16>
    %c0_73 = arith.constant 0 : index
    %c0_74 = arith.constant 0 : index
    %222 = vector.load %arg16[%c0_73, %c0_74] : memref<32x32xbf16, #tpu.memory_space<vmem>>, vector<32x32xbf16>
    %cst_75 = arith.constant dense<0.000000e+00> : vector<32x32xf32>
    %223 = tpu.matmul %221, %222, %cst_75 {dimension_numbers = #tpu.dot_dimension_numbers<[1], [0], [0], [1], [0, 0, 1, 1], [], []>} : vector<32x32xbf16>, vector<32x32xbf16>, vector<32x32xf32> -> vector<32x32xf32>
    %c0_76 = arith.constant 0 : index
    %c0_77 = arith.constant 0 : index
    %224 = vector.load %arg17[%c0_76, %c0_77] : memref<1x32xf32, #tpu.memory_space<vmem>>, vector<1x32xf32>
    %225 = vector.broadcast %224 : vector<1x32xf32> to vector<32x32xf32>
    %226 = arith.addf %223, %225 : vector<32x32xf32>
    %227 = arith.truncf %226 : vector<32x32xf32> to vector<32x32xbf16>
    %228 = arith.truncf %3 : vector<32x32xf32> to vector<32x32xbf16>
    %c0_78 = arith.constant 0 : index
    %c0_79 = arith.constant 0 : index
    %229 = vector.load %arg18[%c0_78, %c0_79] : memref<32x32xbf16, #tpu.memory_space<vmem>>, vector<32x32xbf16>
    %cst_80 = arith.constant dense<0.000000e+00> : vector<32x32xf32>
    %230 = tpu.matmul %228, %229, %cst_80 {dimension_numbers = #tpu.dot_dimension_numbers<[1], [0], [0], [1], [0, 0, 1, 1], [], []>} : vector<32x32xbf16>, vector<32x32xbf16>, vector<32x32xf32> -> vector<32x32xf32>
    %c0_81 = arith.constant 0 : index
    %c0_82 = arith.constant 0 : index
    %231 = vector.load %arg19[%c0_81, %c0_82] : memref<1x32xf32, #tpu.memory_space<vmem>>, vector<1x32xf32>
    %232 = vector.broadcast %231 : vector<1x32xf32> to vector<32x32xf32>
    %233 = arith.addf %230, %232 : vector<32x32xf32>
    %234 = arith.truncf %233 : vector<32x32xf32> to vector<32x32xbf16>
    %235 = vector.extract_strided_slice %220 {offsets = [0, 0], sizes = [8, 32], strides = [1, 1]} : vector<16x32xbf16> to vector<8x32xbf16>
    %236 = vector.extract_strided_slice %227 {offsets = [0, 0], sizes = [16, 32], strides = [1, 1]} : vector<32x32xbf16> to vector<16x32xbf16>
    %237 = vector.extract_strided_slice %234 {offsets = [0, 0], sizes = [16, 32], strides = [1, 1]} : vector<32x32xbf16> to vector<16x32xbf16>
    %238 = vector.extract_strided_slice %235 {offsets = [0, 0], sizes = [8, 8], strides = [1, 1]} : vector<8x32xbf16> to vector<8x8xbf16>
    %239 = vector.extract_strided_slice %236 {offsets = [0, 0], sizes = [16, 8], strides = [1, 1]} : vector<16x32xbf16> to vector<16x8xbf16>
    %240 = vector.extract_strided_slice %237 {offsets = [0, 0], sizes = [16, 8], strides = [1, 1]} : vector<16x32xbf16> to vector<16x8xbf16>
    "tpu.trace_start"() <{level = 10 : i32, message = "qd,kd->qk"}> : () -> ()
    %cst_83 = arith.constant dense<0.000000e+00> : vector<8x16xf32>
    %241 = tpu.matmul %238, %239, %cst_83 {dimension_numbers = #tpu.dot_dimension_numbers<[1], [1], [0], [0], [0, 0, 1, 0], [], []>} : vector<8x8xbf16>, vector<16x8xbf16>, vector<8x16xf32> -> vector<8x16xf32>
    "tpu.trace_stop"() : () -> ()
    %cst_84 = arith.constant dense<0xFF800000> : vector<8xf32>
    %242 = vector.multi_reduction <maximumf>, %241, %cst_84 [1] : vector<8x16xf32> to vector<8xf32>
    %243 = vector.shape_cast %242 : vector<8xf32> to vector<8x1xf32>
    %244 = vector.broadcast %243 : vector<8x1xf32> to vector<8x16xf32>
    %245 = arith.subf %241, %244 : vector<8x16xf32>
    %246 = math.exp %245 : vector<8x16xf32>
    %cst_85 = arith.constant dense<0.000000e+00> : vector<8xf32>
    %247 = vector.multi_reduction <add>, %246, %cst_85 [1] : vector<8x16xf32> to vector<8xf32>
    %248 = vector.shape_cast %247 : vector<8xf32> to vector<8x1xf32>
    %249 = tpu.reciprocal %248 {approx = true} : vector<8x1xf32> -> vector<8x1xf32>
    %250 = vector.broadcast %249 : vector<8x1xf32> to vector<8x16xf32>
    %251 = arith.mulf %246, %250 : vector<8x16xf32>
    %252 = arith.truncf %251 : vector<8x16xf32> to vector<8x16xbf16>
    "tpu.trace_start"() <{level = 10 : i32, message = "qk,kd->qd"}> : () -> ()
    %cst_86 = arith.constant dense<0.000000e+00> : vector<8x8xf32>
    %253 = tpu.matmul %252, %240, %cst_86 {dimension_numbers = #tpu.dot_dimension_numbers<[1], [0], [0], [1], [0, 0, 1, 1], [], []>} : vector<8x16xbf16>, vector<16x8xbf16>, vector<8x8xf32> -> vector<8x8xf32>
    "tpu.trace_stop"() : () -> ()
    %254 = vector.extract_strided_slice %235 {offsets = [0, 8], sizes = [8, 8], strides = [1, 1]} : vector<8x32xbf16> to vector<8x8xbf16>
    %255 = vector.extract_strided_slice %236 {offsets = [0, 8], sizes = [16, 8], strides = [1, 1]} : vector<16x32xbf16> to vector<16x8xbf16>
    %256 = vector.extract_strided_slice %237 {offsets = [0, 8], sizes = [16, 8], strides = [1, 1]} : vector<16x32xbf16> to vector<16x8xbf16>
    "tpu.trace_start"() <{level = 10 : i32, message = "qd,kd->qk"}> : () -> ()
    %cst_87 = arith.constant dense<0.000000e+00> : vector<8x16xf32>
    %257 = tpu.matmul %254, %255, %cst_87 {dimension_numbers = #tpu.dot_dimension_numbers<[1], [1], [0], [0], [0, 0, 1, 0], [], []>} : vector<8x8xbf16>, vector<16x8xbf16>, vector<8x16xf32> -> vector<8x16xf32>
    "tpu.trace_stop"() : () -> ()
    %cst_88 = arith.constant dense<0xFF800000> : vector<8xf32>
    %258 = vector.multi_reduction <maximumf>, %257, %cst_88 [1] : vector<8x16xf32> to vector<8xf32>
    %259 = vector.shape_cast %258 : vector<8xf32> to vector<8x1xf32>
    %260 = vector.broadcast %259 : vector<8x1xf32> to vector<8x16xf32>
    %261 = arith.subf %257, %260 : vector<8x16xf32>
    %262 = math.exp %261 : vector<8x16xf32>
    %cst_89 = arith.constant dense<0.000000e+00> : vector<8xf32>
    %263 = vector.multi_reduction <add>, %262, %cst_89 [1] : vector<8x16xf32> to vector<8xf32>
    %264 = vector.shape_cast %263 : vector<8xf32> to vector<8x1xf32>
    %265 = tpu.reciprocal %264 {approx = true} : vector<8x1xf32> -> vector<8x1xf32>
    %266 = vector.broadcast %265 : vector<8x1xf32> to vector<8x16xf32>
    %267 = arith.mulf %262, %266 : vector<8x16xf32>
    %268 = arith.truncf %267 : vector<8x16xf32> to vector<8x16xbf16>
    "tpu.trace_start"() <{level = 10 : i32, message = "qk,kd->qd"}> : () -> ()
    %cst_90 = arith.constant dense<0.000000e+00> : vector<8x8xf32>
    %269 = tpu.matmul %268, %256, %cst_90 {dimension_numbers = #tpu.dot_dimension_numbers<[1], [0], [0], [1], [0, 0, 1, 1], [], []>} : vector<8x16xbf16>, vector<16x8xbf16>, vector<8x8xf32> -> vector<8x8xf32>
    "tpu.trace_stop"() : () -> ()
    %270 = vector.extract_strided_slice %235 {offsets = [0, 16], sizes = [8, 8], strides = [1, 1]} : vector<8x32xbf16> to vector<8x8xbf16>
    %271 = vector.extract_strided_slice %236 {offsets = [0, 16], sizes = [16, 8], strides = [1, 1]} : vector<16x32xbf16> to vector<16x8xbf16>
    %272 = vector.extract_strided_slice %237 {offsets = [0, 16], sizes = [16, 8], strides = [1, 1]} : vector<16x32xbf16> to vector<16x8xbf16>
    "tpu.trace_start"() <{level = 10 : i32, message = "qd,kd->qk"}> : () -> ()
    %cst_91 = arith.constant dense<0.000000e+00> : vector<8x16xf32>
    %273 = tpu.matmul %270, %271, %cst_91 {dimension_numbers = #tpu.dot_dimension_numbers<[1], [1], [0], [0], [0, 0, 1, 0], [], []>} : vector<8x8xbf16>, vector<16x8xbf16>, vector<8x16xf32> -> vector<8x16xf32>
    "tpu.trace_stop"() : () -> ()
    %cst_92 = arith.constant dense<0xFF800000> : vector<8xf32>
    %274 = vector.multi_reduction <maximumf>, %273, %cst_92 [1] : vector<8x16xf32> to vector<8xf32>
    %275 = vector.shape_cast %274 : vector<8xf32> to vector<8x1xf32>
    %276 = vector.broadcast %275 : vector<8x1xf32> to vector<8x16xf32>
    %277 = arith.subf %273, %276 : vector<8x16xf32>
    %278 = math.exp %277 : vector<8x16xf32>
    %cst_93 = arith.constant dense<0.000000e+00> : vector<8xf32>
    %279 = vector.multi_reduction <add>, %278, %cst_93 [1] : vector<8x16xf32> to vector<8xf32>
    %280 = vector.shape_cast %279 : vector<8xf32> to vector<8x1xf32>
    %281 = tpu.reciprocal %280 {approx = true} : vector<8x1xf32> -> vector<8x1xf32>
    %282 = vector.broadcast %281 : vector<8x1xf32> to vector<8x16xf32>
    %283 = arith.mulf %278, %282 : vector<8x16xf32>
    %284 = arith.truncf %283 : vector<8x16xf32> to vector<8x16xbf16>
    "tpu.trace_start"() <{level = 10 : i32, message = "qk,kd->qd"}> : () -> ()
    %cst_94 = arith.constant dense<0.000000e+00> : vector<8x8xf32>
    %285 = tpu.matmul %284, %272, %cst_94 {dimension_numbers = #tpu.dot_dimension_numbers<[1], [0], [0], [1], [0, 0, 1, 1], [], []>} : vector<8x16xbf16>, vector<16x8xbf16>, vector<8x8xf32> -> vector<8x8xf32>
    "tpu.trace_stop"() : () -> ()
    %286 = vector.extract_strided_slice %235 {offsets = [0, 24], sizes = [8, 8], strides = [1, 1]} : vector<8x32xbf16> to vector<8x8xbf16>
    %287 = vector.extract_strided_slice %236 {offsets = [0, 24], sizes = [16, 8], strides = [1, 1]} : vector<16x32xbf16> to vector<16x8xbf16>
    %288 = vector.extract_strided_slice %237 {offsets = [0, 24], sizes = [16, 8], strides = [1, 1]} : vector<16x32xbf16> to vector<16x8xbf16>
    "tpu.trace_start"() <{level = 10 : i32, message = "qd,kd->qk"}> : () -> ()
    %cst_95 = arith.constant dense<0.000000e+00> : vector<8x16xf32>
    %289 = tpu.matmul %286, %287, %cst_95 {dimension_numbers = #tpu.dot_dimension_numbers<[1], [1], [0], [0], [0, 0, 1, 0], [], []>} : vector<8x8xbf16>, vector<16x8xbf16>, vector<8x16xf32> -> vector<8x16xf32>
    "tpu.trace_stop"() : () -> ()
    %cst_96 = arith.constant dense<0xFF800000> : vector<8xf32>
    %290 = vector.multi_reduction <maximumf>, %289, %cst_96 [1] : vector<8x16xf32> to vector<8xf32>
    %291 = vector.shape_cast %290 : vector<8xf32> to vector<8x1xf32>
    %292 = vector.broadcast %291 : vector<8x1xf32> to vector<8x16xf32>
    %293 = arith.subf %289, %292 : vector<8x16xf32>
    %294 = math.exp %293 : vector<8x16xf32>
    %cst_97 = arith.constant dense<0.000000e+00> : vector<8xf32>
    %295 = vector.multi_reduction <add>, %294, %cst_97 [1] : vector<8x16xf32> to vector<8xf32>
    %296 = vector.shape_cast %295 : vector<8xf32> to vector<8x1xf32>
    %297 = tpu.reciprocal %296 {approx = true} : vector<8x1xf32> -> vector<8x1xf32>
    %298 = vector.broadcast %297 : vector<8x1xf32> to vector<8x16xf32>
    %299 = arith.mulf %294, %298 : vector<8x16xf32>
    %300 = arith.truncf %299 : vector<8x16xf32> to vector<8x16xbf16>
    "tpu.trace_start"() <{level = 10 : i32, message = "qk,kd->qd"}> : () -> ()
    %cst_98 = arith.constant dense<0.000000e+00> : vector<8x8xf32>
    %301 = tpu.matmul %300, %288, %cst_98 {dimension_numbers = #tpu.dot_dimension_numbers<[1], [0], [0], [1], [0, 0, 1, 1], [], []>} : vector<8x16xbf16>, vector<16x8xbf16>, vector<8x8xf32> -> vector<8x8xf32>
    "tpu.trace_stop"() : () -> ()
    %302 = tpu.concatenate %253, %269, %285, %301 in 1 : vector<8x8xf32>, vector<8x8xf32>, vector<8x8xf32>, vector<8x8xf32> -> vector<8x32xf32>
    %303 = vector.extract_strided_slice %220 {offsets = [8, 0], sizes = [8, 32], strides = [1, 1]} : vector<16x32xbf16> to vector<8x32xbf16>
    %304 = vector.extract_strided_slice %227 {offsets = [16, 0], sizes = [16, 32], strides = [1, 1]} : vector<32x32xbf16> to vector<16x32xbf16>
    %305 = vector.extract_strided_slice %234 {offsets = [16, 0], sizes = [16, 32], strides = [1, 1]} : vector<32x32xbf16> to vector<16x32xbf16>
    %306 = vector.extract_strided_slice %303 {offsets = [0, 0], sizes = [8, 8], strides = [1, 1]} : vector<8x32xbf16> to vector<8x8xbf16>
    %307 = vector.extract_strided_slice %304 {offsets = [0, 0], sizes = [16, 8], strides = [1, 1]} : vector<16x32xbf16> to vector<16x8xbf16>
    %308 = vector.extract_strided_slice %305 {offsets = [0, 0], sizes = [16, 8], strides = [1, 1]} : vector<16x32xbf16> to vector<16x8xbf16>
    "tpu.trace_start"() <{level = 10 : i32, message = "qd,kd->qk"}> : () -> ()
    %cst_99 = arith.constant dense<0.000000e+00> : vector<8x16xf32>
    %309 = tpu.matmul %306, %307, %cst_99 {dimension_numbers = #tpu.dot_dimension_numbers<[1], [1], [0], [0], [0, 0, 1, 0], [], []>} : vector<8x8xbf16>, vector<16x8xbf16>, vector<8x16xf32> -> vector<8x16xf32>
    "tpu.trace_stop"() : () -> ()
    %cst_100 = arith.constant dense<0xFF800000> : vector<8xf32>
    %310 = vector.multi_reduction <maximumf>, %309, %cst_100 [1] : vector<8x16xf32> to vector<8xf32>
    %311 = vector.shape_cast %310 : vector<8xf32> to vector<8x1xf32>
    %312 = vector.broadcast %311 : vector<8x1xf32> to vector<8x16xf32>
    %313 = arith.subf %309, %312 : vector<8x16xf32>
    %314 = math.exp %313 : vector<8x16xf32>
    %cst_101 = arith.constant dense<0.000000e+00> : vector<8xf32>
    %315 = vector.multi_reduction <add>, %314, %cst_101 [1] : vector<8x16xf32> to vector<8xf32>
    %316 = vector.shape_cast %315 : vector<8xf32> to vector<8x1xf32>
    %317 = tpu.reciprocal %316 {approx = true} : vector<8x1xf32> -> vector<8x1xf32>
    %318 = vector.broadcast %317 : vector<8x1xf32> to vector<8x16xf32>
    %319 = arith.mulf %314, %318 : vector<8x16xf32>
    %320 = arith.truncf %319 : vector<8x16xf32> to vector<8x16xbf16>
    "tpu.trace_start"() <{level = 10 : i32, message = "qk,kd->qd"}> : () -> ()
    %cst_102 = arith.constant dense<0.000000e+00> : vector<8x8xf32>
    %321 = tpu.matmul %320, %308, %cst_102 {dimension_numbers = #tpu.dot_dimension_numbers<[1], [0], [0], [1], [0, 0, 1, 1], [], []>} : vector<8x16xbf16>, vector<16x8xbf16>, vector<8x8xf32> -> vector<8x8xf32>
    "tpu.trace_stop"() : () -> ()
    %322 = vector.extract_strided_slice %303 {offsets = [0, 8], sizes = [8, 8], strides = [1, 1]} : vector<8x32xbf16> to vector<8x8xbf16>
    %323 = vector.extract_strided_slice %304 {offsets = [0, 8], sizes = [16, 8], strides = [1, 1]} : vector<16x32xbf16> to vector<16x8xbf16>
    %324 = vector.extract_strided_slice %305 {offsets = [0, 8], sizes = [16, 8], strides = [1, 1]} : vector<16x32xbf16> to vector<16x8xbf16>
    "tpu.trace_start"() <{level = 10 : i32, message = "qd,kd->qk"}> : () -> ()
    %cst_103 = arith.constant dense<0.000000e+00> : vector<8x16xf32>
    %325 = tpu.matmul %322, %323, %cst_103 {dimension_numbers = #tpu.dot_dimension_numbers<[1], [1], [0], [0], [0, 0, 1, 0], [], []>} : vector<8x8xbf16>, vector<16x8xbf16>, vector<8x16xf32> -> vector<8x16xf32>
    "tpu.trace_stop"() : () -> ()
    %cst_104 = arith.constant dense<0xFF800000> : vector<8xf32>
    %326 = vector.multi_reduction <maximumf>, %325, %cst_104 [1] : vector<8x16xf32> to vector<8xf32>
    %327 = vector.shape_cast %326 : vector<8xf32> to vector<8x1xf32>
    %328 = vector.broadcast %327 : vector<8x1xf32> to vector<8x16xf32>
    %329 = arith.subf %325, %328 : vector<8x16xf32>
    %330 = math.exp %329 : vector<8x16xf32>
    %cst_105 = arith.constant dense<0.000000e+00> : vector<8xf32>
    %331 = vector.multi_reduction <add>, %330, %cst_105 [1] : vector<8x16xf32> to vector<8xf32>
    %332 = vector.shape_cast %331 : vector<8xf32> to vector<8x1xf32>
    %333 = tpu.reciprocal %332 {approx = true} : vector<8x1xf32> -> vector<8x1xf32>
    %334 = vector.broadcast %333 : vector<8x1xf32> to vector<8x16xf32>
    %335 = arith.mulf %330, %334 : vector<8x16xf32>
    %336 = arith.truncf %335 : vector<8x16xf32> to vector<8x16xbf16>
    "tpu.trace_start"() <{level = 10 : i32, message = "qk,kd->qd"}> : () -> ()
    %cst_106 = arith.constant dense<0.000000e+00> : vector<8x8xf32>
    %337 = tpu.matmul %336, %324, %cst_106 {dimension_numbers = #tpu.dot_dimension_numbers<[1], [0], [0], [1], [0, 0, 1, 1], [], []>} : vector<8x16xbf16>, vector<16x8xbf16>, vector<8x8xf32> -> vector<8x8xf32>
    "tpu.trace_stop"() : () -> ()
    %338 = vector.extract_strided_slice %303 {offsets = [0, 16], sizes = [8, 8], strides = [1, 1]} : vector<8x32xbf16> to vector<8x8xbf16>
    %339 = vector.extract_strided_slice %304 {offsets = [0, 16], sizes = [16, 8], strides = [1, 1]} : vector<16x32xbf16> to vector<16x8xbf16>
    %340 = vector.extract_strided_slice %305 {offsets = [0, 16], sizes = [16, 8], strides = [1, 1]} : vector<16x32xbf16> to vector<16x8xbf16>
    "tpu.trace_start"() <{level = 10 : i32, message = "qd,kd->qk"}> : () -> ()
    %cst_107 = arith.constant dense<0.000000e+00> : vector<8x16xf32>
    %341 = tpu.matmul %338, %339, %cst_107 {dimension_numbers = #tpu.dot_dimension_numbers<[1], [1], [0], [0], [0, 0, 1, 0], [], []>} : vector<8x8xbf16>, vector<16x8xbf16>, vector<8x16xf32> -> vector<8x16xf32>
    "tpu.trace_stop"() : () -> ()
    %cst_108 = arith.constant dense<0xFF800000> : vector<8xf32>
    %342 = vector.multi_reduction <maximumf>, %341, %cst_108 [1] : vector<8x16xf32> to vector<8xf32>
    %343 = vector.shape_cast %342 : vector<8xf32> to vector<8x1xf32>
    %344 = vector.broadcast %343 : vector<8x1xf32> to vector<8x16xf32>
    %345 = arith.subf %341, %344 : vector<8x16xf32>
    %346 = math.exp %345 : vector<8x16xf32>
    %cst_109 = arith.constant dense<0.000000e+00> : vector<8xf32>
    %347 = vector.multi_reduction <add>, %346, %cst_109 [1] : vector<8x16xf32> to vector<8xf32>
    %348 = vector.shape_cast %347 : vector<8xf32> to vector<8x1xf32>
    %349 = tpu.reciprocal %348 {approx = true} : vector<8x1xf32> -> vector<8x1xf32>
    %350 = vector.broadcast %349 : vector<8x1xf32> to vector<8x16xf32>
    %351 = arith.mulf %346, %350 : vector<8x16xf32>
    %352 = arith.truncf %351 : vector<8x16xf32> to vector<8x16xbf16>
    "tpu.trace_start"() <{level = 10 : i32, message = "qk,kd->qd"}> : () -> ()
    %cst_110 = arith.constant dense<0.000000e+00> : vector<8x8xf32>
    %353 = tpu.matmul %352, %340, %cst_110 {dimension_numbers = #tpu.dot_dimension_numbers<[1], [0], [0], [1], [0, 0, 1, 1], [], []>} : vector<8x16xbf16>, vector<16x8xbf16>, vector<8x8xf32> -> vector<8x8xf32>
    "tpu.trace_stop"() : () -> ()
    %354 = vector.extract_strided_slice %303 {offsets = [0, 24], sizes = [8, 8], strides = [1, 1]} : vector<8x32xbf16> to vector<8x8xbf16>
    %355 = vector.extract_strided_slice %304 {offsets = [0, 24], sizes = [16, 8], strides = [1, 1]} : vector<16x32xbf16> to vector<16x8xbf16>
    %356 = vector.extract_strided_slice %305 {offsets = [0, 24], sizes = [16, 8], strides = [1, 1]} : vector<16x32xbf16> to vector<16x8xbf16>
    "tpu.trace_start"() <{level = 10 : i32, message = "qd,kd->qk"}> : () -> ()
    %cst_111 = arith.constant dense<0.000000e+00> : vector<8x16xf32>
    %357 = tpu.matmul %354, %355, %cst_111 {dimension_numbers = #tpu.dot_dimension_numbers<[1], [1], [0], [0], [0, 0, 1, 0], [], []>} : vector<8x8xbf16>, vector<16x8xbf16>, vector<8x16xf32> -> vector<8x16xf32>
    "tpu.trace_stop"() : () -> ()
    %cst_112 = arith.constant dense<0xFF800000> : vector<8xf32>
    %358 = vector.multi_reduction <maximumf>, %357, %cst_112 [1] : vector<8x16xf32> to vector<8xf32>
    %359 = vector.shape_cast %358 : vector<8xf32> to vector<8x1xf32>
    %360 = vector.broadcast %359 : vector<8x1xf32> to vector<8x16xf32>
    %361 = arith.subf %357, %360 : vector<8x16xf32>
    %362 = math.exp %361 : vector<8x16xf32>
    %cst_113 = arith.constant dense<0.000000e+00> : vector<8xf32>
    %363 = vector.multi_reduction <add>, %362, %cst_113 [1] : vector<8x16xf32> to vector<8xf32>
    %364 = vector.shape_cast %363 : vector<8xf32> to vector<8x1xf32>
    %365 = tpu.reciprocal %364 {approx = true} : vector<8x1xf32> -> vector<8x1xf32>
    %366 = vector.broadcast %365 : vector<8x1xf32> to vector<8x16xf32>
    %367 = arith.mulf %362, %366 : vector<8x16xf32>
    %368 = arith.truncf %367 : vector<8x16xf32> to vector<8x16xbf16>
    "tpu.trace_start"() <{level = 10 : i32, message = "qk,kd->qd"}> : () -> ()
    %cst_114 = arith.constant dense<0.000000e+00> : vector<8x8xf32>
    %369 = tpu.matmul %368, %356, %cst_114 {dimension_numbers = #tpu.dot_dimension_numbers<[1], [0], [0], [1], [0, 0, 1, 1], [], []>} : vector<8x16xbf16>, vector<16x8xbf16>, vector<8x8xf32> -> vector<8x8xf32>
    "tpu.trace_stop"() : () -> ()
    %370 = tpu.concatenate %321, %337, %353, %369 in 1 : vector<8x8xf32>, vector<8x8xf32>, vector<8x8xf32>, vector<8x8xf32> -> vector<8x32xf32>
    %371 = tpu.concatenate %302, %370 in 0 : vector<8x32xf32>, vector<8x32xf32> -> vector<16x32xf32>
    %372 = arith.truncf %371 : vector<16x32xf32> to vector<16x32xbf16>
    %c0_115 = arith.constant 0 : index
    %c0_116 = arith.constant 0 : index
    %373 = vector.load %arg20[%c0_115, %c0_116] : memref<32x32xbf16, #tpu.memory_space<vmem>>, vector<32x32xbf16>
    %cst_117 = arith.constant dense<0.000000e+00> : vector<16x32xf32>
    %374 = tpu.matmul %372, %373, %cst_117 {dimension_numbers = #tpu.dot_dimension_numbers<[1], [0], [0], [1], [0, 0, 1, 1], [], []>} : vector<16x32xbf16>, vector<32x32xbf16>, vector<16x32xf32> -> vector<16x32xf32>
    %c0_118 = arith.constant 0 : index
    %c0_119 = arith.constant 0 : index
    %375 = vector.load %arg21[%c0_118, %c0_119] : memref<1x32xf32, #tpu.memory_space<vmem>>, vector<1x32xf32>
    %376 = vector.broadcast %375 : vector<1x32xf32> to vector<16x32xf32>
    %377 = arith.addf %374, %376 : vector<16x32xf32>
    %378 = arith.addf %377, %213 : vector<16x32xf32>
    %c0_120 = arith.constant 0 : index
    %c0_121 = arith.constant 0 : index
    %379 = vector.load %arg22[%c0_120, %c0_121] : memref<1x32xf32, #tpu.memory_space<vmem>>, vector<1x32xf32>
    %c0_122 = arith.constant 0 : index
    %c0_123 = arith.constant 0 : index
    %380 = vector.load %arg23[%c0_122, %c0_123] : memref<1x32xf32, #tpu.memory_space<vmem>>, vector<1x32xf32>
    %cst_124 = arith.constant dense<0.000000e+00> : vector<16xf32>
    %381 = vector.multi_reduction <add>, %378, %cst_124 [1] : vector<16x32xf32> to vector<16xf32>
    %382 = vector.shape_cast %381 : vector<16xf32> to vector<16x1xf32>
    %cst_125 = arith.constant 3.200000e+01 : f32
    %383 = vector.broadcast %cst_125 : f32 to vector<16x1xf32>
    %384 = arith.divf %382, %383 : vector<16x1xf32>
    %385 = vector.broadcast %384 : vector<16x1xf32> to vector<16x32xf32>
    %386 = arith.subf %378, %385 : vector<16x32xf32>
    %387 = arith.mulf %386, %386 : vector<16x32xf32>
    %cst_126 = arith.constant dense<0.000000e+00> : vector<16xf32>
    %388 = vector.multi_reduction <add>, %387, %cst_126 [1] : vector<16x32xf32> to vector<16xf32>
    %389 = vector.shape_cast %388 : vector<16xf32> to vector<16x1xf32>
    %cst_127 = arith.constant 3.200000e+01 : f32
    %390 = vector.broadcast %cst_127 : f32 to vector<16x1xf32>
    %391 = arith.divf %389, %390 : vector<16x1xf32>
    %392 = vector.broadcast %384 : vector<16x1xf32> to vector<16x32xf32>
    %393 = arith.subf %378, %392 : vector<16x32xf32>
    %cst_128 = arith.constant 9.99999974E-6 : f32
    %394 = vector.broadcast %cst_128 : f32 to vector<16x1xf32>
    %395 = arith.addf %391, %394 : vector<16x1xf32>
    %396 = math.rsqrt %395 : vector<16x1xf32>
    %397 = vector.broadcast %396 : vector<16x1xf32> to vector<16x32xf32>
    %398 = arith.mulf %393, %397 : vector<16x32xf32>
    %399 = vector.broadcast %379 : vector<1x32xf32> to vector<16x32xf32>
    %400 = arith.mulf %398, %399 : vector<16x32xf32>
    %401 = vector.broadcast %380 : vector<1x32xf32> to vector<16x32xf32>
    %402 = arith.addf %400, %401 : vector<16x32xf32>
    %403 = arith.truncf %402 : vector<16x32xf32> to vector<16x32xbf16>
    %c0_129 = arith.constant 0 : index
    %c0_130 = arith.constant 0 : index
    %404 = vector.load %arg24[%c0_129, %c0_130] : memref<32x128xbf16, #tpu.memory_space<vmem>>, vector<32x128xbf16>
    %cst_131 = arith.constant dense<0.000000e+00> : vector<16x128xf32>
    %405 = tpu.matmul %403, %404, %cst_131 {dimension_numbers = #tpu.dot_dimension_numbers<[1], [0], [0], [1], [0, 0, 1, 1], [], []>} : vector<16x32xbf16>, vector<32x128xbf16>, vector<16x128xf32> -> vector<16x128xf32>
    %c0_132 = arith.constant 0 : index
    %c0_133 = arith.constant 0 : index
    %406 = vector.load %arg25[%c0_132, %c0_133] : memref<1x128xf32, #tpu.memory_space<vmem>>, vector<1x128xf32>
    %407 = vector.broadcast %406 : vector<1x128xf32> to vector<16x128xf32>
    %408 = arith.addf %405, %407 : vector<16x128xf32>
    %cst_134 = arith.constant 0.000000e+00 : f32
    %409 = vector.broadcast %cst_134 : f32 to vector<16x128xf32>
    %410 = arith.maximumf %408, %409 : vector<16x128xf32>
    %411 = arith.truncf %410 : vector<16x128xf32> to vector<16x128xbf16>
    %c0_135 = arith.constant 0 : index
    %c0_136 = arith.constant 0 : index
    %412 = vector.load %arg26[%c0_135, %c0_136] : memref<128x32xbf16, #tpu.memory_space<vmem>>, vector<128x32xbf16>
    %cst_137 = arith.constant dense<0.000000e+00> : vector<16x32xf32>
    %413 = tpu.matmul %411, %412, %cst_137 {dimension_numbers = #tpu.dot_dimension_numbers<[1], [0], [0], [1], [0, 0, 1, 1], [], []>} : vector<16x128xbf16>, vector<128x32xbf16>, vector<16x32xf32> -> vector<16x32xf32>
    %c0_138 = arith.constant 0 : index
    %c0_139 = arith.constant 0 : index
    %414 = vector.load %arg27[%c0_138, %c0_139] : memref<1x32xf32, #tpu.memory_space<vmem>>, vector<1x32xf32>
    %415 = vector.broadcast %414 : vector<1x32xf32> to vector<16x32xf32>
    %416 = arith.addf %413, %415 : vector<16x32xf32>
    %417 = arith.addf %416, %402 : vector<16x32xf32>
    %c0_140 = arith.constant 0 : index
    %c0_141 = arith.constant 0 : index
    %418 = vector.load %arg28[%c0_140, %c0_141] : memref<1x32xf32, #tpu.memory_space<vmem>>, vector<1x32xf32>
    %c0_142 = arith.constant 0 : index
    %c0_143 = arith.constant 0 : index
    %419 = vector.load %arg29[%c0_142, %c0_143] : memref<1x32xf32, #tpu.memory_space<vmem>>, vector<1x32xf32>
    %cst_144 = arith.constant dense<0.000000e+00> : vector<16xf32>
    %420 = vector.multi_reduction <add>, %417, %cst_144 [1] : vector<16x32xf32> to vector<16xf32>
    %421 = vector.shape_cast %420 : vector<16xf32> to vector<16x1xf32>
    %cst_145 = arith.constant 3.200000e+01 : f32
    %422 = vector.broadcast %cst_145 : f32 to vector<16x1xf32>
    %423 = arith.divf %421, %422 : vector<16x1xf32>
    %424 = vector.broadcast %423 : vector<16x1xf32> to vector<16x32xf32>
    %425 = arith.subf %417, %424 : vector<16x32xf32>
    %426 = arith.mulf %425, %425 : vector<16x32xf32>
    %cst_146 = arith.constant dense<0.000000e+00> : vector<16xf32>
    %427 = vector.multi_reduction <add>, %426, %cst_146 [1] : vector<16x32xf32> to vector<16xf32>
    %428 = vector.shape_cast %427 : vector<16xf32> to vector<16x1xf32>
    %cst_147 = arith.constant 3.200000e+01 : f32
    %429 = vector.broadcast %cst_147 : f32 to vector<16x1xf32>
    %430 = arith.divf %428, %429 : vector<16x1xf32>
    %431 = vector.broadcast %423 : vector<16x1xf32> to vector<16x32xf32>
    %432 = arith.subf %417, %431 : vector<16x32xf32>
    %cst_148 = arith.constant 9.99999974E-6 : f32
    %433 = vector.broadcast %cst_148 : f32 to vector<16x1xf32>
    %434 = arith.addf %430, %433 : vector<16x1xf32>
    %435 = math.rsqrt %434 : vector<16x1xf32>
    %436 = vector.broadcast %435 : vector<16x1xf32> to vector<16x32xf32>
    %437 = arith.mulf %432, %436 : vector<16x32xf32>
    %438 = vector.broadcast %418 : vector<1x32xf32> to vector<16x32xf32>
    %439 = arith.mulf %437, %438 : vector<16x32xf32>
    %440 = vector.broadcast %419 : vector<1x32xf32> to vector<16x32xf32>
    %441 = arith.addf %439, %440 : vector<16x32xf32>
    %442 = vector.shape_cast %441 : vector<16x32xf32> to vector<2x8x32xf32>
    %c0_149 = arith.constant 0 : index
    %c0_150 = arith.constant 0 : index
    %c0_151 = arith.constant 0 : index
    %443 = vector.load %arg30[%c0_149, %c0_150, %c0_151] : memref<2x8x32xf32, #tpu.memory_space<vmem>>, vector<2x8x32xf32>
    tpu.vector_store %arg30[%c0_149, %c0_150, %c0_151], %442 {strides = array<i32>} : memref<2x8x32xf32, #tpu.memory_space<vmem>>, vector<2x8x32xf32>,
    return
  }
  func.func @transform_0(%arg0: i32) -> (i32, i32, i32) {
    %c0_i32 = arith.constant 0 : i32
    %c0_i32_0 = arith.constant 0 : i32
    %c0_i32_1 = arith.constant 0 : i32
    return %arg0, %c0_i32, %c0_i32_0 : i32, i32, i32
  }
  func.func @transform_1(%arg0: i32) -> (i32, i32, i32) {
    %c0_i32 = arith.constant 0 : i32
    %c0_i32_0 = arith.constant 0 : i32
    %c0_i32_1 = arith.constant 0 : i32
    return %arg0, %c0_i32, %c0_i32_0 : i32, i32, i32
  }
  func.func @transform_2(%arg0: i32) -> (i32, i32, i32) {
    %c0_i32 = arith.constant 0 : i32
    %c0_i32_0 = arith.constant 0 : i32
    %c0_i32_1 = arith.constant 0 : i32
    return %arg0, %c0_i32, %c0_i32_0 : i32, i32, i32
  }
  func.func @transform_3(%arg0: i32) -> (i32, i32) {
    %c0_i32 = arith.constant 0 : i32
    %c0_i32_0 = arith.constant 0 : i32
    %c0_i32_1 = arith.constant 0 : i32
    return %c0_i32, %c0_i32_0 : i32, i32
  }
  func.func @transform_4(%arg0: i32) -> (i32, i32) {
    %c0_i32 = arith.constant 0 : i32
    %c0_i32_0 = arith.constant 0 : i32
    %c0_i32_1 = arith.constant 0 : i32
    return %c0_i32, %c0_i32_0 : i32, i32
  }
  func.func @transform_5(%arg0: i32) -> (i32, i32) {
    %c0_i32 = arith.constant 0 : i32
    %c0_i32_0 = arith.constant 0 : i32
    %c0_i32_1 = arith.constant 0 : i32
    return %c0_i32, %c0_i32_0 : i32, i32
  }
  func.func @transform_6(%arg0: i32) -> (i32, i32) {
    %c0_i32 = arith.constant 0 : i32
    %c0_i32_0 = arith.constant 0 : i32
    %c0_i32_1 = arith.constant 0 : i32
    return %c0_i32, %c0_i32_0 : i32, i32
  }
  func.func @transform_7(%arg0: i32) -> (i32, i32) {
    %c0_i32 = arith.constant 0 : i32
    %c0_i32_0 = arith.constant 0 : i32
    %c0_i32_1 = arith.constant 0 : i32
    return %c0_i32, %c0_i32_0 : i32, i32
  }
  func.func @transform_8(%arg0: i32) -> (i32, i32) {
    %c0_i32 = arith.constant 0 : i32
    %c0_i32_0 = arith.constant 0 : i32
    %c0_i32_1 = arith.constant 0 : i32
    return %c0_i32, %c0_i32_0 : i32, i32
  }
  func.func @transform_9(%arg0: i32) -> (i32, i32) {
    %c0_i32 = arith.constant 0 : i32
    %c0_i32_0 = arith.constant 0 : i32
    %c0_i32_1 = arith.constant 0 : i32
    return %c0_i32, %c0_i32_0 : i32, i32
  }
  func.func @transform_10(%arg0: i32) -> (i32, i32) {
    %c0_i32 = arith.constant 0 : i32
    %c0_i32_0 = arith.constant 0 : i32
    %c0_i32_1 = arith.constant 0 : i32
    return %c0_i32, %c0_i32_0 : i32, i32
  }
  func.func @transform_11(%arg0: i32) -> (i32, i32) {
    %c0_i32 = arith.constant 0 : i32
    %c0_i32_0 = arith.constant 0 : i32
    %c0_i32_1 = arith.constant 0 : i32
    return %c0_i32, %c0_i32_0 : i32, i32
  }
  func.func @transform_12(%arg0: i32) -> (i32, i32) {
    %c0_i32 = arith.constant 0 : i32
    %c0_i32_0 = arith.constant 0 : i32
    %c0_i32_1 = arith.constant 0 : i32
    return %c0_i32, %c0_i32_0 : i32, i32
  }
  func.func @transform_13(%arg0: i32) -> (i32, i32) {
    %c0_i32 = arith.constant 0 : i32
    %c0_i32_0 = arith.constant 0 : i32
    %c0_i32_1 = arith.constant 0 : i32
    return %c0_i32, %c0_i32_0 : i32, i32
  }
  func.func @transform_14(%arg0: i32) -> (i32, i32) {
    %c0_i32 = arith.constant 0 : i32
    %c0_i32_0 = arith.constant 0 : i32
    %c0_i32_1 = arith.constant 0 : i32
    return %c0_i32, %c0_i32_0 : i32, i32
  }
  func.func @transform_15(%arg0: i32) -> (i32, i32) {
    %c0_i32 = arith.constant 0 : i32
    %c0_i32_0 = arith.constant 0 : i32
    %c0_i32_1 = arith.constant 0 : i32
    return %c0_i32, %c0_i32_0 : i32, i32
  }
  func.func @transform_16(%arg0: i32) -> (i32, i32) {
    %c0_i32 = arith.constant 0 : i32
    %c0_i32_0 = arith.constant 0 : i32
    %c0_i32_1 = arith.constant 0 : i32
    return %c0_i32, %c0_i32_0 : i32, i32
  }
  func.func @transform_17(%arg0: i32) -> (i32, i32) {
    %c0_i32 = arith.constant 0 : i32
    %c0_i32_0 = arith.constant 0 : i32
    %c0_i32_1 = arith.constant 0 : i32
    return %c0_i32, %c0_i32_0 : i32, i32
  }
  func.func @transform_18(%arg0: i32) -> (i32, i32) {
    %c0_i32 = arith.constant 0 : i32
    %c0_i32_0 = arith.constant 0 : i32
    %c0_i32_1 = arith.constant 0 : i32
    return %c0_i32, %c0_i32_0 : i32, i32
  }
  func.func @transform_19(%arg0: i32) -> (i32, i32) {
    %c0_i32 = arith.constant 0 : i32
    %c0_i32_0 = arith.constant 0 : i32
    %c0_i32_1 = arith.constant 0 : i32
    return %c0_i32, %c0_i32_0 : i32, i32
  }
  func.func @transform_20(%arg0: i32) -> (i32, i32) {
    %c0_i32 = arith.constant 0 : i32
    %c0_i32_0 = arith.constant 0 : i32
    %c0_i32_1 = arith.constant 0 : i32
    return %c0_i32, %c0_i32_0 : i32, i32
  }
  func.func @transform_21(%arg0: i32) -> (i32, i32) {
    %c0_i32 = arith.constant 0 : i32
    %c0_i32_0 = arith.constant 0 : i32
    %c0_i32_1 = arith.constant 0 : i32
    return %c0_i32, %c0_i32_0 : i32, i32
  }
  func.func @transform_22(%arg0: i32) -> (i32, i32) {
    %c0_i32 = arith.constant 0 : i32
    %c0_i32_0 = arith.constant 0 : i32
    %c0_i32_1 = arith.constant 0 : i32
    return %c0_i32, %c0_i32_0 : i32, i32
  }
  func.func @transform_23(%arg0: i32) -> (i32, i32) {
    %c0_i32 = arith.constant 0 : i32
    %c0_i32_0 = arith.constant 0 : i32
    %c0_i32_1 = arith.constant 0 : i32
    return %c0_i32, %c0_i32_0 : i32, i32
  }
  func.func @transform_24(%arg0: i32) -> (i32, i32) {
    %c0_i32 = arith.constant 0 : i32
    %c0_i32_0 = arith.constant 0 : i32
    %c0_i32_1 = arith.constant 0 : i32
    return %c0_i32, %c0_i32_0 : i32, i32
  }
  func.func @transform_25(%arg0: i32) -> (i32, i32) {
    %c0_i32 = arith.constant 0 : i32
    %c0_i32_0 = arith.constant 0 : i32
    %c0_i32_1 = arith.constant 0 : i32
    return %c0_i32, %c0_i32_0 : i32, i32
  }
  func.func @transform_26(%arg0: i32) -> (i32, i32) {
    %c0_i32 = arith.constant 0 : i32
    %c0_i32_0 = arith.constant 0 : i32
    %c0_i32_1 = arith.constant 0 : i32
    return %c0_i32, %c0_i32_0 : i32, i32
  }
  func.func @transform_27(%arg0: i32) -> (i32, i32) {
    %c0_i32 = arith.constant 0 : i32
    %c0_i32_0 = arith.constant 0 : i32
    %c0_i32_1 = arith.constant 0 : i32
    return %c0_i32, %c0_i32_0 : i32, i32
  }
  func.func @transform_28(%arg0: i32) -> (i32, i32) {
    %c0_i32 = arith.constant 0 : i32
    %c0_i32_0 = arith.constant 0 : i32
    %c0_i32_1 = arith.constant 0 : i32
    return %c0_i32, %c0_i32_0 : i32, i32
  }
  func.func @transform_29(%arg0: i32) -> (i32, i32, i32) {
    %c0_i32 = arith.constant 0 : i32
    %c0_i32_0 = arith.constant 0 : i32
    %c0_i32_1 = arith.constant 0 : i32
    return %arg0, %c0_i32, %c0_i32_0 : i32, i32, i32
  }
}

</mosaic_0001>

<bundles_post_ra>
// kernel: tpu_custom_call.1
= control target key start
LH: loop header
LB: loop body
LE: loop exit
PB: predicated region body
PF: predicated region fallthrough
CT: control target
= control target key end

     0   :  { %s4052_s6 = smov 1   ;;  %s4053_s10 = smov 2   ;;  %s4737_s0 = inlined_call_operand.smem [shape: u32[30], index: -1, kind: input, shape index: {}] }
   0x1   :  { %s4116_s5 = sld [smem:[%s4737_s0]]   ;;  %s4054_s14 = smov 3  }
   0x2   :  { %s4121_s9 = sld [smem:[%s4737_s0 + %s4052_s6]]   ;;  %s4055_s18 = smov 4  }
   0x3   :  { %s4126_s13 = sld [smem:[%s4737_s0 + %s4053_s10]]   ;;  %s4056_s22 = smov 5  }
   0x4   :  { %s4131_s17 = sld [smem:[%s4737_s0 + %s4054_s14]]   ;;  %s4057_s26 = smov 6  }
   0x5   :  { %s4136_s21 = sld [smem:[%s4737_s0 + %s4055_s18]]   ;;  %s4058_s30 = smov 7  }
   0x6   :  { %s4141_s25 = sld [smem:[%s4737_s0 + %s4056_s22]]   ;;  %s4059_s4 = smov 8  }
   0x7   :  { %4745 = sst [smem:[#allocation36_spill]] %s4116_s5  ;;  %s4060_s10 = smov 9  }
   0x8   :  { %4746 = sst [smem:[#allocation37_spill]] %s4121_s9  ;;  %s4061_s15 = smov 10  }
   0x9   :  { %s4146_s29 = sld [smem:[%s4737_s0 + %s4057_s26]]   ;;  %s4062_s20 = smov 11  }
   0xa   :  { %4747 = sst [smem:[#allocation38_spill]] %s4131_s17  ;;  %s4063_s26 = smov 12  }
   0xb   :  { %s4151_s3 = sld [smem:[%s4737_s0 + %s4058_s30]]   ;;  %s4064_s1 = smov 13  }
   0xc   :  { %4748 = sst [smem:[#allocation39_spill]] %s4141_s25  ;;  %s4065_s7 = smov 14  }
   0xd   :  { %s4156_s8 = sld [smem:[%s4737_s0 + %s4059_s4]]   ;;  %s4067_s22 = smov 16  }
   0xe   :  { %s4161_s14 = sld [smem:[%s4737_s0 + %s4060_s10]]   ;;  %s4068_s28 = smov 17  }
   0xf   :  { %s4166_s19 = sld [smem:[%s4737_s0 + %s4061_s15]]   ;;  %s4066_s15 = smov 15  }
  0x10   :  { %s4171_s24 = sld [smem:[%s4737_s0 + %s4062_s20]]  }
  0x11   :  { %s4176_s30 = sld [smem:[%s4737_s0 + %s4063_s26]]  }
  0x12   :  { %s4181_s6 = sld [smem:[%s4737_s0 + %s4064_s1]]  }
  0x13   :  { %s4186_s12 = sld [smem:[%s4737_s0 + %s4065_s7]]   ;;  %s4069_s7 = smov 18  }
  0x14   :  { %4749 = sst [smem:[#allocation40_spill]] %s4161_s14 }
  0x15   :  { %s4191_s20 = sld [smem:[%s4737_s0 + %s4066_s15]]   ;;  %s4070_s15 = smov 19  }
  0x16   :  { %s4196_s27 = sld [smem:[%s4737_s0 + %s4067_s22]]   ;;  %s4071_s22 = smov 20  }
  0x17   :  { %s4201_s4 = sld [smem:[%s4737_s0 + %s4068_s28]]   ;;  %s4072_s28 = smov 21  }
  0x18   :  { %s4206_s9 = sld [smem:[%s4737_s0 + %s4069_s7]]   ;;  %s4073_s7 = smov 22  }
  0x19   :  { %s4211_s14 = sld [smem:[%s4737_s0 + %s4070_s15]]   ;;  %s4074_s15 = smov 23  }
  0x1a   :  { %s4216_s25 = sld [smem:[%s4737_s0 + %s4071_s22]]   ;;  %s4075_s22 = smov 24  }
  0x1b   :  { %s4221_s5 = sld [smem:[%s4737_s0 + %s4072_s28]]   ;;  %s4076_s28 = smov 25  }
  0x1c   :  { %s4226_s17 = sld [smem:[%s4737_s0 + %s4073_s7]]   ;;  %s4077_s7 = smov 26  }
  0x1f   :  { %4750 = sst [smem:[#allocation41_spill]] %s4211_s14 }
  0x20   :  { %4751 = sst [smem:[#allocation42_spill]] %s4216_s25 }
  0x21   :  { %4752 = sst [smem:[#allocation43_spill]] %s4221_s5 }
  0x22   :  { %4753 = sst [smem:[#allocation44_spill]] %s4226_s17 }
  0x23   :  { %s4231_s14 = sld [smem:[%s4737_s0 + %s4074_s15]]   ;;  %s4078_s15 = smov 27  }
  0x24   :  { %s4236_s25 = sld [smem:[%s4737_s0 + %s4075_s22]]   ;;  %s4079_s22 = smov 28  }
  0x25   :  { %s4241_s5 = sld [smem:[%s4737_s0 + %s4076_s28]]   ;;  %s4080_s28 = smov 29  }
  0x26   :  { %s4246_s17 = sld [smem:[%s4737_s0 + %s4077_s7]]  }
  0x29   :  { %4754 = sst [smem:[#allocation45_spill]] %s4231_s14 }
  0x2a   :  { %4755 = sst [smem:[#allocation46_spill]] %s4236_s25 }
  0x2b   :  { %4756 = sst [smem:[#allocation47_spill]] %s4241_s5 }
  0x2c   :  { %s4251_s14 = sld [smem:[%s4737_s0 + %s4078_s15]]  }
  0x2d   :  { %s4256_s25 = sld [smem:[%s4737_s0 + %s4079_s22]]  }
  0x2e   :  { %s4261_s5 = sld [smem:[%s4737_s0 + %s4080_s28]]  }
  0x2f   :  { %64 = vsyncpa [#allocation3], 0 }
  0x30   :  { %65 = vsyncpa [#allocation6], 0 }
  0x31   :  { %66 = vsyncpa [#allocation9], 0 }
  0x32   :  { %67 = vsyncpa [#allocation12], 0 }
  0x33   :  { %68 = vsyncpa [#allocation15], 0 }
  0x34   :  { %69 = vsyncpa [#allocation18], 0 }
  0x35   :  { %70 = vsyncpa [#allocation21], 0 }
  0x36   :  { %71 = vsyncpa [#allocation24], 0 }
  0x37   :  { %72 = vsyncpa [#allocation4], 0  ;;  %s4081_s7 = smov [#allocation5]  }
  0x38   :  { %s97_s10 = sshll.u32 %s4081_s7, 4  ;;  %s98_s10 = int_to_ptr.vmem [resolvable:$true] %s97_s10 }
  0x39   :  { %s3722_s11 = scalar_lea.vmem %s98_s10, 16  ;;  %s3726_s15 = scalar_lea.vmem %s98_s10, 32 }
  0x3a   :  { %p3723_p0 = scmp.ne.s32.totalorder %s98_s10, %s3722_s11  ;;  %p3727_p1 = scmp.lt.s32.totalorder %s98_s10, %s98_s10 }
  0x3b   :  { %p3728_p2 = scmp.lt.s32.totalorder %s3726_s15, %s3722_s11 }
  0x3d   :  { %p3729_p3 = por %p3728_p2, %p3727_p1 }
  0x3f   :  { %p3730_p4 = pnand %p3729_p3, %p3723_p0 }
  0x41   :  { %3733 = shalt.err (!%p3730_p4)
}
  0x42   :  { %100 = dma.hbm_to_vmem [thread:$0]  %s4136_s21, 16, %s98_s10, [#allocation6]  }
  0x43   :  { %s4082_s0 = smov [#allocation8]   ;;  %s4083_s18 = smov [#allocation11]  }
  0x44   :  { %s118_s16 = sshll.u32 %s4082_s0, 4  ;;  %s143_s22 = sshll.u32 %s4083_s18, 4  ;;  %s119_s16 = int_to_ptr.vmem [resolvable:$true] %s118_s16  ;;  %s144_s22 = int_to_ptr.vmem [resolvable:$true] %s143_s22 }
  0x45   :  { %s3742_s23 = scalar_lea.vmem %s119_s16, 256  ;;  %p3747_p6 = scmp.lt.s32.totalorder %s119_s16, %s119_s16 }
  0x46   :  { %p3743_p5 = scmp.ne.s32.totalorder %s119_s16, %s3742_s23  ;;  %p3748_p7 = scmp.lt.s32.totalorder %s3742_s23, %s3742_s23 }
  0x48   :  { %p3749_p8 = por %p3748_p7, %p3747_p6 }
  0x4a   :  { %p3750_p9 = pnand %p3749_p8, %p3743_p5 }
  0x4c   :  { %3753 = shalt.err (!%p3750_p9)
}
  0x4d   :  { %s4084_s26 = smov 64   ;;  %s4085_s28 = smov 4  }
  0x4e   :  { %124 = dma.hbm_to_vmem [thread:$0]  %s4151_s3, 256, %s119_s16, [#allocation9], %s4084_s26, %s4084_s26, %s4085_s28  }
  0x4f   :  { %s3762_s21 = scalar_lea.vmem %s144_s22, 16  ;;  %s3766_s1 = scalar_lea.vmem %s144_s22, 32 }
  0x50   :  { %p3763_p10 = scmp.ne.s32.totalorder %s144_s22, %s3762_s21  ;;  %p3767_p11 = scmp.lt.s32.totalorder %s144_s22, %s144_s22 }
  0x51   :  { %p3768_p12 = scmp.lt.s32.totalorder %s3766_s1, %s3762_s21 }
  0x53   :  { %p3769_p13 = por %p3768_p12, %p3767_p11 }
  0x55   :  { %p3770_p0 = pnand %p3769_p13, %p3763_p10 }
  0x57   :  { %3773 = shalt.err (!%p3770_p0)
}
  0x58   :  { %146 = dma.hbm_to_vmem [thread:$0]  %s4166_s19, 16, %s144_s22, [#allocation12]  }
  0x59   :  { %s4086_s2 = smov [#allocation14]   ;;  %s4087_s10 = smov [#allocation17]  }
  0x5a   :  { %s163_s7 = sshll.u32 %s4086_s2, 4  ;;  %s185_s11 = sshll.u32 %s4087_s10, 4  ;;  %s164_s7 = int_to_ptr.vmem [resolvable:$true] %s163_s7  ;;  %s186_s11 = int_to_ptr.vmem [resolvable:$true] %s185_s11 }
  0x5b   :  { %s3782_s15 = scalar_lea.vmem %s164_s7, 16  ;;  %s3786_s0 = scalar_lea.vmem %s164_s7, 32 }
  0x5c   :  { %p3783_p1 = scmp.ne.s32.totalorder %s164_s7, %s3782_s15  ;;  %p3787_p2 = scmp.lt.s32.totalorder %s164_s7, %s164_s7 }
  0x5d   :  { %p3788_p3 = scmp.lt.s32.totalorder %s3786_s0, %s3782_s15 }
  0x5f   :  { %p3789_p4 = por %p3788_p3, %p3787_p2 }
  0x61   :  { %p3790_p5 = pnand %p3789_p4, %p3783_p1 }
  0x63   :  { %3793 = shalt.err (!%p3790_p5)
}
  0x64   :  { %166 = dma.hbm_to_vmem [thread:$0]  %s4176_s30, 16, %s164_s7, [#allocation15]  }
  0x65   :  { %s3802_s3 = scalar_lea.vmem %s186_s11, 16  ;;  %s3806_s16 = scalar_lea.vmem %s186_s11, 32 }
  0x66   :  { %p3803_p6 = scmp.ne.s32.totalorder %s186_s11, %s3802_s3  ;;  %p3807_p7 = scmp.lt.s32.totalorder %s186_s11, %s186_s11 }
  0x67   :  { %p3808_p8 = scmp.lt.s32.totalorder %s3806_s16, %s3802_s3 }
  0x69   :  { %p3809_p9 = por %p3808_p8, %p3807_p7 }
  0x6b   :  { %p3810_p10 = pnand %p3809_p9, %p3803_p6 }
  0x6d   :  { %3813 = shalt.err (!%p3810_p10)
}
  0x6e   :  { %188 = dma.hbm_to_vmem [thread:$0]  %s4186_s12, 16, %s186_s11, [#allocation18]  }
  0x6f   :  { %s4088_s19 = smov [#allocation20]   ;;  %s4089_s22 = smov [#allocation23]  }
  0x70   :  { %s207_s18 = sshll.u32 %s4088_s19, 4  ;;  %s229_s23 = sshll.u32 %s4089_s22, 4  ;;  %s208_s18 = int_to_ptr.vmem [resolvable:$true] %s207_s18  ;;  %s230_s23 = int_to_ptr.vmem [resolvable:$true] %s229_s23 }
  0x71   :  { %s3822_s21 = scalar_lea.vmem %s208_s18, 16  ;;  %s3826_s1 = scalar_lea.vmem %s208_s18, 32 }
  0x72   :  { %p3823_p11 = scmp.ne.s32.totalorder %s208_s18, %s3822_s21  ;;  %p3827_p12 = scmp.lt.s32.totalorder %s208_s18, %s208_s18 }
  0x73   :  { %p3828_p13 = scmp.lt.s32.totalorder %s3826_s1, %s3822_s21 }
  0x75   :  { %p3829_p0 = por %p3828_p13, %p3827_p12 }
  0x77   :  { %p3830_p1 = pnand %p3829_p0, %p3823_p11 }
  0x79   :  { %3833 = shalt.err (!%p3830_p1)
}
  0x7a   :  { %210 = dma.hbm_to_vmem [thread:$0]  %s4196_s27, 16, %s208_s18, [#allocation21]  }
  0x7b   :  { %s3842_s30 = scalar_lea.vmem %s230_s23, 16  ;;  %s3846_s2 = scalar_lea.vmem %s230_s23, 32 }
  0x7c   :  { %p3843_p2 = scmp.ne.s32.totalorder %s230_s23, %s3842_s30  ;;  %p3847_p3 = scmp.lt.s32.totalorder %s230_s23, %s230_s23 }
  0x7d   :  { %p3848_p4 = scmp.lt.s32.totalorder %s3846_s2, %s3842_s30 }
  0x7f   :  { %p3849_p5 = por %p3848_p4, %p3847_p3 }
  0x81   :  { %p3850_p6 = pnand %p3849_p5, %p3843_p2 }
  0x83   :  { %3853 = shalt.err (!%p3850_p6)
}
  0x84   :  { %232 = dma.hbm_to_vmem [thread:$0]  %s4206_s9, 16, %s230_s23, [#allocation24]  }
  0x85   :  { %s4090_s12 = smov [#allocation2]   ;;  %s4091_s10 = smov [#allocation7]  }
  0x86   :  { %s82_s7 = sshll.u32 %s4090_s12, 4  ;;  %s109_s11 = sshll.u32 %s4091_s10, 4  ;;  %s83_s7 = int_to_ptr.vmem [resolvable:$true] %s82_s7  ;;  %s110_s11 = int_to_ptr.vmem [resolvable:$true] %s109_s11 }
  0x87   :  { %s3862_s15 = scalar_lea.vmem %s83_s7, 128  ;;  %p3867_p8 = scmp.lt.s32.totalorder %s83_s7, %s83_s7 }
  0x88   :  { %p3863_p7 = scmp.ne.s32.totalorder %s83_s7, %s3862_s15  ;;  %p3868_p9 = scmp.lt.s32.totalorder %s3862_s15, %s3862_s15 }
  0x8a   :  { %p3869_p10 = por %p3868_p9, %p3867_p8 }
  0x8c   :  { %p3870_p11 = pnand %p3869_p10, %p3863_p7 }
  0x8e   :  { %3873 = shalt.err (!%p3870_p11)
}
  0x8f   :  { %88 = dma.hbm_to_vmem [thread:$0]  %s4126_s13, 128, %s83_s7, [#allocation3], %s4084_s26, %s4084_s26, %s4085_s28  }
  0x90   :  { %s3882_s27 = scalar_lea.vmem %s110_s11, 16  ;;  %s3886_s9 = scalar_lea.vmem %s110_s11, 32 }
  0x91   :  { %p3883_p12 = scmp.ne.s32.totalorder %s110_s11, %s3882_s27  ;;  %p3887_p13 = scmp.lt.s32.totalorder %s110_s11, %s110_s11 }
  0x92   :  { %p3888_p0 = scmp.lt.s32.totalorder %s3886_s9, %s3882_s27 }
  0x94   :  { %p3889_p1 = por %p3888_p0, %p3887_p13 }
  0x96   :  { %p3890_p2 = pnand %p3889_p1, %p3883_p12 }
  0x98   :  { %3893 = shalt.err (!%p3890_p2)
}
  0x99   :  { %112 = dma.hbm_to_vmem [thread:$0]  %s4146_s29, 16, %s110_s11, [#allocation6]  }
  0x9a   :  { %s4092_s0 = smov [#allocation10]   ;;  %s4093_s16 = smov [#allocation13]  }
  0x9b   :  { %s131_s3 = sshll.u32 %s4092_s0, 4  ;;  %s153_s19 = sshll.u32 %s4093_s16, 4  ;;  %s132_s3 = int_to_ptr.vmem [resolvable:$true] %s131_s3  ;;  %s154_s19 = int_to_ptr.vmem [resolvable:$true] %s153_s19 }
  0x9c   :  { %s3902_s18 = scalar_lea.vmem %s132_s3, 16  ;;  %s3906_s22 = scalar_lea.vmem %s132_s3, 32 }
  0x9d   :  { %p3903_p3 = scmp.ne.s32.totalorder %s132_s3, %s3902_s18  ;;  %p3907_p4 = scmp.lt.s32.totalorder %s132_s3, %s132_s3 }
  0x9e   :  { %p3908_p5 = scmp.lt.s32.totalorder %s3906_s22, %s3902_s18 }
  0xa0   :  { %p3909_p6 = por %p3908_p5, %p3907_p4 }
  0xa2   :  { %p3910_p7 = pnand %p3909_p6, %p3903_p3 }
  0xa4   :  { %3913 = shalt.err (!%p3910_p7)
}
  0xa5   :  { %134 = dma.hbm_to_vmem [thread:$0]  %s4156_s8, 16, %s132_s3, [#allocation9]  }
  0xa6   :  { %s3922_s13 = scalar_lea.vmem %s154_s19, 16  ;;  %s3926_s23 = scalar_lea.vmem %s154_s19, 32 }
  0xa7   :  { %p3923_p8 = scmp.ne.s32.totalorder %s154_s19, %s3922_s13  ;;  %p3927_p9 = scmp.lt.s32.totalorder %s154_s19, %s154_s19 }
  0xa8   :  { %p3928_p10 = scmp.lt.s32.totalorder %s3926_s23, %s3922_s13 }
  0xaa   :  { %p3929_p11 = por %p3928_p10, %p3927_p9 }
  0xac   :  { %p3930_p12 = pnand %p3929_p11, %p3923_p8 }
  0xae   :  { %3933 = shalt.err (!%p3930_p12)
}
  0xaf   :  { %156 = dma.hbm_to_vmem [thread:$0]  %s4171_s24, 16, %s154_s19, [#allocation12]  }
  0xb0   :  { %s4094_s29 = smov [#allocation16]   ;;  %s4095_s1 = smov [#allocation19]  }
  0xb1   :  { %s172_s21 = sshll.u32 %s4094_s29, 4  ;;  %s194_s30 = sshll.u32 %s4095_s1, 4  ;;  %s173_s21 = int_to_ptr.vmem [resolvable:$true] %s172_s21  ;;  %s195_s30 = int_to_ptr.vmem [resolvable:$true] %s194_s30 }
  0xb2   :  { %s3942_s2 = scalar_lea.vmem %s173_s21, 256  ;;  %p3947_p0 = scmp.lt.s32.totalorder %s173_s21, %s173_s21 }
  0xb3   :  { %p3943_p13 = scmp.ne.s32.totalorder %s173_s21, %s3942_s2  ;;  %p3948_p1 = scmp.lt.s32.totalorder %s3942_s2, %s3942_s2 }
  0xb5   :  { %p3949_p2 = por %p3948_p1, %p3947_p0 }
  0xb7   :  { %p3950_p3 = pnand %p3949_p2, %p3943_p13 }
  0xb9   :  { %3953 = shalt.err (!%p3950_p3)
}
  0xba   :  { %178 = dma.hbm_to_vmem [thread:$0]  %s4181_s6, 256, %s173_s21, [#allocation15], %s4084_s26, %s4084_s26, %s4085_s28  }
  0xbb   :  { %s3962_s8 = scalar_lea.vmem %s195_s30, 256  ;;  %p3967_p5 = scmp.lt.s32.totalorder %s195_s30, %s195_s30 }
  0xbc   :  { %p3963_p4 = scmp.ne.s32.totalorder %s195_s30, %s3962_s8  ;;  %p3968_p6 = scmp.lt.s32.totalorder %s3962_s8, %s3962_s8 }
  0xbe   :  { %p3969_p7 = por %p3968_p6, %p3967_p5 }
  0xc0   :  { %p3970_p8 = pnand %p3969_p7, %p3963_p4 }
  0xc2   :  { %3973 = shalt.err (!%p3970_p8)
}
  0xc3   :  { %200 = dma.hbm_to_vmem [thread:$0]  %s4191_s20, 256, %s195_s30, [#allocation18], %s4084_s26, %s4084_s26, %s4085_s28  }
  0xc4   :  { %s4096_s24 = smov [#allocation22]   ;;  %s4097_s7 = smov [#allocation25]  }
  0xc5   :  { %s216_s12 = sshll.u32 %s4096_s24, 4  ;;  %s246_s10 = sshll.u32 %s4097_s7, 4  ;;  %s217_s12 = int_to_ptr.vmem [resolvable:$true] %s216_s12  ;;  %s247_s10 = int_to_ptr.vmem [resolvable:$true] %s246_s10 }
  0xc6   :  { %s3982_s11 = scalar_lea.vmem %s217_s12, 256  ;;  %p3987_p10 = scmp.lt.s32.totalorder %s217_s12, %s217_s12 }
  0xc7   :  { %p3983_p9 = scmp.ne.s32.totalorder %s217_s12, %s3982_s11  ;;  %p3988_p11 = scmp.lt.s32.totalorder %s3982_s11, %s3982_s11 }
  0xc9   :  { %p3989_p12 = por %p3988_p11, %p3987_p10 }
  0xcb   :  { %p3990_p13 = pnand %p3989_p12, %p3983_p9 }
  0xcd   :  { %3993 = shalt.err (!%p3990_p13)
}
  0xce   :  { %222 = dma.hbm_to_vmem [thread:$0]  %s4201_s4, 256, %s217_s12, [#allocation21], %s4084_s26, %s4084_s26, %s4085_s28  }
  0xcf   :  { %s4002_s6 = scalar_lea.vmem %s247_s10, 256  ;;  %p4007_p1 = scmp.lt.s32.totalorder %s247_s10, %s247_s10 }
  0xd0   :  { %p4003_p0 = scmp.ne.s32.totalorder %s247_s10, %s4002_s6  ;;  %p4008_p2 = scmp.lt.s32.totalorder %s4002_s6, %s4002_s6 }
  0xd2   :  { %p4009_p3 = por %p4008_p2, %p4007_p1 }
  0xd4   :  { %p4010_p4 = pnand %p4009_p3, %p4003_p0 }
  0xd6   :  { %4013 = shalt.err (!%p4010_p4)
}
  0xd7   :  { %s4757_s20 = sld [smem:[#allocation45_spill]] }
  0xdd   :  { %252 = dma.hbm_to_vmem [thread:$0]  %s4757_s20, 256, %s247_s10, [#allocation24], %s4084_s26, %s4084_s26, %s4085_s28  }
  0xde   :  { %4034 = dma.done.wait [#allocation3], 128  }
  0xdf   :  { %4035 = vsyncadd [#allocation3], 4294967168 }
  0xe0   :  { %4036 = dma.done.wait [#allocation6], 32  }
  0xe1   :  { %4037 = vsyncadd [#allocation6], 4294967264 }
  0xe2   :  { %4038 = dma.done.wait [#allocation9], 272  }
  0xe3   :  { %4039 = vsyncadd [#allocation9], 4294967024 }
  0xe4   :  { %4040 = dma.done.wait [#allocation12], 32  }
  0xe5   :  { %4041 = vsyncadd [#allocation12], 4294967264 }
  0xe6   :  { %4042 = dma.done.wait [#allocation15], 272  }
  0xe7   :  { %4043 = vsyncadd [#allocation15], 4294967024 }
  0xe8   :  { %4044 = dma.done.wait [#allocation18], 272  }
  0xe9   :  { %4045 = vsyncadd [#allocation18], 4294967024 }
  0xea   :  { %4046 = dma.done.wait [#allocation21], 272  }
  0xeb   :  { %4047 = vsyncadd [#allocation21], 4294967024 }
  0xec   :  { %4048 = dma.done.wait [#allocation24], 272  }
  0xed   :  { %4049 = vsyncadd [#allocation24], 4294967024  ;;  %s4758_s4 = sld [smem:[#allocation38_spill]]  ;;  %v4098_v0 = vmov 0.0   ;;  %vm4099_vm0 = vmmov 0   ;;  %vm341_vm1 = vcmask 261120  }
  0xee   :  { %s4759_s15 = sld [smem:[#allocation36_spill]]  ;;  %3242 = vmatprep.subr.bf16.mxu0 %v4098_v0  ;;  %3246 = vmatprep.mubr.msk.bf16.mxu0 %vm4099_vm0, %v4098_v0  ;;  %v3055_v13 = vld [vmem:[#allocation7] ss:$0 sm:$0xff]  ;;  %v3051_v18 = vld [vmem:[#allocation5] ss:$0 sm:$0xff]  ;;  %vm518_vm2 = vcmask 64512  }
  0xef   :  { %s4760_s26 = sld [smem:[#allocation39_spill]]  ;;  %3266 = vmatprep.subr.bf16.mxu1 %v4098_v0  ;;  %3268 = vmatprep.mubr.msk.bf16.mxu1 %vm4099_vm0, %v4098_v0  ;;  %s4100_s28 = smov 112   ;;  %v3616_v27 = vld [vmem:[#allocation8 + $0x8] sm:$0xff]   ;;  %v3617_v28 = vld [vmem:[#allocation8] sm:$0xff]   ;;  %v3137_v48 = vld [vmem:[#allocation2] sm:$0xff]   ;;  %vm580_vm3 = vcmask 1043456  }
  0xf0   :  { %s4101_s27 = smov 120   ;;  %s4102_s9 = smov 104   ;;  %v3138_v49 = vunpack.c.l.bf16 %v3137_v48  ;;  %vm970_vm4 = vcmask 130048   ;;  %vm972_vm5 = vcmask 195584  }
  0xf1   :  { %s4761_s0 = sld [smem:[#allocation40_spill]]  ;;  %s4103_s3 = smov 8  }
  0xf2   :  { %s4104_s16 = smov 16   ;;  %s4105_s19 = smov 24  }
  0xf3   :  { %v3612_v1 = vld [vmem:[%s4758_s4 + $0x8] sm:$0xff]   ;;  %v3613_v2 = vld [vmem:[%s4758_s4] sm:$0xff]   ;;  %s4762_s18 = sld [smem:[#allocation37_spill]] }
  0xf4   :  { %3243 = vmatpush3.bf16.msra.mxu0 %v3612_v1  ;;  %v4305_v3 = vld [vmem:[%s4759_s15] sm:$0xff]  ;;  %v4308_v4 = vld [vmem:[%s4759_s15 + $0x8] sm:$0xff]  ;;  %s4763_s22 = sld [smem:[#allocation41_spill]] }
  0xf5   :  { %3244 = vmatprep.subr.bf16.mxu0 %v4098_v0  ;;  %v3614_v5 = vld [vmem:[%s4760_s26 + $0x8] sm:$0xff]   ;;  %v317_v6 = vpack.c.bf16 %v4308_v4, %v4305_v3  ;;  %v3615_v7 = vld [vmem:[%s4760_s26] sm:$0xff]   ;;  %s4764_s13 = sld [smem:[#allocation42_spill]] }
  0xf6   :  { %s4765_s23 = sld [smem:[#allocation47_spill]] }
  0xf7   :  { %s4766_s29 = sld [smem:[#allocation43_spill]] }
  0xf8   :  { %3245 = vmatpush3.bf16.msra.mxu0 %v3613_v2  ;;  %s4767_s21 = sld [smem:[#allocation44_spill]] }
  0xf9   :  { %3250 = vmatprep.subr.bf16.mxu0 %v4098_v0  ;;  %s4768_s1 = sld [smem:[#allocation46_spill]] }
  0xfb   :  { %3247 = vmatmul.mubr.msk.bf16.vlgmr.msra.gmra.mxu0 %vm341_vm1, %v317_v6 }
  0xfc   :  { %3251 = vmatpush3.bf16.msra.mxu0 %v3614_v5  ;;  %3254 = vmatprep.mubr.msk.bf16.mxu0 %vm4099_vm0, %v4098_v0 }
  0xfd   :  { %3252 = vmatprep.subr.bf16.mxu0 %v4098_v0 }
 0x100   :  { %3253 = vmatpush3.bf16.msra.mxu0 %v3615_v7 }
 0x101   :  { %3258 = vmatprep.subr.bf16.mxu0 %v4098_v0 }
 0x103   :  { %3255 = vmatmul.mubr.msk.bf16.vlgmr.msra.gmra.mxu0 %vm341_vm1, %v317_v6 }
 0x104   :  { %3262 = vmatprep.mubr.msk.bf16.mxu0 %vm4099_vm0, %v4098_v0  ;;  %3259 = vmatpush3.bf16.msra.mxu0 %v3616_v27 }
 0x105   :  { %3260 = vmatprep.subr.bf16.mxu0 %v4098_v0 }
 0x108   :  { %3261 = vmatpush3.bf16.msra.mxu0 %v3617_v28 }
 0x109   :  { %3272 = vmatprep.subr.bf16.mxu0 %v4098_v0 }
 0x10b   :  { %3263 = vmatmul.mubr.msk.bf16.vlgmr.msra.gmra.mxu0 %vm341_vm1, %v317_v6 }
 0x10c   :  { %3274 = vmatprep.mubr.msk.bf16.mxu0 %vm4099_vm0, %v4098_v0 }
 0x1bb   :  { %v379_v8 = vpop.f32.mrf.mxu0 }
 0x1bc   :  { %v380_v22 = vadd.f32 %v3051_v18, %v379_v8 }
 0x1bd   :  { %v3248_v9 = vpop.f32.mrf.mxu0 }
 0x1bf   :  { %v382_v10 = vpop.f32.mrf.mxu0 }
 0x1c0   :  { %v383_v20 = vadd.f32 %v3051_v18, %v382_v10 }
 0x1c1   :  { %v3249_v11 = vpop.f32.mrf.mxu0 }
 0x1c2   :  { %v386_v24 = vpack.c.bf16 %v383_v20, %v380_v22 }
 0x1c3   :  { %v444_v12 = vpop.f32.mrf.mxu0 }
 0x1c4   :  { %v445_v16 = vadd.f32 %v3055_v13, %v444_v12  ;;  %v975_v25 = vrot.slane %v386_v24, 4  ;;  %v3139_v12 = vunpack.c.h.bf16 %v3137_v48 }
 0x1c5   :  { %v3256_v14 = vpop.f32.mrf.mxu0 }
 0x1c7   :  { %v447_v15 = vpop.f32.mrf.mxu0 }
 0x1c8   :  { %v448_v17 = vadd.f32 %v3055_v13, %v447_v15 }
 0x1c9   :  { %v3257_v19 = vpop.f32.mrf.mxu0 }
 0x1ca   :  { %v451_v21 = vpack.c.bf16 %v448_v17, %v445_v16 }
 0x1cc   :  { %739 = vrot.lane.b32.xlu1 %v451_v21, %s4100_s28  ;;  %628 = vrot.lane.b32.xlu0 %v451_v21, %s4101_s27  ;;  %v523_v23 = vsel %vm518_vm2, %v451_v21, 0  ;;  %v976_v26 = vrot.slane %v451_v21, 4 }
 0x1cd   :  { %3267 = vmatpush3.bf16.xpose.msra.mxu1 %v523_v23 }
 0x1ce   :  { %3278 = vmatprep.subr.bf16.mxu1 %v4098_v0  ;;  %v981_v38 = vsel %vm518_vm2, %v976_v26, 0 }
 0x1d0   :  { %737 = vrot.lane.b32.xlu1 %v386_v24, %s4100_s28  ;;  %625 = vrot.lane.b32.xlu0 %v386_v24, %s4101_s27 }
 0x1d4   :  { %847 = vrot.lane.b32.xlu1 %v386_v24, %s4102_s9  ;;  %849 = vrot.lane.b32.xlu0 %v451_v21, %s4102_s9 }
 0x1d5   :  { %3269 = vmatmul.mubr.msk.bf16.vlgmr.msra.gmra.mxu1 %vm518_vm2, %v386_v24 }
 0x1d6   :  { %3280 = vmatprep.mubr.msk.bf16.mxu1 %vm4099_vm0, %v4098_v0 }
 0x1d8   :  { %1082 = vrot.lane.b32.xlu1 %v975_v25, %s4101_s27  ;;  %1084 = vrot.lane.b32.xlu0 %v976_v26, %s4101_s27 }
 0x1dc   :  { %1192 = vrot.lane.b32.xlu1 %v975_v25, %s4100_s28  ;;  %1194 = vrot.lane.b32.xlu0 %v976_v26, %s4100_s28 }
 0x1e0   :  { %1302 = vrot.lane.b32.xlu1 %v975_v25, %s4102_s9  ;;  %1304 = vrot.lane.b32.xlu0 %v976_v26, %s4102_s9 }
 0x23e   :  { %v629_v29 = vpop.permute.xlu0 %628  ;;  %v740_v31 = vpop.permute.xlu1 %739 }
 0x23f   :  { %v634_v30 = vsel %vm518_vm2, %v629_v29, 0  ;;  %v745_v33 = vsel %vm518_vm2, %v740_v31, 0 }
 0x240   :  { %3279 = vmatpush3.bf16.xpose.msra.mxu1 %v634_v30 }
 0x241   :  { %3290 = vmatprep.subr.bf16.mxu1 %v4098_v0 }
 0x242   :  { %v626_v32 = vpop.permute.xlu0 %625  ;;  %v738_v35 = vpop.permute.xlu1 %737 }
 0x246   :  { %v850_v34 = vpop.permute.xlu0 %849  ;;  %v848_v37 = vpop.permute.xlu1 %847 }
 0x247   :  { %3281 = vmatmul.mubr.msk.bf16.vlgmr.msra.gmra.mxu1 %vm518_vm2, %v626_v32  ;;  %v855_v36 = vsel %vm518_vm2, %v850_v34, 0  ;;  %v509_v32 = vpop.f32.mrf.mxu0 }
 0x248   :  { %3291 = vmatpush3.bf16.xpose.msra.mxu1 %v745_v33  ;;  %3292 = vmatprep.mubr.msk.bf16.mxu1 %vm4099_vm0, %v4098_v0 }
 0x249   :  { %3302 = vmatprep.subr.bf16.mxu1 %v4098_v0 }
 0x24a   :  { %v1085_v39 = vpop.permute.xlu0 %1084  ;;  %v1083_v42 = vpop.permute.xlu1 %1082 }
 0x24b   :  { %v1090_v40 = vsel %vm518_vm2, %v1085_v39, 0 }
 0x24e   :  { %v1195_v41 = vpop.permute.xlu0 %1194  ;;  %v1193_v45 = vpop.permute.xlu1 %1192 }
 0x24f   :  { %3293 = vmatmul.mubr.msk.bf16.vlgmr.msra.gmra.mxu1 %vm518_vm2, %v738_v35  ;;  %v1200_v43 = vsel %vm518_vm2, %v1195_v41, 0  ;;  %v3264_v35 = vpop.f32.mrf.mxu0 }
 0x250   :  { %3303 = vmatpush3.bf16.xpose.msra.mxu1 %v855_v36  ;;  %3304 = vmatprep.mubr.msk.bf16.mxu1 %vm4099_vm0, %v4098_v0 }
 0x251   :  { %3314 = vmatprep.subr.bf16.mxu1 %v4098_v0 }
 0x252   :  { %v1305_v44 = vpop.permute.xlu0 %1304  ;;  %v1303_v47 = vpop.permute.xlu1 %1302 }
 0x253   :  { %v1310_v46 = vsel %vm518_vm2, %v1305_v44, 0 }
 0x257   :  { %3305 = vmatmul.mubr.msk.bf16.vlgmr.msra.gmra.mxu1 %vm518_vm2, %v848_v37  ;;  %v3059_v37 = vld [vmem:[#allocation10] ss:$0 sm:$0xff] }
 0x258   :  { %3315 = vmatpush3.bf16.xpose.msra.mxu1 %v981_v38  ;;  %3316 = vmatprep.mubr.msk.bf16.mxu1 %vm4099_vm0, %v4098_v0  ;;  %v510_v41 = vadd.f32 %v3059_v37, %v509_v32 }
 0x259   :  { %3326 = vmatprep.subr.bf16.mxu1 %v4098_v0 }
 0x25f   :  { %3317 = vmatmul.mubr.msk.bf16.vlgmr.msra.gmra.mxu1 %vm518_vm2, %v975_v25 }
 0x260   :  { %3327 = vmatpush3.bf16.xpose.msra.mxu1 %v1090_v40  ;;  %3328 = vmatprep.mubr.msk.bf16.mxu1 %vm4099_vm0, %v4098_v0 }
 0x261   :  { %3338 = vmatprep.subr.bf16.mxu1 %v4098_v0 }
 0x267   :  { %3329 = vmatmul.mubr.msk.bf16.vlgmr.msra.gmra.mxu1 %vm518_vm2, %v1083_v42  ;;  %v512_v42 = vpop.f32.mrf.mxu0 }
 0x268   :  { %3339 = vmatpush3.bf16.xpose.msra.mxu1 %v1200_v43  ;;  %3340 = vmatprep.mubr.msk.bf16.mxu1 %vm4099_vm0, %v4098_v0 }
 0x269   :  { %3350 = vmatprep.subr.bf16.mxu1 %v4098_v0 }
 0x26f   :  { %3341 = vmatmul.mubr.msk.bf16.vlgmr.msra.gmra.mxu1 %vm518_vm2, %v1193_v45  ;;  %v513_v45 = vadd.f32 %v3059_v37, %v512_v42 }
 0x270   :  { %3351 = vmatpush3.bf16.xpose.msra.mxu1 %v1310_v46  ;;  %3352 = vmatprep.mubr.msk.bf16.mxu1 %vm4099_vm0, %v4098_v0  ;;  %v3265_v46 = vpop.f32.mrf.mxu0 }
 0x271   :  { %3362 = vmatprep.subr.bf16.mxu1 %v4098_v0 }
 0x277   :  { %3353 = vmatmul.mubr.msk.bf16.vlgmr.msra.gmra.mxu1 %vm518_vm2, %v1303_v47 }
 0x278   :  { %3366 = vmatprep.mubr.msk.bf16.mxu1 %vm4099_vm0, %v4098_v0 }
 0x295   :  { %v559_v50 = vpop.f32.mrf.mxu1 }
 0x296   :  { %v560_v51 = vadd.f32 %v3138_v49, %v559_v50 }
 0x297   :  { %v3270_v52 = vpop.f32.mrf.mxu1 }
 0x298   :  { %v565_v53 = vsel %vm518_vm2, %v560_v51, -inf }
 0x299   :  { %566 = vmax.xlane.f32.xlu0 %v565_v53  ;;  %v562_v54 = vpop.f32.mrf.mxu1 }
 0x29b   :  { %v3271_v55 = vpop.f32.mrf.mxu1 }
 0x307   :  { %v670_v56 = vpop.f32.mrf.mxu1 }
 0x308   :  { %v4382_v57 = vadd.f32 %v3138_v49, %v670_v56 }
 0x309   :  { %v3282_v58 = vpop.f32.mrf.mxu1 }
 0x30a   :  { %v676_v59 = vsel %vm518_vm2, %v4382_v57, -inf }
 0x30b   :  { %677 = vmax.xlane.f32.xlu1 %v676_v59  ;;  %v673_v60 = vpop.f32.mrf.mxu1 }
 0x30d   :  { %v3283_v61 = vpop.f32.mrf.mxu1 }
 0x30f   :  { %v781_v62 = vpop.f32.mrf.mxu1 }
 0x310   :  { %v4386_v63 = vadd.f32 %v3138_v49, %v781_v62 }
 0x311   :  { %v3294_v1 = vpop.f32.mrf.mxu1 }
 0x312   :  { %v787_v2 = vsel %vm518_vm2, %v4386_v63, -inf }
 0x313   :  { %788 = vmax.xlane.f32.xlu0 %v787_v2  ;;  %v784_v5 = vpop.f32.mrf.mxu1 }
 0x315   :  { %v3295_v6 = vpop.f32.mrf.mxu1 }
 0x317   :  { %v891_v7 = vpop.f32.mrf.mxu1 }
 0x318   :  { %v4390_v8 = vadd.f32 %v3138_v49, %v891_v7  ;;  %v4408_v49 = vpack.c.bf16 %v513_v45, %v510_v41 }
 0x319   :  { %v3306_v9 = vpop.f32.mrf.mxu1 }
 0x31a   :  { %v897_v10 = vsel %vm518_vm2, %v4390_v8, -inf }
 0x31b   :  { %898 = vmax.xlane.f32.xlu0 %v897_v10  ;;  %v894_v11 = vpop.f32.mrf.mxu1 }
 0x31d   :  { %v3307_v13 = vpop.f32.mrf.mxu1 }
 0x31f   :  { %v1017_v14 = vpop.f32.mrf.mxu1 }
 0x320   :  { %v4394_v15 = vadd.f32 %v3139_v12, %v1017_v14 }
 0x321   :  { %v3318_v16 = vpop.f32.mrf.mxu1 }
 0x322   :  { %v567_v17 = vpop.xlane.xlu0 %566  ;;  %v1023_v18 = vsel %vm518_vm2, %v4394_v15, -inf }
 0x323   :  { %v568_v19 = vsub.f32 %v560_v51, %v567_v17  ;;  %1024 = vmax.xlane.f32.xlu1 %v1023_v18  ;;  %v1020_v20 = vpop.f32.mrf.mxu1  ;;  %v582_v51 = vsel %vm580_vm3, %v4408_v49, 0 }
 0x324   :  { %3273 = vmatpush3.bf16.msra.mxu0 %v582_v51 }
 0x325   :  { %v569_v21 = vmul.f32 1.442695, %v568_v19  ;;  %v3319_v22 = vpop.f32.mrf.mxu1  ;;  %3284 = vmatprep.subr.bf16.mxu0 %v4098_v0 }
 0x327   :  { %3638 = vpow2.f32 %v569_v21  ;;  %v1126_v23 = vpop.f32.mrf.mxu1 }
 0x328   :  { %v4398_v24 = vadd.f32 %v3139_v12, %v1126_v23 }
 0x329   :  { %v3330_v25 = vpop.f32.mrf.mxu1 }
 0x32a   :  { %v1132_v26 = vsel %vm518_vm2, %v4398_v24, -inf }
 0x32b   :  { %1133 = vmax.xlane.f32.xlu0 %v1132_v26  ;;  %v1129_v27 = vpop.f32.mrf.mxu1 }
 0x32d   :  { %v3331_v28 = vpop.f32.mrf.mxu1 }
 0x32f   :  { %v1236_v29 = vpop.f32.mrf.mxu1 }
 0x330   :  { %v4402_v30 = vadd.f32 %v3139_v12, %v1236_v29 }
 0x331   :  { %v3342_v31 = vpop.f32.mrf.mxu1 }
 0x332   :  { %v1242_v33 = vsel %vm518_vm2, %v4402_v30, -inf }
 0x333   :  { %1243 = vmax.xlane.f32.xlu1 %v1242_v33  ;;  %v1239_v34 = vpop.f32.mrf.mxu1 }
 0x334   :  { %v3639_v36 = vpop.eup %3638 }
 0x335   :  { %v3343_v38 = vpop.f32.mrf.mxu1  ;;  %v571_v39 = vsel %vm518_vm2, %v3639_v36, 0.0 }
 0x337   :  { %572 = vadd.xlane.f32.xlu1 %v571_v39  ;;  %v1346_v40 = vpop.f32.mrf.mxu1 }
 0x338   :  { %v1347_v43 = vadd.f32 %v3139_v12, %v1346_v40 }
 0x339   :  { %v3354_v44 = vpop.f32.mrf.mxu1 }
 0x33a   :  { %v1352_v47 = vsel %vm518_vm2, %v1347_v43, -inf }
 0x33b   :  { %1353 = vmax.xlane.f32.xlu0 %v1352_v47  ;;  %v1349_v48 = vpop.f32.mrf.mxu1 }
 0x33d   :  { %v3355_v50 = vpop.f32.mrf.mxu1 }
 0x394   :  { %v678_v52 = vpop.xlane.xlu1 %677 }
 0x395   :  { %v679_v53 = vsub.f32 %v4382_v57, %v678_v52 }
 0x397   :  { %v680_v54 = vmul.f32 1.442695, %v679_v53 }
 0x399   :  { %3640 = vpow2.f32 %v680_v54 }
 0x39c   :  { %v789_v55 = vpop.xlane.xlu0 %788 }
 0x39d   :  { %v790_v56 = vsub.f32 %v4386_v63, %v789_v55 }
 0x39f   :  { %v791_v58 = vmul.f32 1.442695, %v790_v56 }
 0x3a1   :  { %3642 = vpow2.f32 %v791_v58 }
 0x3a4   :  { %v899_v59 = vpop.xlane.xlu0 %898 }
 0x3a5   :  { %v900_v60 = vsub.f32 %v4390_v8, %v899_v59 }
 0x3a6   :  { %v3641_v61 = vpop.eup %3640 }
 0x3a7   :  { %v901_v62 = vmul.f32 1.442695, %v900_v60  ;;  %v682_v1 = vsel %vm518_vm2, %v3641_v61, 0.0 }
 0x3a8   :  { %683 = vadd.xlane.f32.xlu0 %v682_v1 }
 0x3a9   :  { %3644 = vpow2.f32 %v901_v62 }
 0x3ac   :  { %v1025_v6 = vpop.xlane.xlu1 %1024 }
 0x3ad   :  { %v1026_v10 = vsub.f32 %v4394_v15, %v1025_v6 }
 0x3ae   :  { %v4417_v2 = vpop.eup %3642 }
 0x3af   :  { %v793_v57 = vsel %vm518_vm2, %v4417_v2, 0.0  ;;  %v1027_v16 = vmul.f32 1.442695, %v1026_v10 }
 0x3b0   :  { %794 = vadd.xlane.f32.xlu1 %v793_v57 }
 0x3b4   :  { %v1134_v11 = vpop.xlane.xlu0 %1133 }
 0x3b5   :  { %v1135_v14 = vsub.f32 %v4398_v24, %v1134_v11 }
 0x3b6   :  { %v4421_v5 = vpop.eup %3644 }
 0x3b7   :  { %v903_v63 = vsel %vm518_vm2, %v4421_v5, 0.0  ;;  %v1136_v19 = vmul.f32 1.442695, %v1135_v14 }
 0x3b8   :  { %904 = vadd.xlane.f32.xlu0 %v903_v63 }
 0x3bc   :  { %v1244_v7 = vpop.xlane.xlu1 %1243 }
 0x3bd   :  { %v1245_v17 = vsub.f32 %v4402_v30, %v1244_v7  ;;  %v1035_v30 = vrot.slane %v4408_v49, 4 }
 0x3bf   :  { %v1246_v20 = vmul.f32 1.442695, %v1245_v17 }
 0x3c0   :  { %v573_v8 = vpop.xlane.xlu1 %572 }
 0x3c1   :  { %799 = vrot.lane.b32.xlu1 %v4408_v49, %s4100_s28  ;;  %3646 = vrcp.f32 %v573_v8 }
 0x3c2   :  { %3648 = vpow2.f32 %v1027_v16 }
 0x3c3   :  { %3650 = vpow2.f32 %v1136_v19 }
 0x3c4   :  { %v1354_v18 = vpop.xlane.xlu0 %1353  ;;  %3652 = vpow2.f32 %v1246_v20 }
 0x3c5   :  { %909 = vrot.lane.b32.xlu1 %v4408_v49, %s4102_s9  ;;  %v1355_v21 = vsub.f32 %v1347_v43, %v1354_v18 }
 0x3c7   :  { %v1356_v15 = vmul.f32 1.442695, %v1355_v21 }
 0x3c9   :  { %3654 = vpow2.f32 %v1356_v15 }
 0x3ce   :  { %689 = vrot.lane.b32.xlu0 %v4408_v49, %s4101_s27  ;;  %v3647_v9 = vpop.eup %3646  ;;  %v1040_v49 = vsel %vm580_vm3, %v1035_v30, 0 }
 0x3cf   :  { %v575_v12 = vmul.f32 %v3647_v9, %v3639_v36  ;;  %v3649_v22 = vpop.eup %3648 }
 0x3d0   :  { %v4437_v23 = vpop.eup %3650  ;;  %v1029_v24 = vsel %vm518_vm2, %v3649_v22, 0.0 }
 0x3d1   :  { %v576_v13 = vpack.c.bf16 %v575_v12, %v575_v12  ;;  %v4440_v25 = vpop.eup %3652  ;;  %v1138_v26 = vsel %vm518_vm2, %v4437_v23, 0.0 }
 0x3d2   :  { %v1248_v27 = vsel %vm518_vm2, %v4440_v25, 0.0 }
 0x3d3   :  { %3275 = vmatmul.mubr.msk.bf16.vlgmr.msra.gmra.mxu0 %vm518_vm2, %v576_v13 }
 0x3d4   :  { %3286 = vmatprep.mubr.msk.bf16.mxu0 %vm4099_vm0, %v4098_v0 }
 0x3d6   :  { %v4446_v28 = vpop.eup %3654 }
 0x3d7   :  { %v1358_v29 = vsel %vm518_vm2, %v4446_v28, 0.0 }
 0x3e9   :  { %1030 = vadd.xlane.f32.xlu1 %v1029_v24 }
 0x3ed   :  { %1139 = vadd.xlane.f32.xlu1 %v1138_v26  ;;  %1249 = vadd.xlane.f32.xlu0 %v1248_v27 }
 0x3f1   :  { %1359 = vadd.xlane.f32.xlu1 %v1358_v29 }
 0x402   :  { %1254 = vrot.lane.b32.xlu1 %v1035_v30, %s4100_s28 }
 0x403   :  { %1144 = vrot.lane.b32.xlu0 %v1035_v30, %s4101_s27 }
 0x407   :  { %1364 = vrot.lane.b32.xlu0 %v1035_v30, %s4102_s9 }
 0x431   :  { %v684_v31 = vpop.xlane.xlu0 %683 }
 0x432   :  { %3656 = vrcp.f32 %v684_v31 }
 0x439   :  { %v795_v32 = vpop.xlane.xlu1 %794 }
 0x43a   :  { %3658 = vrcp.f32 %v795_v32  ;;  %v3618_v32 = vld [vmem:[%s4761_s0 + $0x8] sm:$0xff]  }
 0x43b   :  { %3363 = vmatpush3.bf16.msra.mxu1 %v3618_v32 }
 0x43c   :  { %3364 = vmatprep.subr.bf16.mxu1 %v4098_v0 }
 0x43d   :  { %v800_v38 = vpop.permute.xlu1 %799 }
 0x43e   :  { %v805_v41 = vsel %vm580_vm3, %v800_v38, 0 }
 0x43f   :  { %v3657_v33 = vpop.eup %3656 }
 0x440   :  { %v686_v35 = vmul.f32 %v3657_v33, %v3641_v61 }
 0x441   :  { %v905_v34 = vpop.xlane.xlu0 %904  ;;  %v910_v43 = vpop.permute.xlu1 %909 }
 0x442   :  { %3660 = vrcp.f32 %v905_v34  ;;  %v687_v39 = vpack.c.bf16 %v686_v35, %v686_v35  ;;  %v915_v46 = vsel %vm580_vm3, %v910_v43, 0 }
 0x445   :  { %v690_v36 = vpop.permute.xlu0 %689 }
 0x446   :  { %v695_v37 = vsel %vm580_vm3, %v690_v36, 0 }
 0x447   :  { %3285 = vmatpush3.bf16.msra.mxu0 %v695_v37  ;;  %v3659_v40 = vpop.eup %3658  ;;  %v3619_v37 = vld [vmem:[%s4761_s0] sm:$0xff]  }
 0x448   :  { %3296 = vmatprep.subr.bf16.mxu0 %v4098_v0  ;;  %v797_v42 = vmul.f32 %v3659_v40, %v4417_v2  ;;  %3365 = vmatpush3.bf16.msra.mxu1 %v3619_v37 }
 0x44a   :  { %3287 = vmatmul.mubr.msk.bf16.vlgmr.msra.gmra.mxu0 %vm518_vm2, %v687_v39  ;;  %v798_v44 = vpack.c.bf16 %v797_v42, %v797_v42 }
 0x44b   :  { %3297 = vmatpush3.bf16.msra.mxu0 %v805_v41  ;;  %3298 = vmatprep.mubr.msk.bf16.mxu0 %vm4099_vm0, %v4098_v0 }
 0x44c   :  { %3308 = vmatprep.subr.bf16.mxu0 %v4098_v0 }
 0x44f   :  { %v3661_v45 = vpop.eup %3660 }
 0x450   :  { %v907_v47 = vmul.f32 %v3661_v45, %v4421_v5 }
 0x452   :  { %3299 = vmatmul.mubr.msk.bf16.vlgmr.msra.gmra.mxu0 %vm518_vm2, %v798_v44  ;;  %v908_v48 = vpack.c.bf16 %v907_v47, %v907_v47 }
 0x453   :  { %3309 = vmatpush3.bf16.msra.mxu0 %v915_v46  ;;  %3310 = vmatprep.mubr.msk.bf16.mxu0 %vm4099_vm0, %v4098_v0 }
 0x454   :  { %3320 = vmatprep.subr.bf16.mxu0 %v4098_v0 }
 0x45a   :  { %3311 = vmatmul.mubr.msk.bf16.vlgmr.msra.gmra.mxu0 %vm518_vm2, %v908_v48 }
 0x45b   :  { %3321 = vmatpush3.bf16.msra.mxu0 %v1040_v49  ;;  %3322 = vmatprep.mubr.msk.bf16.mxu0 %vm4099_vm0, %v4098_v0 }
 0x45c   :  { %3332 = vmatprep.subr.bf16.mxu0 %v4098_v0 }
 0x472   :  { %v1031_v50 = vpop.xlane.xlu1 %1030 }
 0x473   :  { %3662 = vrcp.f32 %v1031_v50 }
 0x476   :  { %v1140_v51 = vpop.xlane.xlu1 %1139  ;;  %v1250_v52 = vpop.xlane.xlu0 %1249 }
 0x477   :  { %3664 = vrcp.f32 %v1140_v51 }
 0x478   :  { %3666 = vrcp.f32 %v1250_v52 }
 0x47a   :  { %v1145_v55 = vpop.permute.xlu0 %1144  ;;  %v1360_v59 = vpop.xlane.xlu1 %1359 }
 0x47b   :  { %v1150_v60 = vsel %vm580_vm3, %v1145_v55, 0  ;;  %3668 = vrcp.f32 %v1360_v59 }
 0x47e   :  { %v1255_v62 = vpop.permute.xlu1 %1254  ;;  %v1365_v63 = vpop.permute.xlu0 %1364 }
 0x47f   :  { %v1260_v57 = vsel %vm580_vm3, %v1255_v62, 0  ;;  %v1370_v9 = vsel %vm580_vm3, %v1365_v63, 0 }
 0x480   :  { %v3663_v53 = vpop.eup %3662 }
 0x481   :  { %v1033_v54 = vmul.f32 %v3663_v53, %v3649_v22 }
 0x483   :  { %v1034_v56 = vpack.c.bf16 %v1033_v54, %v1033_v54 }
 0x484   :  { %v3665_v58 = vpop.eup %3664 }
 0x485   :  { %3323 = vmatmul.mubr.msk.bf16.vlgmr.msra.gmra.mxu0 %vm518_vm2, %v1034_v56  ;;  %v1142_v61 = vmul.f32 %v3665_v58, %v4437_v23  ;;  %v3667_v2 = vpop.eup %3666 }
 0x486   :  { %3333 = vmatpush3.bf16.msra.mxu0 %v1150_v60  ;;  %3334 = vmatprep.mubr.msk.bf16.mxu0 %vm4099_vm0, %v4098_v0  ;;  %v1252_v5 = vmul.f32 %v3667_v2, %v4440_v25 }
 0x487   :  { %3344 = vmatprep.subr.bf16.mxu0 %v4098_v0  ;;  %v1143_v1 = vpack.c.bf16 %v1142_v61, %v1142_v61 }
 0x488   :  { %v1253_v6 = vpack.c.bf16 %v1252_v5, %v1252_v5  ;;  %v3669_v7 = vpop.eup %3668 }
 0x489   :  { %v1362_v11 = vmul.f32 %v3669_v7, %v4446_v28 }
 0x48b   :  { %v1363_v14 = vpack.c.bf16 %v1362_v11, %v1362_v11 }
 0x48d   :  { %3335 = vmatmul.mubr.msk.bf16.vlgmr.msra.gmra.mxu0 %vm518_vm2, %v1143_v1 }
 0x48e   :  { %3345 = vmatpush3.bf16.msra.mxu0 %v1260_v57  ;;  %3346 = vmatprep.mubr.msk.bf16.mxu0 %vm4099_vm0, %v4098_v0  ;;  %v3079_v57 = vld [vmem:[#allocation11] ss:$0 sm:$0xff] }
 0x48f   :  { %3356 = vmatprep.subr.bf16.mxu0 %v4098_v0 }
 0x493   :  { %v4485_v8 = vpop.f32.mrf.mxu0 }
 0x495   :  { %3347 = vmatmul.mubr.msk.bf16.vlgmr.msra.gmra.mxu0 %vm518_vm2, %v1253_v6  ;;  %v3276_v10 = vpop.f32.mrf.mxu0 }
 0x496   :  { %3357 = vmatpush3.bf16.msra.mxu0 %v1370_v9  ;;  %3358 = vmatprep.mubr.msk.bf16.mxu0 %vm4099_vm0, %v4098_v0 }
 0x497   :  { %3370 = vmatprep.subr.bf16.mxu0 %v4098_v0  ;;  %v621_v12 = vpop.f32.mrf.mxu0 }
 0x499   :  { %v3277_v13 = vpop.f32.mrf.mxu0 }
 0x49d   :  { %3359 = vmatmul.mubr.msk.bf16.vlgmr.msra.gmra.mxu0 %vm518_vm2, %v1363_v14 }
 0x49e   :  { %3374 = vmatprep.mubr.msk.bf16.mxu0 %vm4099_vm0, %v4098_v0 }
 0x50a   :  { %v731_v16 = vpop.f32.mrf.mxu0 }
 0x50c   :  { %v3288_v17 = vpop.f32.mrf.mxu0 }
 0x50e   :  { %v734_v18 = vpop.f32.mrf.mxu0 }
 0x510   :  { %v3289_v19 = vpop.f32.mrf.mxu0 }
 0x512   :  { %v841_v20 = vpop.f32.mrf.mxu0 }
 0x514   :  { %v3300_v21 = vpop.f32.mrf.mxu0 }
 0x516   :  { %v844_v15 = vpop.f32.mrf.mxu0 }
 0x518   :  { %v3301_v22 = vpop.f32.mrf.mxu0 }
 0x519   :  { %v3620_v22 = vld [vmem:[#allocation19 + $0x8] sm:$0xff]  }
 0x51a   :  { %v951_v23 = vpop.f32.mrf.mxu0  ;;  %3378 = vmatprep.subr.bf16.mxu1 %v3620_v22 }
 0x51c   :  { %v3312_v24 = vpop.f32.mrf.mxu0 }
 0x51d   :  { %v311_v24 = vld [vmem:[%s4762_s18] sm:$0xff] }
 0x51e   :  { %v954_v25 = vpop.f32.mrf.mxu0 }
 0x51f   :  { %v312_v25 = vld [vmem:[%s4762_s18 + $0x8] sm:$0xff] }
 0x520   :  { %v3313_v26 = vpop.f32.mrf.mxu0 }
 0x521   :  { %v1611_v26 = vpack.c.bf16 %v312_v25, %v311_v24 }
 0x545   :  { %v1076_v27 = vpop.f32.mrf.mxu0 }
 0x547   :  { %v3324_v28 = vpop.f32.mrf.mxu0 }
 0x548   :  { %v314_v28 = vld [vmem:[%s4762_s18 + $0x18] sm:$0xff] }
 0x549   :  { %v1079_v29 = vpop.f32.mrf.mxu0 }
 0x54b   :  { %v3325_v30 = vpop.f32.mrf.mxu0 }
 0x54c   :  { %v3622_v30 = vld [vmem:[#allocation16 + $0x8] sm:$0xff]  }
 0x54d   :  { %v1186_v31 = vpop.f32.mrf.mxu0  ;;  %3371 = vmatpush3.bf16.msra.mxu0 %v3622_v30 }
 0x54e   :  { %v3582_v33 = vpack.i.bf16 %v1186_v31, %v731_v16  ;;  %v3623_v31 = vld [vmem:[#allocation16] sm:$0xff]   ;;  %3372 = vmatprep.subr.bf16.mxu0 %v4098_v0 }
 0x54f   :  { %v3336_v34 = vpop.f32.mrf.mxu0 }
 0x550   :  { %3583 = vrot.lane.b32.xlu0 %v3582_v33, %s4103_s3 }
 0x551   :  { %v1189_v35 = vpop.f32.mrf.mxu0  ;;  %3373 = vmatpush3.bf16.msra.mxu0 %v3623_v31 }
 0x553   :  { %v3337_v36 = vpop.f32.mrf.mxu0 }
 0x555   :  { %v1296_v38 = vpop.f32.mrf.mxu0 }
 0x556   :  { %v3587_v39 = vpack.i.bf16 %v1296_v38, %v841_v20 }
 0x557   :  { %v3348_v40 = vpop.f32.mrf.mxu0 }
 0x558   :  { %3588 = vrot.lane.b32.xlu1 %v3587_v39, %s4104_s16  ;;  %v3083_v40 = vld [vmem:[#allocation13] ss:$0 sm:$0xff] }
 0x559   :  { %v1299_v41 = vpop.f32.mrf.mxu0 }
 0x55b   :  { %v3349_v42 = vpop.f32.mrf.mxu0 }
 0x55d   :  { %v1406_v43 = vpop.f32.mrf.mxu0 }
 0x55e   :  { %v3592_v44 = vpack.i.bf16 %v1406_v43, %v951_v23  ;;  %v3621_v23 = vld [vmem:[#allocation19] sm:$0xff]  }
 0x55f   :  { %v3360_v45 = vpop.f32.mrf.mxu0 }
 0x560   :  { %3593 = vrot.lane.b32.xlu0 %v3592_v44, %s4105_s19  ;;  %v3084_v44 = vld [vmem:[#allocation14] ss:$0 sm:$0xff] }
 0x561   :  { %v1409_v46 = vpop.f32.mrf.mxu0 }
 0x563   :  { %v3361_v47 = vpop.f32.mrf.mxu0 }
 0x5c2   :  { %v3584_v48 = vpop.permute.xlu0 %3583 }
 0x5c3   :  { %v3586_v50 = vunpack.i.h.bf16 %v3584_v48  ;;  %v3585_v51 = vunpack.i.l.bf16 %v3584_v48 }
 0x5c5   :  { %v1424_v55 = vsel %vm518_vm2, %v1076_v27, %v3586_v50  ;;  %v969_v56 = vsel %vm518_vm2, %v4485_v8, %v3585_v51  ;;  %v313_v27 = vld [vmem:[%s4762_s18 + $0x10] sm:$0xff] }
 0x5c6   :  { %v4520_v29 = vpack.c.bf16 %v314_v28, %v313_v27 }
 0x5ca   :  { %v3589_v49 = vpop.permute.xlu1 %3588 }
 0x5cb   :  { %v3591_v52 = vunpack.i.h.bf16 %v3589_v49  ;;  %v3590_v53 = vunpack.i.l.bf16 %v3589_v49  ;;  %v3089_v49 = vld [vmem:[#allocation20] ss:$0 sm:$0xff] }
 0x5cd   :  { %v1425_v60 = vsel %vm970_vm4, %v1424_v55, %v3591_v52  ;;  %v971_v61 = vsel %vm970_vm4, %v969_v56, %v3590_v53 }
 0x5d2   :  { %v3594_v54 = vpop.permute.xlu0 %3593 }
 0x5d3   :  { %v3596_v58 = vunpack.i.h.bf16 %v3594_v54  ;;  %v3595_v59 = vunpack.i.l.bf16 %v3594_v54 }
 0x5d5   :  { %v1426_v62 = vsel %vm972_vm5, %v1425_v60, %v3596_v58  ;;  %v973_v1 = vsel %vm972_vm5, %v971_v61, %v3595_v59 }
 0x5d6   :  { %v1427_v2 = vpack.c.bf16 %v1426_v62, %v973_v1  ;;  %v3085_v1 = vld [vmem:[#allocation17] ss:$0 sm:$0xff] }
 0x5d8   :  { %3367 = vmatmul.mubr.msk.bf16.vlgmr.msra.gmra.mxu1 %vm341_vm1, %v1427_v2 }
 0x5d9   :  { %3379 = vmatpush3.bf16.msra.mxu1 %v3620_v22  ;;  %3382 = vmatprep.mubr.msk.bf16.mxu1 %vm341_vm1, %v1611_v26 }
 0x5da   :  { %3380 = vmatprep.subr.bf16.mxu1 %v3621_v23 }
 0x5dd   :  { %3381 = vmatpush3.bf16.msra.mxu1 %v3621_v23 }
 0x5de   :  { %3394 = vmatprep.subr.bf16.mxu1 %v4098_v0 }
 0x5e0   :  { %3383 = vmatmul.mubr.msk.bf16.vlgmr.msra.gmra.mxu1 %vm341_vm1, %v4520_v29 }
 0x5e1   :  { %3396 = vmatprep.mubr.msk.bf16.mxu1 %vm4099_vm0, %v4098_v0 }
 0x698   :  { %v1488_v5 = vpop.f32.mrf.mxu1 }
 0x699   :  { %v1489_v63 = vadd.f32 %v3079_v57, %v1488_v5 }
 0x69a   :  { %v3368_v6 = vpop.f32.mrf.mxu1 }
 0x69b   :  { %v1495_v7 = vadd.f32 %v1489_v63, %v4305_v3 }
 0x69c   :  { %v1491_v8 = vpop.f32.mrf.mxu1 }
 0x69d   :  { %v1492_v9 = vadd.f32 %v3079_v57, %v1491_v8  ;;  %v1499_v10 = vsel %vm341_vm1, %v1495_v7, 0.0 }
 0x69e   :  { %1500 = vadd.xlane.f32.xlu1 %v1499_v10  ;;  %v3369_v11 = vpop.f32.mrf.mxu1 }
 0x69f   :  { %v1496_v12 = vadd.f32 %v1492_v9, %v4308_v4  ;;  %v3624_v11 = vld [vmem:[#allocation22 + $0x8] sm:$0xff]  }
 0x6a0   :  { %v3384_v50 = vpop.f32.mrf.mxu1  ;;  %3386 = vmatprep.subr.bf16.mxu0 %v3624_v11 }
 0x6a1   :  { %v1502_v13 = vsel %vm341_vm1, %v1496_v12, 0.0  ;;  %v1685_v51 = vadd.f32 %v3384_v50, %v3089_v49 }
 0x6a2   :  { %1503 = vadd.xlane.f32.xlu0 %v1502_v13  ;;  %v1676_v52 = vpop.f32.mrf.mxu1 }
 0x6a3   :  { %v1677_v54 = vadd.f32 %v3089_v49, %v1676_v52 }
 0x6a4   :  { %v3385_v53 = vpop.f32.mrf.mxu1 }
 0x6a5   :  { %v1688_v55 = vadd.f32 %v3385_v53, %v3089_v49 }
 0x6a6   :  { %v1679_v56 = vpop.f32.mrf.mxu1 }
 0x6a7   :  { %v1692_v58 = vpack.c.bf16 %v1688_v55, %v1685_v51  ;;  %v1680_v59 = vadd.f32 %v3089_v49, %v1679_v56 }
 0x6a9   :  { %v1691_v60 = vpack.c.bf16 %v1680_v59, %v1677_v54 }
 0x6ab   :  { %v1771_v61 = vsel %vm518_vm2, %v1691_v60, 0 }
 0x6ac   :  { %3395 = vmatpush3.bf16.xpose.msra.mxu1 %v1771_v61 }
 0x6ad   :  { %3406 = vmatprep.subr.bf16.mxu1 %v4098_v0 }
 0x727   :  { %v1501_v14 = vpop.xlane.xlu1 %1500 }
 0x728   :  { %v1506_v16 = vmul.f32 0.03125, %v1501_v14 }
 0x72a   :  { %v1508_v17 = vsub.f32 %v1495_v7, %v1506_v16 }
 0x72b   :  { %v1504_v18 = vpop.xlane.xlu0 %1503 }
 0x72c   :  { %v1507_v19 = vmul.f32 0.03125, %v1504_v18  ;;  %v1510_v20 = vmul.f32 %v1508_v17, %v1508_v17 }
 0x72e   :  { %v1509_v3 = vsub.f32 %v1496_v12, %v1507_v19  ;;  %v1512_v21 = vsel %vm341_vm1, %v1510_v20, 0.0  ;;  %v3625_v12 = vld [vmem:[#allocation22] sm:$0xff]  }
 0x72f   :  { %1513 = vadd.xlane.f32.xlu0 %v1512_v21 }
 0x730   :  { %v1511_v15 = vmul.f32 %v1509_v3, %v1509_v3 }
 0x732   :  { %v1515_v4 = vsel %vm341_vm1, %v1511_v15, 0.0 }
 0x733   :  { %1516 = vadd.xlane.f32.xlu1 %v1515_v4 }
 0x745   :  { %1872 = vrot.lane.b32.xlu0 %v1691_v60, %s4101_s27 }
 0x7b8   :  { %v1514_v32 = vpop.xlane.xlu0 %1513 }
 0x7b9   :  { %v1518_v33 = vmul.f32 0.03125, %v1514_v32 }
 0x7bb   :  { %v1520_v34 = vadd.f32 1e-05, %v1518_v33 }
 0x7bc   :  { %v1517_v35 = vpop.xlane.xlu1 %1516  ;;  %v1873_v6 = vpop.permute.xlu0 %1872 }
 0x7bd   :  { %3670 = vrsqrt.f32 %v1520_v34  ;;  %v1519_v36 = vmul.f32 0.03125, %v1517_v35  ;;  %v1878_v9 = vsel %vm518_vm2, %v1873_v6, 0  ;;  %v3094_v34 = vld [vmem:[#allocation23] ss:$0 sm:$0xff] }
 0x7bf   :  { %v1521_v37 = vadd.f32 1e-05, %v1519_v36 }
 0x7c1   :  { %3672 = vrsqrt.f32 %v1521_v37 }
 0x7ca   :  { %v3671_v38 = vpop.eup %3670 }
 0x7cb   :  { %v1524_v39 = vmul.f32 %v3671_v38, %v1508_v17 }
 0x7cd   :  { %v1532_v43 = vmul.f32 %v3083_v40, %v1524_v39 }
 0x7ce   :  { %v3673_v41 = vpop.eup %3672 }
 0x7cf   :  { %v1525_v42 = vmul.f32 %v3673_v41, %v1509_v3  ;;  %v4529_v46 = vadd.f32 %v3084_v44, %v1532_v43  ;;  %v2215_v3 = vsel %vm518_vm2, %v1692_v58, 0 }
 0x7d1   :  { %v1533_v45 = vmul.f32 %v3083_v40, %v1525_v42 }
 0x7d3   :  { %v4531_v47 = vadd.f32 %v3084_v44, %v1533_v45 }
 0x7d5   :  { %v1542_v48 = vpack.c.bf16 %v4531_v47, %v4529_v46 }
 0x7d7   :  { %3375 = vmatmul.mubr.msk.bf16.vlgmr.msra.gmra.mxu0 %vm341_vm1, %v1542_v48 }
 0x7d8   :  { %3390 = vmatprep.mubr.msk.bf16.mxu0 %vm341_vm1, %v1611_v26  ;;  %3387 = vmatpush3.bf16.msra.mxu0 %v3624_v11 }
 0x7d9   :  { %3388 = vmatprep.subr.bf16.mxu0 %v3625_v12 }
 0x7dc   :  { %3389 = vmatpush3.bf16.msra.mxu0 %v3625_v12 }
 0x7dd   :  { %3400 = vmatprep.subr.bf16.mxu0 %v4098_v0 }
 0x7df   :  { %3391 = vmatmul.mubr.msk.bf16.vlgmr.msra.gmra.mxu0 %vm341_vm1, %v4520_v29 }
 0x7e0   :  { %3402 = vmatprep.mubr.msk.bf16.mxu0 %vm4099_vm0, %v4098_v0 }
 0x897   :  { %v1603_v62 = vpop.f32.mrf.mxu0 }
 0x898   :  { %v1604_v5 = vadd.f32 %v3085_v1, %v1603_v62 }
 0x899   :  { %v3376_v2 = vpop.f32.mrf.mxu0 }
 0x89b   :  { %v1606_v57 = vpop.f32.mrf.mxu0 }
 0x89c   :  { %v1607_v63 = vadd.f32 %v3085_v1, %v1606_v57 }
 0x89d   :  { %v3377_v7 = vpop.f32.mrf.mxu0 }
 0x89e   :  { %v1610_v8 = vpack.c.bf16 %v1607_v63, %v1604_v5 }
 0x89f   :  { %v3392_v33 = vpop.f32.mrf.mxu0 }
 0x8a0   :  { %1979 = vrot.lane.b32.xlu0 %v1610_v8, %s4100_s28  ;;  %1869 = vrot.lane.b32.xlu1 %v1610_v8, %s4101_s27  ;;  %v2210_v10 = vrot.slane %v1610_v8, 4  ;;  %v1759_v35 = vadd.f32 %v3392_v33, %v3094_v34 }
 0x8a1   :  { %3397 = vmatmul.mubr.msk.bf16.vlgmr.msra.gmra.mxu1 %vm518_vm2, %v1610_v8  ;;  %v1750_v36 = vpop.f32.mrf.mxu0 }
 0x8a2   :  { %3407 = vmatpush3.bf16.xpose.msra.mxu1 %v1878_v9  ;;  %3408 = vmatprep.mubr.msk.bf16.mxu1 %vm4099_vm0, %v4098_v0  ;;  %v1751_v38 = vadd.f32 %v3094_v34, %v1750_v36 }
 0x8a3   :  { %3418 = vmatprep.subr.bf16.mxu1 %v4098_v0  ;;  %v3393_v37 = vpop.f32.mrf.mxu0 }
 0x8a4   :  { %2087 = vrot.lane.b32.xlu0 %v1610_v8, %s4102_s9  ;;  %1981 = vrot.lane.b32.xlu1 %v1691_v60, %s4100_s28  ;;  %v1762_v39 = vadd.f32 %v3393_v37, %v3094_v34 }
 0x8a5   :  { %v1753_v40 = vpop.f32.mrf.mxu0 }
 0x8a6   :  { %v4595_v41 = vpack.c.bf16 %v1762_v39, %v1759_v35  ;;  %v1754_v42 = vadd.f32 %v3094_v34, %v1753_v40 }
 0x8a8   :  { %2089 = vrot.lane.b32.xlu1 %v1691_v60, %s4102_s9  ;;  %2312 = vrot.lane.b32.xlu0 %v2210_v10, %s4101_s27  ;;  %v4597_v43 = vpack.c.bf16 %v1754_v42, %v1751_v38 }
 0x8aa   :  { %3401 = vmatpush3.bf16.msra.mxu0 %v4597_v43 }
 0x8ab   :  { %3412 = vmatprep.subr.bf16.mxu0 %v4098_v0 }
 0x8ac   :  { %2315 = vrot.lane.b32.xlu1 %v1692_v58, %s4101_s27  ;;  %2422 = vrot.lane.b32.xlu0 %v2210_v10, %s4100_s28 }
 0x8b0   :  { %2424 = vrot.lane.b32.xlu1 %v1692_v58, %s4100_s28  ;;  %2530 = vrot.lane.b32.xlu0 %v2210_v10, %s4102_s9 }
 0x8b4   :  { %2532 = vrot.lane.b32.xlu1 %v1692_v58, %s4102_s9 }
 0x912   :  { %v1870_v13 = vpop.permute.xlu1 %1869  ;;  %v1980_v18 = vpop.permute.xlu0 %1979 }
 0x913   :  { %3409 = vmatmul.mubr.msk.bf16.vlgmr.msra.gmra.mxu1 %vm518_vm2, %v1870_v13 }
 0x914   :  { %3420 = vmatprep.mubr.msk.bf16.mxu1 %vm4099_vm0, %v4098_v0 }
 0x916   :  { %v1982_v14 = vpop.permute.xlu1 %1981  ;;  %v2088_v20 = vpop.permute.xlu0 %2087 }
 0x917   :  { %v1987_v16 = vsel %vm518_vm2, %v1982_v14, 0 }
 0x918   :  { %3419 = vmatpush3.bf16.xpose.msra.mxu1 %v1987_v16 }
 0x919   :  { %3430 = vmatprep.subr.bf16.mxu1 %v4098_v0 }
 0x91a   :  { %v2090_v17 = vpop.permute.xlu1 %2089  ;;  %v2313_v22 = vpop.permute.xlu0 %2312 }
 0x91b   :  { %v2095_v19 = vsel %vm518_vm2, %v2090_v17, 0 }
 0x91e   :  { %v2316_v21 = vpop.permute.xlu1 %2315  ;;  %v2423_v25 = vpop.permute.xlu0 %2422 }
 0x91f   :  { %3421 = vmatmul.mubr.msk.bf16.vlgmr.msra.gmra.mxu1 %vm518_vm2, %v1980_v18  ;;  %v2321_v15 = vsel %vm518_vm2, %v2316_v21, 0 }
 0x920   :  { %3431 = vmatpush3.bf16.xpose.msra.mxu1 %v2095_v19  ;;  %3432 = vmatprep.mubr.msk.bf16.mxu1 %vm4099_vm0, %v4098_v0 }
 0x921   :  { %3442 = vmatprep.subr.bf16.mxu1 %v4098_v0 }
 0x922   :  { %v2425_v4 = vpop.permute.xlu1 %2424  ;;  %v2531_v27 = vpop.permute.xlu0 %2530 }
 0x923   :  { %v2430_v23 = vsel %vm518_vm2, %v2425_v4, 0 }
 0x926   :  { %v2533_v24 = vpop.permute.xlu1 %2532 }
 0x927   :  { %3433 = vmatmul.mubr.msk.bf16.vlgmr.msra.gmra.mxu1 %vm518_vm2, %v2088_v20  ;;  %v2538_v26 = vsel %vm518_vm2, %v2533_v24, 0 }
 0x928   :  { %3443 = vmatpush3.bf16.xpose.msra.mxu1 %v2215_v3  ;;  %3444 = vmatprep.mubr.msk.bf16.mxu1 %vm4099_vm0, %v4098_v0 }
 0x929   :  { %3454 = vmatprep.subr.bf16.mxu1 %v4098_v0 }
 0x92f   :  { %3445 = vmatmul.mubr.msk.bf16.vlgmr.msra.gmra.mxu1 %vm518_vm2, %v2210_v10 }
 0x930   :  { %3455 = vmatpush3.bf16.xpose.msra.mxu1 %v2321_v15  ;;  %3456 = vmatprep.mubr.msk.bf16.mxu1 %vm4099_vm0, %v4098_v0 }
 0x931   :  { %3466 = vmatprep.subr.bf16.mxu1 %v4098_v0 }
 0x937   :  { %3457 = vmatmul.mubr.msk.bf16.vlgmr.msra.gmra.mxu1 %vm518_vm2, %v2313_v22 }
 0x938   :  { %3467 = vmatpush3.bf16.xpose.msra.mxu1 %v2430_v23  ;;  %3468 = vmatprep.mubr.msk.bf16.mxu1 %vm4099_vm0, %v4098_v0 }
 0x939   :  { %3478 = vmatprep.subr.bf16.mxu1 %v4098_v0 }
 0x93f   :  { %3469 = vmatmul.mubr.msk.bf16.vlgmr.msra.gmra.mxu1 %vm518_vm2, %v2423_v25 }
 0x940   :  { %3479 = vmatpush3.bf16.xpose.msra.mxu1 %v2538_v26  ;;  %3480 = vmatprep.mubr.msk.bf16.mxu1 %vm4099_vm0, %v4098_v0 }
 0x941   :  { %3490 = vmatprep.subr.bf16.mxu1 %v4098_v0 }
 0x947   :  { %3481 = vmatmul.mubr.msk.bf16.vlgmr.msra.gmra.mxu1 %vm518_vm2, %v2531_v27 }
 0x948   :  { %3494 = vmatprep.mubr.msk.bf16.mxu1 %vm4099_vm0, %v4098_v0 }
 0x961   :  { %v1807_v28 = vpop.f32.mrf.mxu1 }
 0x962   :  { %v1813_v29 = vsel %vm970_vm4, %v1807_v28, -inf }
 0x963   :  { %1814 = vmax.xlane.f32.xlu1 %v1813_v29  ;;  %v3398_v30 = vpop.f32.mrf.mxu1 }
 0x965   :  { %v1810_v31 = vpop.f32.mrf.mxu1 }
 0x967   :  { %v3399_v32 = vpop.f32.mrf.mxu1 }
 0x9d3   :  { %v1914_v44 = vpop.f32.mrf.mxu1 }
 0x9d4   :  { %v1920_v45 = vsel %vm970_vm4, %v1914_v44, -inf }
 0x9d5   :  { %1921 = vmax.xlane.f32.xlu0 %v1920_v45  ;;  %v3410_v48 = vpop.f32.mrf.mxu1 }
 0x9d7   :  { %v1917_v49 = vpop.f32.mrf.mxu1 }
 0x9d9   :  { %v3411_v50 = vpop.f32.mrf.mxu1 }
 0x9df   :  { %v2023_v51 = vpop.f32.mrf.mxu1 }
 0x9e0   :  { %v2029_v52 = vsel %vm970_vm4, %v2023_v51, -inf }
 0x9e1   :  { %2030 = vmax.xlane.f32.xlu0 %v2029_v52  ;;  %v3422_v53 = vpop.f32.mrf.mxu1 }
 0x9e3   :  { %v2026_v54 = vpop.f32.mrf.mxu1 }
 0x9e5   :  { %v3423_v55 = vpop.f32.mrf.mxu1 }
 0x9e7   :  { %v2131_v56 = vpop.f32.mrf.mxu1 }
 0x9e8   :  { %v2137_v58 = vsel %vm970_vm4, %v2131_v56, -inf }
 0x9e9   :  { %2138 = vmax.xlane.f32.xlu1 %v2137_v58  ;;  %v3434_v59 = vpop.f32.mrf.mxu1 }
 0x9eb   :  { %v2134_v60 = vpop.f32.mrf.mxu1 }
 0x9ec   :  { %v1815_v61 = vpop.xlane.xlu1 %1814 }
 0x9ed   :  { %v1816_v62 = vsub.f32 %v1807_v28, %v1815_v61  ;;  %v3435_v1 = vpop.f32.mrf.mxu1 }
 0x9ef   :  { %v2251_v2 = vpop.f32.mrf.mxu1  ;;  %v1817_v57 = vmul.f32 1.442695, %v1816_v62 }
 0x9f0   :  { %v2257_v5 = vsel %vm970_vm4, %v2251_v2, -inf }
 0x9f1   :  { %2258 = vmax.xlane.f32.xlu0 %v2257_v5  ;;  %v3446_v63 = vpop.f32.mrf.mxu1  ;;  %3674 = vpow2.f32 %v1817_v57 }
 0x9f3   :  { %v2254_v6 = vpop.f32.mrf.mxu1 }
 0x9f5   :  { %v3447_v7 = vpop.f32.mrf.mxu1 }
 0x9f7   :  { %v4605_v8 = vpop.f32.mrf.mxu1 }
 0x9f8   :  { %v2363_v9 = vsel %vm970_vm4, %v4605_v8, -inf }
 0x9f9   :  { %2364 = vmax.xlane.f32.xlu1 %v2363_v9  ;;  %v3458_v10 = vpop.f32.mrf.mxu1 }
 0x9fb   :  { %v2360_v11 = vpop.f32.mrf.mxu1 }
 0x9fd   :  { %v3459_v12 = vpop.f32.mrf.mxu1 }
 0x9fe   :  { %v3675_v16 = vpop.eup %3674 }
 0x9ff   :  { %v2466_v13 = vpop.f32.mrf.mxu1  ;;  %v1819_v19 = vsel %vm970_vm4, %v3675_v16, 0.0 }
 0xa00   :  { %v2472_v14 = vsel %vm970_vm4, %v2466_v13, -inf }
 0xa01   :  { %2473 = vmax.xlane.f32.xlu0 %v2472_v14  ;;  %v3470_v17 = vpop.f32.mrf.mxu1 }
 0xa03   :  { %v2469_v18 = vpop.f32.mrf.mxu1 }
 0xa05   :  { %1820 = vadd.xlane.f32.xlu0 %v1819_v19  ;;  %v3471_v20 = vpop.f32.mrf.mxu1 }
 0xa07   :  { %v2574_v3 = vpop.f32.mrf.mxu1 }
 0xa08   :  { %v2580_v21 = vsel %vm970_vm4, %v2574_v3, -inf }
 0xa09   :  { %2581 = vmax.xlane.f32.xlu1 %v2580_v21  ;;  %v3482_v15 = vpop.f32.mrf.mxu1 }
 0xa0b   :  { %v2577_v4 = vpop.f32.mrf.mxu1 }
 0xa0d   :  { %v3483_v22 = vpop.f32.mrf.mxu1 }
 0xa1a   :  { %1933 = vrot.lane.b32.xlu1 %v4597_v43, %s4101_s27 }
 0xa1b   :  { %2041 = vrot.lane.b32.xlu0 %v4597_v43, %s4100_s28 }
 0xa5e   :  { %v1922_v23 = vpop.xlane.xlu0 %1921 }
 0xa5f   :  { %v1923_v24 = vsub.f32 %v1914_v44, %v1922_v23 }
 0xa61   :  { %v1924_v25 = vmul.f32 1.442695, %v1923_v24 }
 0xa63   :  { %3676 = vpow2.f32 %v1924_v25 }
 0xa6a   :  { %v2031_v26 = vpop.xlane.xlu0 %2030 }
 0xa6b   :  { %v2032_v27 = vsub.f32 %v2023_v51, %v2031_v26 }
 0xa6d   :  { %v2033_v28 = vmul.f32 1.442695, %v2032_v27 }
 0xa6f   :  { %3678 = vpow2.f32 %v2033_v28 }
 0xa70   :  { %v3677_v29 = vpop.eup %3676 }
 0xa71   :  { %v1926_v30 = vsel %vm970_vm4, %v3677_v29, 0.0 }
 0xa72   :  { %v2139_v31 = vpop.xlane.xlu1 %2138  ;;  %1927 = vadd.xlane.f32.xlu1 %v1926_v30 }
 0xa73   :  { %v2140_v32 = vsub.f32 %v2131_v56, %v2139_v31 }
 0xa75   :  { %v2141_v33 = vmul.f32 1.442695, %v2140_v32 }
 0xa77   :  { %3680 = vpow2.f32 %v2141_v33 }
 0xa7a   :  { %v2259_v34 = vpop.xlane.xlu0 %2258 }
 0xa7b   :  { %v2260_v35 = vsub.f32 %v2251_v2, %v2259_v34 }
 0xa7c   :  { %v3679_v36 = vpop.eup %3678 }
 0xa7d   :  { %v2261_v37 = vmul.f32 1.442695, %v2260_v35  ;;  %v2035_v38 = vsel %vm970_vm4, %v3679_v36, 0.0 }
 0xa7e   :  { %2036 = vadd.xlane.f32.xlu0 %v2035_v38 }
 0xa7f   :  { %3682 = vpow2.f32 %v2261_v37 }
 0xa82   :  { %v2365_v49 = vpop.xlane.xlu1 %2364 }
 0xa83   :  { %v2366_v58 = vsub.f32 %v4605_v8, %v2365_v49 }
 0xa84   :  { %v4618_v39 = vpop.eup %3680 }
 0xa85   :  { %v2143_v40 = vsel %vm970_vm4, %v4618_v39, 0.0  ;;  %v2367_v59 = vmul.f32 1.442695, %v2366_v58 }
 0xa86   :  { %2144 = vadd.xlane.f32.xlu1 %v2143_v40 }
 0xa8a   :  { %v2474_v42 = vpop.xlane.xlu0 %2473 }
 0xa8b   :  { %v2475_v55 = vsub.f32 %v2466_v13, %v2474_v42 }
 0xa8c   :  { %v4622_v44 = vpop.eup %3682 }
 0xa8d   :  { %v2263_v45 = vsel %vm970_vm4, %v4622_v44, 0.0  ;;  %v2476_v56 = vmul.f32 1.442695, %v2475_v55 }
 0xa8e   :  { %v1821_v48 = vpop.xlane.xlu0 %1820  ;;  %2264 = vadd.xlane.f32.xlu0 %v2263_v45 }
 0xa8f   :  { %3684 = vrcp.f32 %v1821_v48 }
 0xa90   :  { %3686 = vpow2.f32 %v2476_v56 }
 0xa91   :  { %3688 = vpow2.f32 %v2367_v59 }
 0xa92   :  { %v2582_v50 = vpop.xlane.xlu1 %2581  ;;  %v2042_v6 = vpop.permute.xlu0 %2041 }
 0xa93   :  { %v2583_v60 = vsub.f32 %v2574_v3, %v2582_v50 }
 0xa95   :  { %v2584_v61 = vmul.f32 1.442695, %v2583_v60 }
 0xa96   :  { %v1934_v54 = vpop.permute.xlu1 %1933 }
 0xa97   :  { %2376 = vrot.lane.b32.xlu1 %v4595_v41, %s4101_s27  ;;  %3690 = vpow2.f32 %v2584_v61  ;;  %v3626_v61 = vld [vmem:[%s4763_s22 + $0x8] sm:$0xff]  }
 0xa98   :  { %3491 = vmatpush3.bf16.msra.mxu1 %v3626_v61 }
 0xa99   :  { %3492 = vmatprep.subr.bf16.mxu1 %v4098_v0 }
 0xa9c   :  { %v3685_v51 = vpop.eup %3684 }
 0xa9d   :  { %v1823_v52 = vmul.f32 %v3685_v51, %v3675_v16  ;;  %v4635_v62 = vpop.eup %3686 }
 0xa9e   :  { %v2478_v1 = vsel %vm970_vm4, %v4635_v62, 0.0  ;;  %v3689_v2 = vpop.eup %3688 }
 0xa9f   :  { %v1824_v53 = vpack.c.bf16 %v1823_v52, %v1823_v52 }
 0xaa1   :  { %3403 = vmatmul.mubr.msk.bf16.vlgmr.msra.gmra.mxu0 %vm970_vm4, %v1824_v53 }
 0xaa2   :  { %3413 = vmatpush3.bf16.msra.mxu0 %v1934_v54  ;;  %3414 = vmatprep.mubr.msk.bf16.mxu0 %vm4099_vm0, %v4098_v0 }
 0xaa3   :  { %3424 = vmatprep.subr.bf16.mxu0 %v4098_v0 }
 0xaa4   :  { %2149 = vrot.lane.b32.xlu0 %v4597_v43, %s4102_s9  ;;  %v2369_v43 = vsel %vm970_vm4, %v3689_v2, 0.0  ;;  %v4640_v57 = vpop.eup %3690 }
 0xaa5   :  { %v2586_v5 = vsel %vm970_vm4, %v4640_v57, 0.0 }
 0xabb   :  { %2479 = vadd.xlane.f32.xlu1 %v2478_v1 }
 0xac3   :  { %2370 = vadd.xlane.f32.xlu0 %v2369_v43 }
 0xac7   :  { %2587 = vadd.xlane.f32.xlu0 %v2586_v5 }
 0xacc   :  { %2592 = vrot.lane.b32.xlu1 %v4595_v41, %s4102_s9 }
 0xadd   :  { %2484 = vrot.lane.b32.xlu0 %v4595_v41, %s4100_s28 }
 0xafb   :  { %v1928_v63 = vpop.xlane.xlu1 %1927 }
 0xafc   :  { %3692 = vrcp.f32 %v1928_v63 }
 0xb07   :  { %v2037_v7 = vpop.xlane.xlu0 %2036 }
 0xb08   :  { %3694 = vrcp.f32 %v2037_v7 }
 0xb09   :  { %v3693_v8 = vpop.eup %3692 }
 0xb0a   :  { %v1930_v9 = vmul.f32 %v3693_v8, %v3677_v29 }
 0xb0c   :  { %v1931_v10 = vpack.c.bf16 %v1930_v9, %v1930_v9 }
 0xb0e   :  { %3415 = vmatmul.mubr.msk.bf16.vlgmr.msra.gmra.mxu0 %vm970_vm4, %v1931_v10 }
 0xb0f   :  { %3425 = vmatpush3.bf16.msra.mxu0 %v2042_v6  ;;  %v2145_v11 = vpop.xlane.xlu1 %2144  ;;  %3426 = vmatprep.mubr.msk.bf16.mxu0 %vm4099_vm0, %v4098_v0 }
 0xb10   :  { %3696 = vrcp.f32 %v2145_v11  ;;  %3436 = vmatprep.subr.bf16.mxu0 %v4098_v0 }
 0xb13   :  { %v2377_v4 = vpop.permute.xlu1 %2376 }
 0xb15   :  { %v3695_v12 = vpop.eup %3694 }
 0xb16   :  { %v2039_v13 = vmul.f32 %v3695_v12, %v3679_v36 }
 0xb17   :  { %v2265_v14 = vpop.xlane.xlu0 %2264 }
 0xb18   :  { %3698 = vrcp.f32 %v2265_v14  ;;  %v2040_v16 = vpack.c.bf16 %v2039_v13, %v2039_v13 }
 0xb1a   :  { %3427 = vmatmul.mubr.msk.bf16.vlgmr.msra.gmra.mxu0 %vm970_vm4, %v2040_v16 }
 0xb1b   :  { %v2150_v17 = vpop.permute.xlu0 %2149  ;;  %3438 = vmatprep.mubr.msk.bf16.mxu0 %vm4099_vm0, %v4098_v0 }
 0xb1c   :  { %3437 = vmatpush3.bf16.msra.mxu0 %v2150_v17 }
 0xb1d   :  { %v3697_v18 = vpop.eup %3696  ;;  %3448 = vmatprep.subr.bf16.mxu0 %v4098_v0 }
 0xb1e   :  { %v2147_v19 = vmul.f32 %v3697_v18, %v4618_v39 }
 0xb20   :  { %v2148_v20 = vpack.c.bf16 %v2147_v19, %v2147_v19 }
 0xb22   :  { %3439 = vmatmul.mubr.msk.bf16.vlgmr.msra.gmra.mxu0 %vm970_vm4, %v2148_v20 }
 0xb23   :  { %3449 = vmatpush3.bf16.msra.mxu0 %v4595_v41  ;;  %3450 = vmatprep.mubr.msk.bf16.mxu0 %vm4099_vm0, %v4098_v0 }
 0xb24   :  { %3460 = vmatprep.subr.bf16.mxu0 %v4098_v0 }
 0xb25   :  { %v3699_v3 = vpop.eup %3698 }
 0xb26   :  { %v2267_v21 = vmul.f32 %v3699_v3, %v4622_v44 }
 0xb28   :  { %v2268_v15 = vpack.c.bf16 %v2267_v21, %v2267_v21 }
 0xb2a   :  { %3451 = vmatmul.mubr.msk.bf16.vlgmr.msra.gmra.mxu0 %vm970_vm4, %v2268_v15 }
 0xb2b   :  { %3461 = vmatpush3.bf16.msra.mxu0 %v2377_v4  ;;  %3462 = vmatprep.mubr.msk.bf16.mxu0 %vm4099_vm0, %v4098_v0 }
 0xb2c   :  { %3472 = vmatprep.subr.bf16.mxu0 %v4098_v0 }
 0xb44   :  { %v2480_v41 = vpop.xlane.xlu1 %2479 }
 0xb48   :  { %v2593_v35 = vpop.permute.xlu1 %2592 }
 0xb4c   :  { %v2371_v22 = vpop.xlane.xlu0 %2370 }
 0xb4d   :  { %3700 = vrcp.f32 %v2371_v22 }
 0xb4e   :  { %3702 = vrcp.f32 %v2480_v41 }
 0xb50   :  { %v2588_v23 = vpop.xlane.xlu0 %2587 }
 0xb51   :  { %3704 = vrcp.f32 %v2588_v23 }
 0xb54   :  { %v2485_v28 = vpop.permute.xlu0 %2484 }
 0xb5a   :  { %v3701_v24 = vpop.eup %3700 }
 0xb5b   :  { %v2373_v25 = vmul.f32 %v3701_v24, %v3689_v2  ;;  %v3703_v27 = vpop.eup %3702 }
 0xb5c   :  { %v2482_v29 = vmul.f32 %v3703_v27, %v4635_v62  ;;  %v3115_v27 = vld [vmem:[%s4764_s13] ss:$0 sm:$0xff] }
 0xb5d   :  { %v2374_v26 = vpack.c.bf16 %v2373_v25, %v2373_v25 }
 0xb5e   :  { %v2483_v32 = vpack.c.bf16 %v2482_v29, %v2482_v29  ;;  %v3705_v33 = vpop.eup %3704 }
 0xb5f   :  { %3463 = vmatmul.mubr.msk.bf16.vlgmr.msra.gmra.mxu0 %vm970_vm4, %v2374_v26  ;;  %v2590_v37 = vmul.f32 %v3705_v33, %v4640_v57  ;;  %v3627_v57 = vld [vmem:[%s4763_s22] sm:$0xff]  }
 0xb60   :  { %3473 = vmatpush3.bf16.msra.mxu0 %v2485_v28  ;;  %3474 = vmatprep.mubr.msk.bf16.mxu0 %vm4099_vm0, %v4098_v0 }
 0xb61   :  { %3484 = vmatprep.subr.bf16.mxu0 %v4098_v0  ;;  %v4672_v30 = vpop.f32.mrf.mxu0  ;;  %v2591_v38 = vpack.c.bf16 %v2590_v37, %v2590_v37  ;;  %3493 = vmatpush3.bf16.msra.mxu1 %v3627_v57  ;;  %v3119_v57 = vld [vmem:[%s4766_s29] ss:$0 sm:$0xff] }
 0xb62   :  { %3506 = vmatprep.subr.bf16.mxu1 %v4098_v0 }
 0xb63   :  { %v3404_v31 = vpop.f32.mrf.mxu0 }
 0xb65   :  { %v1865_v34 = vpop.f32.mrf.mxu0 }
 0xb67   :  { %3475 = vmatmul.mubr.msk.bf16.vlgmr.msra.gmra.mxu0 %vm970_vm4, %v2483_v32  ;;  %v3405_v36 = vpop.f32.mrf.mxu0 }
 0xb68   :  { %3485 = vmatpush3.bf16.msra.mxu0 %v2593_v35  ;;  %3486 = vmatprep.mubr.msk.bf16.mxu0 %vm4099_vm0, %v4098_v0 }
 0xb69   :  { %3498 = vmatprep.subr.bf16.mxu0 %v4098_v0 }
 0xb6f   :  { %3487 = vmatmul.mubr.msk.bf16.vlgmr.msra.gmra.mxu0 %vm970_vm4, %v2591_v38 }
 0xb70   :  { %3502 = vmatprep.mubr.msk.bf16.mxu0 %vm4099_vm0, %v4098_v0 }
 0xbce   :  { %v1973_v39 = vpop.f32.mrf.mxu0 }
 0xbd0   :  { %v3416_v40 = vpop.f32.mrf.mxu0 }
 0xbd2   :  { %v1976_v42 = vpop.f32.mrf.mxu0 }
 0xbd4   :  { %v3417_v44 = vpop.f32.mrf.mxu0 }
 0xbda   :  { %v2081_v45 = vpop.f32.mrf.mxu0 }
 0xbdc   :  { %v3428_v48 = vpop.f32.mrf.mxu0 }
 0xbde   :  { %v2084_v49 = vpop.f32.mrf.mxu0 }
 0xbe0   :  { %v3429_v50 = vpop.f32.mrf.mxu0 }
 0xbe1   :  { %v3628_v50 = vld [vmem:[#allocation25 + $0x8] sm:$0xff]  }
 0xbe2   :  { %v2189_v51 = vpop.f32.mrf.mxu0  ;;  %3499 = vmatpush3.bf16.msra.mxu0 %v3628_v50 }
 0xbe3   :  { %3500 = vmatprep.subr.bf16.mxu0 %v4098_v0 }
 0xbe4   :  { %v3440_v52 = vpop.f32.mrf.mxu0 }
 0xbe5   :  { %v3630_v52 = vld [vmem:[%s4765_s23 + $0x38] sm:$0xff]  }
 0xbe6   :  { %v2192_v53 = vpop.f32.mrf.mxu0 }
 0xbe7   :  { %v3631_v53 = vld [vmem:[%s4765_s23 + $0x30] sm:$0xff]  }
 0xbe8   :  { %v3441_v54 = vpop.f32.mrf.mxu0 }
 0xbe9   :  { %v3632_v54 = vld [vmem:[%s4765_s23 + $0x28] sm:$0xff]  }
 0xbea   :  { %v2306_v55 = vpop.f32.mrf.mxu0 }
 0xbec   :  { %v3452_v56 = vpop.f32.mrf.mxu0 }
 0xbed   :  { %v3634_v56 = vld [vmem:[%s4765_s23 + $0x18] sm:$0xff]  }
 0xbee   :  { %v2309_v58 = vpop.f32.mrf.mxu0 }
 0xbf0   :  { %v3453_v59 = vpop.f32.mrf.mxu0 }
 0xc1f   :  { %v2416_v60 = vpop.f32.mrf.mxu0 }
 0xc20   :  { %v3597_v62 = vpack.i.bf16 %v2416_v60, %v1973_v39 }
 0xc21   :  { %v3464_v1 = vpop.f32.mrf.mxu0 }
 0xc22   :  { %3598 = vrot.lane.b32.xlu1 %v3597_v62, %s4103_s3 }
 0xc23   :  { %v2419_v2 = vpop.f32.mrf.mxu0 }
 0xc25   :  { %v3465_v43 = vpop.f32.mrf.mxu0 }
 0xc27   :  { %v2524_v5 = vpop.f32.mrf.mxu0 }
 0xc28   :  { %v3602_v63 = vpack.i.bf16 %v2524_v5, %v2081_v45 }
 0xc29   :  { %v3476_v6 = vpop.f32.mrf.mxu0 }
 0xc2a   :  { %3603 = vrot.lane.b32.xlu1 %v3602_v63, %s4104_s16 }
 0xc2b   :  { %v2527_v7 = vpop.f32.mrf.mxu0 }
 0xc2c   :  { %v3120_v7 = vld [vmem:[%s4767_s21] ss:$0 sm:$0xff] }
 0xc2d   :  { %v3477_v8 = vpop.f32.mrf.mxu0 }
 0xc2f   :  { %v2632_v9 = vpop.f32.mrf.mxu0 }
 0xc30   :  { %v3607_v10 = vpack.i.bf16 %v2632_v9, %v2189_v51  ;;  %v3629_v51 = vld [vmem:[#allocation25] sm:$0xff]  }
 0xc31   :  { %v3488_v11 = vpop.f32.mrf.mxu0  ;;  %3501 = vmatpush3.bf16.msra.mxu0 %v3629_v51  ;;  %v3134_v51 = vld [vmem:[%s4251_s14] ss:$0 sm:$0xff] }
 0xc32   :  { %3608 = vrot.lane.b32.xlu1 %v3607_v10, %s4105_s19 }
 0xc33   :  { %v2635_v12 = vpop.f32.mrf.mxu0 }
 0xc34   :  { %v3635_v12 = vld [vmem:[%s4765_s23 + $0x10] sm:$0xff]  }
 0xc35   :  { %v3489_v13 = vpop.f32.mrf.mxu0 }
 0xc36   :  { %v3636_v13 = vld [vmem:[%s4765_s23 + $0x8] sm:$0xff]  }
 0xc94   :  { %v3599_v14 = vpop.permute.xlu1 %3598 }
 0xc95   :  { %v3601_v17 = vunpack.i.h.bf16 %v3599_v14  ;;  %v3600_v18 = vunpack.i.l.bf16 %v3599_v14  ;;  %v3637_v14 = vld [vmem:[%s4765_s23] sm:$0xff]  }
 0xc97   :  { %v2650_v21 = vsel %vm518_vm2, %v2306_v55, %v3601_v17  ;;  %v2207_v15 = vsel %vm518_vm2, %v4672_v30, %v3600_v18  ;;  %v3633_v55 = vld [vmem:[%s4765_s23 + $0x20] sm:$0xff]  }
 0xc9c   :  { %v3604_v16 = vpop.permute.xlu1 %3603 }
 0xc9d   :  { %v3606_v19 = vunpack.i.h.bf16 %v3604_v16  ;;  %v3605_v20 = vunpack.i.l.bf16 %v3604_v16  ;;  %v3121_v16 = vld [vmem:[%s4768_s1] ss:$0 sm:$0xff] }
 0xc9f   :  { %v2651_v41 = vsel %vm970_vm4, %v2650_v21, %v3606_v19  ;;  %v2208_v23 = vsel %vm970_vm4, %v2207_v15, %v3605_v20 }
 0xca4   :  { %v3609_v3 = vpop.permute.xlu1 %3608 }
 0xca5   :  { %v3611_v4 = vunpack.i.h.bf16 %v3609_v3  ;;  %v3610_v22 = vunpack.i.l.bf16 %v3609_v3 }
 0xca7   :  { %v2652_v24 = vsel %vm972_vm5, %v2651_v41, %v3611_v4  ;;  %v2209_v25 = vsel %vm972_vm5, %v2208_v23, %v3610_v22  ;;  %v3125_v41 = vld [vmem:[%s4246_s17] ss:$0 sm:$0xff]  ;;  %s4106_s17 = smov [#allocation26]  }
 0xca8   :  { %v2653_v26 = vpack.c.bf16 %v2652_v24, %v2209_v25  ;;  %s3003_s30 = sshll.u32 %s4106_s17, 4  ;;  %s3004_s30 = int_to_ptr.vmem [resolvable:$true] %s3003_s30 }
 0xca9   :  { %s4014_s2 = scalar_lea.vmem %s3004_s30, 256  ;;  %p4019_p6 = scmp.lt.s32.totalorder %s3004_s30, %s3004_s30 }
 0xcaa   :  { %3495 = vmatmul.mubr.msk.bf16.vlgmr.msra.gmra.mxu1 %vm341_vm1, %v2653_v26  ;;  %p4015_p5 = scmp.ne.s32.totalorder %s3004_s30, %s4014_s2  ;;  %p4020_p7 = scmp.lt.s32.totalorder %s4014_s2, %s4014_s2 }
 0xcab   :  { %3522 = vmatprep.mubr.msk.bf16.mxu1 %vm4099_vm0, %v4098_v0  ;;  %3507 = vmatpush3.bf16.msra.mxu1 %v3630_v52 }
 0xcac   :  { %3508 = vmatprep.subr.bf16.mxu1 %v4098_v0  ;;  %p4021_p8 = por %p4020_p7, %p4019_p6 }
 0xcae   :  { %p4022_p9 = pnand %p4021_p8, %p4015_p5 }
 0xcaf   :  { %3509 = vmatpush3.bf16.msra.mxu1 %v3631_v53  ;;  %v3135_v53 = vld [vmem:[%s4256_s25] ss:$0 sm:$0xff] }
 0xcb0   :  { %3510 = vmatprep.subr.bf16.mxu1 %v4098_v0 }
 0xcb3   :  { %3511 = vmatpush3.bf16.msra.mxu1 %v3632_v54 }
 0xcb4   :  { %3512 = vmatprep.subr.bf16.mxu1 %v4098_v0 }
 0xcb7   :  { %3513 = vmatpush3.bf16.msra.mxu1 %v3633_v55 }
 0xcb8   :  { %3514 = vmatprep.subr.bf16.mxu1 %v4098_v0 }
 0xcbb   :  { %3515 = vmatpush3.bf16.msra.mxu1 %v3634_v56 }
 0xcbc   :  { %3516 = vmatprep.subr.bf16.mxu1 %v4098_v0 }
 0xcbf   :  { %3517 = vmatpush3.bf16.msra.mxu1 %v3635_v12 }
 0xcc0   :  { %3518 = vmatprep.subr.bf16.mxu1 %v4098_v0 }
 0xcc3   :  { %3519 = vmatpush3.bf16.msra.mxu1 %v3636_v13 }
 0xcc4   :  { %3520 = vmatprep.subr.bf16.mxu1 %v4098_v0 }
 0xcc7   :  { %3521 = vmatpush3.bf16.msra.mxu1 %v3637_v14 }
 0xd6a   :  { %v2714_v28 = vpop.f32.mrf.mxu1 }
 0xd6b   :  { %v2715_v29 = vadd.f32 %v3115_v27, %v2714_v28 }
 0xd6c   :  { %v3496_v30 = vpop.f32.mrf.mxu1 }
 0xd6d   :  { %v2721_v31 = vadd.f32 %v2715_v29, %v4529_v46 }
 0xd6e   :  { %v2717_v32 = vpop.f32.mrf.mxu1 }
 0xd6f   :  { %v2718_v33 = vadd.f32 %v3115_v27, %v2717_v32  ;;  %v2725_v34 = vsel %vm341_vm1, %v2721_v31, 0.0 }
 0xd70   :  { %2726 = vadd.xlane.f32.xlu0 %v2725_v34  ;;  %v3497_v35 = vpop.f32.mrf.mxu1 }
 0xd71   :  { %v2722_v36 = vadd.f32 %v2718_v33, %v4531_v47 }
 0xd73   :  { %v2728_v37 = vsel %vm341_vm1, %v2722_v36, 0.0 }
 0xd74   :  { %2729 = vadd.xlane.f32.xlu1 %v2728_v37 }
 0xdf9   :  { %v2727_v38 = vpop.xlane.xlu0 %2726 }
 0xdfa   :  { %v2731_v39 = vmul.f32 0.03125, %v2727_v38 }
 0xdfc   :  { %v2733_v40 = vsub.f32 %v2721_v31, %v2731_v39 }
 0xdfd   :  { %v2730_v42 = vpop.xlane.xlu1 %2729 }
 0xdfe   :  { %v2732_v44 = vmul.f32 0.03125, %v2730_v42  ;;  %v2735_v45 = vmul.f32 %v2733_v40, %v2733_v40 }
 0xe00   :  { %v2734_v46 = vsub.f32 %v2722_v36, %v2732_v44  ;;  %v2737_v48 = vsel %vm341_vm1, %v2735_v45, 0.0 }
 0xe01   :  { %2738 = vadd.xlane.f32.xlu0 %v2737_v48 }
 0xe02   :  { %v2736_v49 = vmul.f32 %v2734_v46, %v2734_v46 }
 0xe04   :  { %v2740_v47 = vsel %vm341_vm1, %v2736_v49, 0.0 }
 0xe05   :  { %2741 = vadd.xlane.f32.xlu0 %v2740_v47 }
 0xe8a   :  { %v2739_v58 = vpop.xlane.xlu0 %2738 }
 0xe8b   :  { %v2743_v59 = vmul.f32 0.03125, %v2739_v58 }
 0xe8d   :  { %v2745_v60 = vadd.f32 1e-05, %v2743_v59 }
 0xe8e   :  { %v2742_v61 = vpop.xlane.xlu0 %2741 }
 0xe8f   :  { %3706 = vrsqrt.f32 %v2745_v60  ;;  %v2744_v62 = vmul.f32 0.03125, %v2742_v61 }
 0xe91   :  { %v2746_v1 = vadd.f32 1e-05, %v2744_v62 }
 0xe93   :  { %3708 = vrsqrt.f32 %v2746_v1 }
 0xe9c   :  { %v3707_v2 = vpop.eup %3706 }
 0xe9d   :  { %v2749_v43 = vmul.f32 %v3707_v2, %v2733_v40 }
 0xe9f   :  { %v2757_v6 = vmul.f32 %v3119_v57, %v2749_v43 }
 0xea0   :  { %v3709_v5 = vpop.eup %3708 }
 0xea1   :  { %v2750_v63 = vmul.f32 %v3709_v5, %v2734_v46  ;;  %v2765_v9 = vadd.f32 %v3120_v7, %v2757_v6 }
 0xea3   :  { %v2758_v8 = vmul.f32 %v3119_v57, %v2750_v63 }
 0xea5   :  { %v2766_v10 = vadd.f32 %v3120_v7, %v2758_v8 }
 0xea7   :  { %v2767_v11 = vpack.c.bf16 %v2766_v10, %v2765_v9 }
 0xea9   :  { %3503 = vmatmul.mubr.msk.bf16.vlgmr.msra.gmra.mxu0 %vm341_vm1, %v2767_v11 }
 0xf69   :  { %v2828_v17 = vpop.f32.mrf.mxu0 }
 0xf6a   :  { %v2829_v19 = vadd.f32 %v3121_v16, %v2828_v17 }
 0xf6b   :  { %v3504_v18 = vpop.f32.mrf.mxu0 }
 0xf6c   :  { %v2835_v15 = vmax.f32 %v2829_v19, 0.0 }
 0xf6d   :  { %v2831_v20 = vpop.f32.mrf.mxu0 }
 0xf6e   :  { %v2832_v3 = vadd.f32 %v3121_v16, %v2831_v20 }
 0xf6f   :  { %v3505_v21 = vpop.f32.mrf.mxu0 }
 0xf70   :  { %v2836_v4 = vmax.f32 %v2832_v3, 0.0 }
 0xf72   :  { %v2837_v22 = vpack.c.bf16 %v2836_v4, %v2835_v15 }
 0xf74   :  { %3523 = vmatmul.mubr.bf16.vlgmr.msra.gmra.mxu1 %v2837_v22 }
0x1034   :  { %v2943_v23 = vpop.f32.mrf.mxu1 }
0x1035   :  { %v2944_v24 = vadd.f32 %v3125_v41, %v2943_v23 }
0x1036   :  { %v3524_v25 = vpop.f32.mrf.mxu1 }
0x1037   :  { %v2950_v26 = vadd.f32 %v2944_v24, %v2765_v9 }
0x1038   :  { %v2946_v27 = vpop.f32.mrf.mxu1 }
0x1039   :  { %v2947_v0 = vadd.f32 %v3125_v41, %v2946_v27  ;;  %v2954_v28 = vsel %vm341_vm1, %v2950_v26, 0.0 }
0x103a   :  { %2955 = vadd.xlane.f32.xlu1 %v2954_v28  ;;  %v3525_v29 = vpop.f32.mrf.mxu1 }
0x103b   :  { %v2951_v30 = vadd.f32 %v2947_v0, %v2766_v10 }
0x103d   :  { %v2957_v31 = vsel %vm341_vm1, %v2951_v30, 0.0 }
0x103e   :  { %2958 = vadd.xlane.f32.xlu0 %v2957_v31 }
0x10c3   :  { %v2956_v32 = vpop.xlane.xlu1 %2955 }
0x10c4   :  { %v2960_v33 = vmul.f32 0.03125, %v2956_v32 }
0x10c6   :  { %v2962_v34 = vsub.f32 %v2950_v26, %v2960_v33 }
0x10c7   :  { %v2959_v35 = vpop.xlane.xlu0 %2958 }
0x10c8   :  { %v2961_v36 = vmul.f32 0.03125, %v2959_v35  ;;  %v2964_v37 = vmul.f32 %v2962_v34, %v2962_v34 }
0x10ca   :  { %v2963_v38 = vsub.f32 %v2951_v30, %v2961_v36  ;;  %v2966_v39 = vsel %vm341_vm1, %v2964_v37, 0.0 }
0x10cb   :  { %2967 = vadd.xlane.f32.xlu1 %v2966_v39 }
0x10cc   :  { %v2965_v40 = vmul.f32 %v2963_v38, %v2963_v38 }
0x10ce   :  { %v2969_v42 = vsel %vm341_vm1, %v2965_v40, 0.0 }
0x10cf   :  { %2970 = vadd.xlane.f32.xlu0 %v2969_v42 }
0x1154   :  { %v2968_v44 = vpop.xlane.xlu1 %2967 }
0x1155   :  { %v2972_v45 = vmul.f32 0.03125, %v2968_v44 }
0x1157   :  { %v2974_v46 = vadd.f32 1e-05, %v2972_v45 }
0x1158   :  { %v2971_v48 = vpop.xlane.xlu0 %2970 }
0x1159   :  { %3710 = vrsqrt.f32 %v2974_v46  ;;  %v2973_v49 = vmul.f32 0.03125, %v2971_v48 }
0x115b   :  { %v2975_v47 = vadd.f32 1e-05, %v2973_v49 }
0x115d   :  { %3712 = vrsqrt.f32 %v2975_v47 }
0x1166   :  { %v3711_v50 = vpop.eup %3710 }
0x1167   :  { %v2978_v52 = vmul.f32 %v3711_v50, %v2962_v34 }
0x1169   :  { %v2986_v54 = vmul.f32 %v3134_v51, %v2978_v52 }
0x116a   :  { %v3713_v55 = vpop.eup %3712 }
0x116b   :  { %v2979_v56 = vmul.f32 %v3713_v55, %v2963_v38  ;;  %v2994_v58 = vadd.f32 %v3135_v53, %v2986_v54 }
0x116d   :  { %v2987_v59 = vmul.f32 %v3134_v51, %v2979_v56  ;;  %2996 = vst.msk [vmem:[#allocation26] sm:$0xff] %vm341_vm1, %v2994_v58 }
0x116f   :  { %v2995_v60 = vadd.f32 %v3135_v53, %v2987_v59 }
0x1171   :  { %2997 = vst.msk [vmem:[#allocation26 + $0x8] sm:$0xff] %vm341_vm1, %v2995_v60 }
0x1172   :  { %4025 = shalt.err (!%p4022_p9)
}
0x1173   :  { %s4107_s25 = smov 128  }
0x1174   :  { %3009 = dma.vmem_to_hbm [thread:$0]  %s3004_s30, 256, %s4261_s5, [#allocation4], %s4107_s25, %s4107_s25, %s4103_s3  }
0x1175   :  { %4050 = dma.done.wait [#allocation4], 256  }
0x1176   :  { %4051 = vsyncadd [#allocation4], 4294967040 }
0x1177   :  { %3013 = vsyncpa [#allocation3], 1 }
0x1178   :  { %3014 = vsyncpa [#allocation6], 1 }
0x1179   :  { %3015 = vsyncpa [#allocation9], 1 }
0x117a   :  { %3016 = vsyncpa [#allocation12], 1 }
0x117b   :  { %3017 = vsyncpa [#allocation15], 1 }
0x117c   :  { %3018 = vsyncpa [#allocation18], 1 }
0x117d   :  { %3019 = vsyncpa [#allocation21], 1 }
0x117e   :  { %3020 = vsyncpa [#allocation24], 1 }
0x117f   :  { %3021 = vsyncpa [#allocation4], 1 }

// kernel: tpu_custom_call.1
= control target key start
LH: loop header
LB: loop body
LE: loop exit
PB: predicated region body
PF: predicated region fallthrough
CT: control target
= control target key end

     0   :  { %s4052_s6 = smov 1   ;;  %s4053_s10 = smov 2   ;;  %s4737_s0 = inlined_call_operand.smem [shape: u32[30], index: -1, kind: input, shape index: {}] }
   0x1   :  { %s4116_s5 = sld [smem:[%s4737_s0]]   ;;  %s4054_s14 = smov 3  }
   0x2   :  { %s4121_s9 = sld [smem:[%s4737_s0 + %s4052_s6]]   ;;  %s4055_s18 = smov 4  }
   0x3   :  { %s4126_s13 = sld [smem:[%s4737_s0 + %s4053_s10]]   ;;  %s4056_s22 = smov 5  }
   0x4   :  { %s4131_s17 = sld [smem:[%s4737_s0 + %s4054_s14]]   ;;  %s4057_s26 = smov 6  }
   0x5   :  { %s4136_s21 = sld [smem:[%s4737_s0 + %s4055_s18]]   ;;  %s4058_s30 = smov 7  }
   0x6   :  { %s4141_s25 = sld [smem:[%s4737_s0 + %s4056_s22]]   ;;  %s4059_s4 = smov 8  }
   0x7   :  { %4745 = sst [smem:[#allocation36_spill]] %s4116_s5  ;;  %s4060_s10 = smov 9  }
   0x8   :  { %4746 = sst [smem:[#allocation37_spill]] %s4121_s9  ;;  %s4061_s15 = smov 10  }
   0x9   :  { %s4146_s29 = sld [smem:[%s4737_s0 + %s4057_s26]]   ;;  %s4062_s20 = smov 11  }
   0xa   :  { %4747 = sst [smem:[#allocation38_spill]] %s4131_s17  ;;  %s4063_s26 = smov 12  }
   0xb   :  { %s4151_s3 = sld [smem:[%s4737_s0 + %s4058_s30]]   ;;  %s4064_s1 = smov 13  }
   0xc   :  { %4748 = sst [smem:[#allocation39_spill]] %s4141_s25  ;;  %s4065_s7 = smov 14  }
   0xd   :  { %s4156_s8 = sld [smem:[%s4737_s0 + %s4059_s4]]   ;;  %s4067_s22 = smov 16  }
   0xe   :  { %s4161_s14 = sld [smem:[%s4737_s0 + %s4060_s10]]   ;;  %s4068_s28 = smov 17  }
   0xf   :  { %s4166_s19 = sld [smem:[%s4737_s0 + %s4061_s15]]   ;;  %s4066_s15 = smov 15  }
  0x10   :  { %s4171_s24 = sld [smem:[%s4737_s0 + %s4062_s20]]  }
  0x11   :  { %s4176_s30 = sld [smem:[%s4737_s0 + %s4063_s26]]  }
  0x12   :  { %s4181_s6 = sld [smem:[%s4737_s0 + %s4064_s1]]  }
  0x13   :  { %s4186_s12 = sld [smem:[%s4737_s0 + %s4065_s7]]   ;;  %s4069_s7 = smov 18  }
  0x14   :  { %4749 = sst [smem:[#allocation40_spill]] %s4161_s14 }
  0x15   :  { %s4191_s20 = sld [smem:[%s4737_s0 + %s4066_s15]]   ;;  %s4070_s15 = smov 19  }
  0x16   :  { %s4196_s27 = sld [smem:[%s4737_s0 + %s4067_s22]]   ;;  %s4071_s22 = smov 20  }
  0x17   :  { %s4201_s4 = sld [smem:[%s4737_s0 + %s4068_s28]]   ;;  %s4072_s28 = smov 21  }
  0x18   :  { %s4206_s9 = sld [smem:[%s4737_s0 + %s4069_s7]]   ;;  %s4073_s7 = smov 22  }
  0x19   :  { %s4211_s14 = sld [smem:[%s4737_s0 + %s4070_s15]]   ;;  %s4074_s15 = smov 23  }
  0x1a   :  { %s4216_s25 = sld [smem:[%s4737_s0 + %s4071_s22]]   ;;  %s4075_s22 = smov 24  }
  0x1b   :  { %s4221_s5 = sld [smem:[%s4737_s0 + %s4072_s28]]   ;;  %s4076_s28 = smov 25  }
  0x1c   :  { %s4226_s17 = sld [smem:[%s4737_s0 + %s4073_s7]]   ;;  %s4077_s7 = smov 26  }
  0x1f   :  { %4750 = sst [smem:[#allocation41_spill]] %s4211_s14 }
  0x20   :  { %4751 = sst [smem:[#allocation42_spill]] %s4216_s25 }
  0x21   :  { %4752 = sst [smem:[#allocation43_spill]] %s4221_s5 }
  0x22   :  { %4753 = sst [smem:[#allocation44_spill]] %s4226_s17 }
  0x23   :  { %s4231_s14 = sld [smem:[%s4737_s0 + %s4074_s15]]   ;;  %s4078_s15 = smov 27  }
  0x24   :  { %s4236_s25 = sld [smem:[%s4737_s0 + %s4075_s22]]   ;;  %s4079_s22 = smov 28  }
  0x25   :  { %s4241_s5 = sld [smem:[%s4737_s0 + %s4076_s28]]   ;;  %s4080_s28 = smov 29  }
  0x26   :  { %s4246_s17 = sld [smem:[%s4737_s0 + %s4077_s7]]  }
  0x29   :  { %4754 = sst [smem:[#allocation45_spill]] %s4231_s14 }
  0x2a   :  { %4755 = sst [smem:[#allocation46_spill]] %s4236_s25 }
  0x2b   :  { %4756 = sst [smem:[#allocation47_spill]] %s4241_s5 }
  0x2c   :  { %s4251_s14 = sld [smem:[%s4737_s0 + %s4078_s15]]  }
  0x2d   :  { %s4256_s25 = sld [smem:[%s4737_s0 + %s4079_s22]]  }
  0x2e   :  { %s4261_s5 = sld [smem:[%s4737_s0 + %s4080_s28]]  }
  0x2f   :  { %64 = vsyncpa [#allocation3], 0 }
  0x30   :  { %65 = vsyncpa [#allocation6], 0 }
  0x31   :  { %66 = vsyncpa [#allocation9], 0 }
  0x32   :  { %67 = vsyncpa [#allocation12], 0 }
  0x33   :  { %68 = vsyncpa [#allocation15], 0 }
  0x34   :  { %69 = vsyncpa [#allocation18], 0 }
  0x35   :  { %70 = vsyncpa [#allocation21], 0 }
  0x36   :  { %71 = vsyncpa [#allocation24], 0 }
  0x37   :  { %72 = vsyncpa [#allocation4], 0  ;;  %s4081_s7 = smov [#allocation5]  }
  0x38   :  { %s97_s10 = sshll.u32 %s4081_s7, 4  ;;  %s98_s10 = int_to_ptr.vmem [resolvable:$true] %s97_s10 }
  0x39   :  { %s3722_s11 = scalar_lea.vmem %s98_s10, 16  ;;  %s3726_s15 = scalar_lea.vmem %s98_s10, 32 }
  0x3a   :  { %p3723_p0 = scmp.ne.s32.totalorder %s98_s10, %s3722_s11  ;;  %p3727_p1 = scmp.lt.s32.totalorder %s98_s10, %s98_s10 }
  0x3b   :  { %p3728_p2 = scmp.lt.s32.totalorder %s3726_s15, %s3722_s11 }
  0x3d   :  { %p3729_p3 = por %p3728_p2, %p3727_p1 }
  0x3f   :  { %p3730_p4 = pnand %p3729_p3, %p3723_p0 }
  0x41   :  { %3733 = shalt.err (!%p3730_p4)
}
  0x42   :  { %100 = dma.hbm_to_vmem [thread:$0]  %s4136_s21, 16, %s98_s10, [#allocation6]  }
  0x43   :  { %s4082_s0 = smov [#allocation8]   ;;  %s4083_s18 = smov [#allocation11]  }
  0x44   :  { %s118_s16 = sshll.u32 %s4082_s0, 4  ;;  %s143_s22 = sshll.u32 %s4083_s18, 4  ;;  %s119_s16 = int_to_ptr.vmem [resolvable:$true] %s118_s16  ;;  %s144_s22 = int_to_ptr.vmem [resolvable:$true] %s143_s22 }
  0x45   :  { %s3742_s23 = scalar_lea.vmem %s119_s16, 256  ;;  %p3747_p6 = scmp.lt.s32.totalorder %s119_s16, %s119_s16 }
  0x46   :  { %p3743_p5 = scmp.ne.s32.totalorder %s119_s16, %s3742_s23  ;;  %p3748_p7 = scmp.lt.s32.totalorder %s3742_s23, %s3742_s23 }
  0x48   :  { %p3749_p8 = por %p3748_p7, %p3747_p6 }
  0x4a   :  { %p3750_p9 = pnand %p3749_p8, %p3743_p5 }
  0x4c   :  { %3753 = shalt.err (!%p3750_p9)
}
  0x4d   :  { %s4084_s26 = smov 64   ;;  %s4085_s28 = smov 4  }
  0x4e   :  { %124 = dma.hbm_to_vmem [thread:$0]  %s4151_s3, 256, %s119_s16, [#allocation9], %s4084_s26, %s4084_s26, %s4085_s28  }
  0x4f   :  { %s3762_s21 = scalar_lea.vmem %s144_s22, 16  ;;  %s3766_s1 = scalar_lea.vmem %s144_s22, 32 }
  0x50   :  { %p3763_p10 = scmp.ne.s32.totalorder %s144_s22, %s3762_s21  ;;  %p3767_p11 = scmp.lt.s32.totalorder %s144_s22, %s144_s22 }
  0x51   :  { %p3768_p12 = scmp.lt.s32.totalorder %s3766_s1, %s3762_s21 }
  0x53   :  { %p3769_p13 = por %p3768_p12, %p3767_p11 }
  0x55   :  { %p3770_p0 = pnand %p3769_p13, %p3763_p10 }
  0x57   :  { %3773 = shalt.err (!%p3770_p0)
}
  0x58   :  { %146 = dma.hbm_to_vmem [thread:$0]  %s4166_s19, 16, %s144_s22, [#allocation12]  }
  0x59   :  { %s4086_s2 = smov [#allocation14]   ;;  %s4087_s10 = smov [#allocation17]  }
  0x5a   :  { %s163_s7 = sshll.u32 %s4086_s2, 4  ;;  %s185_s11 = sshll.u32 %s4087_s10, 4  ;;  %s164_s7 = int_to_ptr.vmem [resolvable:$true] %s163_s7  ;;  %s186_s11 = int_to_ptr.vmem [resolvable:$true] %s185_s11 }
  0x5b   :  { %s3782_s15 = scalar_lea.vmem %s164_s7, 16  ;;  %s3786_s0 = scalar_lea.vmem %s164_s7, 32 }
  0x5c   :  { %p3783_p1 = scmp.ne.s32.totalorder %s164_s7, %s3782_s15  ;;  %p3787_p2 = scmp.lt.s32.totalorder %s164_s7, %s164_s7 }
  0x5d   :  { %p3788_p3 = scmp.lt.s32.totalorder %s3786_s0, %s3782_s15 }
  0x5f   :  { %p3789_p4 = por %p3788_p3, %p3787_p2 }
  0x61   :  { %p3790_p5 = pnand %p3789_p4, %p3783_p1 }
  0x63   :  { %3793 = shalt.err (!%p3790_p5)
}
  0x64   :  { %166 = dma.hbm_to_vmem [thread:$0]  %s4176_s30, 16, %s164_s7, [#allocation15]  }
  0x65   :  { %s3802_s3 = scalar_lea.vmem %s186_s11, 16  ;;  %s3806_s16 = scalar_lea.vmem %s186_s11, 32 }
  0x66   :  { %p3803_p6 = scmp.ne.s32.totalorder %s186_s11, %s3802_s3  ;;  %p3807_p7 = scmp.lt.s32.totalorder %s186_s11, %s186_s11 }
  0x67   :  { %p3808_p8 = scmp.lt.s32.totalorder %s3806_s16, %s3802_s3 }
  0x69   :  { %p3809_p9 = por %p3808_p8, %p3807_p7 }
  0x6b   :  { %p3810_p10 = pnand %p3809_p9, %p3803_p6 }
  0x6d   :  { %3813 = shalt.err (!%p3810_p10)
}
  0x6e   :  { %188 = dma.hbm_to_vmem [thread:$0]  %s4186_s12, 16, %s186_s11, [#allocation18]  }
  0x6f   :  { %s4088_s19 = smov [#allocation20]   ;;  %s4089_s22 = smov [#allocation23]  }
  0x70   :  { %s207_s18 = sshll.u32 %s4088_s19, 4  ;;  %s229_s23 = sshll.u32 %s4089_s22, 4  ;;  %s208_s18 = int_to_ptr.vmem [resolvable:$true] %s207_s18  ;;  %s230_s23 = int_to_ptr.vmem [resolvable:$true] %s229_s23 }
  0x71   :  { %s3822_s21 = scalar_lea.vmem %s208_s18, 16  ;;  %s3826_s1 = scalar_lea.vmem %s208_s18, 32 }
  0x72   :  { %p3823_p11 = scmp.ne.s32.totalorder %s208_s18, %s3822_s21  ;;  %p3827_p12 = scmp.lt.s32.totalorder %s208_s18, %s208_s18 }
  0x73   :  { %p3828_p13 = scmp.lt.s32.totalorder %s3826_s1, %s3822_s21 }
  0x75   :  { %p3829_p0 = por %p3828_p13, %p3827_p12 }
  0x77   :  { %p3830_p1 = pnand %p3829_p0, %p3823_p11 }
  0x79   :  { %3833 = shalt.err (!%p3830_p1)
}
  0x7a   :  { %210 = dma.hbm_to_vmem [thread:$0]  %s4196_s27, 16, %s208_s18, [#allocation21]  }
  0x7b   :  { %s3842_s30 = scalar_lea.vmem %s230_s23, 16  ;;  %s3846_s2 = scalar_lea.vmem %s230_s23, 32 }
  0x7c   :  { %p3843_p2 = scmp.ne.s32.totalorder %s230_s23, %s3842_s30  ;;  %p3847_p3 = scmp.lt.s32.totalorder %s230_s23, %s230_s23 }
  0x7d   :  { %p3848_p4 = scmp.lt.s32.totalorder %s3846_s2, %s3842_s30 }
  0x7f   :  { %p3849_p5 = por %p3848_p4, %p3847_p3 }
  0x81   :  { %p3850_p6 = pnand %p3849_p5, %p3843_p2 }
  0x83   :  { %3853 = shalt.err (!%p3850_p6)
}
  0x84   :  { %232 = dma.hbm_to_vmem [thread:$0]  %s4206_s9, 16, %s230_s23, [#allocation24]  }
  0x85   :  { %s4090_s12 = smov [#allocation2]   ;;  %s4091_s10 = smov [#allocation7]  }
  0x86   :  { %s82_s7 = sshll.u32 %s4090_s12, 4  ;;  %s109_s11 = sshll.u32 %s4091_s10, 4  ;;  %s83_s7 = int_to_ptr.vmem [resolvable:$true] %s82_s7  ;;  %s110_s11 = int_to_ptr.vmem [resolvable:$true] %s109_s11 }
  0x87   :  { %s3862_s15 = scalar_lea.vmem %s83_s7, 128  ;;  %p3867_p8 = scmp.lt.s32.totalorder %s83_s7, %s83_s7 }
  0x88   :  { %p3863_p7 = scmp.ne.s32.totalorder %s83_s7, %s3862_s15  ;;  %p3868_p9 = scmp.lt.s32.totalorder %s3862_s15, %s3862_s15 }
  0x8a   :  { %p3869_p10 = por %p3868_p9, %p3867_p8 }
  0x8c   :  { %p3870_p11 = pnand %p3869_p10, %p3863_p7 }
  0x8e   :  { %3873 = shalt.err (!%p3870_p11)
}
  0x8f   :  { %88 = dma.hbm_to_vmem [thread:$0]  %s4126_s13, 128, %s83_s7, [#allocation3], %s4084_s26, %s4084_s26, %s4085_s28  }
  0x90   :  { %s3882_s27 = scalar_lea.vmem %s110_s11, 16  ;;  %s3886_s9 = scalar_lea.vmem %s110_s11, 32 }
  0x91   :  { %p3883_p12 = scmp.ne.s32.totalorder %s110_s11, %s3882_s27  ;;  %p3887_p13 = scmp.lt.s32.totalorder %s110_s11, %s110_s11 }
  0x92   :  { %p3888_p0 = scmp.lt.s32.totalorder %s3886_s9, %s3882_s27 }
  0x94   :  { %p3889_p1 = por %p3888_p0, %p3887_p13 }
  0x96   :  { %p3890_p2 = pnand %p3889_p1, %p3883_p12 }
  0x98   :  { %3893 = shalt.err (!%p3890_p2)
}
  0x99   :  { %112 = dma.hbm_to_vmem [thread:$0]  %s4146_s29, 16, %s110_s11, [#allocation6]  }
  0x9a   :  { %s4092_s0 = smov [#allocation10]   ;;  %s4093_s16 = smov [#allocation13]  }
  0x9b   :  { %s131_s3 = sshll.u32 %s4092_s0, 4  ;;  %s153_s19 = sshll.u32 %s4093_s16, 4  ;;  %s132_s3 = int_to_ptr.vmem [resolvable:$true] %s131_s3  ;;  %s154_s19 = int_to_ptr.vmem [resolvable:$true] %s153_s19 }
  0x9c   :  { %s3902_s18 = scalar_lea.vmem %s132_s3, 16  ;;  %s3906_s22 = scalar_lea.vmem %s132_s3, 32 }
  0x9d   :  { %p3903_p3 = scmp.ne.s32.totalorder %s132_s3, %s3902_s18  ;;  %p3907_p4 = scmp.lt.s32.totalorder %s132_s3, %s132_s3 }
  0x9e   :  { %p3908_p5 = scmp.lt.s32.totalorder %s3906_s22, %s3902_s18 }
  0xa0   :  { %p3909_p6 = por %p3908_p5, %p3907_p4 }
  0xa2   :  { %p3910_p7 = pnand %p3909_p6, %p3903_p3 }
  0xa4   :  { %3913 = shalt.err (!%p3910_p7)
}
  0xa5   :  { %134 = dma.hbm_to_vmem [thread:$0]  %s4156_s8, 16, %s132_s3, [#allocation9]  }
  0xa6   :  { %s3922_s13 = scalar_lea.vmem %s154_s19, 16  ;;  %s3926_s23 = scalar_lea.vmem %s154_s19, 32 }
  0xa7   :  { %p3923_p8 = scmp.ne.s32.totalorder %s154_s19, %s3922_s13  ;;  %p3927_p9 = scmp.lt.s32.totalorder %s154_s19, %s154_s19 }
  0xa8   :  { %p3928_p10 = scmp.lt.s32.totalorder %s3926_s23, %s3922_s13 }
  0xaa   :  { %p3929_p11 = por %p3928_p10, %p3927_p9 }
  0xac   :  { %p3930_p12 = pnand %p3929_p11, %p3923_p8 }
  0xae   :  { %3933 = shalt.err (!%p3930_p12)
}
  0xaf   :  { %156 = dma.hbm_to_vmem [thread:$0]  %s4171_s24, 16, %s154_s19, [#allocation12]  }
  0xb0   :  { %s4094_s29 = smov [#allocation16]   ;;  %s4095_s1 = smov [#allocation19]  }
  0xb1   :  { %s172_s21 = sshll.u32 %s4094_s29, 4  ;;  %s194_s30 = sshll.u32 %s4095_s1, 4  ;;  %s173_s21 = int_to_ptr.vmem [resolvable:$true] %s172_s21  ;;  %s195_s30 = int_to_ptr.vmem [resolvable:$true] %s194_s30 }
  0xb2   :  { %s3942_s2 = scalar_lea.vmem %s173_s21, 256  ;;  %p3947_p0 = scmp.lt.s32.totalorder %s173_s21, %s173_s21 }
  0xb3   :  { %p3943_p13 = scmp.ne.s32.totalorder %s173_s21, %s3942_s2  ;;  %p3948_p1 = scmp.lt.s32.totalorder %s3942_s2, %s3942_s2 }
  0xb5   :  { %p3949_p2 = por %p3948_p1, %p3947_p0 }
  0xb7   :  { %p3950_p3 = pnand %p3949_p2, %p3943_p13 }
  0xb9   :  { %3953 = shalt.err (!%p3950_p3)
}
  0xba   :  { %178 = dma.hbm_to_vmem [thread:$0]  %s4181_s6, 256, %s173_s21, [#allocation15], %s4084_s26, %s4084_s26, %s4085_s28  }
  0xbb   :  { %s3962_s8 = scalar_lea.vmem %s195_s30, 256  ;;  %p3967_p5 = scmp.lt.s32.totalorder %s195_s30, %s195_s30 }
  0xbc   :  { %p3963_p4 = scmp.ne.s32.totalorder %s195_s30, %s3962_s8  ;;  %p3968_p6 = scmp.lt.s32.totalorder %s3962_s8, %s3962_s8 }
  0xbe   :  { %p3969_p7 = por %p3968_p6, %p3967_p5 }
  0xc0   :  { %p3970_p8 = pnand %p3969_p7, %p3963_p4 }
  0xc2   :  { %3973 = shalt.err (!%p3970_p8)
}
  0xc3   :  { %200 = dma.hbm_to_vmem [thread:$0]  %s4191_s20, 256, %s195_s30, [#allocation18], %s4084_s26, %s4084_s26, %s4085_s28  }
  0xc4   :  { %s4096_s24 = smov [#allocation22]   ;;  %s4097_s7 = smov [#allocation25]  }
  0xc5   :  { %s216_s12 = sshll.u32 %s4096_s24, 4  ;;  %s246_s10 = sshll.u32 %s4097_s7, 4  ;;  %s217_s12 = int_to_ptr.vmem [resolvable:$true] %s216_s12  ;;  %s247_s10 = int_to_ptr.vmem [resolvable:$true] %s246_s10 }
  0xc6   :  { %s3982_s11 = scalar_lea.vmem %s217_s12, 256  ;;  %p3987_p10 = scmp.lt.s32.totalorder %s217_s12, %s217_s12 }
  0xc7   :  { %p3983_p9 = scmp.ne.s32.totalorder %s217_s12, %s3982_s11  ;;  %p3988_p11 = scmp.lt.s32.totalorder %s3982_s11, %s3982_s11 }
  0xc9   :  { %p3989_p12 = por %p3988_p11, %p3987_p10 }
  0xcb   :  { %p3990_p13 = pnand %p3989_p12, %p3983_p9 }
  0xcd   :  { %3993 = shalt.err (!%p3990_p13)
}
  0xce   :  { %222 = dma.hbm_to_vmem [thread:$0]  %s4201_s4, 256, %s217_s12, [#allocation21], %s4084_s26, %s4084_s26, %s4085_s28  }
  0xcf   :  { %s4002_s6 = scalar_lea.vmem %s247_s10, 256  ;;  %p4007_p1 = scmp.lt.s32.totalorder %s247_s10, %s247_s10 }
  0xd0   :  { %p4003_p0 = scmp.ne.s32.totalorder %s247_s10, %s4002_s6  ;;  %p4008_p2 = scmp.lt.s32.totalorder %s4002_s6, %s4002_s6 }
  0xd2   :  { %p4009_p3 = por %p4008_p2, %p4007_p1 }
  0xd4   :  { %p4010_p4 = pnand %p4009_p3, %p4003_p0 }
  0xd6   :  { %4013 = shalt.err (!%p4010_p4)
}
  0xd7   :  { %s4757_s20 = sld [smem:[#allocation45_spill]] }
  0xdd   :  { %252 = dma.hbm_to_vmem [thread:$0]  %s4757_s20, 256, %s247_s10, [#allocation24], %s4084_s26, %s4084_s26, %s4085_s28  }
  0xde   :  { %4034 = dma.done.wait [#allocation3], 128  }
  0xdf   :  { %4035 = vsyncadd [#allocation3], 4294967168 }
  0xe0   :  { %4036 = dma.done.wait [#allocation6], 32  }
  0xe1   :  { %4037 = vsyncadd [#allocation6], 4294967264 }
  0xe2   :  { %4038 = dma.done.wait [#allocation9], 272  }
  0xe3   :  { %4039 = vsyncadd [#allocation9], 4294967024 }
  0xe4   :  { %4040 = dma.done.wait [#allocation12], 32  }
  0xe5   :  { %4041 = vsyncadd [#allocation12], 4294967264 }
  0xe6   :  { %4042 = dma.done.wait [#allocation15], 272  }
  0xe7   :  { %4043 = vsyncadd [#allocation15], 4294967024 }
  0xe8   :  { %4044 = dma.done.wait [#allocation18], 272  }
  0xe9   :  { %4045 = vsyncadd [#allocation18], 4294967024 }
  0xea   :  { %4046 = dma.done.wait [#allocation21], 272  }
  0xeb   :  { %4047 = vsyncadd [#allocation21], 4294967024 }
  0xec   :  { %4048 = dma.done.wait [#allocation24], 272  }
  0xed   :  { %4049 = vsyncadd [#allocation24], 4294967024  ;;  %s4758_s4 = sld [smem:[#allocation38_spill]]  ;;  %v4098_v0 = vmov 0.0   ;;  %vm4099_vm0 = vmmov 0   ;;  %vm341_vm1 = vcmask 261120  }
  0xee   :  { %s4759_s15 = sld [smem:[#allocation36_spill]]  ;;  %3242 = vmatprep.subr.bf16.mxu0 %v4098_v0  ;;  %3246 = vmatprep.mubr.msk.bf16.mxu0 %vm4099_vm0, %v4098_v0  ;;  %v3055_v13 = vld [vmem:[#allocation7] ss:$0 sm:$0xff]  ;;  %v3051_v18 = vld [vmem:[#allocation5] ss:$0 sm:$0xff]  ;;  %vm518_vm2 = vcmask 64512  }
  0xef   :  { %s4760_s26 = sld [smem:[#allocation39_spill]]  ;;  %3266 = vmatprep.subr.bf16.mxu1 %v4098_v0  ;;  %3268 = vmatprep.mubr.msk.bf16.mxu1 %vm4099_vm0, %v4098_v0  ;;  %s4100_s28 = smov 112   ;;  %v3616_v27 = vld [vmem:[#allocation8 + $0x8] sm:$0xff]   ;;  %v3617_v28 = vld [vmem:[#allocation8] sm:$0xff]   ;;  %v3137_v48 = vld [vmem:[#allocation2] sm:$0xff]   ;;  %vm580_vm3 = vcmask 1043456  }
  0xf0   :  { %s4101_s27 = smov 120   ;;  %s4102_s9 = smov 104   ;;  %v3138_v49 = vunpack.c.l.bf16 %v3137_v48  ;;  %vm970_vm4 = vcmask 130048   ;;  %vm972_vm5 = vcmask 195584  }
  0xf1   :  { %s4761_s0 = sld [smem:[#allocation40_spill]]  ;;  %s4103_s3 = smov 8  }
  0xf2   :  { %s4104_s16 = smov 16   ;;  %s4105_s19 = smov 24  }
  0xf3   :  { %v3612_v1 = vld [vmem:[%s4758_s4 + $0x8] sm:$0xff]   ;;  %v3613_v2 = vld [vmem:[%s4758_s4] sm:$0xff]   ;;  %s4762_s18 = sld [smem:[#allocation37_spill]] }
  0xf4   :  { %3243 = vmatpush3.bf16.msra.mxu0 %v3612_v1  ;;  %v4305_v3 = vld [vmem:[%s4759_s15] sm:$0xff]  ;;  %v4308_v4 = vld [vmem:[%s4759_s15 + $0x8] sm:$0xff]  ;;  %s4763_s22 = sld [smem:[#allocation41_spill]] }
  0xf5   :  { %3244 = vmatprep.subr.bf16.mxu0 %v4098_v0  ;;  %v3614_v5 = vld [vmem:[%s4760_s26 + $0x8] sm:$0xff]   ;;  %v317_v6 = vpack.c.bf16 %v4308_v4, %v4305_v3  ;;  %v3615_v7 = vld [vmem:[%s4760_s26] sm:$0xff]   ;;  %s4764_s13 = sld [smem:[#allocation42_spill]] }
  0xf6   :  { %s4765_s23 = sld [smem:[#allocation47_spill]] }
  0xf7   :  { %s4766_s29 = sld [smem:[#allocation43_spill]] }
  0xf8   :  { %3245 = vmatpush3.bf16.msra.mxu0 %v3613_v2  ;;  %s4767_s21 = sld [smem:[#allocation44_spill]] }
  0xf9   :  { %3250 = vmatprep.subr.bf16.mxu0 %v4098_v0  ;;  %s4768_s1 = sld [smem:[#allocation46_spill]] }
  0xfb   :  { %3247 = vmatmul.mubr.msk.bf16.vlgmr.msra.gmra.mxu0 %vm341_vm1, %v317_v6 }
  0xfc   :  { %3251 = vmatpush3.bf16.msra.mxu0 %v3614_v5  ;;  %3254 = vmatprep.mubr.msk.bf16.mxu0 %vm4099_vm0, %v4098_v0 }
  0xfd   :  { %3252 = vmatprep.subr.bf16.mxu0 %v4098_v0 }
 0x100   :  { %3253 = vmatpush3.bf16.msra.mxu0 %v3615_v7 }
 0x101   :  { %3258 = vmatprep.subr.bf16.mxu0 %v4098_v0 }
 0x103   :  { %3255 = vmatmul.mubr.msk.bf16.vlgmr.msra.gmra.mxu0 %vm341_vm1, %v317_v6 }
 0x104   :  { %3262 = vmatprep.mubr.msk.bf16.mxu0 %vm4099_vm0, %v4098_v0  ;;  %3259 = vmatpush3.bf16.msra.mxu0 %v3616_v27 }
 0x105   :  { %3260 = vmatprep.subr.bf16.mxu0 %v4098_v0 }
 0x108   :  { %3261 = vmatpush3.bf16.msra.mxu0 %v3617_v28 }
 0x109   :  { %3272 = vmatprep.subr.bf16.mxu0 %v4098_v0 }
 0x10b   :  { %3263 = vmatmul.mubr.msk.bf16.vlgmr.msra.gmra.mxu0 %vm341_vm1, %v317_v6 }
 0x10c   :  { %3274 = vmatprep.mubr.msk.bf16.mxu0 %vm4099_vm0, %v4098_v0 }
 0x1bb   :  { %v379_v8 = vpop.f32.mrf.mxu0 }
 0x1bc   :  { %v380_v22 = vadd.f32 %v3051_v18, %v379_v8 }
 0x1bd   :  { %v3248_v9 = vpop.f32.mrf.mxu0 }
 0x1bf   :  { %v382_v10 = vpop.f32.mrf.mxu0 }
 0x1c0   :  { %v383_v20 = vadd.f32 %v3051_v18, %v382_v10 }
 0x1c1   :  { %v3249_v11 = vpop.f32.mrf.mxu0 }
 0x1c2   :  { %v386_v24 = vpack.c.bf16 %v383_v20, %v380_v22 }
 0x1c3   :  { %v444_v12 = vpop.f32.mrf.mxu0 }
 0x1c4   :  { %v445_v16 = vadd.f32 %v3055_v13, %v444_v12  ;;  %v975_v25 = vrot.slane %v386_v24, 4  ;;  %v3139_v12 = vunpack.c.h.bf16 %v3137_v48 }
 0x1c5   :  { %v3256_v14 = vpop.f32.mrf.mxu0 }
 0x1c7   :  { %v447_v15 = vpop.f32.mrf.mxu0 }
 0x1c8   :  { %v448_v17 = vadd.f32 %v3055_v13, %v447_v15 }
 0x1c9   :  { %v3257_v19 = vpop.f32.mrf.mxu0 }
 0x1ca   :  { %v451_v21 = vpack.c.bf16 %v448_v17, %v445_v16 }
 0x1cc   :  { %739 = vrot.lane.b32.xlu1 %v451_v21, %s4100_s28  ;;  %628 = vrot.lane.b32.xlu0 %v451_v21, %s4101_s27  ;;  %v523_v23 = vsel %vm518_vm2, %v451_v21, 0  ;;  %v976_v26 = vrot.slane %v451_v21, 4 }
 0x1cd   :  { %3267 = vmatpush3.bf16.xpose.msra.mxu1 %v523_v23 }
 0x1ce   :  { %3278 = vmatprep.subr.bf16.mxu1 %v4098_v0  ;;  %v981_v38 = vsel %vm518_vm2, %v976_v26, 0 }
 0x1d0   :  { %737 = vrot.lane.b32.xlu1 %v386_v24, %s4100_s28  ;;  %625 = vrot.lane.b32.xlu0 %v386_v24, %s4101_s27 }
 0x1d4   :  { %847 = vrot.lane.b32.xlu1 %v386_v24, %s4102_s9  ;;  %849 = vrot.lane.b32.xlu0 %v451_v21, %s4102_s9 }
 0x1d5   :  { %3269 = vmatmul.mubr.msk.bf16.vlgmr.msra.gmra.mxu1 %vm518_vm2, %v386_v24 }
 0x1d6   :  { %3280 = vmatprep.mubr.msk.bf16.mxu1 %vm4099_vm0, %v4098_v0 }
 0x1d8   :  { %1082 = vrot.lane.b32.xlu1 %v975_v25, %s4101_s27  ;;  %1084 = vrot.lane.b32.xlu0 %v976_v26, %s4101_s27 }
 0x1dc   :  { %1192 = vrot.lane.b32.xlu1 %v975_v25, %s4100_s28  ;;  %1194 = vrot.lane.b32.xlu0 %v976_v26, %s4100_s28 }
 0x1e0   :  { %1302 = vrot.lane.b32.xlu1 %v975_v25, %s4102_s9  ;;  %1304 = vrot.lane.b32.xlu0 %v976_v26, %s4102_s9 }
 0x23e   :  { %v629_v29 = vpop.permute.xlu0 %628  ;;  %v740_v31 = vpop.permute.xlu1 %739 }
 0x23f   :  { %v634_v30 = vsel %vm518_vm2, %v629_v29, 0  ;;  %v745_v33 = vsel %vm518_vm2, %v740_v31, 0 }
 0x240   :  { %3279 = vmatpush3.bf16.xpose.msra.mxu1 %v634_v30 }
 0x241   :  { %3290 = vmatprep.subr.bf16.mxu1 %v4098_v0 }
 0x242   :  { %v626_v32 = vpop.permute.xlu0 %625  ;;  %v738_v35 = vpop.permute.xlu1 %737 }
 0x246   :  { %v850_v34 = vpop.permute.xlu0 %849  ;;  %v848_v37 = vpop.permute.xlu1 %847 }
 0x247   :  { %3281 = vmatmul.mubr.msk.bf16.vlgmr.msra.gmra.mxu1 %vm518_vm2, %v626_v32  ;;  %v855_v36 = vsel %vm518_vm2, %v850_v34, 0  ;;  %v509_v32 = vpop.f32.mrf.mxu0 }
 0x248   :  { %3291 = vmatpush3.bf16.xpose.msra.mxu1 %v745_v33  ;;  %3292 = vmatprep.mubr.msk.bf16.mxu1 %vm4099_vm0, %v4098_v0 }
 0x249   :  { %3302 = vmatprep.subr.bf16.mxu1 %v4098_v0 }
 0x24a   :  { %v1085_v39 = vpop.permute.xlu0 %1084  ;;  %v1083_v42 = vpop.permute.xlu1 %1082 }
 0x24b   :  { %v1090_v40 = vsel %vm518_vm2, %v1085_v39, 0 }
 0x24e   :  { %v1195_v41 = vpop.permute.xlu0 %1194  ;;  %v1193_v45 = vpop.permute.xlu1 %1192 }
 0x24f   :  { %3293 = vmatmul.mubr.msk.bf16.vlgmr.msra.gmra.mxu1 %vm518_vm2, %v738_v35  ;;  %v1200_v43 = vsel %vm518_vm2, %v1195_v41, 0  ;;  %v3264_v35 = vpop.f32.mrf.mxu0 }
 0x250   :  { %3303 = vmatpush3.bf16.xpose.msra.mxu1 %v855_v36  ;;  %3304 = vmatprep.mubr.msk.bf16.mxu1 %vm4099_vm0, %v4098_v0 }
 0x251   :  { %3314 = vmatprep.subr.bf16.mxu1 %v4098_v0 }
 0x252   :  { %v1305_v44 = vpop.permute.xlu0 %1304  ;;  %v1303_v47 = vpop.permute.xlu1 %1302 }
 0x253   :  { %v1310_v46 = vsel %vm518_vm2, %v1305_v44, 0 }
 0x257   :  { %3305 = vmatmul.mubr.msk.bf16.vlgmr.msra.gmra.mxu1 %vm518_vm2, %v848_v37  ;;  %v3059_v37 = vld [vmem:[#allocation10] ss:$0 sm:$0xff] }
 0x258   :  { %3315 = vmatpush3.bf16.xpose.msra.mxu1 %v981_v38  ;;  %3316 = vmatprep.mubr.msk.bf16.mxu1 %vm4099_vm0, %v4098_v0  ;;  %v510_v41 = vadd.f32 %v3059_v37, %v509_v32 }
 0x259   :  { %3326 = vmatprep.subr.bf16.mxu1 %v4098_v0 }
 0x25f   :  { %3317 = vmatmul.mubr.msk.bf16.vlgmr.msra.gmra.mxu1 %vm518_vm2, %v975_v25 }
 0x260   :  { %3327 = vmatpush3.bf16.xpose.msra.mxu1 %v1090_v40  ;;  %3328 = vmatprep.mubr.msk.bf16.mxu1 %vm4099_vm0, %v4098_v0 }
 0x261   :  { %3338 = vmatprep.subr.bf16.mxu1 %v4098_v0 }
 0x267   :  { %3329 = vmatmul.mubr.msk.bf16.vlgmr.msra.gmra.mxu1 %vm518_vm2, %v1083_v42  ;;  %v512_v42 = vpop.f32.mrf.mxu0 }
 0x268   :  { %3339 = vmatpush3.bf16.xpose.msra.mxu1 %v1200_v43  ;;  %3340 = vmatprep.mubr.msk.bf16.mxu1 %vm4099_vm0, %v4098_v0 }
 0x269   :  { %3350 = vmatprep.subr.bf16.mxu1 %v4098_v0 }
 0x26f   :  { %3341 = vmatmul.mubr.msk.bf16.vlgmr.msra.gmra.mxu1 %vm518_vm2, %v1193_v45  ;;  %v513_v45 = vadd.f32 %v3059_v37, %v512_v42 }
 0x270   :  { %3351 = vmatpush3.bf16.xpose.msra.mxu1 %v1310_v46  ;;  %3352 = vmatprep.mubr.msk.bf16.mxu1 %vm4099_vm0, %v4098_v0  ;;  %v3265_v46 = vpop.f32.mrf.mxu0 }
 0x271   :  { %3362 = vmatprep.subr.bf16.mxu1 %v4098_v0 }
 0x277   :  { %3353 = vmatmul.mubr.msk.bf16.vlgmr.msra.gmra.mxu1 %vm518_vm2, %v1303_v47 }
 0x278   :  { %3366 = vmatprep.mubr.msk.bf16.mxu1 %vm4099_vm0, %v4098_v0 }
 0x295   :  { %v559_v50 = vpop.f32.mrf.mxu1 }
 0x296   :  { %v560_v51 = vadd.f32 %v3138_v49, %v559_v50 }
 0x297   :  { %v3270_v52 = vpop.f32.mrf.mxu1 }
 0x298   :  { %v565_v53 = vsel %vm518_vm2, %v560_v51, -inf }
 0x299   :  { %566 = vmax.xlane.f32.xlu0 %v565_v53  ;;  %v562_v54 = vpop.f32.mrf.mxu1 }
 0x29b   :  { %v3271_v55 = vpop.f32.mrf.mxu1 }
 0x307   :  { %v670_v56 = vpop.f32.mrf.mxu1 }
 0x308   :  { %v4382_v57 = vadd.f32 %v3138_v49, %v670_v56 }
 0x309   :  { %v3282_v58 = vpop.f32.mrf.mxu1 }
 0x30a   :  { %v676_v59 = vsel %vm518_vm2, %v4382_v57, -inf }
 0x30b   :  { %677 = vmax.xlane.f32.xlu1 %v676_v59  ;;  %v673_v60 = vpop.f32.mrf.mxu1 }
 0x30d   :  { %v3283_v61 = vpop.f32.mrf.mxu1 }
 0x30f   :  { %v781_v62 = vpop.f32.mrf.mxu1 }
 0x310   :  { %v4386_v63 = vadd.f32 %v3138_v49, %v781_v62 }
 0x311   :  { %v3294_v1 = vpop.f32.mrf.mxu1 }
 0x312   :  { %v787_v2 = vsel %vm518_vm2, %v4386_v63, -inf }
 0x313   :  { %788 = vmax.xlane.f32.xlu0 %v787_v2  ;;  %v784_v5 = vpop.f32.mrf.mxu1 }
 0x315   :  { %v3295_v6 = vpop.f32.mrf.mxu1 }
 0x317   :  { %v891_v7 = vpop.f32.mrf.mxu1 }
 0x318   :  { %v4390_v8 = vadd.f32 %v3138_v49, %v891_v7  ;;  %v4408_v49 = vpack.c.bf16 %v513_v45, %v510_v41 }
 0x319   :  { %v3306_v9 = vpop.f32.mrf.mxu1 }
 0x31a   :  { %v897_v10 = vsel %vm518_vm2, %v4390_v8, -inf }
 0x31b   :  { %898 = vmax.xlane.f32.xlu0 %v897_v10  ;;  %v894_v11 = vpop.f32.mrf.mxu1 }
 0x31d   :  { %v3307_v13 = vpop.f32.mrf.mxu1 }
 0x31f   :  { %v1017_v14 = vpop.f32.mrf.mxu1 }
 0x320   :  { %v4394_v15 = vadd.f32 %v3139_v12, %v1017_v14 }
 0x321   :  { %v3318_v16 = vpop.f32.mrf.mxu1 }
 0x322   :  { %v567_v17 = vpop.xlane.xlu0 %566  ;;  %v1023_v18 = vsel %vm518_vm2, %v4394_v15, -inf }
 0x323   :  { %v568_v19 = vsub.f32 %v560_v51, %v567_v17  ;;  %1024 = vmax.xlane.f32.xlu1 %v1023_v18  ;;  %v1020_v20 = vpop.f32.mrf.mxu1  ;;  %v582_v51 = vsel %vm580_vm3, %v4408_v49, 0 }
 0x324   :  { %3273 = vmatpush3.bf16.msra.mxu0 %v582_v51 }
 0x325   :  { %v569_v21 = vmul.f32 1.442695, %v568_v19  ;;  %v3319_v22 = vpop.f32.mrf.mxu1  ;;  %3284 = vmatprep.subr.bf16.mxu0 %v4098_v0 }
 0x327   :  { %3638 = vpow2.f32 %v569_v21  ;;  %v1126_v23 = vpop.f32.mrf.mxu1 }
 0x328   :  { %v4398_v24 = vadd.f32 %v3139_v12, %v1126_v23 }
 0x329   :  { %v3330_v25 = vpop.f32.mrf.mxu1 }
 0x32a   :  { %v1132_v26 = vsel %vm518_vm2, %v4398_v24, -inf }
 0x32b   :  { %1133 = vmax.xlane.f32.xlu0 %v1132_v26  ;;  %v1129_v27 = vpop.f32.mrf.mxu1 }
 0x32d   :  { %v3331_v28 = vpop.f32.mrf.mxu1 }
 0x32f   :  { %v1236_v29 = vpop.f32.mrf.mxu1 }
 0x330   :  { %v4402_v30 = vadd.f32 %v3139_v12, %v1236_v29 }
 0x331   :  { %v3342_v31 = vpop.f32.mrf.mxu1 }
 0x332   :  { %v1242_v33 = vsel %vm518_vm2, %v4402_v30, -inf }
 0x333   :  { %1243 = vmax.xlane.f32.xlu1 %v1242_v33  ;;  %v1239_v34 = vpop.f32.mrf.mxu1 }
 0x334   :  { %v3639_v36 = vpop.eup %3638 }
 0x335   :  { %v3343_v38 = vpop.f32.mrf.mxu1  ;;  %v571_v39 = vsel %vm518_vm2, %v3639_v36, 0.0 }
 0x337   :  { %572 = vadd.xlane.f32.xlu1 %v571_v39  ;;  %v1346_v40 = vpop.f32.mrf.mxu1 }
 0x338   :  { %v1347_v43 = vadd.f32 %v3139_v12, %v1346_v40 }
 0x339   :  { %v3354_v44 = vpop.f32.mrf.mxu1 }
 0x33a   :  { %v1352_v47 = vsel %vm518_vm2, %v1347_v43, -inf }
 0x33b   :  { %1353 = vmax.xlane.f32.xlu0 %v1352_v47  ;;  %v1349_v48 = vpop.f32.mrf.mxu1 }
 0x33d   :  { %v3355_v50 = vpop.f32.mrf.mxu1 }
 0x394   :  { %v678_v52 = vpop.xlane.xlu1 %677 }
 0x395   :  { %v679_v53 = vsub.f32 %v4382_v57, %v678_v52 }
 0x397   :  { %v680_v54 = vmul.f32 1.442695, %v679_v53 }
 0x399   :  { %3640 = vpow2.f32 %v680_v54 }
 0x39c   :  { %v789_v55 = vpop.xlane.xlu0 %788 }
 0x39d   :  { %v790_v56 = vsub.f32 %v4386_v63, %v789_v55 }
 0x39f   :  { %v791_v58 = vmul.f32 1.442695, %v790_v56 }
 0x3a1   :  { %3642 = vpow2.f32 %v791_v58 }
 0x3a4   :  { %v899_v59 = vpop.xlane.xlu0 %898 }
 0x3a5   :  { %v900_v60 = vsub.f32 %v4390_v8, %v899_v59 }
 0x3a6   :  { %v3641_v61 = vpop.eup %3640 }
 0x3a7   :  { %v901_v62 = vmul.f32 1.442695, %v900_v60  ;;  %v682_v1 = vsel %vm518_vm2, %v3641_v61, 0.0 }
 0x3a8   :  { %683 = vadd.xlane.f32.xlu0 %v682_v1 }
 0x3a9   :  { %3644 = vpow2.f32 %v901_v62 }
 0x3ac   :  { %v1025_v6 = vpop.xlane.xlu1 %1024 }
 0x3ad   :  { %v1026_v10 = vsub.f32 %v4394_v15, %v1025_v6 }
 0x3ae   :  { %v4417_v2 = vpop.eup %3642 }
 0x3af   :  { %v793_v57 = vsel %vm518_vm2, %v4417_v2, 0.0  ;;  %v1027_v16 = vmul.f32 1.442695, %v1026_v10 }
 0x3b0   :  { %794 = vadd.xlane.f32.xlu1 %v793_v57 }
 0x3b4   :  { %v1134_v11 = vpop.xlane.xlu0 %1133 }
 0x3b5   :  { %v1135_v14 = vsub.f32 %v4398_v24, %v1134_v11 }
 0x3b6   :  { %v4421_v5 = vpop.eup %3644 }
 0x3b7   :  { %v903_v63 = vsel %vm518_vm2, %v4421_v5, 0.0  ;;  %v1136_v19 = vmul.f32 1.442695, %v1135_v14 }
 0x3b8   :  { %904 = vadd.xlane.f32.xlu0 %v903_v63 }
 0x3bc   :  { %v1244_v7 = vpop.xlane.xlu1 %1243 }
 0x3bd   :  { %v1245_v17 = vsub.f32 %v4402_v30, %v1244_v7  ;;  %v1035_v30 = vrot.slane %v4408_v49, 4 }
 0x3bf   :  { %v1246_v20 = vmul.f32 1.442695, %v1245_v17 }
 0x3c0   :  { %v573_v8 = vpop.xlane.xlu1 %572 }
 0x3c1   :  { %799 = vrot.lane.b32.xlu1 %v4408_v49, %s4100_s28  ;;  %3646 = vrcp.f32 %v573_v8 }
 0x3c2   :  { %3648 = vpow2.f32 %v1027_v16 }
 0x3c3   :  { %3650 = vpow2.f32 %v1136_v19 }
 0x3c4   :  { %v1354_v18 = vpop.xlane.xlu0 %1353  ;;  %3652 = vpow2.f32 %v1246_v20 }
 0x3c5   :  { %909 = vrot.lane.b32.xlu1 %v4408_v49, %s4102_s9  ;;  %v1355_v21 = vsub.f32 %v1347_v43, %v1354_v18 }
 0x3c7   :  { %v1356_v15 = vmul.f32 1.442695, %v1355_v21 }
 0x3c9   :  { %3654 = vpow2.f32 %v1356_v15 }
 0x3ce   :  { %689 = vrot.lane.b32.xlu0 %v4408_v49, %s4101_s27  ;;  %v3647_v9 = vpop.eup %3646  ;;  %v1040_v49 = vsel %vm580_vm3, %v1035_v30, 0 }
 0x3cf   :  { %v575_v12 = vmul.f32 %v3647_v9, %v3639_v36  ;;  %v3649_v22 = vpop.eup %3648 }
 0x3d0   :  { %v4437_v23 = vpop.eup %3650  ;;  %v1029_v24 = vsel %vm518_vm2, %v3649_v22, 0.0 }
 0x3d1   :  { %v576_v13 = vpack.c.bf16 %v575_v12, %v575_v12  ;;  %v4440_v25 = vpop.eup %3652  ;;  %v1138_v26 = vsel %vm518_vm2, %v4437_v23, 0.0 }
 0x3d2   :  { %v1248_v27 = vsel %vm518_vm2, %v4440_v25, 0.0 }
 0x3d3   :  { %3275 = vmatmul.mubr.msk.bf16.vlgmr.msra.gmra.mxu0 %vm518_vm2, %v576_v13 }
 0x3d4   :  { %3286 = vmatprep.mubr.msk.bf16.mxu0 %vm4099_vm0, %v4098_v0 }
 0x3d6   :  { %v4446_v28 = vpop.eup %3654 }
 0x3d7   :  { %v1358_v29 = vsel %vm518_vm2, %v4446_v28, 0.0 }
 0x3e9   :  { %1030 = vadd.xlane.f32.xlu1 %v1029_v24 }
 0x3ed   :  { %1139 = vadd.xlane.f32.xlu1 %v1138_v26  ;;  %1249 = vadd.xlane.f32.xlu0 %v1248_v27 }
 0x3f1   :  { %1359 = vadd.xlane.f32.xlu1 %v1358_v29 }
 0x402   :  { %1254 = vrot.lane.b32.xlu1 %v1035_v30, %s4100_s28 }
 0x403   :  { %1144 = vrot.lane.b32.xlu0 %v1035_v30, %s4101_s27 }
 0x407   :  { %1364 = vrot.lane.b32.xlu0 %v1035_v30, %s4102_s9 }
 0x431   :  { %v684_v31 = vpop.xlane.xlu0 %683 }
 0x432   :  { %3656 = vrcp.f32 %v684_v31 }
 0x439   :  { %v795_v32 = vpop.xlane.xlu1 %794 }
 0x43a   :  { %3658 = vrcp.f32 %v795_v32  ;;  %v3618_v32 = vld [vmem:[%s4761_s0 + $0x8] sm:$0xff]  }
 0x43b   :  { %3363 = vmatpush3.bf16.msra.mxu1 %v3618_v32 }
 0x43c   :  { %3364 = vmatprep.subr.bf16.mxu1 %v4098_v0 }
 0x43d   :  { %v800_v38 = vpop.permute.xlu1 %799 }
 0x43e   :  { %v805_v41 = vsel %vm580_vm3, %v800_v38, 0 }
 0x43f   :  { %v3657_v33 = vpop.eup %3656 }
 0x440   :  { %v686_v35 = vmul.f32 %v3657_v33, %v3641_v61 }
 0x441   :  { %v905_v34 = vpop.xlane.xlu0 %904  ;;  %v910_v43 = vpop.permute.xlu1 %909 }
 0x442   :  { %3660 = vrcp.f32 %v905_v34  ;;  %v687_v39 = vpack.c.bf16 %v686_v35, %v686_v35  ;;  %v915_v46 = vsel %vm580_vm3, %v910_v43, 0 }
 0x445   :  { %v690_v36 = vpop.permute.xlu0 %689 }
 0x446   :  { %v695_v37 = vsel %vm580_vm3, %v690_v36, 0 }
 0x447   :  { %3285 = vmatpush3.bf16.msra.mxu0 %v695_v37  ;;  %v3659_v40 = vpop.eup %3658  ;;  %v3619_v37 = vld [vmem:[%s4761_s0] sm:$0xff]  }
 0x448   :  { %3296 = vmatprep.subr.bf16.mxu0 %v4098_v0  ;;  %v797_v42 = vmul.f32 %v3659_v40, %v4417_v2  ;;  %3365 = vmatpush3.bf16.msra.mxu1 %v3619_v37 }
 0x44a   :  { %3287 = vmatmul.mubr.msk.bf16.vlgmr.msra.gmra.mxu0 %vm518_vm2, %v687_v39  ;;  %v798_v44 = vpack.c.bf16 %v797_v42, %v797_v42 }
 0x44b   :  { %3297 = vmatpush3.bf16.msra.mxu0 %v805_v41  ;;  %3298 = vmatprep.mubr.msk.bf16.mxu0 %vm4099_vm0, %v4098_v0 }
 0x44c   :  { %3308 = vmatprep.subr.bf16.mxu0 %v4098_v0 }
 0x44f   :  { %v3661_v45 = vpop.eup %3660 }
 0x450   :  { %v907_v47 = vmul.f32 %v3661_v45, %v4421_v5 }
 0x452   :  { %3299 = vmatmul.mubr.msk.bf16.vlgmr.msra.gmra.mxu0 %vm518_vm2, %v798_v44  ;;  %v908_v48 = vpack.c.bf16 %v907_v47, %v907_v47 }
 0x453   :  { %3309 = vmatpush3.bf16.msra.mxu0 %v915_v46  ;;  %3310 = vmatprep.mubr.msk.bf16.mxu0 %vm4099_vm0, %v4098_v0 }
 0x454   :  { %3320 = vmatprep.subr.bf16.mxu0 %v4098_v0 }
 0x45a   :  { %3311 = vmatmul.mubr.msk.bf16.vlgmr.msra.gmra.mxu0 %vm518_vm2, %v908_v48 }
 0x45b   :  { %3321 = vmatpush3.bf16.msra.mxu0 %v1040_v49  ;;  %3322 = vmatprep.mubr.msk.bf16.mxu0 %vm4099_vm0, %v4098_v0 }
 0x45c   :  { %3332 = vmatprep.subr.bf16.mxu0 %v4098_v0 }
 0x472   :  { %v1031_v50 = vpop.xlane.xlu1 %1030 }
 0x473   :  { %3662 = vrcp.f32 %v1031_v50 }
 0x476   :  { %v1140_v51 = vpop.xlane.xlu1 %1139  ;;  %v1250_v52 = vpop.xlane.xlu0 %1249 }
 0x477   :  { %3664 = vrcp.f32 %v1140_v51 }
 0x478   :  { %3666 = vrcp.f32 %v1250_v52 }
 0x47a   :  { %v1145_v55 = vpop.permute.xlu0 %1144  ;;  %v1360_v59 = vpop.xlane.xlu1 %1359 }
 0x47b   :  { %v1150_v60 = vsel %vm580_vm3, %v1145_v55, 0  ;;  %3668 = vrcp.f32 %v1360_v59 }
 0x47e   :  { %v1255_v62 = vpop.permute.xlu1 %1254  ;;  %v1365_v63 = vpop.permute.xlu0 %1364 }
 0x47f   :  { %v1260_v57 = vsel %vm580_vm3, %v1255_v62, 0  ;;  %v1370_v9 = vsel %vm580_vm3, %v1365_v63, 0 }
 0x480   :  { %v3663_v53 = vpop.eup %3662 }
 0x481   :  { %v1033_v54 = vmul.f32 %v3663_v53, %v3649_v22 }
 0x483   :  { %v1034_v56 = vpack.c.bf16 %v1033_v54, %v1033_v54 }
 0x484   :  { %v3665_v58 = vpop.eup %3664 }
 0x485   :  { %3323 = vmatmul.mubr.msk.bf16.vlgmr.msra.gmra.mxu0 %vm518_vm2, %v1034_v56  ;;  %v1142_v61 = vmul.f32 %v3665_v58, %v4437_v23  ;;  %v3667_v2 = vpop.eup %3666 }
 0x486   :  { %3333 = vmatpush3.bf16.msra.mxu0 %v1150_v60  ;;  %3334 = vmatprep.mubr.msk.bf16.mxu0 %vm4099_vm0, %v4098_v0  ;;  %v1252_v5 = vmul.f32 %v3667_v2, %v4440_v25 }
 0x487   :  { %3344 = vmatprep.subr.bf16.mxu0 %v4098_v0  ;;  %v1143_v1 = vpack.c.bf16 %v1142_v61, %v1142_v61 }
 0x488   :  { %v1253_v6 = vpack.c.bf16 %v1252_v5, %v1252_v5  ;;  %v3669_v7 = vpop.eup %3668 }
 0x489   :  { %v1362_v11 = vmul.f32 %v3669_v7, %v4446_v28 }
 0x48b   :  { %v1363_v14 = vpack.c.bf16 %v1362_v11, %v1362_v11 }
 0x48d   :  { %3335 = vmatmul.mubr.msk.bf16.vlgmr.msra.gmra.mxu0 %vm518_vm2, %v1143_v1 }
 0x48e   :  { %3345 = vmatpush3.bf16.msra.mxu0 %v1260_v57  ;;  %3346 = vmatprep.mubr.msk.bf16.mxu0 %vm4099_vm0, %v4098_v0  ;;  %v3079_v57 = vld [vmem:[#allocation11] ss:$0 sm:$0xff] }
 0x48f   :  { %3356 = vmatprep.subr.bf16.mxu0 %v4098_v0 }
 0x493   :  { %v4485_v8 = vpop.f32.mrf.mxu0 }
 0x495   :  { %3347 = vmatmul.mubr.msk.bf16.vlgmr.msra.gmra.mxu0 %vm518_vm2, %v1253_v6  ;;  %v3276_v10 = vpop.f32.mrf.mxu0 }
 0x496   :  { %3357 = vmatpush3.bf16.msra.mxu0 %v1370_v9  ;;  %3358 = vmatprep.mubr.msk.bf16.mxu0 %vm4099_vm0, %v4098_v0 }
 0x497   :  { %3370 = vmatprep.subr.bf16.mxu0 %v4098_v0  ;;  %v621_v12 = vpop.f32.mrf.mxu0 }
 0x499   :  { %v3277_v13 = vpop.f32.mrf.mxu0 }
 0x49d   :  { %3359 = vmatmul.mubr.msk.bf16.vlgmr.msra.gmra.mxu0 %vm518_vm2, %v1363_v14 }
 0x49e   :  { %3374 = vmatprep.mubr.msk.bf16.mxu0 %vm4099_vm0, %v4098_v0 }
 0x50a   :  { %v731_v16 = vpop.f32.mrf.mxu0 }
 0x50c   :  { %v3288_v17 = vpop.f32.mrf.mxu0 }
 0x50e   :  { %v734_v18 = vpop.f32.mrf.mxu0 }
 0x510   :  { %v3289_v19 = vpop.f32.mrf.mxu0 }
 0x512   :  { %v841_v20 = vpop.f32.mrf.mxu0 }
 0x514   :  { %v3300_v21 = vpop.f32.mrf.mxu0 }
 0x516   :  { %v844_v15 = vpop.f32.mrf.mxu0 }
 0x518   :  { %v3301_v22 = vpop.f32.mrf.mxu0 }
 0x519   :  { %v3620_v22 = vld [vmem:[#allocation19 + $0x8] sm:$0xff]  }
 0x51a   :  { %v951_v23 = vpop.f32.mrf.mxu0  ;;  %3378 = vmatprep.subr.bf16.mxu1 %v3620_v22 }
 0x51c   :  { %v3312_v24 = vpop.f32.mrf.mxu0 }
 0x51d   :  { %v311_v24 = vld [vmem:[%s4762_s18] sm:$0xff] }
 0x51e   :  { %v954_v25 = vpop.f32.mrf.mxu0 }
 0x51f   :  { %v312_v25 = vld [vmem:[%s4762_s18 + $0x8] sm:$0xff] }
 0x520   :  { %v3313_v26 = vpop.f32.mrf.mxu0 }
 0x521   :  { %v1611_v26 = vpack.c.bf16 %v312_v25, %v311_v24 }
 0x545   :  { %v1076_v27 = vpop.f32.mrf.mxu0 }
 0x547   :  { %v3324_v28 = vpop.f32.mrf.mxu0 }
 0x548   :  { %v314_v28 = vld [vmem:[%s4762_s18 + $0x18] sm:$0xff] }
 0x549   :  { %v1079_v29 = vpop.f32.mrf.mxu0 }
 0x54b   :  { %v3325_v30 = vpop.f32.mrf.mxu0 }
 0x54c   :  { %v3622_v30 = vld [vmem:[#allocation16 + $0x8] sm:$0xff]  }
 0x54d   :  { %v1186_v31 = vpop.f32.mrf.mxu0  ;;  %3371 = vmatpush3.bf16.msra.mxu0 %v3622_v30 }
 0x54e   :  { %v3582_v33 = vpack.i.bf16 %v1186_v31, %v731_v16  ;;  %v3623_v31 = vld [vmem:[#allocation16] sm:$0xff]   ;;  %3372 = vmatprep.subr.bf16.mxu0 %v4098_v0 }
 0x54f   :  { %v3336_v34 = vpop.f32.mrf.mxu0 }
 0x550   :  { %3583 = vrot.lane.b32.xlu0 %v3582_v33, %s4103_s3 }
 0x551   :  { %v1189_v35 = vpop.f32.mrf.mxu0  ;;  %3373 = vmatpush3.bf16.msra.mxu0 %v3623_v31 }
 0x553   :  { %v3337_v36 = vpop.f32.mrf.mxu0 }
 0x555   :  { %v1296_v38 = vpop.f32.mrf.mxu0 }
 0x556   :  { %v3587_v39 = vpack.i.bf16 %v1296_v38, %v841_v20 }
 0x557   :  { %v3348_v40 = vpop.f32.mrf.mxu0 }
 0x558   :  { %3588 = vrot.lane.b32.xlu1 %v3587_v39, %s4104_s16  ;;  %v3083_v40 = vld [vmem:[#allocation13] ss:$0 sm:$0xff] }
 0x559   :  { %v1299_v41 = vpop.f32.mrf.mxu0 }
 0x55b   :  { %v3349_v42 = vpop.f32.mrf.mxu0 }
 0x55d   :  { %v1406_v43 = vpop.f32.mrf.mxu0 }
 0x55e   :  { %v3592_v44 = vpack.i.bf16 %v1406_v43, %v951_v23  ;;  %v3621_v23 = vld [vmem:[#allocation19] sm:$0xff]  }
 0x55f   :  { %v3360_v45 = vpop.f32.mrf.mxu0 }
 0x560   :  { %3593 = vrot.lane.b32.xlu0 %v3592_v44, %s4105_s19  ;;  %v3084_v44 = vld [vmem:[#allocation14] ss:$0 sm:$0xff] }
 0x561   :  { %v1409_v46 = vpop.f32.mrf.mxu0 }
 0x563   :  { %v3361_v47 = vpop.f32.mrf.mxu0 }
 0x5c2   :  { %v3584_v48 = vpop.permute.xlu0 %3583 }
 0x5c3   :  { %v3586_v50 = vunpack.i.h.bf16 %v3584_v48  ;;  %v3585_v51 = vunpack.i.l.bf16 %v3584_v48 }
 0x5c5   :  { %v1424_v55 = vsel %vm518_vm2, %v1076_v27, %v3586_v50  ;;  %v969_v56 = vsel %vm518_vm2, %v4485_v8, %v3585_v51  ;;  %v313_v27 = vld [vmem:[%s4762_s18 + $0x10] sm:$0xff] }
 0x5c6   :  { %v4520_v29 = vpack.c.bf16 %v314_v28, %v313_v27 }
 0x5ca   :  { %v3589_v49 = vpop.permute.xlu1 %3588 }
 0x5cb   :  { %v3591_v52 = vunpack.i.h.bf16 %v3589_v49  ;;  %v3590_v53 = vunpack.i.l.bf16 %v3589_v49  ;;  %v3089_v49 = vld [vmem:[#allocation20] ss:$0 sm:$0xff] }
 0x5cd   :  { %v1425_v60 = vsel %vm970_vm4, %v1424_v55, %v3591_v52  ;;  %v971_v61 = vsel %vm970_vm4, %v969_v56, %v3590_v53 }
 0x5d2   :  { %v3594_v54 = vpop.permute.xlu0 %3593 }
 0x5d3   :  { %v3596_v58 = vunpack.i.h.bf16 %v3594_v54  ;;  %v3595_v59 = vunpack.i.l.bf16 %v3594_v54 }
 0x5d5   :  { %v1426_v62 = vsel %vm972_vm5, %v1425_v60, %v3596_v58  ;;  %v973_v1 = vsel %vm972_vm5, %v971_v61, %v3595_v59 }
 0x5d6   :  { %v1427_v2 = vpack.c.bf16 %v1426_v62, %v973_v1  ;;  %v3085_v1 = vld [vmem:[#allocation17] ss:$0 sm:$0xff] }
 0x5d8   :  { %3367 = vmatmul.mubr.msk.bf16.vlgmr.msra.gmra.mxu1 %vm341_vm1, %v1427_v2 }
 0x5d9   :  { %3379 = vmatpush3.bf16.msra.mxu1 %v3620_v22  ;;  %3382 = vmatprep.mubr.msk.bf16.mxu1 %vm341_vm1, %v1611_v26 }
 0x5da   :  { %3380 = vmatprep.subr.bf16.mxu1 %v3621_v23 }
 0x5dd   :  { %3381 = vmatpush3.bf16.msra.mxu1 %v3621_v23 }
 0x5de   :  { %3394 = vmatprep.subr.bf16.mxu1 %v4098_v0 }
 0x5e0   :  { %3383 = vmatmul.mubr.msk.bf16.vlgmr.msra.gmra.mxu1 %vm341_vm1, %v4520_v29 }
 0x5e1   :  { %3396 = vmatprep.mubr.msk.bf16.mxu1 %vm4099_vm0, %v4098_v0 }
 0x698   :  { %v1488_v5 = vpop.f32.mrf.mxu1 }
 0x699   :  { %v1489_v63 = vadd.f32 %v3079_v57, %v1488_v5 }
 0x69a   :  { %v3368_v6 = vpop.f32.mrf.mxu1 }
 0x69b   :  { %v1495_v7 = vadd.f32 %v1489_v63, %v4305_v3 }
 0x69c   :  { %v1491_v8 = vpop.f32.mrf.mxu1 }
 0x69d   :  { %v1492_v9 = vadd.f32 %v3079_v57, %v1491_v8  ;;  %v1499_v10 = vsel %vm341_vm1, %v1495_v7, 0.0 }
 0x69e   :  { %1500 = vadd.xlane.f32.xlu1 %v1499_v10  ;;  %v3369_v11 = vpop.f32.mrf.mxu1 }
 0x69f   :  { %v1496_v12 = vadd.f32 %v1492_v9, %v4308_v4  ;;  %v3624_v11 = vld [vmem:[#allocation22 + $0x8] sm:$0xff]  }
 0x6a0   :  { %v3384_v50 = vpop.f32.mrf.mxu1  ;;  %3386 = vmatprep.subr.bf16.mxu0 %v3624_v11 }
 0x6a1   :  { %v1502_v13 = vsel %vm341_vm1, %v1496_v12, 0.0  ;;  %v1685_v51 = vadd.f32 %v3384_v50, %v3089_v49 }
 0x6a2   :  { %1503 = vadd.xlane.f32.xlu0 %v1502_v13  ;;  %v1676_v52 = vpop.f32.mrf.mxu1 }
 0x6a3   :  { %v1677_v54 = vadd.f32 %v3089_v49, %v1676_v52 }
 0x6a4   :  { %v3385_v53 = vpop.f32.mrf.mxu1 }
 0x6a5   :  { %v1688_v55 = vadd.f32 %v3385_v53, %v3089_v49 }
 0x6a6   :  { %v1679_v56 = vpop.f32.mrf.mxu1 }
 0x6a7   :  { %v1692_v58 = vpack.c.bf16 %v1688_v55, %v1685_v51  ;;  %v1680_v59 = vadd.f32 %v3089_v49, %v1679_v56 }
 0x6a9   :  { %v1691_v60 = vpack.c.bf16 %v1680_v59, %v1677_v54 }
 0x6ab   :  { %v1771_v61 = vsel %vm518_vm2, %v1691_v60, 0 }
 0x6ac   :  { %3395 = vmatpush3.bf16.xpose.msra.mxu1 %v1771_v61 }
 0x6ad   :  { %3406 = vmatprep.subr.bf16.mxu1 %v4098_v0 }
 0x727   :  { %v1501_v14 = vpop.xlane.xlu1 %1500 }
 0x728   :  { %v1506_v16 = vmul.f32 0.03125, %v1501_v14 }
 0x72a   :  { %v1508_v17 = vsub.f32 %v1495_v7, %v1506_v16 }
 0x72b   :  { %v1504_v18 = vpop.xlane.xlu0 %1503 }
 0x72c   :  { %v1507_v19 = vmul.f32 0.03125, %v1504_v18  ;;  %v1510_v20 = vmul.f32 %v1508_v17, %v1508_v17 }
 0x72e   :  { %v1509_v3 = vsub.f32 %v1496_v12, %v1507_v19  ;;  %v1512_v21 = vsel %vm341_vm1, %v1510_v20, 0.0  ;;  %v3625_v12 = vld [vmem:[#allocation22] sm:$0xff]  }
 0x72f   :  { %1513 = vadd.xlane.f32.xlu0 %v1512_v21 }
 0x730   :  { %v1511_v15 = vmul.f32 %v1509_v3, %v1509_v3 }
 0x732   :  { %v1515_v4 = vsel %vm341_vm1, %v1511_v15, 0.0 }
 0x733   :  { %1516 = vadd.xlane.f32.xlu1 %v1515_v4 }
 0x745   :  { %1872 = vrot.lane.b32.xlu0 %v1691_v60, %s4101_s27 }
 0x7b8   :  { %v1514_v32 = vpop.xlane.xlu0 %1513 }
 0x7b9   :  { %v1518_v33 = vmul.f32 0.03125, %v1514_v32 }
 0x7bb   :  { %v1520_v34 = vadd.f32 1e-05, %v1518_v33 }
 0x7bc   :  { %v1517_v35 = vpop.xlane.xlu1 %1516  ;;  %v1873_v6 = vpop.permute.xlu0 %1872 }
 0x7bd   :  { %3670 = vrsqrt.f32 %v1520_v34  ;;  %v1519_v36 = vmul.f32 0.03125, %v1517_v35  ;;  %v1878_v9 = vsel %vm518_vm2, %v1873_v6, 0  ;;  %v3094_v34 = vld [vmem:[#allocation23] ss:$0 sm:$0xff] }
 0x7bf   :  { %v1521_v37 = vadd.f32 1e-05, %v1519_v36 }
 0x7c1   :  { %3672 = vrsqrt.f32 %v1521_v37 }
 0x7ca   :  { %v3671_v38 = vpop.eup %3670 }
 0x7cb   :  { %v1524_v39 = vmul.f32 %v3671_v38, %v1508_v17 }
 0x7cd   :  { %v1532_v43 = vmul.f32 %v3083_v40, %v1524_v39 }
 0x7ce   :  { %v3673_v41 = vpop.eup %3672 }
 0x7cf   :  { %v1525_v42 = vmul.f32 %v3673_v41, %v1509_v3  ;;  %v4529_v46 = vadd.f32 %v3084_v44, %v1532_v43  ;;  %v2215_v3 = vsel %vm518_vm2, %v1692_v58, 0 }
 0x7d1   :  { %v1533_v45 = vmul.f32 %v3083_v40, %v1525_v42 }
 0x7d3   :  { %v4531_v47 = vadd.f32 %v3084_v44, %v1533_v45 }
 0x7d5   :  { %v1542_v48 = vpack.c.bf16 %v4531_v47, %v4529_v46 }
 0x7d7   :  { %3375 = vmatmul.mubr.msk.bf16.vlgmr.msra.gmra.mxu0 %vm341_vm1, %v1542_v48 }
 0x7d8   :  { %3390 = vmatprep.mubr.msk.bf16.mxu0 %vm341_vm1, %v1611_v26  ;;  %3387 = vmatpush3.bf16.msra.mxu0 %v3624_v11 }
 0x7d9   :  { %3388 = vmatprep.subr.bf16.mxu0 %v3625_v12 }
 0x7dc   :  { %3389 = vmatpush3.bf16.msra.mxu0 %v3625_v12 }
 0x7dd   :  { %3400 = vmatprep.subr.bf16.mxu0 %v4098_v0 }
 0x7df   :  { %3391 = vmatmul.mubr.msk.bf16.vlgmr.msra.gmra.mxu0 %vm341_vm1, %v4520_v29 }
 0x7e0   :  { %3402 = vmatprep.mubr.msk.bf16.mxu0 %vm4099_vm0, %v4098_v0 }
 0x897   :  { %v1603_v62 = vpop.f32.mrf.mxu0 }
 0x898   :  { %v1604_v5 = vadd.f32 %v3085_v1, %v1603_v62 }
 0x899   :  { %v3376_v2 = vpop.f32.mrf.mxu0 }
 0x89b   :  { %v1606_v57 = vpop.f32.mrf.mxu0 }
 0x89c   :  { %v1607_v63 = vadd.f32 %v3085_v1, %v1606_v57 }
 0x89d   :  { %v3377_v7 = vpop.f32.mrf.mxu0 }
 0x89e   :  { %v1610_v8 = vpack.c.bf16 %v1607_v63, %v1604_v5 }
 0x89f   :  { %v3392_v33 = vpop.f32.mrf.mxu0 }
 0x8a0   :  { %1979 = vrot.lane.b32.xlu0 %v1610_v8, %s4100_s28  ;;  %1869 = vrot.lane.b32.xlu1 %v1610_v8, %s4101_s27  ;;  %v2210_v10 = vrot.slane %v1610_v8, 4  ;;  %v1759_v35 = vadd.f32 %v3392_v33, %v3094_v34 }
 0x8a1   :  { %3397 = vmatmul.mubr.msk.bf16.vlgmr.msra.gmra.mxu1 %vm518_vm2, %v1610_v8  ;;  %v1750_v36 = vpop.f32.mrf.mxu0 }
 0x8a2   :  { %3407 = vmatpush3.bf16.xpose.msra.mxu1 %v1878_v9  ;;  %3408 = vmatprep.mubr.msk.bf16.mxu1 %vm4099_vm0, %v4098_v0  ;;  %v1751_v38 = vadd.f32 %v3094_v34, %v1750_v36 }
 0x8a3   :  { %3418 = vmatprep.subr.bf16.mxu1 %v4098_v0  ;;  %v3393_v37 = vpop.f32.mrf.mxu0 }
 0x8a4   :  { %2087 = vrot.lane.b32.xlu0 %v1610_v8, %s4102_s9  ;;  %1981 = vrot.lane.b32.xlu1 %v1691_v60, %s4100_s28  ;;  %v1762_v39 = vadd.f32 %v3393_v37, %v3094_v34 }
 0x8a5   :  { %v1753_v40 = vpop.f32.mrf.mxu0 }
 0x8a6   :  { %v4595_v41 = vpack.c.bf16 %v1762_v39, %v1759_v35  ;;  %v1754_v42 = vadd.f32 %v3094_v34, %v1753_v40 }
 0x8a8   :  { %2089 = vrot.lane.b32.xlu1 %v1691_v60, %s4102_s9  ;;  %2312 = vrot.lane.b32.xlu0 %v2210_v10, %s4101_s27  ;;  %v4597_v43 = vpack.c.bf16 %v1754_v42, %v1751_v38 }
 0x8aa   :  { %3401 = vmatpush3.bf16.msra.mxu0 %v4597_v43 }
 0x8ab   :  { %3412 = vmatprep.subr.bf16.mxu0 %v4098_v0 }
 0x8ac   :  { %2315 = vrot.lane.b32.xlu1 %v1692_v58, %s4101_s27  ;;  %2422 = vrot.lane.b32.xlu0 %v2210_v10, %s4100_s28 }
 0x8b0   :  { %2424 = vrot.lane.b32.xlu1 %v1692_v58, %s4100_s28  ;;  %2530 = vrot.lane.b32.xlu0 %v2210_v10, %s4102_s9 }
 0x8b4   :  { %2532 = vrot.lane.b32.xlu1 %v1692_v58, %s4102_s9 }
 0x912   :  { %v1870_v13 = vpop.permute.xlu1 %1869  ;;  %v1980_v18 = vpop.permute.xlu0 %1979 }
 0x913   :  { %3409 = vmatmul.mubr.msk.bf16.vlgmr.msra.gmra.mxu1 %vm518_vm2, %v1870_v13 }
 0x914   :  { %3420 = vmatprep.mubr.msk.bf16.mxu1 %vm4099_vm0, %v4098_v0 }
 0x916   :  { %v1982_v14 = vpop.permute.xlu1 %1981  ;;  %v2088_v20 = vpop.permute.xlu0 %2087 }
 0x917   :  { %v1987_v16 = vsel %vm518_vm2, %v1982_v14, 0 }
 0x918   :  { %3419 = vmatpush3.bf16.xpose.msra.mxu1 %v1987_v16 }
 0x919   :  { %3430 = vmatprep.subr.bf16.mxu1 %v4098_v0 }
 0x91a   :  { %v2090_v17 = vpop.permute.xlu1 %2089  ;;  %v2313_v22 = vpop.permute.xlu0 %2312 }
 0x91b   :  { %v2095_v19 = vsel %vm518_vm2, %v2090_v17, 0 }
 0x91e   :  { %v2316_v21 = vpop.permute.xlu1 %2315  ;;  %v2423_v25 = vpop.permute.xlu0 %2422 }
 0x91f   :  { %3421 = vmatmul.mubr.msk.bf16.vlgmr.msra.gmra.mxu1 %vm518_vm2, %v1980_v18  ;;  %v2321_v15 = vsel %vm518_vm2, %v2316_v21, 0 }
 0x920   :  { %3431 = vmatpush3.bf16.xpose.msra.mxu1 %v2095_v19  ;;  %3432 = vmatprep.mubr.msk.bf16.mxu1 %vm4099_vm0, %v4098_v0 }
 0x921   :  { %3442 = vmatprep.subr.bf16.mxu1 %v4098_v0 }
 0x922   :  { %v2425_v4 = vpop.permute.xlu1 %2424  ;;  %v2531_v27 = vpop.permute.xlu0 %2530 }
 0x923   :  { %v2430_v23 = vsel %vm518_vm2, %v2425_v4, 0 }
 0x926   :  { %v2533_v24 = vpop.permute.xlu1 %2532 }
 0x927   :  { %3433 = vmatmul.mubr.msk.bf16.vlgmr.msra.gmra.mxu1 %vm518_vm2, %v2088_v20  ;;  %v2538_v26 = vsel %vm518_vm2, %v2533_v24, 0 }
 0x928   :  { %3443 = vmatpush3.bf16.xpose.msra.mxu1 %v2215_v3  ;;  %3444 = vmatprep.mubr.msk.bf16.mxu1 %vm4099_vm0, %v4098_v0 }
 0x929   :  { %3454 = vmatprep.subr.bf16.mxu1 %v4098_v0 }
 0x92f   :  { %3445 = vmatmul.mubr.msk.bf16.vlgmr.msra.gmra.mxu1 %vm518_vm2, %v2210_v10 }
 0x930   :  { %3455 = vmatpush3.bf16.xpose.msra.mxu1 %v2321_v15  ;;  %3456 = vmatprep.mubr.msk.bf16.mxu1 %vm4099_vm0, %v4098_v0 }
 0x931   :  { %3466 = vmatprep.subr.bf16.mxu1 %v4098_v0 }
 0x937   :  { %3457 = vmatmul.mubr.msk.bf16.vlgmr.msra.gmra.mxu1 %vm518_vm2, %v2313_v22 }
 0x938   :  { %3467 = vmatpush3.bf16.xpose.msra.mxu1 %v2430_v23  ;;  %3468 = vmatprep.mubr.msk.bf16.mxu1 %vm4099_vm0, %v4098_v0 }
 0x939   :  { %3478 = vmatprep.subr.bf16.mxu1 %v4098_v0 }
 0x93f   :  { %3469 = vmatmul.mubr.msk.bf16.vlgmr.msra.gmra.mxu1 %vm518_vm2, %v2423_v25 }
 0x940   :  { %3479 = vmatpush3.bf16.xpose.msra.mxu1 %v2538_v26  ;;  %3480 = vmatprep.mubr.msk.bf16.mxu1 %vm4099_vm0, %v4098_v0 }
 0x941   :  { %3490 = vmatprep.subr.bf16.mxu1 %v4098_v0 }
 0x947   :  { %3481 = vmatmul.mubr.msk.bf16.vlgmr.msra.gmra.mxu1 %vm518_vm2, %v2531_v27 }
 0x948   :  { %3494 = vmatprep.mubr.msk.bf16.mxu1 %vm4099_vm0, %v4098_v0 }
 0x961   :  { %v1807_v28 = vpop.f32.mrf.mxu1 }
 0x962   :  { %v1813_v29 = vsel %vm970_vm4, %v1807_v28, -inf }
 0x963   :  { %1814 = vmax.xlane.f32.xlu1 %v1813_v29  ;;  %v3398_v30 = vpop.f32.mrf.mxu1 }
 0x965   :  { %v1810_v31 = vpop.f32.mrf.mxu1 }
 0x967   :  { %v3399_v32 = vpop.f32.mrf.mxu1 }
 0x9d3   :  { %v1914_v44 = vpop.f32.mrf.mxu1 }
 0x9d4   :  { %v1920_v45 = vsel %vm970_vm4, %v1914_v44, -inf }
 0x9d5   :  { %1921 = vmax.xlane.f32.xlu0 %v1920_v45  ;;  %v3410_v48 = vpop.f32.mrf.mxu1 }
 0x9d7   :  { %v1917_v49 = vpop.f32.mrf.mxu1 }
 0x9d9   :  { %v3411_v50 = vpop.f32.mrf.mxu1 }
 0x9df   :  { %v2023_v51 = vpop.f32.mrf.mxu1 }
 0x9e0   :  { %v2029_v52 = vsel %vm970_vm4, %v2023_v51, -inf }
 0x9e1   :  { %2030 = vmax.xlane.f32.xlu0 %v2029_v52  ;;  %v3422_v53 = vpop.f32.mrf.mxu1 }
 0x9e3   :  { %v2026_v54 = vpop.f32.mrf.mxu1 }
 0x9e5   :  { %v3423_v55 = vpop.f32.mrf.mxu1 }
 0x9e7   :  { %v2131_v56 = vpop.f32.mrf.mxu1 }
 0x9e8   :  { %v2137_v58 = vsel %vm970_vm4, %v2131_v56, -inf }
 0x9e9   :  { %2138 = vmax.xlane.f32.xlu1 %v2137_v58  ;;  %v3434_v59 = vpop.f32.mrf.mxu1 }
 0x9eb   :  { %v2134_v60 = vpop.f32.mrf.mxu1 }
 0x9ec   :  { %v1815_v61 = vpop.xlane.xlu1 %1814 }
 0x9ed   :  { %v1816_v62 = vsub.f32 %v1807_v28, %v1815_v61  ;;  %v3435_v1 = vpop.f32.mrf.mxu1 }
 0x9ef   :  { %v2251_v2 = vpop.f32.mrf.mxu1  ;;  %v1817_v57 = vmul.f32 1.442695, %v1816_v62 }
 0x9f0   :  { %v2257_v5 = vsel %vm970_vm4, %v2251_v2, -inf }
 0x9f1   :  { %2258 = vmax.xlane.f32.xlu0 %v2257_v5  ;;  %v3446_v63 = vpop.f32.mrf.mxu1  ;;  %3674 = vpow2.f32 %v1817_v57 }
 0x9f3   :  { %v2254_v6 = vpop.f32.mrf.mxu1 }
 0x9f5   :  { %v3447_v7 = vpop.f32.mrf.mxu1 }
 0x9f7   :  { %v4605_v8 = vpop.f32.mrf.mxu1 }
 0x9f8   :  { %v2363_v9 = vsel %vm970_vm4, %v4605_v8, -inf }
 0x9f9   :  { %2364 = vmax.xlane.f32.xlu1 %v2363_v9  ;;  %v3458_v10 = vpop.f32.mrf.mxu1 }
 0x9fb   :  { %v2360_v11 = vpop.f32.mrf.mxu1 }
 0x9fd   :  { %v3459_v12 = vpop.f32.mrf.mxu1 }
 0x9fe   :  { %v3675_v16 = vpop.eup %3674 }
 0x9ff   :  { %v2466_v13 = vpop.f32.mrf.mxu1  ;;  %v1819_v19 = vsel %vm970_vm4, %v3675_v16, 0.0 }
 0xa00   :  { %v2472_v14 = vsel %vm970_vm4, %v2466_v13, -inf }
 0xa01   :  { %2473 = vmax.xlane.f32.xlu0 %v2472_v14  ;;  %v3470_v17 = vpop.f32.mrf.mxu1 }
 0xa03   :  { %v2469_v18 = vpop.f32.mrf.mxu1 }
 0xa05   :  { %1820 = vadd.xlane.f32.xlu0 %v1819_v19  ;;  %v3471_v20 = vpop.f32.mrf.mxu1 }
 0xa07   :  { %v2574_v3 = vpop.f32.mrf.mxu1 }
 0xa08   :  { %v2580_v21 = vsel %vm970_vm4, %v2574_v3, -inf }
 0xa09   :  { %2581 = vmax.xlane.f32.xlu1 %v2580_v21  ;;  %v3482_v15 = vpop.f32.mrf.mxu1 }
 0xa0b   :  { %v2577_v4 = vpop.f32.mrf.mxu1 }
 0xa0d   :  { %v3483_v22 = vpop.f32.mrf.mxu1 }
 0xa1a   :  { %1933 = vrot.lane.b32.xlu1 %v4597_v43, %s4101_s27 }
 0xa1b   :  { %2041 = vrot.lane.b32.xlu0 %v4597_v43, %s4100_s28 }
 0xa5e   :  { %v1922_v23 = vpop.xlane.xlu0 %1921 }
 0xa5f   :  { %v1923_v24 = vsub.f32 %v1914_v44, %v1922_v23 }
 0xa61   :  { %v1924_v25 = vmul.f32 1.442695, %v1923_v24 }
 0xa63   :  { %3676 = vpow2.f32 %v1924_v25 }
 0xa6a   :  { %v2031_v26 = vpop.xlane.xlu0 %2030 }
 0xa6b   :  { %v2032_v27 = vsub.f32 %v2023_v51, %v2031_v26 }
 0xa6d   :  { %v2033_v28 = vmul.f32 1.442695, %v2032_v27 }
 0xa6f   :  { %3678 = vpow2.f32 %v2033_v28 }
 0xa70   :  { %v3677_v29 = vpop.eup %3676 }
 0xa71   :  { %v1926_v30 = vsel %vm970_vm4, %v3677_v29, 0.0 }
 0xa72   :  { %v2139_v31 = vpop.xlane.xlu1 %2138  ;;  %1927 = vadd.xlane.f32.xlu1 %v1926_v30 }
 0xa73   :  { %v2140_v32 = vsub.f32 %v2131_v56, %v2139_v31 }
 0xa75   :  { %v2141_v33 = vmul.f32 1.442695, %v2140_v32 }
 0xa77   :  { %3680 = vpow2.f32 %v2141_v33 }
 0xa7a   :  { %v2259_v34 = vpop.xlane.xlu0 %2258 }
 0xa7b   :  { %v2260_v35 = vsub.f32 %v2251_v2, %v2259_v34 }
 0xa7c   :  { %v3679_v36 = vpop.eup %3678 }
 0xa7d   :  { %v2261_v37 = vmul.f32 1.442695, %v2260_v35  ;;  %v2035_v38 = vsel %vm970_vm4, %v3679_v36, 0.0 }
 0xa7e   :  { %2036 = vadd.xlane.f32.xlu0 %v2035_v38 }
 0xa7f   :  { %3682 = vpow2.f32 %v2261_v37 }
 0xa82   :  { %v2365_v49 = vpop.xlane.xlu1 %2364 }
 0xa83   :  { %v2366_v58 = vsub.f32 %v4605_v8, %v2365_v49 }
 0xa84   :  { %v4618_v39 = vpop.eup %3680 }
 0xa85   :  { %v2143_v40 = vsel %vm970_vm4, %v4618_v39, 0.0  ;;  %v2367_v59 = vmul.f32 1.442695, %v2366_v58 }
 0xa86   :  { %2144 = vadd.xlane.f32.xlu1 %v2143_v40 }
 0xa8a   :  { %v2474_v42 = vpop.xlane.xlu0 %2473 }
 0xa8b   :  { %v2475_v55 = vsub.f32 %v2466_v13, %v2474_v42 }
 0xa8c   :  { %v4622_v44 = vpop.eup %3682 }
 0xa8d   :  { %v2263_v45 = vsel %vm970_vm4, %v4622_v44, 0.0  ;;  %v2476_v56 = vmul.f32 1.442695, %v2475_v55 }
 0xa8e   :  { %v1821_v48 = vpop.xlane.xlu0 %1820  ;;  %2264 = vadd.xlane.f32.xlu0 %v2263_v45 }
 0xa8f   :  { %3684 = vrcp.f32 %v1821_v48 }
 0xa90   :  { %3686 = vpow2.f32 %v2476_v56 }
 0xa91   :  { %3688 = vpow2.f32 %v2367_v59 }
 0xa92   :  { %v2582_v50 = vpop.xlane.xlu1 %2581  ;;  %v2042_v6 = vpop.permute.xlu0 %2041 }
 0xa93   :  { %v2583_v60 = vsub.f32 %v2574_v3, %v2582_v50 }
 0xa95   :  { %v2584_v61 = vmul.f32 1.442695, %v2583_v60 }
 0xa96   :  { %v1934_v54 = vpop.permute.xlu1 %1933 }
 0xa97   :  { %2376 = vrot.lane.b32.xlu1 %v4595_v41, %s4101_s27  ;;  %3690 = vpow2.f32 %v2584_v61  ;;  %v3626_v61 = vld [vmem:[%s4763_s22 + $0x8] sm:$0xff]  }
 0xa98   :  { %3491 = vmatpush3.bf16.msra.mxu1 %v3626_v61 }
 0xa99   :  { %3492 = vmatprep.subr.bf16.mxu1 %v4098_v0 }
 0xa9c   :  { %v3685_v51 = vpop.eup %3684 }
 0xa9d   :  { %v1823_v52 = vmul.f32 %v3685_v51, %v3675_v16  ;;  %v4635_v62 = vpop.eup %3686 }
 0xa9e   :  { %v2478_v1 = vsel %vm970_vm4, %v4635_v62, 0.0  ;;  %v3689_v2 = vpop.eup %3688 }
 0xa9f   :  { %v1824_v53 = vpack.c.bf16 %v1823_v52, %v1823_v52 }
 0xaa1   :  { %3403 = vmatmul.mubr.msk.bf16.vlgmr.msra.gmra.mxu0 %vm970_vm4, %v1824_v53 }
 0xaa2   :  { %3413 = vmatpush3.bf16.msra.mxu0 %v1934_v54  ;;  %3414 = vmatprep.mubr.msk.bf16.mxu0 %vm4099_vm0, %v4098_v0 }
 0xaa3   :  { %3424 = vmatprep.subr.bf16.mxu0 %v4098_v0 }
 0xaa4   :  { %2149 = vrot.lane.b32.xlu0 %v4597_v43, %s4102_s9  ;;  %v2369_v43 = vsel %vm970_vm4, %v3689_v2, 0.0  ;;  %v4640_v57 = vpop.eup %3690 }
 0xaa5   :  { %v2586_v5 = vsel %vm970_vm4, %v4640_v57, 0.0 }
 0xabb   :  { %2479 = vadd.xlane.f32.xlu1 %v2478_v1 }
 0xac3   :  { %2370 = vadd.xlane.f32.xlu0 %v2369_v43 }
 0xac7   :  { %2587 = vadd.xlane.f32.xlu0 %v2586_v5 }
 0xacc   :  { %2592 = vrot.lane.b32.xlu1 %v4595_v41, %s4102_s9 }
 0xadd   :  { %2484 = vrot.lane.b32.xlu0 %v4595_v41, %s4100_s28 }
 0xafb   :  { %v1928_v63 = vpop.xlane.xlu1 %1927 }
 0xafc   :  { %3692 = vrcp.f32 %v1928_v63 }
 0xb07   :  { %v2037_v7 = vpop.xlane.xlu0 %2036 }
 0xb08   :  { %3694 = vrcp.f32 %v2037_v7 }
 0xb09   :  { %v3693_v8 = vpop.eup %3692 }
 0xb0a   :  { %v1930_v9 = vmul.f32 %v3693_v8, %v3677_v29 }
 0xb0c   :  { %v1931_v10 = vpack.c.bf16 %v1930_v9, %v1930_v9 }
 0xb0e   :  { %3415 = vmatmul.mubr.msk.bf16.vlgmr.msra.gmra.mxu0 %vm970_vm4, %v1931_v10 }
 0xb0f   :  { %3425 = vmatpush3.bf16.msra.mxu0 %v2042_v6  ;;  %v2145_v11 = vpop.xlane.xlu1 %2144  ;;  %3426 = vmatprep.mubr.msk.bf16.mxu0 %vm4099_vm0, %v4098_v0 }
 0xb10   :  { %3696 = vrcp.f32 %v2145_v11  ;;  %3436 = vmatprep.subr.bf16.mxu0 %v4098_v0 }
 0xb13   :  { %v2377_v4 = vpop.permute.xlu1 %2376 }
 0xb15   :  { %v3695_v12 = vpop.eup %3694 }
 0xb16   :  { %v2039_v13 = vmul.f32 %v3695_v12, %v3679_v36 }
 0xb17   :  { %v2265_v14 = vpop.xlane.xlu0 %2264 }
 0xb18   :  { %3698 = vrcp.f32 %v2265_v14  ;;  %v2040_v16 = vpack.c.bf16 %v2039_v13, %v2039_v13 }
 0xb1a   :  { %3427 = vmatmul.mubr.msk.bf16.vlgmr.msra.gmra.mxu0 %vm970_vm4, %v2040_v16 }
 0xb1b   :  { %v2150_v17 = vpop.permute.xlu0 %2149  ;;  %3438 = vmatprep.mubr.msk.bf16.mxu0 %vm4099_vm0, %v4098_v0 }
 0xb1c   :  { %3437 = vmatpush3.bf16.msra.mxu0 %v2150_v17 }
 0xb1d   :  { %v3697_v18 = vpop.eup %3696  ;;  %3448 = vmatprep.subr.bf16.mxu0 %v4098_v0 }
 0xb1e   :  { %v2147_v19 = vmul.f32 %v3697_v18, %v4618_v39 }
 0xb20   :  { %v2148_v20 = vpack.c.bf16 %v2147_v19, %v2147_v19 }
 0xb22   :  { %3439 = vmatmul.mubr.msk.bf16.vlgmr.msra.gmra.mxu0 %vm970_vm4, %v2148_v20 }
 0xb23   :  { %3449 = vmatpush3.bf16.msra.mxu0 %v4595_v41  ;;  %3450 = vmatprep.mubr.msk.bf16.mxu0 %vm4099_vm0, %v4098_v0 }
 0xb24   :  { %3460 = vmatprep.subr.bf16.mxu0 %v4098_v0 }
 0xb25   :  { %v3699_v3 = vpop.eup %3698 }
 0xb26   :  { %v2267_v21 = vmul.f32 %v3699_v3, %v4622_v44 }
 0xb28   :  { %v2268_v15 = vpack.c.bf16 %v2267_v21, %v2267_v21 }
 0xb2a   :  { %3451 = vmatmul.mubr.msk.bf16.vlgmr.msra.gmra.mxu0 %vm970_vm4, %v2268_v15 }
 0xb2b   :  { %3461 = vmatpush3.bf16.msra.mxu0 %v2377_v4  ;;  %3462 = vmatprep.mubr.msk.bf16.mxu0 %vm4099_vm0, %v4098_v0 }
 0xb2c   :  { %3472 = vmatprep.subr.bf16.mxu0 %v4098_v0 }
 0xb44   :  { %v2480_v41 = vpop.xlane.xlu1 %2479 }
 0xb48   :  { %v2593_v35 = vpop.permute.xlu1 %2592 }
 0xb4c   :  { %v2371_v22 = vpop.xlane.xlu0 %2370 }
 0xb4d   :  { %3700 = vrcp.f32 %v2371_v22 }
 0xb4e   :  { %3702 = vrcp.f32 %v2480_v41 }
 0xb50   :  { %v2588_v23 = vpop.xlane.xlu0 %2587 }
 0xb51   :  { %3704 = vrcp.f32 %v2588_v23 }
 0xb54   :  { %v2485_v28 = vpop.permute.xlu0 %2484 }
 0xb5a   :  { %v3701_v24 = vpop.eup %3700 }
 0xb5b   :  { %v2373_v25 = vmul.f32 %v3701_v24, %v3689_v2  ;;  %v3703_v27 = vpop.eup %3702 }
 0xb5c   :  { %v2482_v29 = vmul.f32 %v3703_v27, %v4635_v62  ;;  %v3115_v27 = vld [vmem:[%s4764_s13] ss:$0 sm:$0xff] }
 0xb5d   :  { %v2374_v26 = vpack.c.bf16 %v2373_v25, %v2373_v25 }
 0xb5e   :  { %v2483_v32 = vpack.c.bf16 %v2482_v29, %v2482_v29  ;;  %v3705_v33 = vpop.eup %3704 }
 0xb5f   :  { %3463 = vmatmul.mubr.msk.bf16.vlgmr.msra.gmra.mxu0 %vm970_vm4, %v2374_v26  ;;  %v2590_v37 = vmul.f32 %v3705_v33, %v4640_v57  ;;  %v3627_v57 = vld [vmem:[%s4763_s22] sm:$0xff]  }
 0xb60   :  { %3473 = vmatpush3.bf16.msra.mxu0 %v2485_v28  ;;  %3474 = vmatprep.mubr.msk.bf16.mxu0 %vm4099_vm0, %v4098_v0 }
 0xb61   :  { %3484 = vmatprep.subr.bf16.mxu0 %v4098_v0  ;;  %v4672_v30 = vpop.f32.mrf.mxu0  ;;  %v2591_v38 = vpack.c.bf16 %v2590_v37, %v2590_v37  ;;  %3493 = vmatpush3.bf16.msra.mxu1 %v3627_v57  ;;  %v3119_v57 = vld [vmem:[%s4766_s29] ss:$0 sm:$0xff] }
 0xb62   :  { %3506 = vmatprep.subr.bf16.mxu1 %v4098_v0 }
 0xb63   :  { %v3404_v31 = vpop.f32.mrf.mxu0 }
 0xb65   :  { %v1865_v34 = vpop.f32.mrf.mxu0 }
 0xb67   :  { %3475 = vmatmul.mubr.msk.bf16.vlgmr.msra.gmra.mxu0 %vm970_vm4, %v2483_v32  ;;  %v3405_v36 = vpop.f32.mrf.mxu0 }
 0xb68   :  { %3485 = vmatpush3.bf16.msra.mxu0 %v2593_v35  ;;  %3486 = vmatprep.mubr.msk.bf16.mxu0 %vm4099_vm0, %v4098_v0 }
 0xb69   :  { %3498 = vmatprep.subr.bf16.mxu0 %v4098_v0 }
 0xb6f   :  { %3487 = vmatmul.mubr.msk.bf16.vlgmr.msra.gmra.mxu0 %vm970_vm4, %v2591_v38 }
 0xb70   :  { %3502 = vmatprep.mubr.msk.bf16.mxu0 %vm4099_vm0, %v4098_v0 }
 0xbce   :  { %v1973_v39 = vpop.f32.mrf.mxu0 }
 0xbd0   :  { %v3416_v40 = vpop.f32.mrf.mxu0 }
 0xbd2   :  { %v1976_v42 = vpop.f32.mrf.mxu0 }
 0xbd4   :  { %v3417_v44 = vpop.f32.mrf.mxu0 }
 0xbda   :  { %v2081_v45 = vpop.f32.mrf.mxu0 }
 0xbdc   :  { %v3428_v48 = vpop.f32.mrf.mxu0 }
 0xbde   :  { %v2084_v49 = vpop.f32.mrf.mxu0 }
 0xbe0   :  { %v3429_v50 = vpop.f32.mrf.mxu0 }
 0xbe1   :  { %v3628_v50 = vld [vmem:[#allocation25 + $0x8] sm:$0xff]  }
 0xbe2   :  { %v2189_v51 = vpop.f32.mrf.mxu0  ;;  %3499 = vmatpush3.bf16.msra.mxu0 %v3628_v50 }
 0xbe3   :  { %3500 = vmatprep.subr.bf16.mxu0 %v4098_v0 }
 0xbe4   :  { %v3440_v52 = vpop.f32.mrf.mxu0 }
 0xbe5   :  { %v3630_v52 = vld [vmem:[%s4765_s23 + $0x38] sm:$0xff]  }
 0xbe6   :  { %v2192_v53 = vpop.f32.mrf.mxu0 }
 0xbe7   :  { %v3631_v53 = vld [vmem:[%s4765_s23 + $0x30] sm:$0xff]  }
 0xbe8   :  { %v3441_v54 = vpop.f32.mrf.mxu0 }
 0xbe9   :  { %v3632_v54 = vld [vmem:[%s4765_s23 + $0x28] sm:$0xff]  }
 0xbea   :  { %v2306_v55 = vpop.f32.mrf.mxu0 }
 0xbec   :  { %v3452_v56 = vpop.f32.mrf.mxu0 }
 0xbed   :  { %v3634_v56 = vld [vmem:[%s4765_s23 + $0x18] sm:$0xff]  }
 0xbee   :  { %v2309_v58 = vpop.f32.mrf.mxu0 }
 0xbf0   :  { %v3453_v59 = vpop.f32.mrf.mxu0 }
 0xc1f   :  { %v2416_v60 = vpop.f32.mrf.mxu0 }
 0xc20   :  { %v3597_v62 = vpack.i.bf16 %v2416_v60, %v1973_v39 }
 0xc21   :  { %v3464_v1 = vpop.f32.mrf.mxu0 }
 0xc22   :  { %3598 = vrot.lane.b32.xlu1 %v3597_v62, %s4103_s3 }
 0xc23   :  { %v2419_v2 = vpop.f32.mrf.mxu0 }
 0xc25   :  { %v3465_v43 = vpop.f32.mrf.mxu0 }
 0xc27   :  { %v2524_v5 = vpop.f32.mrf.mxu0 }
 0xc28   :  { %v3602_v63 = vpack.i.bf16 %v2524_v5, %v2081_v45 }
 0xc29   :  { %v3476_v6 = vpop.f32.mrf.mxu0 }
 0xc2a   :  { %3603 = vrot.lane.b32.xlu1 %v3602_v63, %s4104_s16 }
 0xc2b   :  { %v2527_v7 = vpop.f32.mrf.mxu0 }
 0xc2c   :  { %v3120_v7 = vld [vmem:[%s4767_s21] ss:$0 sm:$0xff] }
 0xc2d   :  { %v3477_v8 = vpop.f32.mrf.mxu0 }
 0xc2f   :  { %v2632_v9 = vpop.f32.mrf.mxu0 }
 0xc30   :  { %v3607_v10 = vpack.i.bf16 %v2632_v9, %v2189_v51  ;;  %v3629_v51 = vld [vmem:[#allocation25] sm:$0xff]  }
 0xc31   :  { %v3488_v11 = vpop.f32.mrf.mxu0  ;;  %3501 = vmatpush3.bf16.msra.mxu0 %v3629_v51  ;;  %v3134_v51 = vld [vmem:[%s4251_s14] ss:$0 sm:$0xff] }
 0xc32   :  { %3608 = vrot.lane.b32.xlu1 %v3607_v10, %s4105_s19 }
 0xc33   :  { %v2635_v12 = vpop.f32.mrf.mxu0 }
 0xc34   :  { %v3635_v12 = vld [vmem:[%s4765_s23 + $0x10] sm:$0xff]  }
 0xc35   :  { %v3489_v13 = vpop.f32.mrf.mxu0 }
 0xc36   :  { %v3636_v13 = vld [vmem:[%s4765_s23 + $0x8] sm:$0xff]  }
 0xc94   :  { %v3599_v14 = vpop.permute.xlu1 %3598 }
 0xc95   :  { %v3601_v17 = vunpack.i.h.bf16 %v3599_v14  ;;  %v3600_v18 = vunpack.i.l.bf16 %v3599_v14  ;;  %v3637_v14 = vld [vmem:[%s4765_s23] sm:$0xff]  }
 0xc97   :  { %v2650_v21 = vsel %vm518_vm2, %v2306_v55, %v3601_v17  ;;  %v2207_v15 = vsel %vm518_vm2, %v4672_v30, %v3600_v18  ;;  %v3633_v55 = vld [vmem:[%s4765_s23 + $0x20] sm:$0xff]  }
 0xc9c   :  { %v3604_v16 = vpop.permute.xlu1 %3603 }
 0xc9d   :  { %v3606_v19 = vunpack.i.h.bf16 %v3604_v16  ;;  %v3605_v20 = vunpack.i.l.bf16 %v3604_v16  ;;  %v3121_v16 = vld [vmem:[%s4768_s1] ss:$0 sm:$0xff] }
 0xc9f   :  { %v2651_v41 = vsel %vm970_vm4, %v2650_v21, %v3606_v19  ;;  %v2208_v23 = vsel %vm970_vm4, %v2207_v15, %v3605_v20 }
 0xca4   :  { %v3609_v3 = vpop.permute.xlu1 %3608 }
 0xca5   :  { %v3611_v4 = vunpack.i.h.bf16 %v3609_v3  ;;  %v3610_v22 = vunpack.i.l.bf16 %v3609_v3 }
 0xca7   :  { %v2652_v24 = vsel %vm972_vm5, %v2651_v41, %v3611_v4  ;;  %v2209_v25 = vsel %vm972_vm5, %v2208_v23, %v3610_v22  ;;  %v3125_v41 = vld [vmem:[%s4246_s17] ss:$0 sm:$0xff]  ;;  %s4106_s17 = smov [#allocation26]  }
 0xca8   :  { %v2653_v26 = vpack.c.bf16 %v2652_v24, %v2209_v25  ;;  %s3003_s30 = sshll.u32 %s4106_s17, 4  ;;  %s3004_s30 = int_to_ptr.vmem [resolvable:$true] %s3003_s30 }
 0xca9   :  { %s4014_s2 = scalar_lea.vmem %s3004_s30, 256  ;;  %p4019_p6 = scmp.lt.s32.totalorder %s3004_s30, %s3004_s30 }
 0xcaa   :  { %3495 = vmatmul.mubr.msk.bf16.vlgmr.msra.gmra.mxu1 %vm341_vm1, %v2653_v26  ;;  %p4015_p5 = scmp.ne.s32.totalorder %s3004_s30, %s4014_s2  ;;  %p4020_p7 = scmp.lt.s32.totalorder %s4014_s2, %s4014_s2 }
 0xcab   :  { %3522 = vmatprep.mubr.msk.bf16.mxu1 %vm4099_vm0, %v4098_v0  ;;  %3507 = vmatpush3.bf16.msra.mxu1 %v3630_v52 }
 0xcac   :  { %3508 = vmatprep.subr.bf16.mxu1 %v4098_v0  ;;  %p4021_p8 = por %p4020_p7, %p4019_p6 }
 0xcae   :  { %p4022_p9 = pnand %p4021_p8, %p4015_p5 }
 0xcaf   :  { %3509 = vmatpush3.bf16.msra.mxu1 %v3631_v53  ;;  %v3135_v53 = vld [vmem:[%s4256_s25] ss:$0 sm:$0xff] }
 0xcb0   :  { %3510 = vmatprep.subr.bf16.mxu1 %v4098_v0 }
 0xcb3   :  { %3511 = vmatpush3.bf16.msra.mxu1 %v3632_v54 }
 0xcb4   :  { %3512 = vmatprep.subr.bf16.mxu1 %v4098_v0 }
 0xcb7   :  { %3513 = vmatpush3.bf16.msra.mxu1 %v3633_v55 }
 0xcb8   :  { %3514 = vmatprep.subr.bf16.mxu1 %v4098_v0 }
 0xcbb   :  { %3515 = vmatpush3.bf16.msra.mxu1 %v3634_v56 }
 0xcbc   :  { %3516 = vmatprep.subr.bf16.mxu1 %v4098_v0 }
 0xcbf   :  { %3517 = vmatpush3.bf16.msra.mxu1 %v3635_v12 }
 0xcc0   :  { %3518 = vmatprep.subr.bf16.mxu1 %v4098_v0 }
 0xcc3   :  { %3519 = vmatpush3.bf16.msra.mxu1 %v3636_v13 }
 0xcc4   :  { %3520 = vmatprep.subr.bf16.mxu1 %v4098_v0 }
 0xcc7   :  { %3521 = vmatpush3.bf16.msra.mxu1 %v3637_v14 }
 0xd6a   :  { %v2714_v28 = vpop.f32.mrf.mxu1 }
 0xd6b   :  { %v2715_v29 = vadd.f32 %v3115_v27, %v2714_v28 }
 0xd6c   :  { %v3496_v30 = vpop.f32.mrf.mxu1 }
 0xd6d   :  { %v2721_v31 = vadd.f32 %v2715_v29, %v4529_v46 }
 0xd6e   :  { %v2717_v32 = vpop.f32.mrf.mxu1 }
 0xd6f   :  { %v2718_v33 = vadd.f32 %v3115_v27, %v2717_v32  ;;  %v2725_v34 = vsel %vm341_vm1, %v2721_v31, 0.0 }
 0xd70   :  { %2726 = vadd.xlane.f32.xlu0 %v2725_v34  ;;  %v3497_v35 = vpop.f32.mrf.mxu1 }
 0xd71   :  { %v2722_v36 = vadd.f32 %v2718_v33, %v4531_v47 }
 0xd73   :  { %v2728_v37 = vsel %vm341_vm1, %v2722_v36, 0.0 }
 0xd74   :  { %2729 = vadd.xlane.f32.xlu1 %v2728_v37 }
 0xdf9   :  { %v2727_v38 = vpop.xlane.xlu0 %2726 }
 0xdfa   :  { %v2731_v39 = vmul.f32 0.03125, %v2727_v38 }
 0xdfc   :  { %v2733_v40 = vsub.f32 %v2721_v31, %v2731_v39 }
 0xdfd   :  { %v2730_v42 = vpop.xlane.xlu1 %2729 }
 0xdfe   :  { %v2732_v44 = vmul.f32 0.03125, %v2730_v42  ;;  %v2735_v45 = vmul.f32 %v2733_v40, %v2733_v40 }
 0xe00   :  { %v2734_v46 = vsub.f32 %v2722_v36, %v2732_v44  ;;  %v2737_v48 = vsel %vm341_vm1, %v2735_v45, 0.0 }
 0xe01   :  { %2738 = vadd.xlane.f32.xlu0 %v2737_v48 }
 0xe02   :  { %v2736_v49 = vmul.f32 %v2734_v46, %v2734_v46 }
 0xe04   :  { %v2740_v47 = vsel %vm341_vm1, %v2736_v49, 0.0 }
 0xe05   :  { %2741 = vadd.xlane.f32.xlu0 %v2740_v47 }
 0xe8a   :  { %v2739_v58 = vpop.xlane.xlu0 %2738 }
 0xe8b   :  { %v2743_v59 = vmul.f32 0.03125, %v2739_v58 }
 0xe8d   :  { %v2745_v60 = vadd.f32 1e-05, %v2743_v59 }
 0xe8e   :  { %v2742_v61 = vpop.xlane.xlu0 %2741 }
 0xe8f   :  { %3706 = vrsqrt.f32 %v2745_v60  ;;  %v2744_v62 = vmul.f32 0.03125, %v2742_v61 }
 0xe91   :  { %v2746_v1 = vadd.f32 1e-05, %v2744_v62 }
 0xe93   :  { %3708 = vrsqrt.f32 %v2746_v1 }
 0xe9c   :  { %v3707_v2 = vpop.eup %3706 }
 0xe9d   :  { %v2749_v43 = vmul.f32 %v3707_v2, %v2733_v40 }
 0xe9f   :  { %v2757_v6 = vmul.f32 %v3119_v57, %v2749_v43 }
 0xea0   :  { %v3709_v5 = vpop.eup %3708 }
 0xea1   :  { %v2750_v63 = vmul.f32 %v3709_v5, %v2734_v46  ;;  %v2765_v9 = vadd.f32 %v3120_v7, %v2757_v6 }
 0xea3   :  { %v2758_v8 = vmul.f32 %v3119_v57, %v2750_v63 }
 0xea5   :  { %v2766_v10 = vadd.f32 %v3120_v7, %v2758_v8 }
 0xea7   :  { %v2767_v11 = vpack.c.bf16 %v2766_v10, %v2765_v9 }
 0xea9   :  { %3503 = vmatmul.mubr.msk.bf16.vlgmr.msra.gmra.mxu0 %vm341_vm1, %v2767_v11 }
 0xf69   :  { %v2828_v17 = vpop.f32.mrf.mxu0 }
 0xf6a   :  { %v2829_v19 = vadd.f32 %v3121_v16, %v2828_v17 }
 0xf6b   :  { %v3504_v18 = vpop.f32.mrf.mxu0 }
 0xf6c   :  { %v2835_v15 = vmax.f32 %v2829_v19, 0.0 }
 0xf6d   :  { %v2831_v20 = vpop.f32.mrf.mxu0 }
 0xf6e   :  { %v2832_v3 = vadd.f32 %v3121_v16, %v2831_v20 }
 0xf6f   :  { %v3505_v21 = vpop.f32.mrf.mxu0 }
 0xf70   :  { %v2836_v4 = vmax.f32 %v2832_v3, 0.0 }
 0xf72   :  { %v2837_v22 = vpack.c.bf16 %v2836_v4, %v2835_v15 }
 0xf74   :  { %3523 = vmatmul.mubr.bf16.vlgmr.msra.gmra.mxu1 %v2837_v22 }
0x1034   :  { %v2943_v23 = vpop.f32.mrf.mxu1 }
0x1035   :  { %v2944_v24 = vadd.f32 %v3125_v41, %v2943_v23 }
0x1036   :  { %v3524_v25 = vpop.f32.mrf.mxu1 }
0x1037   :  { %v2950_v26 = vadd.f32 %v2944_v24, %v2765_v9 }
0x1038   :  { %v2946_v27 = vpop.f32.mrf.mxu1 }
0x1039   :  { %v2947_v0 = vadd.f32 %v3125_v41, %v2946_v27  ;;  %v2954_v28 = vsel %vm341_vm1, %v2950_v26, 0.0 }
0x103a   :  { %2955 = vadd.xlane.f32.xlu1 %v2954_v28  ;;  %v3525_v29 = vpop.f32.mrf.mxu1 }
0x103b   :  { %v2951_v30 = vadd.f32 %v2947_v0, %v2766_v10 }
0x103d   :  { %v2957_v31 = vsel %vm341_vm1, %v2951_v30, 0.0 }
0x103e   :  { %2958 = vadd.xlane.f32.xlu0 %v2957_v31 }
0x10c3   :  { %v2956_v32 = vpop.xlane.xlu1 %2955 }
0x10c4   :  { %v2960_v33 = vmul.f32 0.03125, %v2956_v32 }
0x10c6   :  { %v2962_v34 = vsub.f32 %v2950_v26, %v2960_v33 }
0x10c7   :  { %v2959_v35 = vpop.xlane.xlu0 %2958 }
0x10c8   :  { %v2961_v36 = vmul.f32 0.03125, %v2959_v35  ;;  %v2964_v37 = vmul.f32 %v2962_v34, %v2962_v34 }
0x10ca   :  { %v2963_v38 = vsub.f32 %v2951_v30, %v2961_v36  ;;  %v2966_v39 = vsel %vm341_vm1, %v2964_v37, 0.0 }
0x10cb   :  { %2967 = vadd.xlane.f32.xlu1 %v2966_v39 }
0x10cc   :  { %v2965_v40 = vmul.f32 %v2963_v38, %v2963_v38 }
0x10ce   :  { %v2969_v42 = vsel %vm341_vm1, %v2965_v40, 0.0 }
0x10cf   :  { %2970 = vadd.xlane.f32.xlu0 %v2969_v42 }
0x1154   :  { %v2968_v44 = vpop.xlane.xlu1 %2967 }
0x1155   :  { %v2972_v45 = vmul.f32 0.03125, %v2968_v44 }
0x1157   :  { %v2974_v46 = vadd.f32 1e-05, %v2972_v45 }
0x1158   :  { %v2971_v48 = vpop.xlane.xlu0 %2970 }
0x1159   :  { %3710 = vrsqrt.f32 %v2974_v46  ;;  %v2973_v49 = vmul.f32 0.03125, %v2971_v48 }
0x115b   :  { %v2975_v47 = vadd.f32 1e-05, %v2973_v49 }
0x115d   :  { %3712 = vrsqrt.f32 %v2975_v47 }
0x1166   :  { %v3711_v50 = vpop.eup %3710 }
0x1167   :  { %v2978_v52 = vmul.f32 %v3711_v50, %v2962_v34 }
0x1169   :  { %v2986_v54 = vmul.f32 %v3134_v51, %v2978_v52 }
0x116a   :  { %v3713_v55 = vpop.eup %3712 }
0x116b   :  { %v2979_v56 = vmul.f32 %v3713_v55, %v2963_v38  ;;  %v2994_v58 = vadd.f32 %v3135_v53, %v2986_v54 }
0x116d   :  { %v2987_v59 = vmul.f32 %v3134_v51, %v2979_v56  ;;  %2996 = vst.msk [vmem:[#allocation26] sm:$0xff] %vm341_vm1, %v2994_v58 }
0x116f   :  { %v2995_v60 = vadd.f32 %v3135_v53, %v2987_v59 }
0x1171   :  { %2997 = vst.msk [vmem:[#allocation26 + $0x8] sm:$0xff] %vm341_vm1, %v2995_v60 }
0x1172   :  { %4025 = shalt.err (!%p4022_p9)
}
0x1173   :  { %s4107_s25 = smov 128  }
0x1174   :  { %3009 = dma.vmem_to_hbm [thread:$0]  %s3004_s30, 256, %s4261_s5, [#allocation4], %s4107_s25, %s4107_s25, %s4103_s3  }
0x1175   :  { %4050 = dma.done.wait [#allocation4], 256  }
0x1176   :  { %4051 = vsyncadd [#allocation4], 4294967040 }
0x1177   :  { %3013 = vsyncpa [#allocation3], 1 }
0x1178   :  { %3014 = vsyncpa [#allocation6], 1 }
0x1179   :  { %3015 = vsyncpa [#allocation9], 1 }
0x117a   :  { %3016 = vsyncpa [#allocation12], 1 }
0x117b   :  { %3017 = vsyncpa [#allocation15], 1 }
0x117c   :  { %3018 = vsyncpa [#allocation18], 1 }
0x117d   :  { %3019 = vsyncpa [#allocation21], 1 }
0x117e   :  { %3020 = vsyncpa [#allocation24], 1 }
0x117f   :  { %3021 = vsyncpa [#allocation4], 1 }

</bundles_post_ra>
